<compile_context>
chip_gen: v7x
topology: tpu7x:2x2x1
jax: 0.10.0
libtpu: 0.0.40
codegen_flags: <defaults>
</compile_context>

<pallas_src>
import functools

import jax
import jax.numpy as jnp
from jax import lax
from jax.experimental import pallas as pl
from jax.experimental.pallas import tpu as pltpu


def _erf(x):
    # Abramowitz-Stegun 7.1.26 polynomial, |error| < 1.5e-7 (well inside the 1e-3
    # tolerance vs the exact-erf reference).  exp goes to the EUP slot.
    a1, a2, a3, a4, a5 = 0.254829592, -0.284496736, 1.421413741, -1.453152027, 1.061405429
    p = 0.3275911
    ax = jnp.abs(x)
    t = 1.0 / (1.0 + p * ax)
    poly = ((((a5 * t + a4) * t + a3) * t + a2) * t + a1) * t
    y = 1.0 - poly * jnp.exp(-ax * ax)
    return jnp.where(x >= 0, y, -y)


def _gelu_exact(x):
    return 0.5 * x * (1.0 + _erf(x * 0.7071067811865476))


def _dwffn_kernel(x_ref, mask_ref, w1_ref, wdw_ref, bdw_ref, wr_ref,
                  o_ref, s1p_ref, acc_ref, *, C, D, H, W, DC):
    # x_ref   : VMEM (C, S)            input for batch n, spatial flattened (S = D*H*W)
    # mask_ref: VMEM (1, S)            1.0 on interior voxels (pad3d placement), else 0.0
    # w1_ref  : VMEM (2C, C)           stacked 1x1 weights [passthrough ; gate]
    # wdw_ref : VMEM (2C, 27)          stacked depthwise 3x3x3 weights (tap = kd*9+kh*3+kw)
    # bdw_ref : VMEM (2C, 1)           effective depthwise bias (1x1 bias folded in)
    # wr_ref  : VMEM (C, C)            rectifier 1x1 weight (bias cancels under InstanceNorm)
    # o_ref   : VMEM (C, S)            output for batch n
    # s1p_ref : VMEM (2C, S + 2*HW)    lane-padded stage-1 output (zero d-row each side)
    # acc_ref : VMEM (2C, S)           depthwise output in pad3d layout
    S = D * H * W
    HW = H * W
    f32 = jnp.float32

    # ---- Stage 1: both 1x1 channel-mixing convs as a single MXU matmul ----
    s1 = jnp.dot(w1_ref[...], x_ref[...].astype(f32),
                 preferred_element_type=f32)                          # (2C, S)

    # Lane-padded copy of s1: one zero d-row (HW lanes) on each side, so the depth
    # offsets of the 3x3x3 taps become vreg-aligned lane slices (HW % 128 == 0 here).
    s1p_ref[:, :HW] = jnp.zeros((2 * C, HW), f32)
    s1p_ref[:, HW:HW + S] = s1
    s1p_ref[:, HW + S:] = jnp.zeros((2 * C, HW), f32)

    wdw = wdw_ref[...]                                                # (2C, 27)
    wcol = [wdw[:, t:t + 1] for t in range(27)]                       # hoisted tap columns
    bdw = bdw_ref[...]                                                # (2C, 1)

    # ---- Stage 2: depthwise 3x3x3 "valid" conv, tiled over strips of DC d-rows ----
    # Per strip: 8 lane rolls (XLU) of the (2C, DC*HW + 2*HW) window; the kd offsets are
    # static vreg-aligned slices of the rolled window; 27 broadcast MACs on the VPU.
    # The result lands directly in the pad3d layout; border voxels hold finite garbage
    # (padding rows are zero) and are masked out downstream.
    n_strips = D // DC
    CHUNK = DC * HW
    LW = CHUNK + 2 * HW
    for strip in range(n_strips):
        s0 = strip * CHUNK
        win = s1p_ref[:, s0:s0 + LW]                                  # aligned vld
        acc = wcol[13] * win[:, HW:HW + CHUNK]                        # center tap (kd=kh=kw=1)
        for kh in range(3):
            for kw in range(3):
                off = (kh - 1) * W + (kw - 1)
                r = win if off == 0 else pltpu.roll(win, shift=(-off) % LW, axis=1)
                for kd in range(3):
                    t = kd * 9 + kh * 3 + kw
                    if t == 13:
                        continue
                    acc = acc + wcol[t] * r[:, kd * HW:kd * HW + CHUNK]
        acc_ref[:, s0:s0 + CHUNK] = acc + bdw

    # ---- Stage 3: gate InstanceNorm over the valid region + exact GELU, pt * gate ----
    accv = acc_ref[...]                                               # (2C, S)
    pt = accv[:C, :]                                                  # passthrough branch
    g = accv[C:, :]                                                   # gate branch
    mask = mask_ref[...]                                              # (1, S)
    nvalid = float((D - 2) * (H - 2) * (W - 2))
    gmask = g * mask
    gm = jnp.sum(gmask, axis=1, keepdims=True) / nvalid
    gsq = jnp.sum(gmask * g, axis=1, keepdims=True) / nvalid
    gvar = jnp.maximum(gsq - gm * gm, 0.0)
    gate = _gelu_exact((g - gm) * lax.rsqrt(gvar + 1e-5))

    # ---- passthrough * gate, zero-padded back to the full volume (pad3d) ----
    y = pt * gate * mask                                              # (C, S)

    # ---- Stage 4: rectifier 1x1 conv (MXU) + InstanceNorm over the full volume ----
    # The rectifier bias is a per-channel constant and cancels exactly under InstanceNorm.
    # TODO(synk): Dropout3d(0.3) is stochastic and identity at inference; not applied.
    r = jnp.dot(wr_ref[...], y, preferred_element_type=f32)           # (C, S)
    rm = jnp.mean(r, axis=1, keepdims=True)
    rsq = jnp.mean(r * r, axis=1, keepdims=True)
    rvar = jnp.maximum(rsq - rm * rm, 0.0)
    r = (r - rm) * lax.rsqrt(rvar + 1e-5)

    # ---- Residual: re-read x from VMEM so it isn't live across the stages above ----
    o_ref[...] = (x_ref[...].astype(f32) + r).astype(o_ref.dtype)


def dwffn_forward(x, params, *, strip_d=4):
    """x: (N, C, D, H, W). params: the 10 conv weights/biases (PyTorch layout)."""
    (w_pt1, b_pt1, w_pt2, b_pt2, w_g1, b_g1, w_g2, b_g2, w_r, b_r) = params
    N, C, D, H, W = x.shape
    assert D >= 3 and H >= 3 and W >= 3, "valid 3x3x3 conv requires D,H,W >= 3"
    S = D * H * W
    HW = H * W
    f32 = jnp.float32

    # Stack the two pre-depthwise branches: passthrough = rows [0,C), gate = rows [C,2C).
    W1 = jnp.concatenate([w_pt1.reshape(C, C), w_g1.reshape(C, C)], axis=0).astype(f32)   # (2C, C)
    B1 = jnp.concatenate([b_pt1, b_g1]).reshape(2 * C, 1).astype(f32)                      # (2C, 1)
    WDW = jnp.concatenate([w_pt2.reshape(C, 27), w_g2.reshape(C, 27)], axis=0).astype(f32)  # (2C, 27)
    BDW = jnp.concatenate([b_pt2, b_g2]).reshape(2 * C, 1).astype(f32)                      # (2C, 1)
    # Fold the 1x1 biases through the depthwise valid conv (exact): a per-channel
    # constant input offset contributes b1[c] * sum_t(wdw[c, t]).
    BDW_eff = BDW + B1 * jnp.sum(WDW, axis=1, keepdims=True)
    WR = w_r.reshape(C, C).astype(f32)                                                      # (C, C)
    # b_r is not passed: a per-channel constant added before InstanceNorm cancels exactly.

    # Interior (pad3d) mask over the flattened spatial axis (tiny, resident, DMA'd once).
    def interior(n):
        i = jnp.arange(n)
        return (i >= 1) & (i <= n - 2)
    m3 = interior(D)[:, None, None] & interior(H)[None, :, None] & interior(W)[None, None, :]
    mask = m3.reshape(1, S).astype(f32)

    xf = x.reshape(N, C, S)

    # Strip depth for the depthwise tap accumulation (keeps the live set small).
    DC = strip_d if D % strip_d == 0 else (2 if D % 2 == 0 else D)

    kernel = functools.partial(_dwffn_kernel, C=C, D=D, H=H, W=W, DC=DC)
    const2d = lambda n: (0, 0)  # weights/mask resident across grid steps

    out = pl.pallas_call(
        kernel,
        out_shape=jax.ShapeDtypeStruct((N, C, S), x.dtype),
        grid=(N,),  # one grid step per batch
        in_specs=[
            pl.BlockSpec((pl.Squeezed(), C, S), lambda n: (n, 0, 0)),   # x
            pl.BlockSpec((1, S), const2d),                              # interior mask
            pl.BlockSpec((2 * C, C), const2d),                          # stacked 1x1 weights
            pl.BlockSpec((2 * C, 27), const2d),                         # stacked depthwise weights
            pl.BlockSpec((2 * C, 1), const2d),                          # effective depthwise bias
            pl.BlockSpec((C, C), const2d),                              # rectifier 1x1 weight
        ],
        out_specs=pl.BlockSpec((pl.Squeezed(), C, S), lambda n: (n, 0, 0)),
        scratch_shapes=[
            pltpu.VMEM((2 * C, S + 2 * HW), jnp.float32),               # lane-padded s1
            pltpu.VMEM((2 * C, S), jnp.float32),                        # depthwise output (pad3d)
        ],
        compiler_params=pltpu.CompilerParams(
            dimension_semantics=("parallel",),
            vmem_limit_bytes=32 * 1024 * 1024,                          # explicit, safe on v5e/v6e/v7x
        ),
    )(xf, mask, W1, WDW, BDW_eff, WR)
    return out.reshape(N, C, D, H, W)


def reference_forward(x, params):
    """Pure-JAX reference matching the PyTorch module (eval mode)."""
    (w_pt1, b_pt1, w_pt2, b_pt2, w_g1, b_g1, w_g2, b_g2, w_r, b_r) = params
    dn = ("NCDHW", "OIDHW", "NCDHW")
    prec = lax.Precision.HIGHEST

    def conv1x1(t, w, b):
        y = lax.conv_general_dilated(t, w, (1, 1, 1), "VALID", dimension_numbers=dn,
                                     precision=prec)
        return y + b.reshape(1, -1, 1, 1, 1)

    def depthwise3(t, w, b):
        y = lax.conv_general_dilated(t, w, (1, 1, 1), "VALID", dimension_numbers=dn,
                                     feature_group_count=t.shape[1], precision=prec)
        return y + b.reshape(1, -1, 1, 1, 1)

    def inorm(t):
        mu = jnp.mean(t, axis=(2, 3, 4), keepdims=True)
        va = jnp.var(t, axis=(2, 3, 4), keepdims=True)
        return (t - mu) / jnp.sqrt(va + 1e-5)

    pt = depthwise3(conv1x1(x, w_pt1, b_pt1), w_pt2, b_pt2)
    gate = jax.nn.gelu(inorm(depthwise3(conv1x1(x, w_g1, b_g1), w_g2, b_g2)),
                       approximate=False)
    y = pt * gate
    y = jnp.pad(y, ((0, 0), (0, 0), (1, 1), (1, 1), (1, 1)))  # pad3d back to x's size
    r = inorm(conv1x1(y, w_r, b_r))                            # Dropout3d == identity (eval)
    return x + r


if __name__ == "__main__":
    key = jax.random.PRNGKey(0)
    keys = jax.random.split(key, 11)

    # Small shapes consistent with the module (C channels, 3-D volume).
    N, C, D, H, W = 2, 4, 16, 16, 16
    x = jax.random.normal(keys[0], (N, C, D, H, W), jnp.float32)

    # PyTorch Conv3d default init: U(-b, b), b = 1/sqrt(fan_in).
    b1 = 1.0 / (C ** 0.5)    # 1x1 convs: fan_in = C
    b3 = 1.0 / (27 ** 0.5)   # depthwise 3x3x3: fan_in = 27
    u = jax.random.uniform
    w_pt1 = u(keys[1], (C, C, 1, 1, 1), jnp.float32, -b1, b1)
    b_pt1 = u(keys[2], (C,), jnp.float32, -b1, b1)
    w_pt2 = u(keys[3], (C, 1, 3, 3, 3), jnp.float32, -b3, b3)
    b_pt2 = u(keys[4], (C,), jnp.float32, -b3, b3)
    w_g1 = u(keys[5], (C, C, 1, 1, 1), jnp.float32, -b1, b1)
    b_g1 = u(keys[6], (C,), jnp.float32, -b1, b1)
    w_g2 = u(keys[7], (C, 1, 3, 3, 3), jnp.float32, -b3, b3)
    b_g2 = u(keys[8], (C,), jnp.float32, -b3, b3)
    w_r = u(keys[9], (C, C, 1, 1, 1), jnp.float32, -b1, b1)
    b_r = u(keys[10], (C,), jnp.float32, -b1, b1)

    params = (w_pt1, b_pt1, w_pt2, b_pt2, w_g1, b_g1, w_g2, b_g2, w_r, b_r)

    out = dwffn_forward(x, params)
    out = jax.block_until_ready(out)
    assert out.shape == x.shape

    ref = reference_forward(x, params)
    if not jnp.allclose(out, ref, atol=1e-3, rtol=1e-3):
        err = float(jnp.max(jnp.abs(out - ref)))
        raise AssertionError(f"Pallas kernel output mismatch vs JAX reference (max abs err {err})")
    print("KERNEL_OK")
</pallas_src>

<mosaic_0001>
module attributes {stable_mosaic.version = 11 : i64} {
  func.func @_dwffn_kernel(%arg0: i32, %arg1: memref<1x4x4096xf32, #tpu.memory_space<vmem>>, %arg2: memref<1x4096xf32, #tpu.memory_space<vmem>>, %arg3: memref<8x4xf32, #tpu.memory_space<vmem>>, %arg4: memref<8x27xf32, #tpu.memory_space<vmem>>, %arg5: memref<8x1xf32, #tpu.memory_space<vmem>>, %arg6: memref<4x4xf32, #tpu.memory_space<vmem>>, %arg7: memref<1x4x4096xf32, #tpu.memory_space<vmem>>, %arg8: memref<8x4608xf32, #tpu.memory_space<vmem>>, %arg9: memref<8x4096xf32, #tpu.memory_space<vmem>>) attributes {dimension_semantics = [#tpu.dimension_semantics<parallel>], iteration_bounds = array<i64: 2>, scalar_prefetch = 0 : i64, scratch_operands = 2 : i64, tpu.core_type = #tpu.core_type<tc>, window_params = [{transform_indices = @transform_0, window_bounds = array<i64: 1, 4, 4096>}, {pipeline_mode = #tpu.pipeline_mode<synchronous>, transform_indices = @transform_1, window_bounds = array<i64: 1, 4096>}, {pipeline_mode = #tpu.pipeline_mode<synchronous>, transform_indices = @transform_2, window_bounds = array<i64: 8, 4>}, {pipeline_mode = #tpu.pipeline_mode<synchronous>, transform_indices = @transform_3, window_bounds = array<i64: 8, 27>}, {pipeline_mode = #tpu.pipeline_mode<synchronous>, transform_indices = @transform_4, window_bounds = array<i64: 8, 1>}, {pipeline_mode = #tpu.pipeline_mode<synchronous>, transform_indices = @transform_5, window_bounds = array<i64: 4, 4>}, {transform_indices = @transform_6, window_bounds = array<i64: 1, 4, 4096>}]} {
    %c0 = arith.constant 0 : index
    %c0_0 = arith.constant 0 : index
    %0 = vector.load %arg3[%c0, %c0_0] : memref<8x4xf32, #tpu.memory_space<vmem>>, vector<8x4xf32>
    %c0_1 = arith.constant 0 : index
    %c0_2 = arith.constant 0 : index
    %c0_3 = arith.constant 0 : index
    %1 = vector.load %arg1[%c0_1, %c0_2, %c0_3] : memref<1x4x4096xf32, #tpu.memory_space<vmem>>, vector<1x4x4096xf32>
    %2 = vector.shape_cast %1 : vector<1x4x4096xf32> to vector<4x4096xf32>
    %cst = arith.constant dense<0.000000e+00> : vector<8x4096xf32>
    %3 = tpu.matmul %0, %2, %cst {dimension_numbers = #tpu.dot_dimension_numbers<[1], [0], [0], [1], [0, 0, 1, 1], [], []>} : vector<8x4xf32>, vector<4x4096xf32>, vector<8x4096xf32> -> vector<8x4096xf32>
    %cst_4 = arith.constant 0.000000e+00 : f32
    %4 = vector.broadcast %cst_4 : f32 to vector<8x256xf32>
    %c0_5 = arith.constant 0 : index
    %c0_6 = arith.constant 0 : index
    %5 = vector.load %arg8[%c0_5, %c0_6] : memref<8x4608xf32, #tpu.memory_space<vmem>>, vector<8x256xf32>
    tpu.vector_store %arg8[%c0_5, %c0_6], %4 {strides = array<i32>} : memref<8x4608xf32, #tpu.memory_space<vmem>>, vector<8x256xf32>,
    %c0_7 = arith.constant 0 : index
    %c256 = arith.constant 256 : index
    %6 = vector.load %arg8[%c0_7, %c256] : memref<8x4608xf32, #tpu.memory_space<vmem>>, vector<8x4096xf32>
    tpu.vector_store %arg8[%c0_7, %c256], %3 {strides = array<i32>} : memref<8x4608xf32, #tpu.memory_space<vmem>>, vector<8x4096xf32>,
    %cst_8 = arith.constant 0.000000e+00 : f32
    %7 = vector.broadcast %cst_8 : f32 to vector<8x256xf32>
    %c0_9 = arith.constant 0 : index
    %c4352 = arith.constant 4352 : index
    %8 = vector.load %arg8[%c0_9, %c4352] : memref<8x4608xf32, #tpu.memory_space<vmem>>, vector<8x256xf32>
    tpu.vector_store %arg8[%c0_9, %c4352], %7 {strides = array<i32>} : memref<8x4608xf32, #tpu.memory_space<vmem>>, vector<8x256xf32>,
    %c0_10 = arith.constant 0 : index
    %c0_11 = arith.constant 0 : index
    %9 = vector.load %arg4[%c0_10, %c0_11] : memref<8x27xf32, #tpu.memory_space<vmem>>, vector<8x27xf32>
    %10 = vector.extract_strided_slice %9 {offsets = [0, 0], sizes = [8, 1], strides = [1, 1]} : vector<8x27xf32> to vector<8x1xf32>
    %11 = vector.extract_strided_slice %9 {offsets = [0, 1], sizes = [8, 1], strides = [1, 1]} : vector<8x27xf32> to vector<8x1xf32>
    %12 = vector.extract_strided_slice %9 {offsets = [0, 2], sizes = [8, 1], strides = [1, 1]} : vector<8x27xf32> to vector<8x1xf32>
    %13 = vector.extract_strided_slice %9 {offsets = [0, 3], sizes = [8, 1], strides = [1, 1]} : vector<8x27xf32> to vector<8x1xf32>
    %14 = vector.extract_strided_slice %9 {offsets = [0, 4], sizes = [8, 1], strides = [1, 1]} : vector<8x27xf32> to vector<8x1xf32>
    %15 = vector.extract_strided_slice %9 {offsets = [0, 5], sizes = [8, 1], strides = [1, 1]} : vector<8x27xf32> to vector<8x1xf32>
    %16 = vector.extract_strided_slice %9 {offsets = [0, 6], sizes = [8, 1], strides = [1, 1]} : vector<8x27xf32> to vector<8x1xf32>
    %17 = vector.extract_strided_slice %9 {offsets = [0, 7], sizes = [8, 1], strides = [1, 1]} : vector<8x27xf32> to vector<8x1xf32>
    %18 = vector.extract_strided_slice %9 {offsets = [0, 8], sizes = [8, 1], strides = [1, 1]} : vector<8x27xf32> to vector<8x1xf32>
    %19 = vector.extract_strided_slice %9 {offsets = [0, 9], sizes = [8, 1], strides = [1, 1]} : vector<8x27xf32> to vector<8x1xf32>
    %20 = vector.extract_strided_slice %9 {offsets = [0, 10], sizes = [8, 1], strides = [1, 1]} : vector<8x27xf32> to vector<8x1xf32>
    %21 = vector.extract_strided_slice %9 {offsets = [0, 11], sizes = [8, 1], strides = [1, 1]} : vector<8x27xf32> to vector<8x1xf32>
    %22 = vector.extract_strided_slice %9 {offsets = [0, 12], sizes = [8, 1], strides = [1, 1]} : vector<8x27xf32> to vector<8x1xf32>
    %23 = vector.extract_strided_slice %9 {offsets = [0, 13], sizes = [8, 1], strides = [1, 1]} : vector<8x27xf32> to vector<8x1xf32>
    %24 = vector.extract_strided_slice %9 {offsets = [0, 14], sizes = [8, 1], strides = [1, 1]} : vector<8x27xf32> to vector<8x1xf32>
    %25 = vector.extract_strided_slice %9 {offsets = [0, 15], sizes = [8, 1], strides = [1, 1]} : vector<8x27xf32> to vector<8x1xf32>
    %26 = vector.extract_strided_slice %9 {offsets = [0, 16], sizes = [8, 1], strides = [1, 1]} : vector<8x27xf32> to vector<8x1xf32>
    %27 = vector.extract_strided_slice %9 {offsets = [0, 17], sizes = [8, 1], strides = [1, 1]} : vector<8x27xf32> to vector<8x1xf32>
    %28 = vector.extract_strided_slice %9 {offsets = [0, 18], sizes = [8, 1], strides = [1, 1]} : vector<8x27xf32> to vector<8x1xf32>
    %29 = vector.extract_strided_slice %9 {offsets = [0, 19], sizes = [8, 1], strides = [1, 1]} : vector<8x27xf32> to vector<8x1xf32>
    %30 = vector.extract_strided_slice %9 {offsets = [0, 20], sizes = [8, 1], strides = [1, 1]} : vector<8x27xf32> to vector<8x1xf32>
    %31 = vector.extract_strided_slice %9 {offsets = [0, 21], sizes = [8, 1], strides = [1, 1]} : vector<8x27xf32> to vector<8x1xf32>
    %32 = vector.extract_strided_slice %9 {offsets = [0, 22], sizes = [8, 1], strides = [1, 1]} : vector<8x27xf32> to vector<8x1xf32>
    %33 = vector.extract_strided_slice %9 {offsets = [0, 23], sizes = [8, 1], strides = [1, 1]} : vector<8x27xf32> to vector<8x1xf32>
    %34 = vector.extract_strided_slice %9 {offsets = [0, 24], sizes = [8, 1], strides = [1, 1]} : vector<8x27xf32> to vector<8x1xf32>
    %35 = vector.extract_strided_slice %9 {offsets = [0, 25], sizes = [8, 1], strides = [1, 1]} : vector<8x27xf32> to vector<8x1xf32>
    %36 = vector.extract_strided_slice %9 {offsets = [0, 26], sizes = [8, 1], strides = [1, 1]} : vector<8x27xf32> to vector<8x1xf32>
    %c0_12 = arith.constant 0 : index
    %c0_13 = arith.constant 0 : index
    %37 = vector.load %arg5[%c0_12, %c0_13] : memref<8x1xf32, #tpu.memory_space<vmem>>, vector<8x1xf32>
    %c0_14 = arith.constant 0 : index
    %c0_15 = arith.constant 0 : index
    %38 = vector.load %arg8[%c0_14, %c0_15] : memref<8x4608xf32, #tpu.memory_space<vmem>>, vector<8x1536xf32>
    %39 = vector.extract_strided_slice %38 {offsets = [0, 256], sizes = [8, 1024], strides = [1, 1]} : vector<8x1536xf32> to vector<8x1024xf32>
    %40 = vector.broadcast %23 : vector<8x1xf32> to vector<8x1024xf32>
    %41 = arith.mulf %40, %39 : vector<8x1024xf32>
    %c17_i32 = arith.constant 17 : i32
    %42 = tpu.dynamic_rotate %38 by %c17_i32 dim 1 : vector<8x1536xf32>, i32 -> vector<8x1536xf32>
    %43 = vector.extract_strided_slice %42 {offsets = [0, 0], sizes = [8, 1024], strides = [1, 1]} : vector<8x1536xf32> to vector<8x1024xf32>
    %44 = vector.broadcast %10 : vector<8x1xf32> to vector<8x1024xf32>
    %45 = arith.mulf %44, %43 : vector<8x1024xf32>
    %46 = arith.addf %41, %45 : vector<8x1024xf32>
    %47 = vector.extract_strided_slice %42 {offsets = [0, 256], sizes = [8, 1024], strides = [1, 1]} : vector<8x1536xf32> to vector<8x1024xf32>
    %48 = vector.broadcast %19 : vector<8x1xf32> to vector<8x1024xf32>
    %49 = arith.mulf %48, %47 : vector<8x1024xf32>
    %50 = arith.addf %46, %49 : vector<8x1024xf32>
    %51 = vector.extract_strided_slice %42 {offsets = [0, 512], sizes = [8, 1024], strides = [1, 1]} : vector<8x1536xf32> to vector<8x1024xf32>
    %52 = vector.broadcast %28 : vector<8x1xf32> to vector<8x1024xf32>
    %53 = arith.mulf %52, %51 : vector<8x1024xf32>
    %54 = arith.addf %50, %53 : vector<8x1024xf32>
    %c16_i32 = arith.constant 16 : i32
    %55 = tpu.dynamic_rotate %38 by %c16_i32 dim 1 : vector<8x1536xf32>, i32 -> vector<8x1536xf32>
    %56 = vector.extract_strided_slice %55 {offsets = [0, 0], sizes = [8, 1024], strides = [1, 1]} : vector<8x1536xf32> to vector<8x1024xf32>
    %57 = vector.broadcast %11 : vector<8x1xf32> to vector<8x1024xf32>
    %58 = arith.mulf %57, %56 : vector<8x1024xf32>
    %59 = arith.addf %54, %58 : vector<8x1024xf32>
    %60 = vector.extract_strided_slice %55 {offsets = [0, 256], sizes = [8, 1024], strides = [1, 1]} : vector<8x1536xf32> to vector<8x1024xf32>
    %61 = vector.broadcast %20 : vector<8x1xf32> to vector<8x1024xf32>
    %62 = arith.mulf %61, %60 : vector<8x1024xf32>
    %63 = arith.addf %59, %62 : vector<8x1024xf32>
    %64 = vector.extract_strided_slice %55 {offsets = [0, 512], sizes = [8, 1024], strides = [1, 1]} : vector<8x1536xf32> to vector<8x1024xf32>
    %65 = vector.broadcast %29 : vector<8x1xf32> to vector<8x1024xf32>
    %66 = arith.mulf %65, %64 : vector<8x1024xf32>
    %67 = arith.addf %63, %66 : vector<8x1024xf32>
    %c15_i32 = arith.constant 15 : i32
    %68 = tpu.dynamic_rotate %38 by %c15_i32 dim 1 : vector<8x1536xf32>, i32 -> vector<8x1536xf32>
    %69 = vector.extract_strided_slice %68 {offsets = [0, 0], sizes = [8, 1024], strides = [1, 1]} : vector<8x1536xf32> to vector<8x1024xf32>
    %70 = vector.broadcast %12 : vector<8x1xf32> to vector<8x1024xf32>
    %71 = arith.mulf %70, %69 : vector<8x1024xf32>
    %72 = arith.addf %67, %71 : vector<8x1024xf32>
    %73 = vector.extract_strided_slice %68 {offsets = [0, 256], sizes = [8, 1024], strides = [1, 1]} : vector<8x1536xf32> to vector<8x1024xf32>
    %74 = vector.broadcast %21 : vector<8x1xf32> to vector<8x1024xf32>
    %75 = arith.mulf %74, %73 : vector<8x1024xf32>
    %76 = arith.addf %72, %75 : vector<8x1024xf32>
    %77 = vector.extract_strided_slice %68 {offsets = [0, 512], sizes = [8, 1024], strides = [1, 1]} : vector<8x1536xf32> to vector<8x1024xf32>
    %78 = vector.broadcast %30 : vector<8x1xf32> to vector<8x1024xf32>
    %79 = arith.mulf %78, %77 : vector<8x1024xf32>
    %80 = arith.addf %76, %79 : vector<8x1024xf32>
    %c1_i32 = arith.constant 1 : i32
    %81 = tpu.dynamic_rotate %38 by %c1_i32 dim 1 : vector<8x1536xf32>, i32 -> vector<8x1536xf32>
    %82 = vector.extract_strided_slice %81 {offsets = [0, 0], sizes = [8, 1024], strides = [1, 1]} : vector<8x1536xf32> to vector<8x1024xf32>
    %83 = vector.broadcast %13 : vector<8x1xf32> to vector<8x1024xf32>
    %84 = arith.mulf %83, %82 : vector<8x1024xf32>
    %85 = arith.addf %80, %84 : vector<8x1024xf32>
    %86 = vector.extract_strided_slice %81 {offsets = [0, 256], sizes = [8, 1024], strides = [1, 1]} : vector<8x1536xf32> to vector<8x1024xf32>
    %87 = vector.broadcast %22 : vector<8x1xf32> to vector<8x1024xf32>
    %88 = arith.mulf %87, %86 : vector<8x1024xf32>
    %89 = arith.addf %85, %88 : vector<8x1024xf32>
    %90 = vector.extract_strided_slice %81 {offsets = [0, 512], sizes = [8, 1024], strides = [1, 1]} : vector<8x1536xf32> to vector<8x1024xf32>
    %91 = vector.broadcast %31 : vector<8x1xf32> to vector<8x1024xf32>
    %92 = arith.mulf %91, %90 : vector<8x1024xf32>
    %93 = arith.addf %89, %92 : vector<8x1024xf32>
    %94 = vector.extract_strided_slice %38 {offsets = [0, 0], sizes = [8, 1024], strides = [1, 1]} : vector<8x1536xf32> to vector<8x1024xf32>
    %95 = vector.broadcast %14 : vector<8x1xf32> to vector<8x1024xf32>
    %96 = arith.mulf %95, %94 : vector<8x1024xf32>
    %97 = arith.addf %93, %96 : vector<8x1024xf32>
    %98 = vector.extract_strided_slice %38 {offsets = [0, 512], sizes = [8, 1024], strides = [1, 1]} : vector<8x1536xf32> to vector<8x1024xf32>
    %99 = vector.broadcast %32 : vector<8x1xf32> to vector<8x1024xf32>
    %100 = arith.mulf %99, %98 : vector<8x1024xf32>
    %101 = arith.addf %97, %100 : vector<8x1024xf32>
    %c1535_i32 = arith.constant 1535 : i32
    %102 = tpu.dynamic_rotate %38 by %c1535_i32 dim 1 : vector<8x1536xf32>, i32 -> vector<8x1536xf32>
    %103 = vector.extract_strided_slice %102 {offsets = [0, 0], sizes = [8, 1024], strides = [1, 1]} : vector<8x1536xf32> to vector<8x1024xf32>
    %104 = vector.broadcast %15 : vector<8x1xf32> to vector<8x1024xf32>
    %105 = arith.mulf %104, %103 : vector<8x1024xf32>
    %106 = arith.addf %101, %105 : vector<8x1024xf32>
    %107 = vector.extract_strided_slice %102 {offsets = [0, 256], sizes = [8, 1024], strides = [1, 1]} : vector<8x1536xf32> to vector<8x1024xf32>
    %108 = vector.broadcast %24 : vector<8x1xf32> to vector<8x1024xf32>
    %109 = arith.mulf %108, %107 : vector<8x1024xf32>
    %110 = arith.addf %106, %109 : vector<8x1024xf32>
    %111 = vector.extract_strided_slice %102 {offsets = [0, 512], sizes = [8, 1024], strides = [1, 1]} : vector<8x1536xf32> to vector<8x1024xf32>
    %112 = vector.broadcast %33 : vector<8x1xf32> to vector<8x1024xf32>
    %113 = arith.mulf %112, %111 : vector<8x1024xf32>
    %114 = arith.addf %110, %113 : vector<8x1024xf32>
    %c1521_i32 = arith.constant 1521 : i32
    %115 = tpu.dynamic_rotate %38 by %c1521_i32 dim 1 : vector<8x1536xf32>, i32 -> vector<8x1536xf32>
    %116 = vector.extract_strided_slice %115 {offsets = [0, 0], sizes = [8, 1024], strides = [1, 1]} : vector<8x1536xf32> to vector<8x1024xf32>
    %117 = vector.broadcast %16 : vector<8x1xf32> to vector<8x1024xf32>
    %118 = arith.mulf %117, %116 : vector<8x1024xf32>
    %119 = arith.addf %114, %118 : vector<8x1024xf32>
    %120 = vector.extract_strided_slice %115 {offsets = [0, 256], sizes = [8, 1024], strides = [1, 1]} : vector<8x1536xf32> to vector<8x1024xf32>
    %121 = vector.broadcast %25 : vector<8x1xf32> to vector<8x1024xf32>
    %122 = arith.mulf %121, %120 : vector<8x1024xf32>
    %123 = arith.addf %119, %122 : vector<8x1024xf32>
    %124 = vector.extract_strided_slice %115 {offsets = [0, 512], sizes = [8, 1024], strides = [1, 1]} : vector<8x1536xf32> to vector<8x1024xf32>
    %125 = vector.broadcast %34 : vector<8x1xf32> to vector<8x1024xf32>
    %126 = arith.mulf %125, %124 : vector<8x1024xf32>
    %127 = arith.addf %123, %126 : vector<8x1024xf32>
    %c1520_i32 = arith.constant 1520 : i32
    %128 = tpu.dynamic_rotate %38 by %c1520_i32 dim 1 : vector<8x1536xf32>, i32 -> vector<8x1536xf32>
    %129 = vector.extract_strided_slice %128 {offsets = [0, 0], sizes = [8, 1024], strides = [1, 1]} : vector<8x1536xf32> to vector<8x1024xf32>
    %130 = vector.broadcast %17 : vector<8x1xf32> to vector<8x1024xf32>
    %131 = arith.mulf %130, %129 : vector<8x1024xf32>
    %132 = arith.addf %127, %131 : vector<8x1024xf32>
    %133 = vector.extract_strided_slice %128 {offsets = [0, 256], sizes = [8, 1024], strides = [1, 1]} : vector<8x1536xf32> to vector<8x1024xf32>
    %134 = vector.broadcast %26 : vector<8x1xf32> to vector<8x1024xf32>
    %135 = arith.mulf %134, %133 : vector<8x1024xf32>
    %136 = arith.addf %132, %135 : vector<8x1024xf32>
    %137 = vector.extract_strided_slice %128 {offsets = [0, 512], sizes = [8, 1024], strides = [1, 1]} : vector<8x1536xf32> to vector<8x1024xf32>
    %138 = vector.broadcast %35 : vector<8x1xf32> to vector<8x1024xf32>
    %139 = arith.mulf %138, %137 : vector<8x1024xf32>
    %140 = arith.addf %136, %139 : vector<8x1024xf32>
    %c1519_i32 = arith.constant 1519 : i32
    %141 = tpu.dynamic_rotate %38 by %c1519_i32 dim 1 : vector<8x1536xf32>, i32 -> vector<8x1536xf32>
    %142 = vector.extract_strided_slice %141 {offsets = [0, 0], sizes = [8, 1024], strides = [1, 1]} : vector<8x1536xf32> to vector<8x1024xf32>
    %143 = vector.broadcast %18 : vector<8x1xf32> to vector<8x1024xf32>
    %144 = arith.mulf %143, %142 : vector<8x1024xf32>
    %145 = arith.addf %140, %144 : vector<8x1024xf32>
    %146 = vector.extract_strided_slice %141 {offsets = [0, 256], sizes = [8, 1024], strides = [1, 1]} : vector<8x1536xf32> to vector<8x1024xf32>
    %147 = vector.broadcast %27 : vector<8x1xf32> to vector<8x1024xf32>
    %148 = arith.mulf %147, %146 : vector<8x1024xf32>
    %149 = arith.addf %145, %148 : vector<8x1024xf32>
    %150 = vector.extract_strided_slice %141 {offsets = [0, 512], sizes = [8, 1024], strides = [1, 1]} : vector<8x1536xf32> to vector<8x1024xf32>
    %151 = vector.broadcast %36 : vector<8x1xf32> to vector<8x1024xf32>
    %152 = arith.mulf %151, %150 : vector<8x1024xf32>
    %153 = arith.addf %149, %152 : vector<8x1024xf32>
    %154 = vector.broadcast %37 : vector<8x1xf32> to vector<8x1024xf32>
    %155 = arith.addf %153, %154 : vector<8x1024xf32>
    %c0_16 = arith.constant 0 : index
    %c0_17 = arith.constant 0 : index
    %156 = vector.load %arg9[%c0_16, %c0_17] : memref<8x4096xf32, #tpu.memory_space<vmem>>, vector<8x1024xf32>
    tpu.vector_store %arg9[%c0_16, %c0_17], %155 {strides = array<i32>} : memref<8x4096xf32, #tpu.memory_space<vmem>>, vector<8x1024xf32>,
    %c0_18 = arith.constant 0 : index
    %c1024 = arith.constant 1024 : index
    %157 = vector.load %arg8[%c0_18, %c1024] : memref<8x4608xf32, #tpu.memory_space<vmem>>, vector<8x1536xf32>
    %158 = vector.extract_strided_slice %157 {offsets = [0, 256], sizes = [8, 1024], strides = [1, 1]} : vector<8x1536xf32> to vector<8x1024xf32>
    %159 = vector.broadcast %23 : vector<8x1xf32> to vector<8x1024xf32>
    %160 = arith.mulf %159, %158 : vector<8x1024xf32>
    %c17_i32_19 = arith.constant 17 : i32
    %161 = tpu.dynamic_rotate %157 by %c17_i32_19 dim 1 : vector<8x1536xf32>, i32 -> vector<8x1536xf32>
    %162 = vector.extract_strided_slice %161 {offsets = [0, 0], sizes = [8, 1024], strides = [1, 1]} : vector<8x1536xf32> to vector<8x1024xf32>
    %163 = vector.broadcast %10 : vector<8x1xf32> to vector<8x1024xf32>
    %164 = arith.mulf %163, %162 : vector<8x1024xf32>
    %165 = arith.addf %160, %164 : vector<8x1024xf32>
    %166 = vector.extract_strided_slice %161 {offsets = [0, 256], sizes = [8, 1024], strides = [1, 1]} : vector<8x1536xf32> to vector<8x1024xf32>
    %167 = vector.broadcast %19 : vector<8x1xf32> to vector<8x1024xf32>
    %168 = arith.mulf %167, %166 : vector<8x1024xf32>
    %169 = arith.addf %165, %168 : vector<8x1024xf32>
    %170 = vector.extract_strided_slice %161 {offsets = [0, 512], sizes = [8, 1024], strides = [1, 1]} : vector<8x1536xf32> to vector<8x1024xf32>
    %171 = vector.broadcast %28 : vector<8x1xf32> to vector<8x1024xf32>
    %172 = arith.mulf %171, %170 : vector<8x1024xf32>
    %173 = arith.addf %169, %172 : vector<8x1024xf32>
    %c16_i32_20 = arith.constant 16 : i32
    %174 = tpu.dynamic_rotate %157 by %c16_i32_20 dim 1 : vector<8x1536xf32>, i32 -> vector<8x1536xf32>
    %175 = vector.extract_strided_slice %174 {offsets = [0, 0], sizes = [8, 1024], strides = [1, 1]} : vector<8x1536xf32> to vector<8x1024xf32>
    %176 = vector.broadcast %11 : vector<8x1xf32> to vector<8x1024xf32>
    %177 = arith.mulf %176, %175 : vector<8x1024xf32>
    %178 = arith.addf %173, %177 : vector<8x1024xf32>
    %179 = vector.extract_strided_slice %174 {offsets = [0, 256], sizes = [8, 1024], strides = [1, 1]} : vector<8x1536xf32> to vector<8x1024xf32>
    %180 = vector.broadcast %20 : vector<8x1xf32> to vector<8x1024xf32>
    %181 = arith.mulf %180, %179 : vector<8x1024xf32>
    %182 = arith.addf %178, %181 : vector<8x1024xf32>
    %183 = vector.extract_strided_slice %174 {offsets = [0, 512], sizes = [8, 1024], strides = [1, 1]} : vector<8x1536xf32> to vector<8x1024xf32>
    %184 = vector.broadcast %29 : vector<8x1xf32> to vector<8x1024xf32>
    %185 = arith.mulf %184, %183 : vector<8x1024xf32>
    %186 = arith.addf %182, %185 : vector<8x1024xf32>
    %c15_i32_21 = arith.constant 15 : i32
    %187 = tpu.dynamic_rotate %157 by %c15_i32_21 dim 1 : vector<8x1536xf32>, i32 -> vector<8x1536xf32>
    %188 = vector.extract_strided_slice %187 {offsets = [0, 0], sizes = [8, 1024], strides = [1, 1]} : vector<8x1536xf32> to vector<8x1024xf32>
    %189 = vector.broadcast %12 : vector<8x1xf32> to vector<8x1024xf32>
    %190 = arith.mulf %189, %188 : vector<8x1024xf32>
    %191 = arith.addf %186, %190 : vector<8x1024xf32>
    %192 = vector.extract_strided_slice %187 {offsets = [0, 256], sizes = [8, 1024], strides = [1, 1]} : vector<8x1536xf32> to vector<8x1024xf32>
    %193 = vector.broadcast %21 : vector<8x1xf32> to vector<8x1024xf32>
    %194 = arith.mulf %193, %192 : vector<8x1024xf32>
    %195 = arith.addf %191, %194 : vector<8x1024xf32>
    %196 = vector.extract_strided_slice %187 {offsets = [0, 512], sizes = [8, 1024], strides = [1, 1]} : vector<8x1536xf32> to vector<8x1024xf32>
    %197 = vector.broadcast %30 : vector<8x1xf32> to vector<8x1024xf32>
    %198 = arith.mulf %197, %196 : vector<8x1024xf32>
    %199 = arith.addf %195, %198 : vector<8x1024xf32>
    %c1_i32_22 = arith.constant 1 : i32
    %200 = tpu.dynamic_rotate %157 by %c1_i32_22 dim 1 : vector<8x1536xf32>, i32 -> vector<8x1536xf32>
    %201 = vector.extract_strided_slice %200 {offsets = [0, 0], sizes = [8, 1024], strides = [1, 1]} : vector<8x1536xf32> to vector<8x1024xf32>
    %202 = vector.broadcast %13 : vector<8x1xf32> to vector<8x1024xf32>
    %203 = arith.mulf %202, %201 : vector<8x1024xf32>
    %204 = arith.addf %199, %203 : vector<8x1024xf32>
    %205 = vector.extract_strided_slice %200 {offsets = [0, 256], sizes = [8, 1024], strides = [1, 1]} : vector<8x1536xf32> to vector<8x1024xf32>
    %206 = vector.broadcast %22 : vector<8x1xf32> to vector<8x1024xf32>
    %207 = arith.mulf %206, %205 : vector<8x1024xf32>
    %208 = arith.addf %204, %207 : vector<8x1024xf32>
    %209 = vector.extract_strided_slice %200 {offsets = [0, 512], sizes = [8, 1024], strides = [1, 1]} : vector<8x1536xf32> to vector<8x1024xf32>
    %210 = vector.broadcast %31 : vector<8x1xf32> to vector<8x1024xf32>
    %211 = arith.mulf %210, %209 : vector<8x1024xf32>
    %212 = arith.addf %208, %211 : vector<8x1024xf32>
    %213 = vector.extract_strided_slice %157 {offsets = [0, 0], sizes = [8, 1024], strides = [1, 1]} : vector<8x1536xf32> to vector<8x1024xf32>
    %214 = vector.broadcast %14 : vector<8x1xf32> to vector<8x1024xf32>
    %215 = arith.mulf %214, %213 : vector<8x1024xf32>
    %216 = arith.addf %212, %215 : vector<8x1024xf32>
    %217 = vector.extract_strided_slice %157 {offsets = [0, 512], sizes = [8, 1024], strides = [1, 1]} : vector<8x1536xf32> to vector<8x1024xf32>
    %218 = vector.broadcast %32 : vector<8x1xf32> to vector<8x1024xf32>
    %219 = arith.mulf %218, %217 : vector<8x1024xf32>
    %220 = arith.addf %216, %219 : vector<8x1024xf32>
    %c1535_i32_23 = arith.constant 1535 : i32
    %221 = tpu.dynamic_rotate %157 by %c1535_i32_23 dim 1 : vector<8x1536xf32>, i32 -> vector<8x1536xf32>
    %222 = vector.extract_strided_slice %221 {offsets = [0, 0], sizes = [8, 1024], strides = [1, 1]} : vector<8x1536xf32> to vector<8x1024xf32>
    %223 = vector.broadcast %15 : vector<8x1xf32> to vector<8x1024xf32>
    %224 = arith.mulf %223, %222 : vector<8x1024xf32>
    %225 = arith.addf %220, %224 : vector<8x1024xf32>
    %226 = vector.extract_strided_slice %221 {offsets = [0, 256], sizes = [8, 1024], strides = [1, 1]} : vector<8x1536xf32> to vector<8x1024xf32>
    %227 = vector.broadcast %24 : vector<8x1xf32> to vector<8x1024xf32>
    %228 = arith.mulf %227, %226 : vector<8x1024xf32>
    %229 = arith.addf %225, %228 : vector<8x1024xf32>
    %230 = vector.extract_strided_slice %221 {offsets = [0, 512], sizes = [8, 1024], strides = [1, 1]} : vector<8x1536xf32> to vector<8x1024xf32>
    %231 = vector.broadcast %33 : vector<8x1xf32> to vector<8x1024xf32>
    %232 = arith.mulf %231, %230 : vector<8x1024xf32>
    %233 = arith.addf %229, %232 : vector<8x1024xf32>
    %c1521_i32_24 = arith.constant 1521 : i32
    %234 = tpu.dynamic_rotate %157 by %c1521_i32_24 dim 1 : vector<8x1536xf32>, i32 -> vector<8x1536xf32>
    %235 = vector.extract_strided_slice %234 {offsets = [0, 0], sizes = [8, 1024], strides = [1, 1]} : vector<8x1536xf32> to vector<8x1024xf32>
    %236 = vector.broadcast %16 : vector<8x1xf32> to vector<8x1024xf32>
    %237 = arith.mulf %236, %235 : vector<8x1024xf32>
    %238 = arith.addf %233, %237 : vector<8x1024xf32>
    %239 = vector.extract_strided_slice %234 {offsets = [0, 256], sizes = [8, 1024], strides = [1, 1]} : vector<8x1536xf32> to vector<8x1024xf32>
    %240 = vector.broadcast %25 : vector<8x1xf32> to vector<8x1024xf32>
    %241 = arith.mulf %240, %239 : vector<8x1024xf32>
    %242 = arith.addf %238, %241 : vector<8x1024xf32>
    %243 = vector.extract_strided_slice %234 {offsets = [0, 512], sizes = [8, 1024], strides = [1, 1]} : vector<8x1536xf32> to vector<8x1024xf32>
    %244 = vector.broadcast %34 : vector<8x1xf32> to vector<8x1024xf32>
    %245 = arith.mulf %244, %243 : vector<8x1024xf32>
    %246 = arith.addf %242, %245 : vector<8x1024xf32>
    %c1520_i32_25 = arith.constant 1520 : i32
    %247 = tpu.dynamic_rotate %157 by %c1520_i32_25 dim 1 : vector<8x1536xf32>, i32 -> vector<8x1536xf32>
    %248 = vector.extract_strided_slice %247 {offsets = [0, 0], sizes = [8, 1024], strides = [1, 1]} : vector<8x1536xf32> to vector<8x1024xf32>
    %249 = vector.broadcast %17 : vector<8x1xf32> to vector<8x1024xf32>
    %250 = arith.mulf %249, %248 : vector<8x1024xf32>
    %251 = arith.addf %246, %250 : vector<8x1024xf32>
    %252 = vector.extract_strided_slice %247 {offsets = [0, 256], sizes = [8, 1024], strides = [1, 1]} : vector<8x1536xf32> to vector<8x1024xf32>
    %253 = vector.broadcast %26 : vector<8x1xf32> to vector<8x1024xf32>
    %254 = arith.mulf %253, %252 : vector<8x1024xf32>
    %255 = arith.addf %251, %254 : vector<8x1024xf32>
    %256 = vector.extract_strided_slice %247 {offsets = [0, 512], sizes = [8, 1024], strides = [1, 1]} : vector<8x1536xf32> to vector<8x1024xf32>
    %257 = vector.broadcast %35 : vector<8x1xf32> to vector<8x1024xf32>
    %258 = arith.mulf %257, %256 : vector<8x1024xf32>
    %259 = arith.addf %255, %258 : vector<8x1024xf32>
    %c1519_i32_26 = arith.constant 1519 : i32
    %260 = tpu.dynamic_rotate %157 by %c1519_i32_26 dim 1 : vector<8x1536xf32>, i32 -> vector<8x1536xf32>
    %261 = vector.extract_strided_slice %260 {offsets = [0, 0], sizes = [8, 1024], strides = [1, 1]} : vector<8x1536xf32> to vector<8x1024xf32>
    %262 = vector.broadcast %18 : vector<8x1xf32> to vector<8x1024xf32>
    %263 = arith.mulf %262, %261 : vector<8x1024xf32>
    %264 = arith.addf %259, %263 : vector<8x1024xf32>
    %265 = vector.extract_strided_slice %260 {offsets = [0, 256], sizes = [8, 1024], strides = [1, 1]} : vector<8x1536xf32> to vector<8x1024xf32>
    %266 = vector.broadcast %27 : vector<8x1xf32> to vector<8x1024xf32>
    %267 = arith.mulf %266, %265 : vector<8x1024xf32>
    %268 = arith.addf %264, %267 : vector<8x1024xf32>
    %269 = vector.extract_strided_slice %260 {offsets = [0, 512], sizes = [8, 1024], strides = [1, 1]} : vector<8x1536xf32> to vector<8x1024xf32>
    %270 = vector.broadcast %36 : vector<8x1xf32> to vector<8x1024xf32>
    %271 = arith.mulf %270, %269 : vector<8x1024xf32>
    %272 = arith.addf %268, %271 : vector<8x1024xf32>
    %273 = vector.broadcast %37 : vector<8x1xf32> to vector<8x1024xf32>
    %274 = arith.addf %272, %273 : vector<8x1024xf32>
    %c0_27 = arith.constant 0 : index
    %c1024_28 = arith.constant 1024 : index
    %275 = vector.load %arg9[%c0_27, %c1024_28] : memref<8x4096xf32, #tpu.memory_space<vmem>>, vector<8x1024xf32>
    tpu.vector_store %arg9[%c0_27, %c1024_28], %274 {strides = array<i32>} : memref<8x4096xf32, #tpu.memory_space<vmem>>, vector<8x1024xf32>,
    %c0_29 = arith.constant 0 : index
    %c2048 = arith.constant 2048 : index
    %276 = vector.load %arg8[%c0_29, %c2048] : memref<8x4608xf32, #tpu.memory_space<vmem>>, vector<8x1536xf32>
    %277 = vector.extract_strided_slice %276 {offsets = [0, 256], sizes = [8, 1024], strides = [1, 1]} : vector<8x1536xf32> to vector<8x1024xf32>
    %278 = vector.broadcast %23 : vector<8x1xf32> to vector<8x1024xf32>
    %279 = arith.mulf %278, %277 : vector<8x1024xf32>
    %c17_i32_30 = arith.constant 17 : i32
    %280 = tpu.dynamic_rotate %276 by %c17_i32_30 dim 1 : vector<8x1536xf32>, i32 -> vector<8x1536xf32>
    %281 = vector.extract_strided_slice %280 {offsets = [0, 0], sizes = [8, 1024], strides = [1, 1]} : vector<8x1536xf32> to vector<8x1024xf32>
    %282 = vector.broadcast %10 : vector<8x1xf32> to vector<8x1024xf32>
    %283 = arith.mulf %282, %281 : vector<8x1024xf32>
    %284 = arith.addf %279, %283 : vector<8x1024xf32>
    %285 = vector.extract_strided_slice %280 {offsets = [0, 256], sizes = [8, 1024], strides = [1, 1]} : vector<8x1536xf32> to vector<8x1024xf32>
    %286 = vector.broadcast %19 : vector<8x1xf32> to vector<8x1024xf32>
    %287 = arith.mulf %286, %285 : vector<8x1024xf32>
    %288 = arith.addf %284, %287 : vector<8x1024xf32>
    %289 = vector.extract_strided_slice %280 {offsets = [0, 512], sizes = [8, 1024], strides = [1, 1]} : vector<8x1536xf32> to vector<8x1024xf32>
    %290 = vector.broadcast %28 : vector<8x1xf32> to vector<8x1024xf32>
    %291 = arith.mulf %290, %289 : vector<8x1024xf32>
    %292 = arith.addf %288, %291 : vector<8x1024xf32>
    %c16_i32_31 = arith.constant 16 : i32
    %293 = tpu.dynamic_rotate %276 by %c16_i32_31 dim 1 : vector<8x1536xf32>, i32 -> vector<8x1536xf32>
    %294 = vector.extract_strided_slice %293 {offsets = [0, 0], sizes = [8, 1024], strides = [1, 1]} : vector<8x1536xf32> to vector<8x1024xf32>
    %295 = vector.broadcast %11 : vector<8x1xf32> to vector<8x1024xf32>
    %296 = arith.mulf %295, %294 : vector<8x1024xf32>
    %297 = arith.addf %292, %296 : vector<8x1024xf32>
    %298 = vector.extract_strided_slice %293 {offsets = [0, 256], sizes = [8, 1024], strides = [1, 1]} : vector<8x1536xf32> to vector<8x1024xf32>
    %299 = vector.broadcast %20 : vector<8x1xf32> to vector<8x1024xf32>
    %300 = arith.mulf %299, %298 : vector<8x1024xf32>
    %301 = arith.addf %297, %300 : vector<8x1024xf32>
    %302 = vector.extract_strided_slice %293 {offsets = [0, 512], sizes = [8, 1024], strides = [1, 1]} : vector<8x1536xf32> to vector<8x1024xf32>
    %303 = vector.broadcast %29 : vector<8x1xf32> to vector<8x1024xf32>
    %304 = arith.mulf %303, %302 : vector<8x1024xf32>
    %305 = arith.addf %301, %304 : vector<8x1024xf32>
    %c15_i32_32 = arith.constant 15 : i32
    %306 = tpu.dynamic_rotate %276 by %c15_i32_32 dim 1 : vector<8x1536xf32>, i32 -> vector<8x1536xf32>
    %307 = vector.extract_strided_slice %306 {offsets = [0, 0], sizes = [8, 1024], strides = [1, 1]} : vector<8x1536xf32> to vector<8x1024xf32>
    %308 = vector.broadcast %12 : vector<8x1xf32> to vector<8x1024xf32>
    %309 = arith.mulf %308, %307 : vector<8x1024xf32>
    %310 = arith.addf %305, %309 : vector<8x1024xf32>
    %311 = vector.extract_strided_slice %306 {offsets = [0, 256], sizes = [8, 1024], strides = [1, 1]} : vector<8x1536xf32> to vector<8x1024xf32>
    %312 = vector.broadcast %21 : vector<8x1xf32> to vector<8x1024xf32>
    %313 = arith.mulf %312, %311 : vector<8x1024xf32>
    %314 = arith.addf %310, %313 : vector<8x1024xf32>
    %315 = vector.extract_strided_slice %306 {offsets = [0, 512], sizes = [8, 1024], strides = [1, 1]} : vector<8x1536xf32> to vector<8x1024xf32>
    %316 = vector.broadcast %30 : vector<8x1xf32> to vector<8x1024xf32>
    %317 = arith.mulf %316, %315 : vector<8x1024xf32>
    %318 = arith.addf %314, %317 : vector<8x1024xf32>
    %c1_i32_33 = arith.constant 1 : i32
    %319 = tpu.dynamic_rotate %276 by %c1_i32_33 dim 1 : vector<8x1536xf32>, i32 -> vector<8x1536xf32>
    %320 = vector.extract_strided_slice %319 {offsets = [0, 0], sizes = [8, 1024], strides = [1, 1]} : vector<8x1536xf32> to vector<8x1024xf32>
    %321 = vector.broadcast %13 : vector<8x1xf32> to vector<8x1024xf32>
    %322 = arith.mulf %321, %320 : vector<8x1024xf32>
    %323 = arith.addf %318, %322 : vector<8x1024xf32>
    %324 = vector.extract_strided_slice %319 {offsets = [0, 256], sizes = [8, 1024], strides = [1, 1]} : vector<8x1536xf32> to vector<8x1024xf32>
    %325 = vector.broadcast %22 : vector<8x1xf32> to vector<8x1024xf32>
    %326 = arith.mulf %325, %324 : vector<8x1024xf32>
    %327 = arith.addf %323, %326 : vector<8x1024xf32>
    %328 = vector.extract_strided_slice %319 {offsets = [0, 512], sizes = [8, 1024], strides = [1, 1]} : vector<8x1536xf32> to vector<8x1024xf32>
    %329 = vector.broadcast %31 : vector<8x1xf32> to vector<8x1024xf32>
    %330 = arith.mulf %329, %328 : vector<8x1024xf32>
    %331 = arith.addf %327, %330 : vector<8x1024xf32>
    %332 = vector.extract_strided_slice %276 {offsets = [0, 0], sizes = [8, 1024], strides = [1, 1]} : vector<8x1536xf32> to vector<8x1024xf32>
    %333 = vector.broadcast %14 : vector<8x1xf32> to vector<8x1024xf32>
    %334 = arith.mulf %333, %332 : vector<8x1024xf32>
    %335 = arith.addf %331, %334 : vector<8x1024xf32>
    %336 = vector.extract_strided_slice %276 {offsets = [0, 512], sizes = [8, 1024], strides = [1, 1]} : vector<8x1536xf32> to vector<8x1024xf32>
    %337 = vector.broadcast %32 : vector<8x1xf32> to vector<8x1024xf32>
    %338 = arith.mulf %337, %336 : vector<8x1024xf32>
    %339 = arith.addf %335, %338 : vector<8x1024xf32>
    %c1535_i32_34 = arith.constant 1535 : i32
    %340 = tpu.dynamic_rotate %276 by %c1535_i32_34 dim 1 : vector<8x1536xf32>, i32 -> vector<8x1536xf32>
    %341 = vector.extract_strided_slice %340 {offsets = [0, 0], sizes = [8, 1024], strides = [1, 1]} : vector<8x1536xf32> to vector<8x1024xf32>
    %342 = vector.broadcast %15 : vector<8x1xf32> to vector<8x1024xf32>
    %343 = arith.mulf %342, %341 : vector<8x1024xf32>
    %344 = arith.addf %339, %343 : vector<8x1024xf32>
    %345 = vector.extract_strided_slice %340 {offsets = [0, 256], sizes = [8, 1024], strides = [1, 1]} : vector<8x1536xf32> to vector<8x1024xf32>
    %346 = vector.broadcast %24 : vector<8x1xf32> to vector<8x1024xf32>
    %347 = arith.mulf %346, %345 : vector<8x1024xf32>
    %348 = arith.addf %344, %347 : vector<8x1024xf32>
    %349 = vector.extract_strided_slice %340 {offsets = [0, 512], sizes = [8, 1024], strides = [1, 1]} : vector<8x1536xf32> to vector<8x1024xf32>
    %350 = vector.broadcast %33 : vector<8x1xf32> to vector<8x1024xf32>
    %351 = arith.mulf %350, %349 : vector<8x1024xf32>
    %352 = arith.addf %348, %351 : vector<8x1024xf32>
    %c1521_i32_35 = arith.constant 1521 : i32
    %353 = tpu.dynamic_rotate %276 by %c1521_i32_35 dim 1 : vector<8x1536xf32>, i32 -> vector<8x1536xf32>
    %354 = vector.extract_strided_slice %353 {offsets = [0, 0], sizes = [8, 1024], strides = [1, 1]} : vector<8x1536xf32> to vector<8x1024xf32>
    %355 = vector.broadcast %16 : vector<8x1xf32> to vector<8x1024xf32>
    %356 = arith.mulf %355, %354 : vector<8x1024xf32>
    %357 = arith.addf %352, %356 : vector<8x1024xf32>
    %358 = vector.extract_strided_slice %353 {offsets = [0, 256], sizes = [8, 1024], strides = [1, 1]} : vector<8x1536xf32> to vector<8x1024xf32>
    %359 = vector.broadcast %25 : vector<8x1xf32> to vector<8x1024xf32>
    %360 = arith.mulf %359, %358 : vector<8x1024xf32>
    %361 = arith.addf %357, %360 : vector<8x1024xf32>
    %362 = vector.extract_strided_slice %353 {offsets = [0, 512], sizes = [8, 1024], strides = [1, 1]} : vector<8x1536xf32> to vector<8x1024xf32>
    %363 = vector.broadcast %34 : vector<8x1xf32> to vector<8x1024xf32>
    %364 = arith.mulf %363, %362 : vector<8x1024xf32>
    %365 = arith.addf %361, %364 : vector<8x1024xf32>
    %c1520_i32_36 = arith.constant 1520 : i32
    %366 = tpu.dynamic_rotate %276 by %c1520_i32_36 dim 1 : vector<8x1536xf32>, i32 -> vector<8x1536xf32>
    %367 = vector.extract_strided_slice %366 {offsets = [0, 0], sizes = [8, 1024], strides = [1, 1]} : vector<8x1536xf32> to vector<8x1024xf32>
    %368 = vector.broadcast %17 : vector<8x1xf32> to vector<8x1024xf32>
    %369 = arith.mulf %368, %367 : vector<8x1024xf32>
    %370 = arith.addf %365, %369 : vector<8x1024xf32>
    %371 = vector.extract_strided_slice %366 {offsets = [0, 256], sizes = [8, 1024], strides = [1, 1]} : vector<8x1536xf32> to vector<8x1024xf32>
    %372 = vector.broadcast %26 : vector<8x1xf32> to vector<8x1024xf32>
    %373 = arith.mulf %372, %371 : vector<8x1024xf32>
    %374 = arith.addf %370, %373 : vector<8x1024xf32>
    %375 = vector.extract_strided_slice %366 {offsets = [0, 512], sizes = [8, 1024], strides = [1, 1]} : vector<8x1536xf32> to vector<8x1024xf32>
    %376 = vector.broadcast %35 : vector<8x1xf32> to vector<8x1024xf32>
    %377 = arith.mulf %376, %375 : vector<8x1024xf32>
    %378 = arith.addf %374, %377 : vector<8x1024xf32>
    %c1519_i32_37 = arith.constant 1519 : i32
    %379 = tpu.dynamic_rotate %276 by %c1519_i32_37 dim 1 : vector<8x1536xf32>, i32 -> vector<8x1536xf32>
    %380 = vector.extract_strided_slice %379 {offsets = [0, 0], sizes = [8, 1024], strides = [1, 1]} : vector<8x1536xf32> to vector<8x1024xf32>
    %381 = vector.broadcast %18 : vector<8x1xf32> to vector<8x1024xf32>
    %382 = arith.mulf %381, %380 : vector<8x1024xf32>
    %383 = arith.addf %378, %382 : vector<8x1024xf32>
    %384 = vector.extract_strided_slice %379 {offsets = [0, 256], sizes = [8, 1024], strides = [1, 1]} : vector<8x1536xf32> to vector<8x1024xf32>
    %385 = vector.broadcast %27 : vector<8x1xf32> to vector<8x1024xf32>
    %386 = arith.mulf %385, %384 : vector<8x1024xf32>
    %387 = arith.addf %383, %386 : vector<8x1024xf32>
    %388 = vector.extract_strided_slice %379 {offsets = [0, 512], sizes = [8, 1024], strides = [1, 1]} : vector<8x1536xf32> to vector<8x1024xf32>
    %389 = vector.broadcast %36 : vector<8x1xf32> to vector<8x1024xf32>
    %390 = arith.mulf %389, %388 : vector<8x1024xf32>
    %391 = arith.addf %387, %390 : vector<8x1024xf32>
    %392 = vector.broadcast %37 : vector<8x1xf32> to vector<8x1024xf32>
    %393 = arith.addf %391, %392 : vector<8x1024xf32>
    %c0_38 = arith.constant 0 : index
    %c2048_39 = arith.constant 2048 : index
    %394 = vector.load %arg9[%c0_38, %c2048_39] : memref<8x4096xf32, #tpu.memory_space<vmem>>, vector<8x1024xf32>
    tpu.vector_store %arg9[%c0_38, %c2048_39], %393 {strides = array<i32>} : memref<8x4096xf32, #tpu.memory_space<vmem>>, vector<8x1024xf32>,
    %c0_40 = arith.constant 0 : index
    %c3072 = arith.constant 3072 : index
    %395 = vector.load %arg8[%c0_40, %c3072] : memref<8x4608xf32, #tpu.memory_space<vmem>>, vector<8x1536xf32>
    %396 = vector.extract_strided_slice %395 {offsets = [0, 256], sizes = [8, 1024], strides = [1, 1]} : vector<8x1536xf32> to vector<8x1024xf32>
    %397 = vector.broadcast %23 : vector<8x1xf32> to vector<8x1024xf32>
    %398 = arith.mulf %397, %396 : vector<8x1024xf32>
    %c17_i32_41 = arith.constant 17 : i32
    %399 = tpu.dynamic_rotate %395 by %c17_i32_41 dim 1 : vector<8x1536xf32>, i32 -> vector<8x1536xf32>
    %400 = vector.extract_strided_slice %399 {offsets = [0, 0], sizes = [8, 1024], strides = [1, 1]} : vector<8x1536xf32> to vector<8x1024xf32>
    %401 = vector.broadcast %10 : vector<8x1xf32> to vector<8x1024xf32>
    %402 = arith.mulf %401, %400 : vector<8x1024xf32>
    %403 = arith.addf %398, %402 : vector<8x1024xf32>
    %404 = vector.extract_strided_slice %399 {offsets = [0, 256], sizes = [8, 1024], strides = [1, 1]} : vector<8x1536xf32> to vector<8x1024xf32>
    %405 = vector.broadcast %19 : vector<8x1xf32> to vector<8x1024xf32>
    %406 = arith.mulf %405, %404 : vector<8x1024xf32>
    %407 = arith.addf %403, %406 : vector<8x1024xf32>
    %408 = vector.extract_strided_slice %399 {offsets = [0, 512], sizes = [8, 1024], strides = [1, 1]} : vector<8x1536xf32> to vector<8x1024xf32>
    %409 = vector.broadcast %28 : vector<8x1xf32> to vector<8x1024xf32>
    %410 = arith.mulf %409, %408 : vector<8x1024xf32>
    %411 = arith.addf %407, %410 : vector<8x1024xf32>
    %c16_i32_42 = arith.constant 16 : i32
    %412 = tpu.dynamic_rotate %395 by %c16_i32_42 dim 1 : vector<8x1536xf32>, i32 -> vector<8x1536xf32>
    %413 = vector.extract_strided_slice %412 {offsets = [0, 0], sizes = [8, 1024], strides = [1, 1]} : vector<8x1536xf32> to vector<8x1024xf32>
    %414 = vector.broadcast %11 : vector<8x1xf32> to vector<8x1024xf32>
    %415 = arith.mulf %414, %413 : vector<8x1024xf32>
    %416 = arith.addf %411, %415 : vector<8x1024xf32>
    %417 = vector.extract_strided_slice %412 {offsets = [0, 256], sizes = [8, 1024], strides = [1, 1]} : vector<8x1536xf32> to vector<8x1024xf32>
    %418 = vector.broadcast %20 : vector<8x1xf32> to vector<8x1024xf32>
    %419 = arith.mulf %418, %417 : vector<8x1024xf32>
    %420 = arith.addf %416, %419 : vector<8x1024xf32>
    %421 = vector.extract_strided_slice %412 {offsets = [0, 512], sizes = [8, 1024], strides = [1, 1]} : vector<8x1536xf32> to vector<8x1024xf32>
    %422 = vector.broadcast %29 : vector<8x1xf32> to vector<8x1024xf32>
    %423 = arith.mulf %422, %421 : vector<8x1024xf32>
    %424 = arith.addf %420, %423 : vector<8x1024xf32>
    %c15_i32_43 = arith.constant 15 : i32
    %425 = tpu.dynamic_rotate %395 by %c15_i32_43 dim 1 : vector<8x1536xf32>, i32 -> vector<8x1536xf32>
    %426 = vector.extract_strided_slice %425 {offsets = [0, 0], sizes = [8, 1024], strides = [1, 1]} : vector<8x1536xf32> to vector<8x1024xf32>
    %427 = vector.broadcast %12 : vector<8x1xf32> to vector<8x1024xf32>
    %428 = arith.mulf %427, %426 : vector<8x1024xf32>
    %429 = arith.addf %424, %428 : vector<8x1024xf32>
    %430 = vector.extract_strided_slice %425 {offsets = [0, 256], sizes = [8, 1024], strides = [1, 1]} : vector<8x1536xf32> to vector<8x1024xf32>
    %431 = vector.broadcast %21 : vector<8x1xf32> to vector<8x1024xf32>
    %432 = arith.mulf %431, %430 : vector<8x1024xf32>
    %433 = arith.addf %429, %432 : vector<8x1024xf32>
    %434 = vector.extract_strided_slice %425 {offsets = [0, 512], sizes = [8, 1024], strides = [1, 1]} : vector<8x1536xf32> to vector<8x1024xf32>
    %435 = vector.broadcast %30 : vector<8x1xf32> to vector<8x1024xf32>
    %436 = arith.mulf %435, %434 : vector<8x1024xf32>
    %437 = arith.addf %433, %436 : vector<8x1024xf32>
    %c1_i32_44 = arith.constant 1 : i32
    %438 = tpu.dynamic_rotate %395 by %c1_i32_44 dim 1 : vector<8x1536xf32>, i32 -> vector<8x1536xf32>
    %439 = vector.extract_strided_slice %438 {offsets = [0, 0], sizes = [8, 1024], strides = [1, 1]} : vector<8x1536xf32> to vector<8x1024xf32>
    %440 = vector.broadcast %13 : vector<8x1xf32> to vector<8x1024xf32>
    %441 = arith.mulf %440, %439 : vector<8x1024xf32>
    %442 = arith.addf %437, %441 : vector<8x1024xf32>
    %443 = vector.extract_strided_slice %438 {offsets = [0, 256], sizes = [8, 1024], strides = [1, 1]} : vector<8x1536xf32> to vector<8x1024xf32>
    %444 = vector.broadcast %22 : vector<8x1xf32> to vector<8x1024xf32>
    %445 = arith.mulf %444, %443 : vector<8x1024xf32>
    %446 = arith.addf %442, %445 : vector<8x1024xf32>
    %447 = vector.extract_strided_slice %438 {offsets = [0, 512], sizes = [8, 1024], strides = [1, 1]} : vector<8x1536xf32> to vector<8x1024xf32>
    %448 = vector.broadcast %31 : vector<8x1xf32> to vector<8x1024xf32>
    %449 = arith.mulf %448, %447 : vector<8x1024xf32>
    %450 = arith.addf %446, %449 : vector<8x1024xf32>
    %451 = vector.extract_strided_slice %395 {offsets = [0, 0], sizes = [8, 1024], strides = [1, 1]} : vector<8x1536xf32> to vector<8x1024xf32>
    %452 = vector.broadcast %14 : vector<8x1xf32> to vector<8x1024xf32>
    %453 = arith.mulf %452, %451 : vector<8x1024xf32>
    %454 = arith.addf %450, %453 : vector<8x1024xf32>
    %455 = vector.extract_strided_slice %395 {offsets = [0, 512], sizes = [8, 1024], strides = [1, 1]} : vector<8x1536xf32> to vector<8x1024xf32>
    %456 = vector.broadcast %32 : vector<8x1xf32> to vector<8x1024xf32>
    %457 = arith.mulf %456, %455 : vector<8x1024xf32>
    %458 = arith.addf %454, %457 : vector<8x1024xf32>
    %c1535_i32_45 = arith.constant 1535 : i32
    %459 = tpu.dynamic_rotate %395 by %c1535_i32_45 dim 1 : vector<8x1536xf32>, i32 -> vector<8x1536xf32>
    %460 = vector.extract_strided_slice %459 {offsets = [0, 0], sizes = [8, 1024], strides = [1, 1]} : vector<8x1536xf32> to vector<8x1024xf32>
    %461 = vector.broadcast %15 : vector<8x1xf32> to vector<8x1024xf32>
    %462 = arith.mulf %461, %460 : vector<8x1024xf32>
    %463 = arith.addf %458, %462 : vector<8x1024xf32>
    %464 = vector.extract_strided_slice %459 {offsets = [0, 256], sizes = [8, 1024], strides = [1, 1]} : vector<8x1536xf32> to vector<8x1024xf32>
    %465 = vector.broadcast %24 : vector<8x1xf32> to vector<8x1024xf32>
    %466 = arith.mulf %465, %464 : vector<8x1024xf32>
    %467 = arith.addf %463, %466 : vector<8x1024xf32>
    %468 = vector.extract_strided_slice %459 {offsets = [0, 512], sizes = [8, 1024], strides = [1, 1]} : vector<8x1536xf32> to vector<8x1024xf32>
    %469 = vector.broadcast %33 : vector<8x1xf32> to vector<8x1024xf32>
    %470 = arith.mulf %469, %468 : vector<8x1024xf32>
    %471 = arith.addf %467, %470 : vector<8x1024xf32>
    %c1521_i32_46 = arith.constant 1521 : i32
    %472 = tpu.dynamic_rotate %395 by %c1521_i32_46 dim 1 : vector<8x1536xf32>, i32 -> vector<8x1536xf32>
    %473 = vector.extract_strided_slice %472 {offsets = [0, 0], sizes = [8, 1024], strides = [1, 1]} : vector<8x1536xf32> to vector<8x1024xf32>
    %474 = vector.broadcast %16 : vector<8x1xf32> to vector<8x1024xf32>
    %475 = arith.mulf %474, %473 : vector<8x1024xf32>
    %476 = arith.addf %471, %475 : vector<8x1024xf32>
    %477 = vector.extract_strided_slice %472 {offsets = [0, 256], sizes = [8, 1024], strides = [1, 1]} : vector<8x1536xf32> to vector<8x1024xf32>
    %478 = vector.broadcast %25 : vector<8x1xf32> to vector<8x1024xf32>
    %479 = arith.mulf %478, %477 : vector<8x1024xf32>
    %480 = arith.addf %476, %479 : vector<8x1024xf32>
    %481 = vector.extract_strided_slice %472 {offsets = [0, 512], sizes = [8, 1024], strides = [1, 1]} : vector<8x1536xf32> to vector<8x1024xf32>
    %482 = vector.broadcast %34 : vector<8x1xf32> to vector<8x1024xf32>
    %483 = arith.mulf %482, %481 : vector<8x1024xf32>
    %484 = arith.addf %480, %483 : vector<8x1024xf32>
    %c1520_i32_47 = arith.constant 1520 : i32
    %485 = tpu.dynamic_rotate %395 by %c1520_i32_47 dim 1 : vector<8x1536xf32>, i32 -> vector<8x1536xf32>
    %486 = vector.extract_strided_slice %485 {offsets = [0, 0], sizes = [8, 1024], strides = [1, 1]} : vector<8x1536xf32> to vector<8x1024xf32>
    %487 = vector.broadcast %17 : vector<8x1xf32> to vector<8x1024xf32>
    %488 = arith.mulf %487, %486 : vector<8x1024xf32>
    %489 = arith.addf %484, %488 : vector<8x1024xf32>
    %490 = vector.extract_strided_slice %485 {offsets = [0, 256], sizes = [8, 1024], strides = [1, 1]} : vector<8x1536xf32> to vector<8x1024xf32>
    %491 = vector.broadcast %26 : vector<8x1xf32> to vector<8x1024xf32>
    %492 = arith.mulf %491, %490 : vector<8x1024xf32>
    %493 = arith.addf %489, %492 : vector<8x1024xf32>
    %494 = vector.extract_strided_slice %485 {offsets = [0, 512], sizes = [8, 1024], strides = [1, 1]} : vector<8x1536xf32> to vector<8x1024xf32>
    %495 = vector.broadcast %35 : vector<8x1xf32> to vector<8x1024xf32>
    %496 = arith.mulf %495, %494 : vector<8x1024xf32>
    %497 = arith.addf %493, %496 : vector<8x1024xf32>
    %c1519_i32_48 = arith.constant 1519 : i32
    %498 = tpu.dynamic_rotate %395 by %c1519_i32_48 dim 1 : vector<8x1536xf32>, i32 -> vector<8x1536xf32>
    %499 = vector.extract_strided_slice %498 {offsets = [0, 0], sizes = [8, 1024], strides = [1, 1]} : vector<8x1536xf32> to vector<8x1024xf32>
    %500 = vector.broadcast %18 : vector<8x1xf32> to vector<8x1024xf32>
    %501 = arith.mulf %500, %499 : vector<8x1024xf32>
    %502 = arith.addf %497, %501 : vector<8x1024xf32>
    %503 = vector.extract_strided_slice %498 {offsets = [0, 256], sizes = [8, 1024], strides = [1, 1]} : vector<8x1536xf32> to vector<8x1024xf32>
    %504 = vector.broadcast %27 : vector<8x1xf32> to vector<8x1024xf32>
    %505 = arith.mulf %504, %503 : vector<8x1024xf32>
    %506 = arith.addf %502, %505 : vector<8x1024xf32>
    %507 = vector.extract_strided_slice %498 {offsets = [0, 512], sizes = [8, 1024], strides = [1, 1]} : vector<8x1536xf32> to vector<8x1024xf32>
    %508 = vector.broadcast %36 : vector<8x1xf32> to vector<8x1024xf32>
    %509 = arith.mulf %508, %507 : vector<8x1024xf32>
    %510 = arith.addf %506, %509 : vector<8x1024xf32>
    %511 = vector.broadcast %37 : vector<8x1xf32> to vector<8x1024xf32>
    %512 = arith.addf %510, %511 : vector<8x1024xf32>
    %c0_49 = arith.constant 0 : index
    %c3072_50 = arith.constant 3072 : index
    %513 = vector.load %arg9[%c0_49, %c3072_50] : memref<8x4096xf32, #tpu.memory_space<vmem>>, vector<8x1024xf32>
    tpu.vector_store %arg9[%c0_49, %c3072_50], %512 {strides = array<i32>} : memref<8x4096xf32, #tpu.memory_space<vmem>>, vector<8x1024xf32>,
    %c0_51 = arith.constant 0 : index
    %c0_52 = arith.constant 0 : index
    %514 = vector.load %arg9[%c0_51, %c0_52] : memref<8x4096xf32, #tpu.memory_space<vmem>>, vector<8x4096xf32>
    %515 = vector.extract_strided_slice %514 {offsets = [0, 0], sizes = [4, 4096], strides = [1, 1]} : vector<8x4096xf32> to vector<4x4096xf32>
    %516 = vector.extract_strided_slice %514 {offsets = [4, 0], sizes = [4, 4096], strides = [1, 1]} : vector<8x4096xf32> to vector<4x4096xf32>
    %c0_53 = arith.constant 0 : index
    %c0_54 = arith.constant 0 : index
    %517 = vector.load %arg2[%c0_53, %c0_54] : memref<1x4096xf32, #tpu.memory_space<vmem>>, vector<1x4096xf32>
    %518 = vector.broadcast %517 : vector<1x4096xf32> to vector<4x4096xf32>
    %519 = arith.mulf %516, %518 : vector<4x4096xf32>
    %cst_55 = arith.constant dense<0.000000e+00> : vector<4xf32>
    %520 = vector.multi_reduction <add>, %519, %cst_55 [1] : vector<4x4096xf32> to vector<4xf32>
    %521 = vector.shape_cast %520 : vector<4xf32> to vector<4x1xf32>
    %cst_56 = arith.constant 2.744000e+03 : f32
    %522 = vector.broadcast %cst_56 : f32 to vector<4x1xf32>
    %523 = arith.divf %521, %522 : vector<4x1xf32>
    %524 = arith.mulf %519, %516 : vector<4x4096xf32>
    %cst_57 = arith.constant dense<0.000000e+00> : vector<4xf32>
    %525 = vector.multi_reduction <add>, %524, %cst_57 [1] : vector<4x4096xf32> to vector<4xf32>
    %526 = vector.shape_cast %525 : vector<4xf32> to vector<4x1xf32>
    %cst_58 = arith.constant 2.744000e+03 : f32
    %527 = vector.broadcast %cst_58 : f32 to vector<4x1xf32>
    %528 = arith.divf %526, %527 : vector<4x1xf32>
    %529 = arith.mulf %523, %523 : vector<4x1xf32>
    %530 = arith.subf %528, %529 : vector<4x1xf32>
    %cst_59 = arith.constant 0.000000e+00 : f32
    %531 = vector.broadcast %cst_59 : f32 to vector<4x1xf32>
    %532 = arith.maximumf %530, %531 : vector<4x1xf32>
    %533 = vector.broadcast %523 : vector<4x1xf32> to vector<4x4096xf32>
    %534 = arith.subf %516, %533 : vector<4x4096xf32>
    %cst_60 = arith.constant 9.99999974E-6 : f32
    %535 = vector.broadcast %cst_60 : f32 to vector<4x1xf32>
    %536 = arith.addf %532, %535 : vector<4x1xf32>
    %537 = math.rsqrt %536 : vector<4x1xf32>
    %538 = vector.broadcast %537 : vector<4x1xf32> to vector<4x4096xf32>
    %539 = arith.mulf %534, %538 : vector<4x4096xf32>
    %cst_61 = arith.constant 5.000000e-01 : f32
    %540 = vector.broadcast %cst_61 : f32 to vector<4x4096xf32>
    %541 = arith.mulf %540, %539 : vector<4x4096xf32>
    %cst_62 = arith.constant 0.707106769 : f32
    %542 = vector.broadcast %cst_62 : f32 to vector<4x4096xf32>
    %543 = arith.mulf %539, %542 : vector<4x4096xf32>
    %544 = math.absf %543 : vector<4x4096xf32>
    %cst_63 = arith.constant 0.327591091 : f32
    %545 = vector.broadcast %cst_63 : f32 to vector<4x4096xf32>
    %546 = arith.mulf %545, %544 : vector<4x4096xf32>
    %cst_64 = arith.constant 1.000000e+00 : f32
    %547 = vector.broadcast %cst_64 : f32 to vector<4x4096xf32>
    %548 = arith.addf %547, %546 : vector<4x4096xf32>
    %cst_65 = arith.constant 1.000000e+00 : f32
    %549 = vector.broadcast %cst_65 : f32 to vector<4x4096xf32>
    %550 = arith.divf %549, %548 : vector<4x4096xf32>
    %cst_66 = arith.constant 1.06140542 : f32
    %551 = vector.broadcast %cst_66 : f32 to vector<4x4096xf32>
    %552 = arith.mulf %551, %550 : vector<4x4096xf32>
    %cst_67 = arith.constant -1.45315206 : f32
    %553 = vector.broadcast %cst_67 : f32 to vector<4x4096xf32>
    %554 = arith.addf %552, %553 : vector<4x4096xf32>
    %555 = arith.mulf %554, %550 : vector<4x4096xf32>
    %cst_68 = arith.constant 1.42141378 : f32
    %556 = vector.broadcast %cst_68 : f32 to vector<4x4096xf32>
    %557 = arith.addf %555, %556 : vector<4x4096xf32>
    %558 = arith.mulf %557, %550 : vector<4x4096xf32>
    %cst_69 = arith.constant -0.284496725 : f32
    %559 = vector.broadcast %cst_69 : f32 to vector<4x4096xf32>
    %560 = arith.addf %558, %559 : vector<4x4096xf32>
    %561 = arith.mulf %560, %550 : vector<4x4096xf32>
    %cst_70 = arith.constant 0.254829586 : f32
    %562 = vector.broadcast %cst_70 : f32 to vector<4x4096xf32>
    %563 = arith.addf %561, %562 : vector<4x4096xf32>
    %564 = arith.mulf %563, %550 : vector<4x4096xf32>
    %cst_71 = arith.constant 0.000000e+00 : f32
    %565 = vector.broadcast %cst_71 : f32 to vector<4x4096xf32>
    %566 = arith.subf %565, %544 : vector<4x4096xf32>
    %567 = arith.mulf %566, %544 : vector<4x4096xf32>
    %568 = math.exp %567 : vector<4x4096xf32>
    %569 = arith.mulf %564, %568 : vector<4x4096xf32>
    %cst_72 = arith.constant 1.000000e+00 : f32
    %570 = vector.broadcast %cst_72 : f32 to vector<4x4096xf32>
    %571 = arith.subf %570, %569 : vector<4x4096xf32>
    %cst_73 = arith.constant 0.000000e+00 : f32
    %572 = vector.broadcast %cst_73 : f32 to vector<4x4096xf32>
    %573 = arith.cmpf oge, %543, %572 : vector<4x4096xf32>
    %cst_74 = arith.constant 0.000000e+00 : f32
    %574 = vector.broadcast %cst_74 : f32 to vector<4x4096xf32>
    %575 = arith.subf %574, %571 : vector<4x4096xf32>
    %576 = arith.select %573, %571, %575 : vector<4x4096xi1>, vector<4x4096xf32>
    %cst_75 = arith.constant 1.000000e+00 : f32
    %577 = vector.broadcast %cst_75 : f32 to vector<4x4096xf32>
    %578 = arith.addf %577, %576 : vector<4x4096xf32>
    %579 = arith.mulf %541, %578 : vector<4x4096xf32>
    %580 = arith.mulf %515, %579 : vector<4x4096xf32>
    %581 = vector.broadcast %517 : vector<1x4096xf32> to vector<4x4096xf32>
    %582 = arith.mulf %580, %581 : vector<4x4096xf32>
    %c0_76 = arith.constant 0 : index
    %c0_77 = arith.constant 0 : index
    %583 = vector.load %arg6[%c0_76, %c0_77] : memref<4x4xf32, #tpu.memory_space<vmem>>, vector<4x4xf32>
    %cst_78 = arith.constant dense<0.000000e+00> : vector<4x4096xf32>
    %584 = tpu.matmul %583, %582, %cst_78 {dimension_numbers = #tpu.dot_dimension_numbers<[1], [0], [0], [1], [0, 0, 1, 1], [], []>} : vector<4x4xf32>, vector<4x4096xf32>, vector<4x4096xf32> -> vector<4x4096xf32>
    %cst_79 = arith.constant dense<0.000000e+00> : vector<4xf32>
    %585 = vector.multi_reduction <add>, %584, %cst_79 [1] : vector<4x4096xf32> to vector<4xf32>
    %586 = vector.shape_cast %585 : vector<4xf32> to vector<4x1xf32>
    %cst_80 = arith.constant 4.096000e+03 : f32
    %587 = vector.broadcast %cst_80 : f32 to vector<4x1xf32>
    %588 = arith.divf %586, %587 : vector<4x1xf32>
    %589 = arith.mulf %584, %584 : vector<4x4096xf32>
    %cst_81 = arith.constant dense<0.000000e+00> : vector<4xf32>
    %590 = vector.multi_reduction <add>, %589, %cst_81 [1] : vector<4x4096xf32> to vector<4xf32>
    %591 = vector.shape_cast %590 : vector<4xf32> to vector<4x1xf32>
    %cst_82 = arith.constant 4.096000e+03 : f32
    %592 = vector.broadcast %cst_82 : f32 to vector<4x1xf32>
    %593 = arith.divf %591, %592 : vector<4x1xf32>
    %594 = arith.mulf %588, %588 : vector<4x1xf32>
    %595 = arith.subf %593, %594 : vector<4x1xf32>
    %cst_83 = arith.constant 0.000000e+00 : f32
    %596 = vector.broadcast %cst_83 : f32 to vector<4x1xf32>
    %597 = arith.maximumf %595, %596 : vector<4x1xf32>
    %598 = vector.broadcast %588 : vector<4x1xf32> to vector<4x4096xf32>
    %599 = arith.subf %584, %598 : vector<4x4096xf32>
    %cst_84 = arith.constant 9.99999974E-6 : f32
    %600 = vector.broadcast %cst_84 : f32 to vector<4x1xf32>
    %601 = arith.addf %597, %600 : vector<4x1xf32>
    %602 = math.rsqrt %601 : vector<4x1xf32>
    %603 = vector.broadcast %602 : vector<4x1xf32> to vector<4x4096xf32>
    %604 = arith.mulf %599, %603 : vector<4x4096xf32>
    %c0_85 = arith.constant 0 : index
    %c0_86 = arith.constant 0 : index
    %c0_87 = arith.constant 0 : index
    %605 = vector.load %arg1[%c0_85, %c0_86, %c0_87] : memref<1x4x4096xf32, #tpu.memory_space<vmem>>, vector<1x4x4096xf32>
    %606 = vector.shape_cast %605 : vector<1x4x4096xf32> to vector<4x4096xf32>
    %607 = arith.addf %606, %604 : vector<4x4096xf32>
    %c0_88 = arith.constant 0 : index
    %c0_89 = arith.constant 0 : index
    %c0_90 = arith.constant 0 : index
    %608 = vector.load %arg7[%c0_88, %c0_89, %c0_90] : memref<1x4x4096xf32, #tpu.memory_space<vmem>>, vector<1x4x4096xf32>
    %609 = vector.shape_cast %608 : vector<1x4x4096xf32> to vector<4x4096xf32>
    %610 = vector.shape_cast %607 : vector<4x4096xf32> to vector<1x4x4096xf32>
    tpu.vector_store %arg7[%c0_88, %c0_89, %c0_90], %610 {strides = array<i32>} : memref<1x4x4096xf32, #tpu.memory_space<vmem>>, vector<1x4x4096xf32>,
    return
  }
  func.func @transform_0(%arg0: i32) -> (i32, i32, i32) {
    %c0_i32 = arith.constant 0 : i32
    %c0_i32_0 = arith.constant 0 : i32
    %c0_i32_1 = arith.constant 0 : i32
    return %arg0, %c0_i32, %c0_i32_0 : i32, i32, i32
  }
  func.func @transform_1(%arg0: i32) -> (i32, i32) {
    %c0_i32 = arith.constant 0 : i32
    %c0_i32_0 = arith.constant 0 : i32
    %c0_i32_1 = arith.constant 0 : i32
    return %c0_i32, %c0_i32_0 : i32, i32
  }
  func.func @transform_2(%arg0: i32) -> (i32, i32) {
    %c0_i32 = arith.constant 0 : i32
    %c0_i32_0 = arith.constant 0 : i32
    %c0_i32_1 = arith.constant 0 : i32
    return %c0_i32, %c0_i32_0 : i32, i32
  }
  func.func @transform_3(%arg0: i32) -> (i32, i32) {
    %c0_i32 = arith.constant 0 : i32
    %c0_i32_0 = arith.constant 0 : i32
    %c0_i32_1 = arith.constant 0 : i32
    return %c0_i32, %c0_i32_0 : i32, i32
  }
  func.func @transform_4(%arg0: i32) -> (i32, i32) {
    %c0_i32 = arith.constant 0 : i32
    %c0_i32_0 = arith.constant 0 : i32
    %c0_i32_1 = arith.constant 0 : i32
    return %c0_i32, %c0_i32_0 : i32, i32
  }
  func.func @transform_5(%arg0: i32) -> (i32, i32) {
    %c0_i32 = arith.constant 0 : i32
    %c0_i32_0 = arith.constant 0 : i32
    %c0_i32_1 = arith.constant 0 : i32
    return %c0_i32, %c0_i32_0 : i32, i32
  }
  func.func @transform_6(%arg0: i32) -> (i32, i32, i32) {
    %c0_i32 = arith.constant 0 : i32
    %c0_i32_0 = arith.constant 0 : i32
    %c0_i32_1 = arith.constant 0 : i32
    return %arg0, %c0_i32, %c0_i32_0 : i32, i32, i32
  }
}

</mosaic_0001>

<bundles_post_ra>
// kernel: tpu_custom_call.1
= control target key start
LH: loop header
LB: loop body
LE: loop exit
PB: predicated region body
PF: predicated region fallthrough
CT: control target
= control target key end

     0   :  { %11 = vsyncpa [#allocation5], 0  ;;  %s16379_s0 = inlined_call_operand.hbm [shape: f32[2,4,4096], index: 0, kind: input, shape index: {}]   ;;  %s16380_s1 = inlined_call_operand.hbm [shape: f32[1,4096], index: 1, kind: input, shape index: {}]   ;;  %s16381_s2 = inlined_call_operand.vmem [shape: f32[8,4], index: 2, kind: input, shape index: {}]   ;;  %s16382_s3 = inlined_call_operand.vmem [shape: f32[8,27], index: 3, kind: input, shape index: {}]   ;;  %s16383_s4 = inlined_call_operand.vmem [shape: f32[8,1], index: 4, kind: input, shape index: {}]   ;;  %s16384_s5 = inlined_call_operand.vmem [shape: f32[4,4], index: 5, kind: input, shape index: {}]   ;;  %s16385_s6 = inlined_call_operand.hbm [shape: f32[2,4,4096], index: 6, kind: output, shape index: {}]  }
   0x1   :  { %13 = vsyncpa [#allocation5 + $0x1], 0 }
   0x2   :  { %14 = vsyncpa [#allocation8], 0 }
   0x3   :  { %15 = vsyncpa [#allocation6], 0 }
   0x4   :  { %17 = vsyncpa [#allocation6 + $0x1], 0  ;;  %s8489_s21 = smov 0   ;;  %s8491_s22 = smov 0  }
   0x5   :  { %s8493_s23 = smov 0   ;;  %s8495_s24 = smov 0  }
   0x6 LB: > { %s8510_s25 = sadd.s32 4294967295, %s8413_s24   ;;  %s7825_s26 = sadd.s32 4294967294, %s8413_s24   ;;  %s8413_s24 = sphi %s8495_s24, %s18812_s24   ;;  %s8409_s23 = sphi %s8493_s23, %s18811_s23   ;;  %s8405_s22 = sphi %s8491_s22, %s18810_s22   ;;  %s8401_s21 = sphi %s8489_s21, %s18809_s21  }
   0x7   : > { %p43_p0 = scmp.ne.s32.totalorder %s8405_s22, %s8401_s21  ;;  %p16386_p1 = scmp.eq.s32.totalorder %s8510_s25, 0 }
   0x8   : > { %p178_p3 = scmp.eq.s32.totalorder %s7825_s26, 1  ;;  %p7826_p5 = scmp.ge.s32.totalorder %s8413_s24, 1 }
   0x9   : > { %p8519_p4 = por %p16386_p1, %p43_p0  ;;  %p185_p7 = scmp.lt.s32.totalorder %s8413_s24, 3 }
   0xa   : > { %p8524_p6 = por %p178_p3, %p43_p0  ;;  %s8415_s30 = smov [#allocation7]  }
   0xb   : > { %s17084_s27 = scalar_select %p8519_p4, 1, 0 }
   0xc   : > { %s17085_s28 = scalar_select %p8524_p6, 1, 0 }
   0xd   : > { %p8529_p8 = pnand %p7826_p5, %p185_p7  ;;  %s198_s7 = sshll.u32 %s8415_s30, 4  ;;  %s199_s7 = int_to_ptr.vmem [resolvable:$true] %s198_s7 }
   0xe   : > { %s8537_s8 = sadd.s32 1, %s8413_s24   ;;  %s30_s12 = sadd.s32 1, %s8409_s23 }
   0xf   : > { %s17086_s29 = scalar_select %p8529_p8, 1, 0 }
  0x10   : > { %p7947_p10 = pneg %p8529_p8  ;;  %s27_s10 = ssub.s32 %s8413_s24, %s8537_s8 }
  0x11   : > { %p8547_p12 = scmp.eq.s32.totalorder %s27_s10, 0  ;;  %s8285_s15 = scalar_lea.hbm %s16380_s1, 512 }
  0x12   : > { %p8541_p11 = pnand %p7947_p10, %p16386_p1  ;;  %p8286_p0 = scmp.ne.s32.totalorder %s16380_s1, %s8285_s15 }
  0x13   : > { %s17088_s11 = scalar_select %p8547_p12, 1, 0 }
  0x14   : > { %p8287_p3 = pneg %p8541_p11  ;;  %p8292_p10 = scmp.lt.u32.totalorder %s8285_s15, %s16380_s1 }
  0x16   : > { %p8288_p5 = pnand %p8287_p3, %p8286_p0 }
  0x18   : > { %p8289_p7 = pneg %p8288_p5 }
  0x1a   : > { %p8294_p9 = pnand %p8292_p10, %p8289_p7 }
  0x1c   : > { %8297 = shalt.err (!%p8294_p9)
}
  0x1d   : > { %s8298_s20 = scalar_lea.vmem %s199_s7, 512  ;;  %p8306_p6 = scmp.lt.s32.totalorder %s199_s7, %s199_s7 }
  0x1e   : > { %p8299_p1 = scmp.ne.s32.totalorder %s199_s7, %s8298_s20  ;;  %p8307_p4 = scmp.lt.s32.totalorder %s8298_s20, %s8298_s20 }
  0x20   : > { %p8301_p2 = pnand %p8299_p1, %p8287_p3  ;;  %p8308_p8 = por %p8307_p4, %p8306_p6 }
  0x22   : > { %p8302_p13 = pneg %p8301_p2 }
  0x24   : > { %p8309_p12 = pnand %p8308_p8, %p8302_p13 }
  0x26   : > { %8312 = shalt.err (!%p8309_p12)
}
  0x27   : > { %7950 = dma.hbm_to_vmem [thread:$0]  (!%p8541_p11), %s16380_s1, 512, %s199_s7, [#allocation8]  }
  0x28   : > { %p17089_p1 = scmp.ne.s32.totalorder %s17088_s11, 0  ;;  %p38_p2 = scmp.eq.s32.totalorder %s8413_s24, 0 }
  0x29   : > { %p17090_p4 = scmp.ne.s32.totalorder %s8409_s23, %s8405_s22  ;;  %p17091_p6 = scmp.eq.s32.totalorder %s8510_s25, 1 }
  0x2a   : > { %s8573_s10 = scalar_select %p17089_p1, %s8409_s23, %s30_s12  }
  0x2b   : > { %p8581_p8 = por %p17091_p6, %p17090_p4  ;;  %p7960_p9 = scmp.lt.s32.totalorder %s8413_s24, 2 }
  0x2c   : > { %s221_s13 = sand.u32 1, %s8409_s23   ;;  %p17093_p12 = pmov %p17090_p4 }
  0x2d   : > { %s7829_s14 = sshll.u32 %s221_s13, 7  ;;  %s7937_s15 = sshll.u32 %s8413_s24, 11 }
  0x2e   : > { %p39_p13 = por %p38_p2, %p17093_p12  ;;  %s8594_s7 = scalar_lea.hbm %s16379_s0, %s7937_s15 }
  0x2f   : > { %s225_s11 = scalar_lea.vmem [#allocation4], %s7829_s14  ;;  %s222_s19 = scalar_lea.sflag [#allocation5], %s221_s13 }
  0x30   : > { %s233_s12 = sshll.u32 %s225_s11, 4  ;;  %p8596_p11 = pnand %p7960_p9, %p39_p13  ;;  %s8600_s12 = int_to_ptr.vmem [resolvable:$true] %s233_s12 }
  0x31   : > { %s8313_s20 = scalar_lea.hbm %s8594_s7, 2048  ;;  %s8318_s14 = scalar_lea.hbm %s16379_s0, 4096 }
  0x32   : > { %p8314_p0 = scmp.ne.s32.totalorder %s8594_s7, %s8313_s20  ;;  %p8315_p3 = pneg %p8596_p11 }
  0x33   : > { %p8319_p10 = scmp.lt.u32.totalorder %s8594_s7, %s16379_s0  ;;  %p8320_p1 = scmp.lt.u32.totalorder %s8318_s14, %s8313_s20 }
  0x34   : > { %p8316_p5 = pnand %p8315_p3, %p8314_p0  ;;  %p8322_p4 = scmp.lt.u32.totalorder %s8313_s20, %s8594_s7 }
  0x35   : > { %p8321_p2 = por %p8320_p1, %p8319_p10 }
  0x36   : > { %p8317_p7 = pneg %p8316_p5 }
  0x37   : > { %p8323_p6 = por %p8322_p4, %p8321_p2 }
  0x39   : > { %p8324_p9 = pnand %p8323_p6, %p8317_p7 }
  0x3b   : > { %8327 = shalt.err (!%p8324_p9)
}
  0x3c   : > { %s8328_s13 = scalar_lea.vmem %s8600_s12, 2048  ;;  %s8416_s17 = smov [#allocation4]  }
  0x3d   : > { %p8329_p12 = scmp.ne.s32.totalorder %s8600_s12, %s8328_s13  ;;  %s8333_s11 = sshll.u32 %s8416_s17, 4  ;;  %s8334_s11 = int_to_ptr.vmem [resolvable:$false] %s8333_s11 }
  0x3e   : > { %s8335_s26 = scalar_lea.vmem %s8334_s11, 4096  ;;  %p8336_p5 = scmp.lt.s32.totalorder %s8600_s12, %s8334_s11 }
  0x3f   : > { %p8331_p13 = pnand %p8329_p12, %p8315_p3  ;;  %p8337_p10 = scmp.lt.s32.totalorder %s8335_s26, %s8328_s13 }
  0x41   : > { %p8332_p0 = pneg %p8331_p13  ;;  %p8338_p1 = por %p8337_p10, %p8336_p5 }
  0x43   : > { %p8339_p2 = pnand %p8338_p1, %p8332_p0 }
  0x45   : > { %8342 = shalt.err (!%p8339_p2)
}
  0x46   : > { %7954 = dma.hbm_to_vmem [thread:$0]  (!%p8596_p11), %s8594_s7, 2048, %s8600_s12, %s222_s19  }
  0x47   : > { %p17095_p7 = scmp.ne.s32.totalorder %s17086_s29, 0 }
  0x49   : > { %242 = sbr.rel (%p17095_p7) target bundleno = 2093 (0x82d), region = 44 }
  0x50   : > { %s8630_s20 = sand.u32 1, %s8405_s22   ;;  %p17096_p3 = scmp.ne.s32.totalorder %s17084_s27, 0 }
  0x51   : > { %s7833_s30 = sshll.u32 %s8630_s20, 7  ;;  %s245_s14 = scalar_lea.sflag [#allocation5], %s8630_s20 }
  0x52   : > { %s8636_s15 = scalar_lea.vmem [#allocation4], %s7833_s30 }
  0x53   : > { %8388 = dma.done.wait (%p17096_p3), %s245_s14, 2048  }
  0x54   : > { %8390 = vsyncadd (%p17096_p3), %s245_s14, 4294965248  ;;  %p17097_p11 = scmp.eq.s32.totalorder %s8510_s25, 0 }
  0x56   : > { %8392 = dma.done.wait (%p17097_p11), [#allocation8], 512   ;;  %p17098_p4 = pmov %p17097_p11 }
  0x57   : > { %v16389_v0 = vmov 0.0   ;;  %v8418_v1 = vmov 9   ;;  %v8419_v2 = vmov 13   ;;  %s8420_s27 = smov 17   ;;  %v282_v3 = vld [vmem:[%s8636_s15] sm:$0xff]  ;;  %vm334_vm0 = vcmask 1043456  }
  0x58   : > { %8394 = vsyncadd (%p17098_p4), [#allocation8], 4294966784  ;;  %463 = vmatprep.mubr.f32.mxu0 %v16389_v0  ;;  %534 = vmatprep.mubr.f32.mxu1 %v16389_v0  ;;  %v283_v4 = vld [vmem:[%s8636_s15 + $0x8] sm:$0xff]  ;;  %v314_v5 = vcombine.high %v282_v3, %v282_v3  ;;  %v8655_v7 = vld [vmem:[%s16382_s3] sm:$0xff]  ;;  %s8421_s12 = smov 16   ;;  %vm330_vm1 = vcmask 31744  }
  0x59   : > { %8043 = vset.pattern.permute.xlu1 %v8418_v1  ;;  %8042 = vset.pattern.permute.xlu0 %v8419_v2  ;;  %v315_v6 = vcombine.high %v283_v4, %v283_v4  ;;  %v284_v8 = vld [vmem:[%s8636_s15 + $0x10] sm:$0xff]  ;;  %v285_v9 = vld [vmem:[%s8636_s15 + $0x18] sm:$0xff]  ;;  %v8664_v10 = vld [vmem:[%s16381_s2] sm:$0xff]  ;;  %v8422_v14 = vmov 18   ;;  %v8423_v19 = vmov 1   ;;  %v8424_v21 = vmov 10  }
  0x5a   : > { %8033 = vrot.lane.b32.xlu0 %v16389_v0, %s8420_s27  ;;  %1658 = vperm.xlu1 %8043, %v8655_v7   ;;  %v316_v11 = vcombine.high %v284_v8, %v284_v8  ;;  %v317_v12 = vcombine.high %v285_v9, %v285_v9  ;;  %v286_v13 = vld [vmem:[%s8636_s15 + $0x20] sm:$0xff]  ;;  %v287_v16 = vld [vmem:[%s8636_s15 + $0x28] sm:$0xff]  ;;  %v288_v17 = vld [vmem:[%s8636_s15 + $0x30] sm:$0xff]  ;;  %v8425_v24 = vmov 19   ;;  %v8426_v27 = vmov 2   ;;  %s8427_s16 = smov 15  }
  0x5b   : > { %7836 = vmatprep.subr.msk.mxu0 %vm334_vm0, %v314_v5  ;;  %7839 = vmatprep.subr.msk.mxu1 %vm334_vm0, %v315_v6  ;;  %v318_v15 = vcombine.high %v286_v13, %v286_v13  ;;  %v319_v18 = vcombine.high %v287_v16, %v287_v16  ;;  %v320_v20 = vcombine.high %v288_v17, %v288_v17  ;;  %v289_v22 = vld [vmem:[%s8636_s15 + $0x38] sm:$0xff]  ;;  %v290_v23 = vld [vmem:[%s8636_s15 + $0x40] sm:$0xff]  ;;  %v291_v28 = vld [vmem:[%s8636_s15 + $0x48] sm:$0xff]  ;;  %v8428_v30 = vmov 11   ;;  %s8429_s13 = smov 1   ;;  %s8437_s17 = smov 127  }
  0x5c   : > { %7837 = vmatpush1.msk.msra.mxu0 %vm334_vm0, %v282_v3  ;;  %7840 = vmatpush1.msk.msra.mxu1 %vm334_vm0, %v283_v4  ;;  %v321_v25 = vcombine.high %v289_v22, %v289_v22  ;;  %v322_v26 = vcombine.high %v290_v23, %v290_v23  ;;  %v292_v29 = vld [vmem:[%s8636_s15 + $0x50] sm:$0xff]  ;;  %v323_v31 = vcombine.high %v291_v28, %v291_v28  ;;  %v8430_v32 = vmov 12   ;;  %v293_v34 = vld [vmem:[%s8636_s15 + $0x58] sm:$0xff]  ;;  %v294_v35 = vld [vmem:[%s8636_s15 + $0x60] sm:$0xff]  ;;  %s8443_s11 = smov 113   ;;  %s8448_s26 = smov 112  }
  0x5d   : > { %7838 = vmatmul.mubr.msk.f32.vlgmr.msra.gmra.mrb[0].mxu0 %vm330_vm1, %v8664_v10  ;;  %7841 = vmatmul.mubr.msk.f32.vlgmr.msra.gmra.mrb[0].mxu1 %vm330_vm1, %v8664_v10  ;;  %v324_v33 = vcombine.high %v292_v29, %v292_v29  ;;  %v8431_v36 = vmov 20   ;;  %v325_v37 = vcombine.high %v293_v34, %v293_v34  ;;  %v326_v38 = vcombine.high %v294_v35, %v294_v35  ;;  %v295_v40 = vld [vmem:[%s8636_s15 + $0x68] sm:$0xff]  ;;  %v296_v41 = vld [vmem:[%s8636_s15 + $0x70] sm:$0xff]  ;;  %v297_v45 = vld [vmem:[%s8636_s15 + $0x78] sm:$0xff]  ;;  %s8452_s14 = smov 111  }
  0x5e   : > { %8038 = vrot.lane.b32.xlu0 %v16389_v0, %s8421_s12  ;;  %7842 = vmatprep.subr.msk.mxu0 %vm334_vm0, %v316_v11  ;;  %v8432_v39 = vmov 22   ;;  %v8433_v42 = vmov 3   ;;  %v327_v43 = vcombine.high %v295_v40, %v295_v40  ;;  %v328_v44 = vcombine.high %v296_v41, %v296_v41 }
  0x5f   : > { %605 = vmatprep.mubr.f32.mxu0 %v16389_v0  ;;  %7843 = vmatpush1.msk.msra.mxu0 %vm334_vm0, %v284_v8  ;;  %v8434_v46 = vmov 21   ;;  %v329_v47 = vcombine.high %v297_v45, %v297_v45  ;;  %v8435_v48 = vmov 4   ;;  %v8436_v49 = vmov 14  }
  0x60   : > { %8044 = vset.pattern.permute.xlu1 %v8422_v14  ;;  %7845 = vmatprep.subr.msk.mxu1 %vm334_vm0, %v317_v12  ;;  %v8438_v50 = vmov 5   ;;  %v8439_v51 = vmov 6   ;;  %v8440_v52 = vmov 15   ;;  %v8441_v53 = vmov 23  }
  0x61   : > { %1678 = vperm.xlu1 %8044, %v8655_v7   ;;  %7844 = vmatmul.mubr.msk.f32.vlgmr.msra.gmra.mrb[2].mxu0 %vm330_vm1, %v8664_v10  ;;  %v8442_v54 = vmov 24   ;;  %vm4889_vm10 = vcmask 1047556  }
  0x62   : > { %7846 = vmatpush1.msk.msra.mxu1 %vm334_vm0, %v285_v9  ;;  %676 = vmatprep.mubr.f32.mxu1 %v16389_v0 }
  0x63   : > { %1587 = vperm.xlu0 %8042, %v8655_v7   ;;  %7847 = vmatmul.mubr.msk.f32.vlgmr.msra.gmra.mrb[2].mxu1 %vm330_vm1, %v8664_v10 }
  0x64   : > { %7848 = vmatprep.subr.msk.mxu0 %vm334_vm0, %v318_v15  ;;  %747 = vmatprep.mubr.f32.mxu0 %v16389_v0 }
  0x65   : > { %8045 = vset.pattern.permute.xlu1 %v8423_v19  ;;  %7849 = vmatpush1.msk.msra.mxu0 %vm334_vm0, %v286_v13 }
  0x66   : > { %1735 = vperm.xlu1 %8045, %v8655_v7   ;;  %7850 = vmatmul.mubr.msk.f32.vlgmr.msra.gmra.mrb[4].mxu0 %vm330_vm1, %v8664_v10 }
  0x67   : > { %8046 = vset.pattern.permute.xlu0 %v8424_v21  ;;  %7851 = vmatprep.subr.msk.mxu1 %vm334_vm0, %v319_v18 }
  0x68   : > { %1755 = vperm.xlu0 %8046, %v8655_v7   ;;  %7854 = vmatprep.subr.msk.mxu0 %vm334_vm0, %v320_v20 }
  0x69   : > { %7852 = vmatpush1.msk.msra.mxu1 %vm334_vm0, %v287_v16  ;;  %818 = vmatprep.mubr.f32.mxu1 %v16389_v0 }
  0x6a   : > { %8047 = vset.pattern.permute.xlu1 %v8425_v24  ;;  %7855 = vmatpush1.msk.msra.mxu0 %vm334_vm0, %v288_v17 }
  0x6b   : > { %1775 = vperm.xlu1 %8047, %v8655_v7   ;;  %889 = vmatprep.mubr.f32.mxu0 %v16389_v0 }
  0x6c   : > { %8053 = vset.pattern.permute.xlu0 %v8426_v27  ;;  %7853 = vmatmul.mubr.msk.f32.vlgmr.msra.gmra.mrb[4].mxu1 %vm330_vm1, %v8664_v10 }
  0x6d   : > { %1832 = vperm.xlu0 %8053, %v8655_v7   ;;  %7856 = vmatmul.mubr.msk.f32.vlgmr.msra.gmra.mrb[6].mxu0 %vm330_vm1, %v8664_v10 }
  0x6e   : > { %7857 = vmatprep.subr.msk.mxu1 %vm334_vm0, %v321_v25  ;;  %7860 = vmatprep.subr.msk.mxu0 %vm334_vm0, %v322_v26  ;;  %v8444_v26 = vmov 7  }
  0x6f   : > { %8049 = vrot.lane.b32.xlu1 %v16389_v0, %s8427_s16  ;;  %7858 = vmatpush1.msk.msra.mxu1 %vm334_vm0, %v289_v22 }
  0x70   : > { %8054 = vset.pattern.permute.xlu1 %v8428_v30  ;;  %960 = vmatprep.mubr.f32.mxu1 %v16389_v0 }
  0x71   : > { %8057 = vrot.lane.b32.xlu0 %v16389_v0, %s8429_s13  ;;  %7861 = vmatpush1.msk.msra.mxu0 %vm334_vm0, %v290_v23 }
  0x72   : > { %8062 = vset.pattern.permute.xlu0 %v8430_v32  ;;  %1031 = vmatprep.mubr.f32.mxu0 %v16389_v0 }
  0x73   : > { %1852 = vperm.xlu1 %8054, %v8655_v7   ;;  %7859 = vmatmul.mubr.msk.f32.vlgmr.msra.gmra.mrb[6].mxu1 %vm330_vm1, %v8664_v10 }
  0x74   : > { %7862 = vmatmul.mubr.msk.f32.vlgmr.msra.gmra.mrb[8].mxu0 %vm330_vm1, %v8664_v10  ;;  %7863 = vmatprep.subr.msk.mxu1 %vm334_vm0, %v323_v31 }
  0x75   : > { %1949 = vperm.xlu0 %8062, %v8655_v7   ;;  %7866 = vmatprep.subr.msk.mxu0 %vm334_vm0, %v324_v33 }
  0x76   : > { %7864 = vmatpush1.msk.msra.mxu1 %vm334_vm0, %v291_v28  ;;  %1102 = vmatprep.mubr.f32.mxu1 %v16389_v0 }
  0x77   : > { %8055 = vset.pattern.permute.xlu1 %v8431_v36  ;;  %7867 = vmatpush1.msk.msra.mxu0 %vm334_vm0, %v292_v29 }
  0x78   : > { %1872 = vperm.xlu1 %8055, %v8655_v7   ;;  %1173 = vmatprep.mubr.f32.mxu0 %v16389_v0 }
  0x79   : > { %8065 = vset.pattern.permute.xlu0 %v8432_v39  ;;  %7865 = vmatmul.mubr.msk.f32.vlgmr.msra.gmra.mrb[8].mxu1 %vm330_vm1, %v8664_v10 }
  0x7a   : > { %2009 = vperm.xlu0 %8065, %v8655_v7   ;;  %7868 = vmatmul.mubr.msk.f32.vlgmr.msra.gmra.mrb[10].mxu0 %vm330_vm1, %v8664_v10 }
  0x7b   : > { %7869 = vmatprep.subr.msk.mxu1 %vm334_vm0, %v325_v37  ;;  %7872 = vmatprep.subr.msk.mxu0 %vm334_vm0, %v326_v38 }
  0x7c   : > { %8061 = vset.pattern.permute.xlu1 %v8433_v42  ;;  %7870 = vmatpush1.msk.msra.mxu1 %vm334_vm0, %v293_v34 }
  0x7d   : > { %1929 = vperm.xlu1 %8061, %v8655_v7   ;;  %1244 = vmatprep.mubr.f32.mxu1 %v16389_v0 }
  0x7e   : > { %7873 = vmatpush1.msk.msra.mxu0 %vm334_vm0, %v294_v35  ;;  %1315 = vmatprep.mubr.f32.mxu0 %v16389_v0 }
  0x7f   : > { %7871 = vmatmul.mubr.msk.f32.vlgmr.msra.gmra.mrb[10].mxu1 %vm330_vm1, %v8664_v10  ;;  %7874 = vmatmul.mubr.msk.f32.vlgmr.msra.gmra.mrb[12].mxu0 %vm330_vm1, %v8664_v10 }
  0x80   : > { %7875 = vmatprep.subr.msk.mxu1 %vm334_vm0, %v327_v43  ;;  %7878 = vmatprep.subr.msk.mxu0 %vm334_vm0, %v328_v44 }
  0x81   : > { %8063 = vset.pattern.permute.xlu1 %v8434_v46  ;;  %7876 = vmatpush1.msk.msra.mxu1 %vm334_vm0, %v295_v40 }
  0x82   : > { %1969 = vperm.xlu1 %8063, %v8655_v7   ;;  %1386 = vmatprep.mubr.f32.mxu1 %v16389_v0 }
  0x83   : > { %7879 = vmatpush1.msk.msra.mxu0 %vm334_vm0, %v296_v41  ;;  %1457 = vmatprep.mubr.f32.mxu0 %v16389_v0 }
  0x84   : > { %7877 = vmatmul.mubr.msk.f32.vlgmr.msra.gmra.mrb[12].mxu1 %vm330_vm1, %v8664_v10  ;;  %7880 = vmatmul.mubr.msk.f32.vlgmr.msra.gmra.mrb[14].mxu0 %vm330_vm1, %v8664_v10 }
  0x85   : > { %7881 = vmatprep.subr.msk.mxu1 %vm334_vm0, %v329_v47  ;;  %1528 = vmatprep.mubr.f32.mxu1 %v16389_v0 }
  0x86   : > { %8064 = vset.pattern.permute.xlu1 %v8435_v48  ;;  %7882 = vmatpush1.msk.msra.mxu1 %vm334_vm0, %v297_v45 }
  0x87   : > { %1989 = vperm.xlu1 %8064, %v8655_v7   ;;  %8072 = vset.pattern.permute.xlu0 %v8436_v49 }
  0x88   : > { %7883 = vmatmul.mubr.msk.f32.vlgmr.msra.gmra.mrb[14].mxu1 %vm330_vm1, %v8664_v10  ;;  %2086 = vperm.xlu0 %8072, %v8655_v7  }
  0x89   : > { %6312 = vmatprep.mubr.f32.mxu0 %v16389_v0  ;;  %6383 = vmatprep.mubr.f32.mxu1 %v16389_v0 }
  0x8b   : > { %8067 = vrot.lane.b32.xlu1 %v16389_v0, %s8437_s17 }
  0x8c   : > { %8071 = vset.pattern.permute.xlu1 %v8438_v50  ;;  %8079 = vset.pattern.permute.xlu0 %v8439_v51  ;;  %v8445_v50 = vmov 25  }
  0x8d   : > { %2163 = vperm.xlu0 %8079, %v8655_v7  }
  0x8f   : > { %2066 = vperm.xlu1 %8071, %v8655_v7  }
  0x91   : > { %8080 = vset.pattern.permute.xlu0 %v8440_v52 }
  0x92   : > { %2183 = vperm.xlu0 %8080, %v8655_v7  }
  0x93   : > { %8073 = vset.pattern.permute.xlu1 %v8441_v53 }
  0x94   : > { %2106 = vperm.xlu1 %8073, %v8655_v7  }
  0x96   : > { %8081 = vset.pattern.permute.xlu0 %v8442_v54 }
  0x97   : > { %2203 = vperm.xlu0 %8081, %v8655_v7  }
  0x98   : > { %8075 = vrot.lane.b32.xlu1 %v16389_v0, %s8443_s11 }
  0x99   : > { %8085 = vset.pattern.permute.xlu1 %v8445_v50 }
  0x9b   : > { %8082 = vset.pattern.permute.xlu0 %v8444_v26 }
  0xcc   : > { %v8898_v28 = vpop.permute.xlu0 %8033 }
  0xcd   : > { %17129 = vst [vmem:[#allocation43_spill] sm:$0xff] %v8898_v28 }
  0xd0   : > { %v8910_v30 = vpop.permute.xlu0 %8038 }
  0xd1   : > { %17131 = vst [vmem:[#allocation45_spill] sm:$0xff] %v8910_v30 }
  0xd9   : > { %v8872_v18 = vpop.permute.xlu1 %1658 }
  0xda   : > { %17120 = vst [vmem:[#allocation34_spill] sm:$0xff] %v8872_v18 }
  0xe0   : > { %v8888_v24 = vpop.permute.xlu1 %1678 }
  0xe1   : > { %17126 = vst [vmem:[#allocation40_spill] sm:$0xff] %v8888_v24 }
  0xe2   : > { %v8918_v32 = vpop.permute.xlu0 %1587 }
  0xe3   : > { %17133 = vst [vmem:[#allocation47_spill] sm:$0xff] %v8918_v32 }
  0xe5   : > { %v8904_v29 = vpop.permute.xlu1 %1735 }
  0xe6   : > { %17130 = vst [vmem:[#allocation44_spill] sm:$0xff] %v8904_v29 }
  0xe7   : > { %v8930_v34 = vpop.permute.xlu0 %1755 }
  0xe8   : > { %17135 = vst [vmem:[#allocation49_spill] sm:$0xff] %v8930_v34 }
  0xea   : > { %v8912_v31 = vpop.permute.xlu1 %1775 }
  0xeb   : > { %17132 = vst [vmem:[#allocation46_spill] sm:$0xff] %v8912_v31 }
  0xec   : > { %v8938_v36 = vpop.permute.xlu0 %1832 }
  0xed   : > { %17137 = vst [vmem:[#allocation51_spill] sm:$0xff] %v8938_v36 }
  0xee   : > { %v8924_v33 = vpop.permute.xlu1 %8049 }
  0xef   : > { %17134 = vst [vmem:[#allocation48_spill] sm:$0xff] %v8924_v33 }
  0xf0   : > { %v8950_v38 = vpop.permute.xlu0 %8057 }
  0xf1   : > { %17139 = vst [vmem:[#allocation53_spill] sm:$0xff] %v8950_v38 }
  0xf2   : > { %v8932_v35 = vpop.permute.xlu1 %1852 }
  0xf3   : > { %17136 = vst [vmem:[#allocation50_spill] sm:$0xff] %v8932_v35 }
  0xf4   : > { %v8958_v40 = vpop.permute.xlu0 %1949 }
  0xf5   : > { %17141 = vst [vmem:[#allocation55_spill] sm:$0xff] %v8958_v40 }
  0xf7   : > { %v8944_v37 = vpop.permute.xlu1 %1872 }
  0xf8   : > { %17138 = vst [vmem:[#allocation52_spill] sm:$0xff] %v8944_v37 }
  0xf9   : > { %v8970_v42 = vpop.permute.xlu0 %2009 }
  0xfa   : > { %17143 = vst [vmem:[#allocation57_spill] sm:$0xff] %v8970_v42 }
  0xfc   : > { %v8952_v39 = vpop.permute.xlu1 %1929 }
  0xfd   : > { %17140 = vst [vmem:[#allocation54_spill] sm:$0xff] %v8952_v39 }
 0x101   : > { %v8964_v41 = vpop.permute.xlu1 %1969 }
 0x102   : > { %17142 = vst [vmem:[#allocation56_spill] sm:$0xff] %v8964_v41 }
 0x106   : > { %v8972_v43 = vpop.permute.xlu1 %1989 }
 0x107   : > { %17144 = vst [vmem:[#allocation58_spill] sm:$0xff] %v8972_v43  ;;  %v8978_v44 = vpop.permute.xlu0 %2086 }
 0x108   : > { %17145 = vst [vmem:[#allocation59_spill] sm:$0xff] %v8978_v44 }
 0x10a   : > { %v8984_v45 = vpop.permute.xlu1 %8067 }
 0x10b   : > { %17146 = vst [vmem:[#allocation60_spill] sm:$0xff] %v8984_v45 }
 0x10c   : > { %v8990_v46 = vpop.permute.xlu0 %2163 }
 0x10d   : > { %17147 = vst [vmem:[#allocation61_spill] sm:$0xff] %v8990_v46 }
 0x10e   : > { %v8992_v47 = vpop.permute.xlu1 %2066 }
 0x10f   : > { %17148 = vst [vmem:[#allocation62_spill] sm:$0xff] %v8992_v47 }
 0x111   : > { %v9000_v49 = vpop.permute.xlu0 %2183 }
 0x112   : > { %17150 = vst [vmem:[#allocation64_spill] sm:$0xff] %v9000_v49 }
 0x113   : > { %v8998_v48 = vpop.permute.xlu1 %2106 }
 0x114   : > { %17149 = vst [vmem:[#allocation63_spill] sm:$0xff] %v8998_v48 }
 0x116   : > { %v9012_v52 = vpop.permute.xlu0 %2203 }
 0x117   : > { %v9010_v51 = vpop.permute.xlu1 %8075  ;;  %17152 = vst [vmem:[#allocation66_spill] sm:$0xff] %v9012_v52 }
 0x118   : > { %17151 = vst [vmem:[#allocation65_spill] sm:$0xff] %v9010_v51 }
 0x130   : > { %v8786_v55 = vpop.f32.mrb[0].mxu0  ;;  %v8788_v56 = vpop.f32.mrb[0].mxu1 }
 0x131   : > { %1606 = vrot.lane.b32.xlu0 %v8788_v56, %s8420_s27  ;;  %1602 = vrot.lane.b32.xlu1 %v8786_v55, %s8420_s27  ;;  %v8794_v57 = vpop.f32.mrb[1].mxu0  ;;  %v8796_v58 = vpop.f32.mrb[1].mxu1 }
 0x132   : > { %17099 = vst [vmem:[#allocation13_spill] sm:$0xff] %v8796_v58  ;;  %v9462_v51 = vmul.f32 %v8972_v43, %v8794_v57 }
 0x134   : > { %v8798_v59 = vpop.f32.mrb[2].mxu0  ;;  %17245 = vst [vmem:[#allocation154_spill] sm:$0xff] %v9462_v51 }
 0x135   : > { %1798 = vrot.lane.b32.xlu0 %v8786_v55, %s8427_s16  ;;  %1701 = vrot.lane.b32.xlu1 %v8786_v55, %s8421_s12  ;;  %v8804_v60 = vpop.f32.mrb[3].mxu0 }
 0x136   : > { %17100 = vst [vmem:[#allocation14_spill] sm:$0xff] %v8804_v60  ;;  %v8806_v61 = vpop.f32.mrb[2].mxu1 }
 0x137   : > { %17101 = vst [vmem:[#allocation15_spill] sm:$0xff] %v8806_v61  ;;  %v8808_v62 = vpop.f32.mrb[3].mxu1 }
 0x138   : > { %17102 = vst [vmem:[#allocation16_spill] sm:$0xff] %v8808_v62  ;;  %v9498_v51 = vmul.f32 %v8972_v43, %v8808_v62 }
 0x139   : > { %1802 = vrot.lane.b32.xlu0 %v8788_v56, %s8427_s16  ;;  %1705 = vrot.lane.b32.xlu1 %v8788_v56, %s8421_s12  ;;  %v8814_v63 = vpop.f32.mrb[4].mxu0 }
 0x13a   : > { %17103 = vst [vmem:[#allocation17_spill] sm:$0xff] %v8814_v63  ;;  %v8816_v1 = vpop.f32.mrb[5].mxu0  ;;  %17252 = vst [vmem:[#allocation161_spill] sm:$0xff] %v9498_v51 }
 0x13b   : > { %17104 = vst [vmem:[#allocation18_spill] sm:$0xff] %v8816_v1 }
 0x13d   : > { %2129 = vrot.lane.b32.xlu0 %v8786_v55, %s8443_s11  ;;  %1895 = vrot.lane.b32.xlu1 %v8786_v55, %s8429_s13 }
 0x13f   : > { %v8822_v2 = vpop.f32.mrb[4].mxu1 }
 0x140   : > { %17105 = vst [vmem:[#allocation19_spill] sm:$0xff] %v8822_v2  ;;  %v8824_v3 = vpop.f32.mrb[6].mxu0  ;;  %v8826_v4 = vpop.f32.mrb[5].mxu1 }
 0x141   : > { %17106 = vst [vmem:[#allocation20_spill] sm:$0xff] %v8824_v3  ;;  %17107 = vst [vmem:[#allocation21_spill] sm:$0xff] %v8826_v4  ;;  %2133 = vrot.lane.b32.xlu0 %v8788_v56, %s8443_s11  ;;  %1899 = vrot.lane.b32.xlu1 %v8788_v56, %s8429_s13  ;;  %v8832_v5 = vpop.f32.mrb[7].mxu0  ;;  %v9535_v51 = vmul.f32 %v8918_v32, %v8824_v3 }
 0x142   : > { %17108 = vst [vmem:[#allocation22_spill] sm:$0xff] %v8832_v5 }
 0x143   : > { %17255 = vst [vmem:[#allocation164_spill] sm:$0xff] %v9535_v51 }
 0x145   : > { %2032 = vrot.lane.b32.xlu1 %v8786_v55, %s8437_s17  ;;  %1703 = vrot.lane.b32.xlu0 %v8794_v57, %s8421_s12 }
 0x146   : > { %v8838_v6 = vpop.f32.mrb[6].mxu1 }
 0x147   : > { %17109 = vst [vmem:[#allocation23_spill] sm:$0xff] %v8838_v6  ;;  %v8840_v8 = vpop.f32.mrb[8].mxu0  ;;  %v8842_v9 = vpop.f32.mrb[7].mxu1 }
 0x148   : > { %17110 = vst [vmem:[#allocation24_spill] sm:$0xff] %v8840_v8  ;;  %17111 = vst [vmem:[#allocation25_spill] sm:$0xff] %v8842_v9  ;;  %v8844_v10 = vpop.f32.mrb[9].mxu0 }
 0x149   : > { %17112 = vst [vmem:[#allocation26_spill] sm:$0xff] %v8844_v10  ;;  %2036 = vrot.lane.b32.xlu1 %v8788_v56, %s8437_s17  ;;  %1707 = vrot.lane.b32.xlu0 %v8796_v58, %s8421_s12 }
 0x14c   : > { %v8850_v11 = vpop.f32.mrb[8].mxu1 }
 0x14d   : > { %17113 = vst [vmem:[#allocation27_spill] sm:$0xff] %v8850_v11  ;;  %1897 = vrot.lane.b32.xlu0 %v8794_v57, %s8429_s13  ;;  %1604 = vrot.lane.b32.xlu1 %v8794_v57, %s8420_s27  ;;  %v8856_v12 = vpop.f32.mrb[10].mxu0  ;;  %v8858_v13 = vpop.f32.mrb[9].mxu1 }
 0x14e   : > { %17114 = vst [vmem:[#allocation28_spill] sm:$0xff] %v8856_v12  ;;  %17115 = vst [vmem:[#allocation29_spill] sm:$0xff] %v8858_v13  ;;  %v8860_v14 = vpop.f32.mrb[11].mxu0 }
 0x14f   : > { %17116 = vst [vmem:[#allocation30_spill] sm:$0xff] %v8860_v14 }
 0x151   : > { %1901 = vrot.lane.b32.xlu0 %v8796_v58, %s8429_s13  ;;  %1608 = vrot.lane.b32.xlu1 %v8796_v58, %s8420_s27 }
 0x152   : > { %v8866_v15 = vpop.f32.mrb[10].mxu1  ;;  %v8868_v16 = vpop.f32.mrb[12].mxu0 }
 0x153   : > { %17117 = vst [vmem:[#allocation31_spill] sm:$0xff] %v8866_v15  ;;  %17118 = vst [vmem:[#allocation32_spill] sm:$0xff] %v8868_v16  ;;  %v8870_v17 = vpop.f32.mrb[11].mxu1  ;;  %v8874_v19 = vpop.f32.mrb[13].mxu0 }
 0x154   : > { %17119 = vst [vmem:[#allocation33_spill] sm:$0xff] %v8870_v17  ;;  %17121 = vst [vmem:[#allocation35_spill] sm:$0xff] %v8874_v19 }
 0x155   : > { %2034 = vrot.lane.b32.xlu0 %v8794_v57, %s8437_s17  ;;  %1800 = vrot.lane.b32.xlu1 %v8794_v57, %s8427_s16 }
 0x157   : > { %v8880_v20 = vpop.f32.mrb[12].mxu1  ;;  %v8882_v21 = vpop.f32.mrb[14].mxu0 }
 0x158   : > { %17122 = vst [vmem:[#allocation36_spill] sm:$0xff] %v8880_v20  ;;  %17123 = vst [vmem:[#allocation37_spill] sm:$0xff] %v8882_v21  ;;  %v8884_v22 = vpop.f32.mrb[13].mxu1  ;;  %v8886_v23 = vpop.f32.mrb[15].mxu0 }
 0x159   : > { %17124 = vst [vmem:[#allocation38_spill] sm:$0xff] %v8884_v22  ;;  %17125 = vst [vmem:[#allocation39_spill] sm:$0xff] %v8886_v23  ;;  %2038 = vrot.lane.b32.xlu0 %v8796_v58, %s8437_s17  ;;  %1804 = vrot.lane.b32.xlu1 %v8796_v58, %s8427_s16 }
 0x15b   : > { %v8894_v25 = vpop.f32.mrb[14].mxu1 }
 0x15c   : > { %17127 = vst [vmem:[#allocation41_spill] sm:$0xff] %v8894_v25  ;;  %v8896_v27 = vpop.f32.mrb[15].mxu1 }
 0x15d   : > { %17128 = vst [vmem:[#allocation42_spill] sm:$0xff] %v8896_v27  ;;  %2131 = vrot.lane.b32.xlu1 %v8794_v57, %s8443_s11  ;;  %1610 = vrot.lane.b32.xlu0 %v8798_v59, %s8420_s27 }
 0x161   : > { %2135 = vrot.lane.b32.xlu1 %v8796_v58, %s8443_s11  ;;  %1614 = vrot.lane.b32.xlu0 %v8806_v61, %s8420_s27 }
 0x165   : > { %1709 = vrot.lane.b32.xlu1 %v8798_v59, %s8421_s12  ;;  %1806 = vrot.lane.b32.xlu0 %v8798_v59, %s8427_s16 }
 0x169   : > { %1713 = vrot.lane.b32.xlu1 %v8806_v61, %s8421_s12  ;;  %1810 = vrot.lane.b32.xlu0 %v8806_v61, %s8427_s16 }
 0x16d   : > { %1903 = vrot.lane.b32.xlu1 %v8798_v59, %s8429_s13  ;;  %2137 = vrot.lane.b32.xlu0 %v8798_v59, %s8443_s11 }
 0x171   : > { %1907 = vrot.lane.b32.xlu1 %v8806_v61, %s8429_s13  ;;  %2141 = vrot.lane.b32.xlu0 %v8806_v61, %s8443_s11 }
 0x175   : > { %2040 = vrot.lane.b32.xlu1 %v8798_v59, %s8437_s17  ;;  %2541 = vrot.lane.b32.xlu0 %v8806_v61, %s8421_s12 }
 0x179   : > { %2044 = vrot.lane.b32.xlu1 %v8806_v61, %s8437_s17  ;;  %2625 = vrot.lane.b32.xlu0 %v8806_v61, %s8427_s16 }
 0x17d   : > { %2457 = vrot.lane.b32.xlu1 %v8806_v61, %s8420_s27  ;;  %2709 = vrot.lane.b32.xlu0 %v8806_v61, %s8429_s13 }
 0x181   : > { %1711 = vrot.lane.b32.xlu0 %v8804_v60, %s8421_s12  ;;  %1612 = vrot.lane.b32.xlu1 %v8804_v60, %s8420_s27 }
 0x185   : > { %1715 = vrot.lane.b32.xlu0 %v8808_v62, %s8421_s12  ;;  %1616 = vrot.lane.b32.xlu1 %v8808_v62, %s8420_s27 }
 0x189   : > { %1905 = vrot.lane.b32.xlu0 %v8804_v60, %s8429_s13  ;;  %1808 = vrot.lane.b32.xlu1 %v8804_v60, %s8427_s16 }
 0x18d   : > { %1909 = vrot.lane.b32.xlu0 %v8808_v62, %s8429_s13  ;;  %1812 = vrot.lane.b32.xlu1 %v8808_v62, %s8427_s16 }
 0x191   : > { %2042 = vrot.lane.b32.xlu0 %v8804_v60, %s8437_s17  ;;  %2139 = vrot.lane.b32.xlu1 %v8804_v60, %s8443_s11 }
 0x195   : > { %2046 = vrot.lane.b32.xlu0 %v8808_v62, %s8437_s17  ;;  %2459 = vrot.lane.b32.xlu1 %v8808_v62, %s8420_s27 }
 0x199   : > { %2627 = vrot.lane.b32.xlu0 %v8808_v62, %s8427_s16  ;;  %2543 = vrot.lane.b32.xlu1 %v8808_v62, %s8421_s12 }
 0x19d   : > { %1717 = vrot.lane.b32.xlu1 %v8814_v63, %s8421_s12  ;;  %1618 = vrot.lane.b32.xlu0 %v8814_v63, %s8420_s27 }
 0x1a1   : > { %1911 = vrot.lane.b32.xlu1 %v8814_v63, %s8429_s13  ;;  %1814 = vrot.lane.b32.xlu0 %v8814_v63, %s8427_s16 }
 0x1a3   : > { %v9018_v53 = vpop.permute.xlu0 %1606  ;;  %v9020_v54 = vpop.permute.xlu1 %1602 }
 0x1a5   : > { %2048 = vrot.lane.b32.xlu1 %v8814_v63, %s8437_s17  ;;  %2461 = vrot.lane.b32.xlu0 %v8814_v63, %s8420_s27 }
 0x1a7   : > { %v9026_v26 = vpop.permute.xlu0 %1798  ;;  %v9028_v50 = vpop.permute.xlu1 %1701 }
 0x1a9   : > { %2549 = vrot.lane.b32.xlu1 %v8822_v2, %s8421_s12  ;;  %2465 = vrot.lane.b32.xlu0 %v8822_v2, %s8420_s27 }
 0x1ab   : > { %v9034_v0 = vpop.permute.xlu0 %1802  ;;  %v9036_v52 = vpop.permute.xlu1 %1705 }
 0x1ac   : > { %17153 = vst [vmem:[#allocation67_spill] sm:$0xff] %v9034_v0 }
 0x1ad   : > { %2629 = vrot.lane.b32.xlu1 %v8814_v63, %s8427_s16  ;;  %2545 = vrot.lane.b32.xlu0 %v8814_v63, %s8421_s12 }
 0x1af   : > { %v9042_v49 = vpop.permute.xlu0 %2129  ;;  %v9044_v48 = vpop.permute.xlu1 %1895 }
 0x1b0   : > { %17154 = vst [vmem:[#allocation68_spill] sm:$0xff] %v9042_v49 }
 0x1b1   : > { %2633 = vrot.lane.b32.xlu1 %v8822_v2, %s8427_s16  ;;  %1719 = vrot.lane.b32.xlu0 %v8816_v1, %s8421_s12 }
 0x1b3   : > { %v9050_v44 = vpop.permute.xlu0 %2133  ;;  %v9052_v27 = vpop.permute.xlu1 %1899 }
 0x1b4   : > { %17155 = vst [vmem:[#allocation69_spill] sm:$0xff] %v9050_v44  ;;  %17156 = vst [vmem:[#allocation70_spill] sm:$0xff] %v9052_v27 }
 0x1b5   : > { %1620 = vrot.lane.b32.xlu1 %v8816_v1, %s8420_s27  ;;  %1913 = vrot.lane.b32.xlu0 %v8816_v1, %s8429_s13 }
 0x1b7   : > { %v9058_v25 = vpop.permute.xlu1 %2032  ;;  %v9060_v49 = vpop.permute.xlu0 %1703 }
 0x1b8   : > { %17157 = vst [vmem:[#allocation71_spill] sm:$0xff] %v9058_v25 }
 0x1b9   : > { %1816 = vrot.lane.b32.xlu1 %v8816_v1, %s8427_s16  ;;  %2050 = vrot.lane.b32.xlu0 %v8816_v1, %s8437_s17 }
 0x1bb   : > { %v9066_v23 = vpop.permute.xlu1 %2036  ;;  %v9068_v44 = vpop.permute.xlu0 %1707 }
 0x1bc   : > { %17158 = vst [vmem:[#allocation72_spill] sm:$0xff] %v9066_v23 }
 0x1bd   : > { %2463 = vrot.lane.b32.xlu1 %v8816_v1, %s8420_s27  ;;  %2547 = vrot.lane.b32.xlu0 %v8816_v1, %s8421_s12 }
 0x1bf   : > { %v9074_v47 = vpop.permute.xlu0 %1897  ;;  %v9076_v25 = vpop.permute.xlu1 %1604 }
 0x1c1   : > { %2467 = vrot.lane.b32.xlu1 %v8826_v4, %s8420_s27  ;;  %2631 = vrot.lane.b32.xlu0 %v8816_v1, %s8427_s16 }
 0x1c3   : > { %v9082_v22 = vpop.permute.xlu0 %1901  ;;  %v9084_v23 = vpop.permute.xlu1 %1608 }
 0x1c4   : > { %17159 = vst [vmem:[#allocation73_spill] sm:$0xff] %v9082_v22  ;;  %17160 = vst [vmem:[#allocation74_spill] sm:$0xff] %v9084_v23 }
 0x1c5   : > { %2551 = vrot.lane.b32.xlu1 %v8826_v4, %s8421_s12  ;;  %2469 = vrot.lane.b32.xlu0 %v8824_v3, %s8420_s27 }
 0x1c7   : > { %v9090_v46 = vpop.permute.xlu0 %2034  ;;  %v9092_v45 = vpop.permute.xlu1 %1800 }
 0x1c8   : > { %17161 = vst [vmem:[#allocation75_spill] sm:$0xff] %v9090_v46  ;;  %17162 = vst [vmem:[#allocation76_spill] sm:$0xff] %v9092_v45 }
 0x1c9   : > { %2635 = vrot.lane.b32.xlu1 %v8826_v4, %s8427_s16  ;;  %2473 = vrot.lane.b32.xlu0 %v8838_v6, %s8420_s27 }
 0x1cb   : > { %v9098_v21 = vpop.permute.xlu0 %2038  ;;  %v9100_v20 = vpop.permute.xlu1 %1804 }
 0x1cc   : > { %17163 = vst [vmem:[#allocation77_spill] sm:$0xff] %v9098_v21  ;;  %17164 = vst [vmem:[#allocation78_spill] sm:$0xff] %v9100_v20 }
 0x1cd   : > { %2553 = vrot.lane.b32.xlu1 %v8824_v3, %s8421_s12  ;;  %3197 = vrot.lane.b32.xlu0 %v8838_v6, %s8420_s27 }
 0x1cf   : > { %v9106_v41 = vpop.permute.xlu1 %2131  ;;  %v9108_v46 = vpop.permute.xlu0 %1610 }
 0x1d0   : > { %17165 = vst [vmem:[#allocation79_spill] sm:$0xff] %v9106_v41  ;;  %17166 = vst [vmem:[#allocation80_spill] sm:$0xff] %v9108_v46 }
 0x1d1   : > { %2557 = vrot.lane.b32.xlu1 %v8838_v6, %s8421_s12  ;;  %2479 = vrot.lane.b32.xlu0 %v8844_v10, %s8420_s27 }
 0x1d3   : > { %v9114_v22 = vpop.permute.xlu1 %2135  ;;  %v9116_v21 = vpop.permute.xlu0 %1614 }
 0x1d4   : > { %17167 = vst [vmem:[#allocation81_spill] sm:$0xff] %v9114_v22  ;;  %17168 = vst [vmem:[#allocation82_spill] sm:$0xff] %v9116_v21 }
 0x1d5   : > { %2471 = vrot.lane.b32.xlu1 %v8832_v5, %s8420_s27  ;;  %3199 = vrot.lane.b32.xlu0 %v8842_v9, %s8420_s27 }
 0x1d7   : > { %v9122_v37 = vpop.permute.xlu1 %1709  ;;  %v9124_v41 = vpop.permute.xlu0 %1806 }
 0x1d8   : > { %17169 = vst [vmem:[#allocation83_spill] sm:$0xff] %v9122_v37  ;;  %17170 = vst [vmem:[#allocation84_spill] sm:$0xff] %v9124_v41  ;;  %v8446_v41 = vmov 16  }
 0x1d9   : > { %2475 = vrot.lane.b32.xlu1 %v8842_v9, %s8420_s27  ;;  %2260 = vperm.xlu0 %8082, %v8655_v7  }
 0x1db   : > { %v9129_v46 = vpop.permute.xlu1 %1713  ;;  %v9131_v22 = vpop.permute.xlu0 %1810 }
 0x1dc   : > { %17171 = vst [vmem:[#allocation85_spill] sm:$0xff] %v9129_v46  ;;  %17172 = vst [vmem:[#allocation86_spill] sm:$0xff] %v9131_v22 }
 0x1dd   : > { %2555 = vrot.lane.b32.xlu1 %v8832_v5, %s8421_s12  ;;  %2711 = vrot.lane.b32.xlu0 %v8808_v62, %s8429_s13 }
 0x1de   : > { %8083 = vset.pattern.permute.xlu0 %v8446_v41  ;;  %v8447_v41 = vmov 0  }
 0x1df   : > { %v9137_v21 = vpop.permute.xlu1 %1903  ;;  %v9139_v37 = vpop.permute.xlu0 %2137 }
 0x1e0   : > { %17173 = vst [vmem:[#allocation87_spill] sm:$0xff] %v9137_v21  ;;  %17174 = vst [vmem:[#allocation88_spill] sm:$0xff] %v9139_v37 }
 0x1e1   : > { %2477 = vrot.lane.b32.xlu1 %v8840_v8, %s8420_s27  ;;  %3203 = vrot.lane.b32.xlu0 %v8844_v10, %s8420_s27 }
 0x1e3   : > { %v9145_v46 = vpop.permute.xlu1 %1907  ;;  %v9147_v22 = vpop.permute.xlu0 %2141 }
 0x1e4   : > { %17175 = vst [vmem:[#allocation89_spill] sm:$0xff] %v9145_v46  ;;  %17176 = vst [vmem:[#allocation90_spill] sm:$0xff] %v9147_v22 }
 0x1e5   : > { %2563 = vrot.lane.b32.xlu1 %v8844_v10, %s8421_s12  ;;  %2280 = vperm.xlu0 %8083, %v8655_v7  }
 0x1e7   : > { %v9152_v21 = vpop.permute.xlu1 %2040  ;;  %v9154_v37 = vpop.permute.xlu0 %2541 }
 0x1e8   : > { %17177 = vst [vmem:[#allocation91_spill] sm:$0xff] %v9152_v21 }
 0x1e9   : > { %2647 = vrot.lane.b32.xlu1 %v8844_v10, %s8427_s16  ;;  %8084 = vset.pattern.permute.xlu0 %v8447_v41 }
 0x1ea   : > { %1638 = vperm.xlu0 %8084, %v8655_v7  }
 0x1eb   : > { %v9159_v20 = vpop.permute.xlu1 %2044  ;;  %v9161_v46 = vpop.permute.xlu0 %2625 }
 0x1ec   : > { %17178 = vst [vmem:[#allocation92_spill] sm:$0xff] %v9159_v20  ;;  %17179 = vst [vmem:[#allocation93_spill] sm:$0xff] %v9161_v46 }
 0x1ed   : > { %2731 = vrot.lane.b32.xlu1 %v8844_v10, %s8429_s13 }
 0x1ee   : > { %2715 = vrot.lane.b32.xlu0 %v8816_v1, %s8429_s13 }
 0x1ef   : > { %v9167_v22 = vpop.permute.xlu1 %2457  ;;  %v9169_v21 = vpop.permute.xlu0 %2709 }
 0x1f0   : > { %17180 = vst [vmem:[#allocation94_spill] sm:$0xff] %v9169_v21 }
 0x1f1   : > { %3219 = vrot.lane.b32.xlu1 %v8874_v19, %s8420_s27 }
 0x1f2   : > { %3207 = vrot.lane.b32.xlu0 %v8858_v13, %s8420_s27 }
 0x1f3   : > { %v9175_v41 = vpop.permute.xlu0 %1711  ;;  %v9177_v20 = vpop.permute.xlu1 %1612 }
 0x1f4   : > { %17181 = vst [vmem:[#allocation95_spill] sm:$0xff] %v9175_v41  ;;  %17182 = vst [vmem:[#allocation96_spill] sm:$0xff] %v9177_v20 }
 0x1f5   : > { %3201 = vrot.lane.b32.xlu1 %v8840_v8, %s8420_s27 }
 0x1f6   : > { %3303 = vrot.lane.b32.xlu0 %v8874_v19, %s8421_s12 }
 0x1f7   : > { %v9183_v46 = vpop.permute.xlu0 %1715  ;;  %v9185_v0 = vpop.permute.xlu1 %1616 }
 0x1f8   : > { %17183 = vst [vmem:[#allocation97_spill] sm:$0xff] %v9183_v46  ;;  %17184 = vst [vmem:[#allocation98_spill] sm:$0xff] %v9185_v0 }
 0x1f9   : > { %2559 = vrot.lane.b32.xlu1 %v8842_v9, %s8421_s12 }
 0x1fa   : > { %2641 = vrot.lane.b32.xlu0 %v8838_v6, %s8427_s16 }
 0x1fb   : > { %v9191_v21 = vpop.permute.xlu0 %1905  ;;  %v9193_v41 = vpop.permute.xlu1 %1808 }
 0x1fc   : > { %17185 = vst [vmem:[#allocation99_spill] sm:$0xff] %v9191_v21  ;;  %17186 = vst [vmem:[#allocation100_spill] sm:$0xff] %v9193_v41 }
 0x1fd   : > { %2637 = vrot.lane.b32.xlu1 %v8824_v3, %s8427_s16 }
 0x1fe   : > { %3209 = vrot.lane.b32.xlu0 %v8856_v12, %s8420_s27 }
 0x1ff   : > { %v9199_v20 = vpop.permute.xlu0 %1909  ;;  %v9201_v46 = vpop.permute.xlu1 %1812 }
 0x200   : > { %17187 = vst [vmem:[#allocation101_spill] sm:$0xff] %v9199_v20  ;;  %17188 = vst [vmem:[#allocation102_spill] sm:$0xff] %v9201_v46 }
 0x201   : > { %2713 = vrot.lane.b32.xlu1 %v8814_v63, %s8429_s13 }
 0x202   : > { %3285 = vrot.lane.b32.xlu0 %v8840_v8, %s8421_s12 }
 0x203   : > { %v9207_v0 = vpop.permute.xlu0 %2042  ;;  %v9209_v21 = vpop.permute.xlu1 %2139 }
 0x204   : > { %17189 = vst [vmem:[#allocation103_spill] sm:$0xff] %v9207_v0  ;;  %17190 = vst [vmem:[#allocation104_spill] sm:$0xff] %v9209_v21 }
 0x205   : > { %3205 = vrot.lane.b32.xlu1 %v8850_v11, %s8420_s27 }
 0x206   : > { %2226 = vrot.lane.b32.xlu0 %v8786_v55, %s8448_s26 }
 0x207   : > { %v9215_v20 = vpop.permute.xlu0 %2046  ;;  %v9217_v46 = vpop.permute.xlu1 %2459 }
 0x208   : > { %17191 = vst [vmem:[#allocation105_spill] sm:$0xff] %v9215_v20 }
 0x209   : > { %2561 = vrot.lane.b32.xlu1 %v8840_v8, %s8421_s12 }
 0x20a   : > { %2643 = vrot.lane.b32.xlu0 %v8842_v9, %s8427_s16 }
 0x20b   : > { %v9223_v0 = vpop.permute.xlu0 %2627  ;;  %v9225_v21 = vpop.permute.xlu1 %2543 }
 0x20c   : > { %17192 = vst [vmem:[#allocation106_spill] sm:$0xff] %v9223_v0  ;;  %17193 = vst [vmem:[#allocation107_spill] sm:$0xff] %v9225_v21 }
 0x20d   : > { %2639 = vrot.lane.b32.xlu1 %v8832_v5, %s8427_s16 }
 0x20e   : > { %3211 = vrot.lane.b32.xlu0 %v8860_v14, %s8420_s27  ;;  %v17204_v14 = vmov 0.0  }
 0x20f   : > { %v9231_v41 = vpop.permute.xlu1 %1717  ;;  %v9233_v20 = vpop.permute.xlu0 %1618 }
 0x210   : > { %17194 = vst [vmem:[#allocation108_spill] sm:$0xff] %v9231_v41  ;;  %17195 = vst [vmem:[#allocation109_spill] sm:$0xff] %v9233_v20 }
 0x211   : > { %2717 = vrot.lane.b32.xlu1 %v8822_v2, %s8429_s13 }
 0x212   : > { %3289 = vrot.lane.b32.xlu0 %v8850_v11, %s8421_s12 }
 0x213   : > { %v9239_v45 = vpop.permute.xlu1 %1911  ;;  %v9241_v0 = vpop.permute.xlu0 %1814 }
 0x214   : > { %17196 = vst [vmem:[#allocation110_spill] sm:$0xff] %v9239_v45  ;;  %17197 = vst [vmem:[#allocation111_spill] sm:$0xff] %v9241_v0  ;;  %v8449_v0 = vmov 8  }
 0x215   : > { %3281 = vrot.lane.b32.xlu1 %v8838_v6, %s8421_s12 }
 0x216   : > { %2230 = vrot.lane.b32.xlu0 %v8788_v56, %s8448_s26 }
 0x217   : > { %v9247_v23 = vpop.permute.xlu1 %2048  ;;  %v9249_v41 = vpop.permute.xlu0 %2461 }
 0x218   : > { %17198 = vst [vmem:[#allocation112_spill] sm:$0xff] %v9247_v23 }
 0x219   : > { %2300 = vperm.xlu1 %8085, %v8655_v7  }
 0x21a   : > { %2645 = vrot.lane.b32.xlu0 %v8840_v8, %s8427_s16 }
 0x21b   : > { %v9254_v20 = vpop.permute.xlu1 %2549  ;;  %v9256_v45 = vpop.permute.xlu0 %2465 }
 0x21c   : > { %17199 = vst [vmem:[#allocation113_spill] sm:$0xff] %v9254_v20 }
 0x21d   : > { %2719 = vrot.lane.b32.xlu1 %v8826_v4, %s8429_s13 }
 0x21e   : > { %8091 = vset.pattern.permute.xlu1 %v8449_v0  ;;  %2825 = vrot.lane.b32.xlu0 %v8806_v61, %s8437_s17 }
 0x21f   : > { %v9262_v23 = vpop.permute.xlu1 %2629  ;;  %v9264_v11 = vpop.permute.xlu0 %2545 }
 0x220   : > { %17200 = vst [vmem:[#allocation114_spill] sm:$0xff] %v9262_v23  ;;  %17201 = vst [vmem:[#allocation115_spill] sm:$0xff] %v9264_v11 }
 0x221   : > { %3283 = vrot.lane.b32.xlu1 %v8842_v9, %s8421_s12 }
 0x222   : > { %3213 = vrot.lane.b32.xlu0 %v8866_v15, %s8420_s27 }
 0x223   : > { %v9270_v20 = vpop.permute.xlu1 %2633  ;;  %v9272_v21 = vpop.permute.xlu0 %1719 }
 0x224   : > { %17202 = vst [vmem:[#allocation116_spill] sm:$0xff] %v9270_v20  ;;  %17203 = vst [vmem:[#allocation117_spill] sm:$0xff] %v9272_v21  ;;  %v8450_v21 = vmov 17  }
 0x225   : > { %8087 = vrot.lane.b32.xlu1 %v17204_v14, %s8448_s26 }
 0x226   : > { %3365 = vrot.lane.b32.xlu0 %v8838_v6, %s8427_s16 }
 0x227   : > { %v9278_v0 = vpop.permute.xlu1 %1620  ;;  %v9280_v23 = vpop.permute.xlu0 %1913 }
 0x228   : > { %17205 = vst [vmem:[#allocation118_spill] sm:$0xff] %v9278_v0  ;;  %17206 = vst [vmem:[#allocation119_spill] sm:$0xff] %v9280_v23 }
 0x229   : > { %2357 = vperm.xlu1 %8091, %v8655_v7  }
 0x22a   : > { %2143 = vrot.lane.b32.xlu0 %v8808_v62, %s8443_s11 }
 0x22b   : > { %v9285_v11 = vpop.permute.xlu1 %1816  ;;  %v9287_v20 = vpop.permute.xlu0 %2050 }
 0x22c   : > { %17207 = vst [vmem:[#allocation120_spill] sm:$0xff] %v9285_v11  ;;  %17208 = vst [vmem:[#allocation121_spill] sm:$0xff] %v9287_v20 }
 0x22d   : > { %2721 = vrot.lane.b32.xlu1 %v8824_v3, %s8429_s13 }
 0x22e   : > { %8092 = vset.pattern.permute.xlu1 %v8450_v21  ;;  %2234 = vrot.lane.b32.xlu0 %v8798_v59, %s8448_s26 }
 0x22f   : > { %v9293_v0 = vpop.permute.xlu1 %2463  ;;  %v9295_v23 = vpop.permute.xlu0 %2547 }
 0x230   : > { %17209 = vst [vmem:[#allocation122_spill] sm:$0xff] %v9295_v23 }
 0x231   : > { %3287 = vrot.lane.b32.xlu1 %v8844_v10, %s8421_s12 }
 0x232   : > { %2725 = vrot.lane.b32.xlu0 %v8838_v6, %s8429_s13 }
 0x233   : > { %v9301_v11 = vpop.permute.xlu1 %2467  ;;  %v9305_v20 = vpop.permute.xlu0 %2631 }
 0x234   : > { %17210 = vst [vmem:[#allocation123_spill] sm:$0xff] %v9301_v11  ;;  %17211 = vst [vmem:[#allocation124_spill] sm:$0xff] %v9305_v20  ;;  %v8451_v11 = vmov 26  }
 0x235   : > { %2228 = vrot.lane.b32.xlu1 %v8794_v57, %s8448_s26 }
 0x236   : > { %2831 = vrot.lane.b32.xlu0 %v8816_v1, %s8437_s17 }
 0x237   : > { %v9309_v21 = vpop.permute.xlu1 %2551  ;;  %v9316_v24 = vpop.permute.xlu0 %2469 }
 0x238   : > { %17212 = vst [vmem:[#allocation125_spill] sm:$0xff] %v9309_v21  ;;  %17214 = vst [vmem:[#allocation127_spill] sm:$0xff] %v9316_v24  ;;  %v17229_v24 = vunpack.i.l.bf16 %v8950_v38 }
 0x239   : > { %2377 = vperm.xlu1 %8092, %v8655_v7  }
 0x23a   : > { %3293 = vrot.lane.b32.xlu0 %v8856_v12, %s8421_s12 }
 0x23b   : > { %v9314_v23 = vpop.permute.xlu1 %2635  ;;  %v9326_v21 = vpop.permute.xlu0 %2473 }
 0x23c   : > { %17213 = vst [vmem:[#allocation126_spill] sm:$0xff] %v9314_v23  ;;  %17216 = vst [vmem:[#allocation129_spill] sm:$0xff] %v9326_v21 }
 0x23d   : > { %2723 = vrot.lane.b32.xlu1 %v8832_v5, %s8429_s13 }
 0x23e   : > { %8093 = vset.pattern.permute.xlu1 %v8451_v11  ;;  %3369 = vrot.lane.b32.xlu0 %v8840_v8, %s8427_s16 }
 0x23f   : > { %v9322_v20 = vpop.permute.xlu1 %2553  ;;  %v9338_v5 = vpop.permute.xlu0 %3197 }
 0x240   : > { %17215 = vst [vmem:[#allocation128_spill] sm:$0xff] %v9322_v20  ;;  %17219 = vst [vmem:[#allocation132_spill] sm:$0xff] %v9338_v5  ;;  %v16488_v5 = vlaneseq }
 0x241   : > { %2827 = vrot.lane.b32.xlu1 %v8808_v62, %s8437_s17 }
 0x242   : > { %2236 = vrot.lane.b32.xlu0 %v8804_v60, %s8448_s26 }
 0x243   : > { %v9330_v12 = vpop.permute.xlu1 %2557 }
 0x244   : > { %17217 = vst [vmem:[#allocation130_spill] sm:$0xff] %v9330_v12  ;;  %v9348_v12 = vpop.permute.xlu0 %2479 }
 0x245   : > { %3291 = vrot.lane.b32.xlu1 %v8858_v13, %s8421_s12  ;;  %17221 = vst [vmem:[#allocation134_spill] sm:$0xff] %v9348_v12 }
 0x246   : > { %2323 = vrot.lane.b32.xlu0 %v8786_v55, %s8452_s14 }
 0x247   : > { %v9336_v11 = vpop.permute.xlu1 %2471 }
 0x248   : > { %17218 = vst [vmem:[#allocation131_spill] sm:$0xff] %v9336_v11  ;;  %v9359_v20 = vpop.permute.xlu0 %3199 }
 0x249   : > { %3387 = vrot.lane.b32.xlu1 %v8874_v19, %s8427_s16  ;;  %17224 = vst [vmem:[#allocation137_spill] sm:$0xff] %v9359_v20  ;;  %v17228_v19 = vunpack.i.l.bf16 %v8910_v30 }
 0x24a   : > { %2833 = vrot.lane.b32.xlu0 %v8822_v2, %s8437_s17 }
 0x24b   : > { %v9344_v21 = vpop.permute.xlu1 %2475 }
 0x24c   : > { %17220 = vst [vmem:[#allocation133_spill] sm:$0xff] %v9344_v21  ;;  %v9364_v21 = vand.u32 127, %v16488_v5  ;;  %v8052_v5 = vunpack.i.h.bf16 %v8924_v33 }
 0x24d   : > { %2232 = vrot.lane.b32.xlu1 %v8796_v58, %s8448_s26 }
 0x24e   : > { %3217 = vrot.lane.b32.xlu0 %v8868_v16, %s8420_s27  ;;  %vm1721_vm2 = vcmp.lt.s32.totalorder %v9364_v21, 16  ;;  %vm1915_vm3 = vcmp.lt.s32.totalorder %v9364_v21, 1  ;;  %vm1818_vm4 = vcmp.lt.s32.totalorder %v9364_v21, 15  ;;  %vm1624_vm5 = vcmp.lt.s32.totalorder %v9364_v21, 17 }
 0x24f   : > { %v9352_v13 = vpop.permute.xlu1 %2555  ;;  %vm2149_vm6 = vcmp.lt.s32.totalorder %v9364_v21, 113  ;;  %vm2052_vm7 = vcmp.lt.s32.totalorder %v9364_v21, 127  ;;  %vm2246_vm8 = vcmp.lt.s32.totalorder %v9364_v21, 112  ;;  %vm2343_vm9 = vcmp.lt.s32.totalorder %v9364_v21, 111 }
 0x250   : > { %17222 = vst [vmem:[#allocation135_spill] sm:$0xff] %v9352_v13 }
 0x251   : > { %2397 = vperm.xlu1 %8093, %v8655_v7   ;;  %v8041_v7 = vunpack.i.h.bf16 %v8910_v30 }
 0x252   : > { %3371 = vrot.lane.b32.xlu0 %v8844_v10, %s8427_s16  ;;  %v8060_v10 = vunpack.i.h.bf16 %v8950_v38 }
 0x253   : > { %v9357_v11 = vpop.permute.xlu1 %2477  ;;  %v1732_v23 = vsel %vm1721_vm2, %v17228_v19, %v8041_v7  ;;  %v17233_v19 = vunpack.i.l.bf16 %v8898_v28 }
 0x254   : > { %17223 = vst [vmem:[#allocation136_spill] sm:$0xff] %v9357_v11  ;;  %v8036_v11 = vunpack.i.h.bf16 %v8898_v28  ;;  %v1926_v8 = vsel %vm1915_vm3, %v17229_v24, %v8060_v10  ;;  %v9417_v38 = vmul.f32 %v8904_v29, %v1732_v23  ;;  %v9440_v23 = vmul.f32 %v8918_v32, %v8788_v56 }
 0x255   : > { %2829 = vrot.lane.b32.xlu1 %v8814_v63, %s8437_s17  ;;  %v9452_v28 = vmul.f32 %v8972_v43, %v8788_v56 }
 0x256   : > { %3937 = vrot.lane.b32.xlu0 %v8866_v15, %s8420_s27  ;;  %v9414_v24 = vsel %vm1624_vm5, %v17233_v19, %v8036_v11  ;;  %17234 = vst [vmem:[#allocation143_spill] sm:$0xff] %v9417_v38  ;;  %17239 = vst [vmem:[#allocation148_spill] sm:$0xff] %v9440_v23  ;;  %v9470_v38 = vmul.f32 %v8970_v42, %v8796_v58 }
 0x257   : > { %v9368_v13 = vpop.permute.xlu1 %2563  ;;  %17242 = vst [vmem:[#allocation151_spill] sm:$0xff] %v9452_v28 }
 0x258   : > { %17225 = vst [vmem:[#allocation138_spill] sm:$0xff] %v9368_v13  ;;  %v9374_v20 = vpop.permute.xlu0 %2260  ;;  %17247 = vst [vmem:[#allocation156_spill] sm:$0xff] %v9470_v38  ;;  %v9494_v38 = vmul.f32 %v8972_v43, %v8806_v61 }
 0x259   : > { %17226 = vst [vmem:[#allocation139_spill] sm:$0xff] %v9374_v20  ;;  %3215 = vrot.lane.b32.xlu1 %v8870_v17, %s8420_s27 }
 0x25a   : > { %2147 = vrot.lane.b32.xlu0 %v8816_v1, %s8443_s11 }
 0x25b   : > { %v9385_v16 = vpop.permute.xlu1 %2647 }
 0x25c   : > { %17227 = vst [vmem:[#allocation140_spill] sm:$0xff] %v9385_v16  ;;  %v9398_v17 = vpop.permute.xlu0 %2711  ;;  %v17231_v16 = vunpack.i.l.bf16 %v8924_v33  ;;  %v9444_v33 = vmul.f32 %v8918_v32, %v8794_v57 }
 0x25d   : > { %17230 = vst [vmem:[#allocation141_spill] sm:$0xff] %v9398_v17  ;;  %3367 = vrot.lane.b32.xlu1 %v8842_v9, %s8427_s16  ;;  %v9420_v17 = vmul.f32 %v8952_v39, %v1926_v8 }
 0x25e   : > { %v1829_v20 = vsel %vm1818_vm4, %v17231_v16, %v8052_v5  ;;  %2325 = vrot.lane.b32.xlu0 %v8794_v57, %s8452_s14  ;;  %v1572_v16 = vld [vmem:[%s16383_s4] sm:$0xff]  ;;  %17240 = vst [vmem:[#allocation149_spill] sm:$0xff] %v9444_v33  ;;  %v9482_v57 = vmul.f32 %v8970_v42, %v8798_v59 }
 0x25f   : > { %v9408_v30 = vpop.permute.xlu1 %2731  ;;  %17235 = vst [vmem:[#allocation144_spill] sm:$0xff] %v9420_v17  ;;  %v9436_v8 = vmul.f32 %v8938_v36, %v1829_v20  ;;  %v9448_v17 = vmul.f32 %v8918_v32, %v8796_v58  ;;  %v9458_v20 = vmul.f32 %v8972_v43, %v8786_v55  ;;  %v9550_v58 = vmul.f32 %v8972_v43, %v8814_v63 }
 0x260   : > { %17232 = vst [vmem:[#allocation142_spill] sm:$0xff] %v9408_v30  ;;  %v9428_v30 = vmul.f32 %v8918_v32, %v8786_v55  ;;  %v9431_v19 = vpop.permute.xlu0 %3203  ;;  %v9478_v55 = vmul.f32 %v8972_v43, %v8798_v59  ;;  %17249 = vst [vmem:[#allocation158_spill] sm:$0xff] %v9482_v57  ;;  %v9502_v57 = vmul.f32 %v8918_v32, %v8806_v61 }
 0x261   : > { %17237 = vst [vmem:[#allocation146_spill] sm:$0xff] %v9431_v19  ;;  %2145 = vrot.lane.b32.xlu1 %v8814_v63, %s8443_s11  ;;  %17238 = vst [vmem:[#allocation147_spill] sm:$0xff] %v9436_v8  ;;  %v9466_v8 = vmul.f32 %v8970_v42, %v8788_v56 }
 0x262   : > { %17236 = vst [vmem:[#allocation145_spill] sm:$0xff] %v9428_v30  ;;  %17241 = vst [vmem:[#allocation150_spill] sm:$0xff] %v9448_v17  ;;  %2418 = vperm.xlu0 %8084, %v1572_v16   ;;  %v9474_v16 = vmul.f32 %v8918_v32, %v8798_v59  ;;  %v17300_v17 = vld [vmem:[#allocation122_spill] sm:$0xff] }
 0x263   : > { %v9454_v19 = vpop.permute.xlu1 %3219  ;;  %17244 = vst [vmem:[#allocation153_spill] sm:$0xff] %v9458_v20  ;;  %17246 = vst [vmem:[#allocation155_spill] sm:$0xff] %v9466_v8  ;;  %v9515_v20 = vmul.f32 %v8918_v32, %v8822_v2  ;;  %v17307_v23 = vld [vmem:[#allocation140_spill] sm:$0xff]  ;;  %v17322_v30 = vld [vmem:[#allocation114_spill] sm:$0xff] }
 0x264   : > { %17243 = vst [vmem:[#allocation152_spill] sm:$0xff] %v9454_v19  ;;  %17248 = vst [vmem:[#allocation157_spill] sm:$0xff] %v9478_v55  ;;  %v9486_v19 = vmul.f32 %v8970_v42, %v8804_v60  ;;  %v9488_v8 = vpop.permute.xlu0 %2280  ;;  %v2449_v60 = vmul.f32 %v8918_v32, %v8814_v63  ;;  %v9521_v55 = vmul.f32 %v8918_v32, %v8816_v1 }
 0x265   : > { %17251 = vst [vmem:[#allocation160_spill] sm:$0xff] %v9488_v8  ;;  %8095 = vrot.lane.b32.xlu1 %v17204_v14, %s8452_s14  ;;  %v9511_v8 = vsel %vm1624_vm5, %v8036_v11, %v9020_v54  ;;  %v1731_v11 = vsel %vm1721_vm2, %v8041_v7, %v9028_v50  ;;  %v9539_v1 = vmul.f32 %v8918_v32, %v8826_v4  ;;  %17258 = vst [vmem:[#allocation167_spill] sm:$0xff] %v9550_v58 }
 0x266   : > { %17250 = vst [vmem:[#allocation159_spill] sm:$0xff] %v9486_v19  ;;  %v9506_v19 = vmul.f32 %v8970_v42, %v8806_v61  ;;  %2909 = vrot.lane.b32.xlu0 %v8806_v61, %s8443_s11  ;;  %v9546_v7 = vmul.f32 %v8970_v42, %v8814_v63  ;;  %v9557_v51 = vmul.f32 %v8872_v18, %v9511_v8 }
 0x267   : > { %v9531_v28 = vpop.permute.xlu1 %3201  ;;  %17256 = vst [vmem:[#allocation165_spill] sm:$0xff] %v9539_v1  ;;  %v9567_v32 = vmul.f32 %v8970_v42, %v8822_v2  ;;  %v9589_v1 = vmul.f32 %v8930_v34, %v1731_v11 }
 0x268   : > { %17253 = vst [vmem:[#allocation162_spill] sm:$0xff] %v9506_v19  ;;  %v1828_v19 = vsel %vm1818_vm4, %v8052_v5, %v9026_v26  ;;  %17254 = vst [vmem:[#allocation163_spill] sm:$0xff] %v9531_v28  ;;  %v1925_v5 = vsel %vm1915_vm3, %v8060_v10, %v9044_v48  ;;  %v9553_v28 = vmul.f32 0.0, %v8972_v43  ;;  %v1730_v10 = vsel %vm1721_vm2, %v9028_v50, %v9060_v49 }
 0x269   : > { %17257 = vst [vmem:[#allocation166_spill] sm:$0xff] %v9546_v7  ;;  %17260 = vst [vmem:[#allocation169_spill] sm:$0xff] %v9557_v51  ;;  %2727 = vrot.lane.b32.xlu1 %v8842_v9, %s8429_s13  ;;  %v9571_v43 = vmul.f32 %v8970_v42, %v8826_v4  ;;  %v9577_v58 = vmul.f32 %v8932_v35, %v1828_v19  ;;  %v9580_v7 = vmul.f32 %v8904_v29, %v1731_v11  ;;  %v9586_v2 = vpop.permute.xlu0 %1638  ;;  %v17299_v51 = vld [vmem:[#allocation113_spill] sm:$0xff] }
 0x26a   : > { %17259 = vst [vmem:[#allocation168_spill] sm:$0xff] %v9553_v28  ;;  %17261 = vst [vmem:[#allocation170_spill] sm:$0xff] %v9567_v32  ;;  %v9574_v28 = vmul.f32 %v8938_v36, %v1828_v19  ;;  %v1729_v50 = vsel %vm1721_vm2, %v9060_v49, %v9036_v52  ;;  %v9592_v42 = vmul.f32 %v8952_v39, %v1925_v5  ;;  %3297 = vrot.lane.b32.xlu0 %v8866_v15, %s8421_s12 }
 0x26b   : > { %17262 = vst [vmem:[#allocation171_spill] sm:$0xff] %v9571_v43  ;;  %17264 = vst [vmem:[#allocation173_spill] sm:$0xff] %v9577_v58  ;;  %v9598_v19 = vsel %vm1624_vm5, %v9217_v46, %v9249_v41  ;;  %v2492_v58 = vsel %vm1624_vm5, %v9348_v12, %v9167_v22  ;;  %v9606_v49 = vpop.permute.xlu1 %2559  ;;  %v9609_v11 = vmul.f32 %v8958_v40, %v1925_v5 }
 0x26c   : > { %17263 = vst [vmem:[#allocation172_spill] sm:$0xff] %v9574_v28  ;;  %17265 = vst [vmem:[#allocation174_spill] sm:$0xff] %v9580_v7  ;;  %v9618_v43 = vsel %vm1721_vm2, %v9036_v52, %v9068_v44  ;;  %v2493_v28 = vmul.f32 %v2492_v58, %v9586_v2  ;;  %v9622_v12 = vmul.f32 %v8904_v29, %v1729_v50  ;;  %v17295_v7 = vld [vmem:[#allocation33_spill] sm:$0xff] }
 0x26d   : > { %17266 = vst [vmem:[#allocation175_spill] sm:$0xff] %v9586_v2  ;;  %17267 = vst [vmem:[#allocation176_spill] sm:$0xff] %v9589_v1  ;;  %v9625_v15 = vmul.f32 %v8930_v34, %v1730_v10  ;;  %v9628_v5 = vmul.f32 %v8930_v34, %v1729_v50  ;;  %2835 = vrot.lane.b32.xlu1 %v8826_v4, %s8437_s17  ;;  %v1924_v58 = vsel %vm1915_vm3, %v9044_v48, %v9074_v47  ;;  %v17285_v1 = vld [vmem:[#allocation30_spill] sm:$0xff] }
 0x26e   : > { %17268 = vst [vmem:[#allocation177_spill] sm:$0xff] %v9592_v42  ;;  %17269 = vst [vmem:[#allocation178_spill] sm:$0xff] %v9606_v49  ;;  %v9612_v42 = vmul.f32 %v8904_v29, %v1730_v10  ;;  %v9634_v49 = vsel %vm1915_vm3, %v9074_v47, %v9052_v27  ;;  %v2509_v52 = vmul.f32 %v9598_v19, %v8872_v18  ;;  %3449 = vrot.lane.b32.xlu0 %v8838_v6, %s8429_s13 }
 0x26f   : > { %17270 = vst [vmem:[#allocation179_spill] sm:$0xff] %v9609_v11  ;;  %17272 = vst [vmem:[#allocation181_spill] sm:$0xff] %v9618_v43  ;;  %v9648_v10 = vsel %vm1624_vm5, %v9293_v0, %v9256_v45  ;;  %v9650_v11 = vpop.permute.xlu0 %2715  ;;  %v2501_v27 = vadd.f32 %v2493_v28, %v2449_v60  ;;  %v9663_v47 = vsel %vm1624_vm5, %v9076_v25, %v9018_v53  ;;  %v9673_v60 = vpop.permute.xlu1 %2637 }
 0x270   : > { %17271 = vst [vmem:[#allocation180_spill] sm:$0xff] %v9612_v42  ;;  %17273 = vst [vmem:[#allocation182_spill] sm:$0xff] %v9622_v12  ;;  %v9669_v48 = vsel %vm1624_vm5, %v9020_v54, %v9076_v25  ;;  %v9677_v28 = vmul.f32 %v8912_v31, %v9618_v43  ;;  %v2576_v25 = vsel %vm1721_vm2, %v9368_v13, %v9154_v37  ;;  %v17289_v13 = vld [vmem:[#allocation115_spill] sm:$0xff] }
 0x271   : > { %17274 = vst [vmem:[#allocation183_spill] sm:$0xff] %v9625_v15  ;;  %17275 = vst [vmem:[#allocation184_spill] sm:$0xff] %v9628_v5  ;;  %v9653_v5 = vmul.f32 %v8912_v31, %v1729_v50  ;;  %v9657_v15 = vmul.f32 %v8930_v34, %v9618_v43  ;;  %v2491_v50 = vsel %vm1624_vm5, %v9167_v22, %v9217_v46  ;;  %v17284_v43 = vld [vmem:[#allocation40_spill] sm:$0xff]  ;;  %3295 = vrot.lane.b32.xlu1 %v17285_v1, %s8421_s12  ;;  %v17315_v12 = vld [vmem:[#allocation123_spill] sm:$0xff] }
 0x272   : > { %17276 = vst [vmem:[#allocation185_spill] sm:$0xff] %v9634_v49  ;;  %17279 = vst [vmem:[#allocation188_spill] sm:$0xff] %v9669_v48  ;;  %v2517_v54 = vadd.f32 %v2509_v52, %v2501_v27  ;;  %v2494_v22 = vmul.f32 %v2491_v50, %v9586_v2  ;;  %v9700_v46 = vmul.f32 %v8958_v40, %v1924_v58  ;;  %v17292_v50 = vld [vmem:[#allocation74_spill] sm:$0xff]  ;;  %3939 = vrot.lane.b32.xlu0 %v17295_v7, %s8420_s27 }
 0x273   : > { %17277 = vst [vmem:[#allocation186_spill] sm:$0xff] %v9653_v5  ;;  %17278 = vst [vmem:[#allocation187_spill] sm:$0xff] %v9657_v15  ;;  %v9688_v5 = vmul.f32 %v8952_v39, %v1924_v58  ;;  %v9692_v15 = vmul.f32 %v8952_v39, %v9634_v49  ;;  %v9704_v27 = vmul.f32 %v8872_v18, %v9669_v48  ;;  %v17323_v48 = vld [vmem:[#allocation106_spill] sm:$0xff] }
 0x274   : > { %17280 = vst [vmem:[#allocation189_spill] sm:$0xff] %v9673_v60  ;;  %17281 = vst [vmem:[#allocation190_spill] sm:$0xff] %v9677_v28  ;;  %v2525_v28 = vmul.f32 %v9648_v10, %v17284_v43  ;;  %v9708_v52 = vmul.f32 %v8872_v18, %v9663_v47  ;;  %v9722_v58 = vsel %vm1624_vm5, %v9018_v53, %v17292_v50 }
 0x275   : > { %17282 = vst [vmem:[#allocation191_spill] sm:$0xff] %v9688_v5  ;;  %17283 = vst [vmem:[#allocation192_spill] sm:$0xff] %v9692_v15  ;;  %v17290_v5 = vld [vmem:[#allocation107_spill] sm:$0xff]  ;;  %v9716_v15 = vpop.permute.xlu0 %3207  ;;  %v2577_v42 = vmul.f32 %v2576_v25, %v8904_v29  ;;  %v9760_v4 = vmul.f32 %v8872_v18, %v9722_v58  ;;  %v9764_v32 = vmul.f32 %v17284_v43, %v9722_v58 }
 0x276   : > { %17286 = vst [vmem:[#allocation193_spill] sm:$0xff] %v9700_v46  ;;  %17287 = vst [vmem:[#allocation194_spill] sm:$0xff] %v9704_v27  ;;  %v9714_v49 = vsel %vm1721_vm2, %v17290_v5, %v17289_v13  ;;  %v17294_v46 = vld [vmem:[#allocation76_spill] sm:$0xff]  ;;  %v2533_v1 = vadd.f32 %v2525_v28, %v2517_v54  ;;  %v17298_v27 = vld [vmem:[#allocation67_spill] sm:$0xff]  ;;  %v9751_v28 = vsel %vm1624_vm5, %v9249_v41, %v9293_v0  ;;  %2240 = vrot.lane.b32.xlu0 %v8808_v62, %s8448_s26 }
 0x277   : > { %17288 = vst [vmem:[#allocation195_spill] sm:$0xff] %v9708_v52  ;;  %17291 = vst [vmem:[#allocation115_spill] sm:$0xff] %v9716_v15  ;;  %v1827_v60 = vsel %vm1818_vm4, %v9026_v26, %v17294_v46  ;;  %v9731_v52 = vpop.permute.xlu1 %2713  ;;  %v9735_v15 = vmul.f32 %v17284_v43, %v9663_v47  ;;  %v1826_v53 = vsel %vm1818_vm4, %v17294_v46, %v17298_v27  ;;  %v17302_v46 = vld [vmem:[#allocation27_spill] sm:$0xff]  ;;  %v17306_v0 = vld [vmem:[#allocation93_spill] sm:$0xff] }
 0x278   : > { %17293 = vst [vmem:[#allocation107_spill] sm:$0xff] %v9722_v58  ;;  %17296 = vst [vmem:[#allocation74_spill] sm:$0xff] %v9731_v52  ;;  %v9745_v26 = vsel %vm1721_vm2, %v17300_v17, %v17299_v51  ;;  %v2593_v25 = vmul.f32 %v9714_v49, %v8930_v34  ;;  %v2502_v54 = vadd.f32 %v2494_v22, %v9521_v55  ;;  %3373 = vrot.lane.b32.xlu1 %v17302_v46, %s8427_s16 }
 0x279   : > { %17297 = vst [vmem:[#allocation76_spill] sm:$0xff] %v9735_v15  ;;  %17301 = vst [vmem:[#allocation67_spill] sm:$0xff] %v9751_v28  ;;  %v2585_v15 = vadd.f32 %v2577_v42, %v2533_v1  ;;  %v9767_v41 = vmul.f32 %v8938_v36, %v1827_v60  ;;  %v2660_v55 = vsel %vm1818_vm4, %v17307_v23, %v17306_v0  ;;  %v9773_v1 = vpop.permute.xlu0 %3303  ;;  %v17309_v42 = vld [vmem:[#allocation78_spill] sm:$0xff] }
 0x27a   : > { %17303 = vst [vmem:[#allocation113_spill] sm:$0xff] %v9760_v4  ;;  %17304 = vst [vmem:[#allocation122_spill] sm:$0xff] %v9764_v32  ;;  %v9779_v22 = vsel %vm1818_vm4, %v17298_v27, %v17309_v42  ;;  %v2609_v58 = vmul.f32 %v9745_v26, %v8912_v31  ;;  %v2510_v46 = vmul.f32 %v9751_v28, %v8872_v18  ;;  %v17314_v27 = vld [vmem:[#allocation80_spill] sm:$0xff]  ;;  %2331 = vrot.lane.b32.xlu0 %v8798_v59, %s8452_s14 }
 0x27b   : > { %17305 = vst [vmem:[#allocation196_spill] sm:$0xff] %v9767_v41  ;;  %17308 = vst [vmem:[#allocation93_spill] sm:$0xff] %v9773_v1  ;;  %v2601_v41 = vadd.f32 %v2593_v25, %v2585_v15  ;;  %v9787_v32 = vpop.permute.xlu1 %3205  ;;  %v9790_v1 = vmul.f32 %v8938_v36, %v1826_v53  ;;  %v9793_v23 = vmul.f32 %v8932_v35, %v1827_v60  ;;  %v17317_v25 = vld [vmem:[#allocation83_spill] sm:$0xff]  ;;  %v17319_v28 = vld [vmem:[#allocation52_spill] sm:$0xff] }
 0x27c   : > { %17310 = vst [vmem:[#allocation78_spill] sm:$0xff] %v9779_v22  ;;  %17311 = vst [vmem:[#allocation197_spill] sm:$0xff] %v9787_v32  ;;  %v9799_v4 = vsel %vm1624_vm5, %v17292_v50, %v17314_v27  ;;  %v9805_v15 = vsel %vm1624_vm5, %v9256_v45, %v17315_v12  ;;  %v1727_v32 = vsel %vm1721_vm2, %v9068_v44, %v17317_v25  ;;  %8100 = vrot.lane.b32.xlu1 %v17204_v14, %s8420_s27 }
 0x27d   : > { %17312 = vst [vmem:[#allocation198_spill] sm:$0xff] %v9790_v1  ;;  %17313 = vst [vmem:[#allocation199_spill] sm:$0xff] %v9793_v23  ;;  %v2661_v60 = vmul.f32 %v2660_v55, %v8938_v36  ;;  %v2518_v23 = vadd.f32 %v2510_v46, %v2502_v54  ;;  %v2617_v1 = vadd.f32 %v2609_v58, %v2601_v41  ;;  %v9830_v58 = vpop.permute.xlu0 %2641  ;;  %v17325_v46 = vld [vmem:[#allocation84_spill] sm:$0xff] }
 0x27e   : > { %17316 = vst [vmem:[#allocation80_spill] sm:$0xff] %v9805_v15  ;;  %v9815_v50 = vmul.f32 %v8932_v35, %v1826_v53  ;;  %v9818_v33 = vmul.f32 %v17319_v28, %v1826_v53  ;;  %v9822_v45 = vmul.f32 %v8932_v35, %v9779_v22  ;;  %v9828_v44 = vsel %vm1818_vm4, %v17323_v48, %v17322_v30  ;;  %v17329_v22 = vld [vmem:[#allocation87_spill] sm:$0xff] }
 0x27f   : > { %17324 = vst [vmem:[#allocation114_spill] sm:$0xff] %v9830_v58  ;;  %v9834_v54 = vmul.f32 %v8872_v18, %v9799_v4  ;;  %v9840_v53 = vsel %vm1818_vm4, %v17309_v42, %v17325_v46  ;;  %v2526_v41 = vmul.f32 %v9805_v15, %v17284_v43  ;;  %v2669_v55 = vadd.f32 %v2661_v60, %v2617_v1  ;;  %v9846_v14 = vpop.permute.xlu1 %2561  ;;  %v17344_v15 = vld [vmem:[#allocation96_spill] sm:$0xff] }
 0x280   : > { %17318 = vst [vmem:[#allocation123_spill] sm:$0xff] %v9815_v50  ;;  %17320 = vst [vmem:[#allocation83_spill] sm:$0xff] %v9818_v33  ;;  %v9850_v58 = vmul.f32 %v17284_v43, %v9799_v4  ;;  %v9853_v33 = vmul.f32 %v8904_v29, %v1727_v32  ;;  %v2575_v59 = vsel %vm1721_vm2, %v9154_v37, %v17290_v5  ;;  %2238 = vrot.lane.b32.xlu1 %v8806_v61, %s8448_s26  ;;  %v17335_v5 = vld [vmem:[#allocation85_spill] sm:$0xff] }
 0x281   : > { %17321 = vst [vmem:[#allocation200_spill] sm:$0xff] %v9822_v45  ;;  %17326 = vst [vmem:[#allocation106_spill] sm:$0xff] %v9840_v53  ;;  %v17330_v45 = vld [vmem:[#allocation73_spill] sm:$0xff]  ;;  %v9866_v1 = vmul.f32 %v8930_v34, %v1727_v32  ;;  %v9869_v60 = vmul.f32 %v8912_v31, %v1727_v32  ;;  %v2534_v50 = vadd.f32 %v2526_v41, %v2518_v23  ;;  %v9893_v41 = vpop.permute.xlu0 %3209  ;;  %2913 = vrot.lane.b32.xlu0 %v8814_v63, %s8443_s11 }
 0x282   : > { %17327 = vst [vmem:[#allocation84_spill] sm:$0xff] %v9846_v14  ;;  %17328 = vst [vmem:[#allocation201_spill] sm:$0xff] %v9850_v58  ;;  %v9859_v42 = vsel %vm1915_vm3, %v17330_v45, %v17329_v22  ;;  %v2677_v14 = vmul.f32 %v9828_v44, %v8932_v35  ;;  %v9877_v22 = vmul.f32 %v8938_v36, %v9840_v53  ;;  %v17336_v45 = vld [vmem:[#allocation95_spill] sm:$0xff]  ;;  %v17338_v58 = vld [vmem:[#allocation124_spill] sm:$0xff] }
 0x283   : > { %17331 = vst [vmem:[#allocation202_spill] sm:$0xff] %v9859_v42  ;;  %17332 = vst [vmem:[#allocation203_spill] sm:$0xff] %v9869_v60  ;;  %v9881_v37 = vmul.f32 %v8932_v35, %v9840_v53  ;;  %v1725_v32 = vsel %vm1721_vm2, %v17336_v45, %v17335_v5  ;;  %v17337_v60 = vld [vmem:[#allocation116_spill] sm:$0xff]  ;;  %v9897_v61 = vmul.f32 %v8952_v39, %v9859_v42 }
 0x284   : > { %17333 = vst [vmem:[#allocation204_spill] sm:$0xff] %v9877_v22  ;;  %v9891_v23 = vsel %vm1818_vm4, %v17338_v58, %v17337_v60  ;;  %17340 = vst [vmem:[#allocation116_spill] sm:$0xff] %v9893_v41  ;;  %v9903_v53 = vsel %vm1721_vm2, %v17317_v25, %v17336_v45  ;;  %v2578_v5 = vmul.f32 %v2575_v59, %v8904_v29  ;;  %v17343_v22 = vld [vmem:[#allocation82_spill] sm:$0xff]  ;;  %v9926_v45 = vpop.permute.xlu1 %2639  ;;  %2327 = vrot.lane.b32.xlu1 %v8788_v56, %s8452_s14 }
 0x285   : > { %17334 = vst [vmem:[#allocation205_spill] sm:$0xff] %v9881_v37  ;;  %17339 = vst [vmem:[#allocation95_spill] sm:$0xff] %v9891_v23  ;;  %v2685_v37 = vadd.f32 %v2677_v14, %v2669_v55  ;;  %v1628_v41 = vsel %vm1624_vm5, %v17344_v15, %v17343_v22  ;;  %v9922_v25 = vsel %vm1721_vm2, %v17289_v13, %v17300_v17  ;;  %v17352_v22 = vld [vmem:[#allocation99_spill] sm:$0xff]  ;;  %3299 = vrot.lane.b32.xlu0 %v17295_v7, %s8421_s12  ;;  %v17363_v7 = vld [vmem:[#allocation24_spill] sm:$0xff] }
 0x286   : > { %17341 = vst [vmem:[#allocation124_spill] sm:$0xff] %v9897_v61  ;;  %17342 = vst [vmem:[#allocation206_spill] sm:$0xff] %v9903_v53  ;;  %v9916_v61 = vsel %vm1624_vm5, %v17314_v27, %v17344_v15  ;;  %v2495_v14 = vmul.f32 %v9598_v19, %v9586_v2  ;;  %v9930_v55 = vmul.f32 %v8958_v40, %v9859_v42  ;;  %v17351_v19 = vld [vmem:[#allocation89_spill] sm:$0xff] }
 0x287   : > { %17345 = vst [vmem:[#allocation96_spill] sm:$0xff] %v9916_v61  ;;  %17346 = vst [vmem:[#allocation207_spill] sm:$0xff] %v9922_v25  ;;  %v9933_v59 = vmul.f32 %v8930_v34, %v1725_v32  ;;  %v2693_v27 = vmul.f32 %v9891_v23, %v17319_v28  ;;  %v2586_v15 = vadd.f32 %v2578_v5, %v2534_v50  ;;  %v9954_v5 = vpop.permute.xlu0 %3285  ;;  %v17359_v23 = vld [vmem:[#allocation125_spill] sm:$0xff] }
 0x288   : > { %17347 = vst [vmem:[#allocation208_spill] sm:$0xff] %v9926_v45  ;;  %17348 = vst [vmem:[#allocation209_spill] sm:$0xff] %v9930_v55  ;;  %v9941_v13 = vmul.f32 %v8912_v31, %v9903_v53  ;;  %v9944_v17 = vmul.f32 %v8912_v31, %v1725_v32  ;;  %v1919_v42 = vsel %vm1915_vm3, %v17352_v22, %v17351_v19  ;;  %v17353_v45 = vld [vmem:[#allocation94_spill] sm:$0xff]  ;;  %v17358_v22 = vld [vmem:[#allocation100_spill] sm:$0xff]  ;;  %2729 = vrot.lane.b32.xlu1 %v17363_v7, %s8429_s13 }
 0x289   : > { %v17354_v55 = vld [vmem:[#allocation142_spill] sm:$0xff]  ;;  %17355 = vst [vmem:[#allocation94_spill] sm:$0xff] %v9954_v5  ;;  %v9957_v56 = vmul.f32 %v8872_v18, %v1628_v41  ;;  %v9961_v53 = vmul.f32 %v17284_v43, %v9916_v61  ;;  %v2594_v32 = vmul.f32 %v9922_v25, %v8930_v34  ;;  %v9968_v19 = vmul.f32 %v17284_v43, %v1628_v41 }
 0x28a   : > { %17349 = vst [vmem:[#allocation210_spill] sm:$0xff] %v9941_v13  ;;  %17350 = vst [vmem:[#allocation211_spill] sm:$0xff] %v9944_v17  ;;  %v2744_v50 = vsel %vm1915_vm3, %v17354_v55, %v17353_v45  ;;  %v2701_v13 = vadd.f32 %v2693_v27, %v2685_v37  ;;  %v17357_v55 = vld [vmem:[#allocation86_spill] sm:$0xff]  ;;  %v9978_v61 = vsel %vm1721_vm2, %v17299_v51, %v17359_v23  ;;  %3451 = vrot.lane.b32.xlu0 %v8842_v9, %s8429_s13 }
 0x28b   : > { %17356 = vst [vmem:[#allocation212_spill] sm:$0xff] %v9961_v53  ;;  %v1822_v5 = vsel %vm1818_vm4, %v17358_v22, %v17357_v55  ;;  %17360 = vst [vmem:[#allocation100_spill] sm:$0xff] %v9978_v61  ;;  %v2503_v25 = vadd.f32 %v2495_v14, %v9515_v20  ;;  %v9982_v37 = vmul.f32 %v8958_v40, %v1919_v42  ;;  %v17364_v53 = vld [vmem:[#allocation56_spill] sm:$0xff] }
 0x28c   : > { %v9988_v41 = vsel %vm1818_vm4, %v17325_v46, %v17358_v22  ;;  %v2745_v27 = vmul.f32 %v2744_v50, %v8952_v39  ;;  %v2602_v55 = vadd.f32 %v2594_v32, %v2586_v15  ;;  %v9994_v51 = vmul.f32 %v17364_v53, %v1919_v42  ;;  %v17366_v22 = vld [vmem:[#allocation141_spill] sm:$0xff]  ;;  %v10008_v15 = vpop.permute.xlu1 %2717  ;;  %v10010_v50 = vpop.permute.xlu0 %2226  ;;  %v17369_v42 = vld [vmem:[#allocation108_spill] sm:$0xff]  ;;  %2837 = vrot.lane.b32.xlu1 %v8824_v3, %s8437_s17 }
 0x28d   : > { %17361 = vst [vmem:[#allocation125_spill] sm:$0xff] %v9982_v37  ;;  %17362 = vst [vmem:[#allocation213_spill] sm:$0xff] %v9988_v41  ;;  %v2659_v20 = vsel %vm1818_vm4, %v17306_v0, %v17323_v48  ;;  %v2511_v14 = vmul.f32 %v9648_v10, %v8872_v18  ;;  %v10006_v46 = vsel %vm1915_vm3, %v17366_v22, %v9731_v52  ;;  %v17370_v32 = vld [vmem:[#allocation97_spill] sm:$0xff]  ;;  %v17371_v0 = vld [vmem:[#allocation127_spill] sm:$0xff] }
 0x28e   : > { %17365 = vst [vmem:[#allocation214_spill] sm:$0xff] %v9994_v51  ;;  %17367 = vst [vmem:[#allocation141_spill] sm:$0xff] %v10006_v46  ;;  %v1723_v41 = vsel %vm1721_vm2, %v17370_v32, %v17369_v42  ;;  %v2610_v48 = vmul.f32 %v9978_v61, %v8912_v31  ;;  %v10022_v7 = vsel %vm1624_vm5, %v17315_v12, %v17371_v0  ;;  %v17373_v37 = vld [vmem:[#allocation109_spill] sm:$0xff]  ;;  %v17374_v18 = vld [vmem:[#allocation98_spill] sm:$0xff] }
 0x28f   : > { %17368 = vst [vmem:[#allocation215_spill] sm:$0xff] %v10010_v50  ;;  %17372 = vst [vmem:[#allocation216_spill] sm:$0xff] %v10022_v7  ;;  %v2753_v51 = vadd.f32 %v2745_v27, %v2701_v13  ;;  %v10027_v50 = vmul.f32 %v8932_v35, %v1822_v5  ;;  %v1626_v42 = vsel %vm1624_vm5, %v17374_v18, %v17373_v37  ;;  %v17375_v32 = vld [vmem:[#allocation110_spill] sm:$0xff]  ;;  %v17376_v61 = vld [vmem:[#allocation101_spill] sm:$0xff] }
 0x290   : > { %v1917_v17 = vsel %vm1915_vm3, %v17376_v61, %v17375_v32  ;;  %v2519_v52 = vadd.f32 %v2511_v14, %v2503_v25  ;;  %v17377_v12 = vld [vmem:[#allocation111_spill] sm:$0xff]  ;;  %v17378_v0 = vld [vmem:[#allocation102_spill] sm:$0xff]  ;;  %v2618_v27 = vadd.f32 %v2610_v48, %v2602_v55  ;;  %v2761_v9 = vmul.f32 %v10006_v46, %v8958_v40  ;;  %v10060_v48 = vpop.permute.xlu0 %2643  ;;  %v17382_v18 = vld [vmem:[#allocation117_spill] sm:$0xff]  ;;  %2911 = vrot.lane.b32.xlu1 %v8808_v62, %s8443_s11 }
 0x291   : > { %v1820_v13 = vsel %vm1818_vm4, %v17378_v0, %v17377_v12  ;;  %v10047_v37 = vsel %vm1915_vm3, %v9650_v11, %v10008_v15  ;;  %v10052_v25 = vmul.f32 %v17319_v28, %v1822_v5  ;;  %v2662_v14 = vmul.f32 %v2659_v20, %v8938_v36  ;;  %17379 = vst [vmem:[#allocation217_spill] sm:$0xff] %v10060_v48  ;;  %v17380_v12 = vld [vmem:[#allocation45_spill] sm:$0xff]  ;;  %v17398_v62 = vld [vmem:[#allocation120_spill] sm:$0xff] }
 0x292   : > { %v10056_v32 = vmul.f32 %v8912_v31, %v1723_v41  ;;  %v2527_v55 = vmul.f32 %v10022_v7, %v17284_v43  ;;  %v1687_v61 = vmul.f32 %v17284_v43, %v1626_v42  ;;  %v17381_v0 = vunpack.i.l.bf16 %v17380_v12  ;;  %v17383_v41 = vld [vmem:[#allocation35_spill] sm:$0xff] }
 0x293   : > { %v2769_v5 = vadd.f32 %v2761_v9, %v2753_v51  ;;  %v2777_v20 = vmul.f32 %v10047_v37, %v17364_v53  ;;  %3943 = vrot.lane.b32.xlu0 %v17383_v41, %s8420_s27  ;;  %v10073_v46 = vmul.f32 %v17364_v53, %v1917_v17  ;;  %v10076_v48 = vmul.f32 %v17319_v28, %v1820_v13 }
 0x294   : > { %v1733_v3 = vsel %vm1721_vm2, %v17382_v18, %v17381_v0  ;;  %v10082_v42 = vsel %vm1818_vm4, %v17322_v30, %v17338_v58  ;;  %v2535_v0 = vadd.f32 %v2527_v55, %v2519_v52  ;;  %v10086_v9 = vmul.f32 %v9828_v44, %v8938_v36  ;;  %v17385_v18 = vld [vmem:[#allocation43_spill] sm:$0xff]  ;;  %v17387_v30 = vld [vmem:[#allocation118_spill] sm:$0xff]  ;;  %v10100_v58 = vpop.permute.xlu0 %3211 }
 0x295   : > { %17384 = vst [vmem:[#allocation45_spill] sm:$0xff] %v10073_v46  ;;  %v2579_v51 = vmul.f32 %v9714_v49, %v8904_v29  ;;  %v2670_v12 = vadd.f32 %v2662_v14, %v2618_v27  ;;  %v2785_v17 = vadd.f32 %v2777_v20, %v2769_v5  ;;  %v10093_v13 = vmul.f32 %v8904_v29, %v1733_v3  ;;  %v17389_v14 = vld [vmem:[#allocation126_spill] sm:$0xff]  ;;  %v17393_v20 = vld [vmem:[#allocation53_spill] sm:$0xff] }
 0x296   : > { %v17386_v46 = vunpack.i.l.bf16 %v17385_v18  ;;  %17388 = vst [vmem:[#allocation43_spill] sm:$0xff] %v10100_v58  ;;  %v1645_v44 = vmul.f32 %v9586_v2, %v9663_v47  ;;  %v1647_v49 = vmul.f32 %v9586_v2, %v9799_v4  ;;  %v2678_v27 = vmul.f32 %v10082_v42, %v8932_v35  ;;  %v17391_v18 = vld [vmem:[#allocation128_spill] sm:$0xff] }
 0x297   : > { %v10112_v3 = vsel %vm1818_vm4, %v17337_v60, %v17389_v14  ;;  %v2801_v47 = vadd.f32 %v9494_v38, %v2785_v17  ;;  %2242 = vrot.lane.b32.xlu0 %v8814_v63, %s8448_s26  ;;  %v2743_v4 = vsel %vm1915_vm3, %v17353_v45, %v17366_v22  ;;  %v2587_v55 = vadd.f32 %v2579_v51, %v2535_v0  ;;  %v17396_v38 = vld [vmem:[#allocation48_spill] sm:$0xff] }
 0x298   : > { %v1636_v52 = vsel %vm1624_vm5, %v17387_v30, %v17386_v46  ;;  %17390 = vst [vmem:[#allocation126_spill] sm:$0xff] %v10112_v3  ;;  %v10118_v46 = vsel %vm1721_vm2, %v17359_v23, %v17391_v18  ;;  %v1653_v60 = vadd.f32 %v1645_v44, %v9474_v16  ;;  %v1655_v5 = vadd.f32 %v1647_v49, %v9502_v57  ;;  %v17395_v30 = vld [vmem:[#allocation119_spill] sm:$0xff]  ;;  %v17399_v16 = vld [vmem:[#allocation29_spill] sm:$0xff]  ;;  %v10147_v0 = vpop.permute.xlu0 %3289 }
 0x299   : > { %17392 = vst [vmem:[#allocation128_spill] sm:$0xff] %v10118_v46  ;;  %v17394_v58 = vunpack.i.l.bf16 %v17393_v20  ;;  %v17397_v17 = vunpack.i.l.bf16 %v17396_v38  ;;  %v2595_v45 = vmul.f32 %v9745_v26, %v8930_v34  ;;  %v2686_v22 = vadd.f32 %v2678_v27, %v2670_v12  ;;  %3375 = vrot.lane.b32.xlu1 %v17399_v16, %s8427_s16  ;;  %17400 = vst [vmem:[#allocation53_spill] sm:$0xff] %v10147_v0 }
 0x29a   : > { %v2694_v57 = vmul.f32 %v10112_v3, %v17319_v28  ;;  %v1673_v51 = vadd.f32 %v9834_v54, %v1653_v60  ;;  %v1641_v44 = vmul.f32 %v9586_v2, %v1636_v52  ;;  %v2611_v49 = vmul.f32 %v10118_v46, %v8912_v31  ;;  %v10161_v54 = vpop.permute.xlu1 %3281 }
 0x29b   : > { %v10134_v23 = vsel %vm1915_vm3, %v17395_v30, %v17394_v58  ;;  %v1830_v63 = vsel %vm1818_vm4, %v17398_v62, %v17397_v17  ;;  %v1675_v58 = vadd.f32 %v9957_v56, %v1655_v5  ;;  %v2746_v20 = vmul.f32 %v2743_v4, %v8952_v39  ;;  %2841 = vrot.lane.b32.xlu0 %v8838_v6, %s8437_s17  ;;  %v17403_v17 = vld [vmem:[#allocation145_spill] sm:$0xff] }
 0x29c   : > { %v2497_v12 = vmul.f32 %v9648_v10, %v9586_v2  ;;  %v1642_v27 = vmul.f32 %v9586_v2, %v9414_v24  ;;  %v2603_v38 = vadd.f32 %v2595_v45, %v2587_v55  ;;  %17401 = vst [vmem:[#allocation48_spill] sm:$0xff] %v10161_v54  ;;  %v1693_v56 = vadd.f32 %v9968_v19, %v1673_v51  ;;  %v17402_v10 = vld [vmem:[#allocation188_spill] sm:$0xff]  ;;  %v17404_v30 = vld [vmem:[#allocation149_spill] sm:$0xff]  ;;  %v10172_v55 = vpop.permute.xlu0 %2230  ;;  %v17406_v45 = vld [vmem:[#allocation182_spill] sm:$0xff] }
 0x29d   : > { %v1695_v52 = vadd.f32 %v1687_v61, %v1675_v58  ;;  %v1643_v60 = vmul.f32 %v9586_v2, %v9511_v8  ;;  %v2702_v5 = vadd.f32 %v2694_v57, %v2686_v22  ;;  %3471 = vrot.lane.b32.xlu1 %v17383_v41, %s8429_s13  ;;  %v1644_v4 = vmul.f32 %v9586_v2, %v17402_v10  ;;  %v17407_v19 = vld [vmem:[#allocation148_spill] sm:$0xff]  ;;  %v17408_v8 = vld [vmem:[#allocation170_spill] sm:$0xff]  ;;  %v17410_v57 = vld [vmem:[#allocation67_spill] sm:$0xff] }
 0x29e   : > { %v1649_v0 = vadd.f32 %v1641_v44, %v17403_v17  ;;  %v1650_v24 = vadd.f32 %v1642_v27, %v17404_v30  ;;  %17405 = vst [vmem:[#allocation188_spill] sm:$0xff] %v10172_v55  ;;  %v1750_v54 = vadd.f32 %v17406_v45, %v1693_v56  ;;  %v10178_v22 = vadd.f32 %v17408_v8, %v2801_v47  ;;  %v17411_v10 = vld [vmem:[#allocation21_spill] sm:$0xff]  ;;  %v17412_v44 = vld [vmem:[#allocation150_spill] sm:$0xff] }
 0x29f   : > { %v1752_v61 = vadd.f32 %v9853_v33, %v1695_v52  ;;  %v1651_v51 = vadd.f32 %v1643_v60, %v17407_v19  ;;  %v2496_v58 = vmul.f32 %v17410_v57, %v9586_v2  ;;  %2919 = vrot.lane.b32.xlu0 %v17411_v10, %s8443_s11  ;;  %v1652_v17 = vadd.f32 %v1644_v4, %v17412_v44  ;;  %v17413_v30 = vld [vmem:[#allocation169_spill] sm:$0xff]  ;;  %v17414_v55 = vld [vmem:[#allocation194_spill] sm:$0xff]  ;;  %v10190_v33 = vpop.permute.xlu1 %2300  ;;  %v17416_v60 = vld [vmem:[#allocation195_spill] sm:$0xff] }
 0x2a0   : > { %17409 = vst [vmem:[#allocation145_spill] sm:$0xff] %v10178_v22  ;;  %v1669_v27 = vadd.f32 %v17413_v30, %v1649_v0  ;;  %v1670_v62 = vadd.f32 %v17414_v55, %v1650_v24  ;;  %v10188_v56 = vmul.f32 %v8938_v36, %v1830_v63  ;;  %17415 = vst [vmem:[#allocation149_spill] sm:$0xff] %v10190_v33  ;;  %v17417_v57 = vld [vmem:[#allocation74_spill] sm:$0xff]  ;;  %v17418_v4 = vld [vmem:[#allocation32_spill] sm:$0xff]  ;;  %v10204_v55 = vpop.permute.xlu0 %2645 }
 0x2a1   : > { %v1770_v47 = vadd.f32 %v9866_v1, %v1750_v54  ;;  %v1772_v52 = vadd.f32 %v9933_v59, %v1752_v61  ;;  %v1671_v45 = vadd.f32 %v17416_v60, %v1651_v51  ;;  %v2619_v19 = vadd.f32 %v2611_v49, %v2603_v38  ;;  %3941 = vrot.lane.b32.xlu1 %v17418_v4, %s8420_s27  ;;  %v17419_v63 = vld [vmem:[#allocation113_spill] sm:$0xff]  ;;  %v17421_v1 = vld [vmem:[#allocation211_spill] sm:$0xff]  ;;  %v17422_v61 = vld [vmem:[#allocation76_spill] sm:$0xff] }
 0x2a2   : > { %v2754_v8 = vadd.f32 %v2746_v20, %v2702_v5  ;;  %v10199_v0 = vsel %vm1915_vm3, %v17417_v57, %v9650_v11  ;;  %v1672_v24 = vadd.f32 %v17419_v63, %v1652_v17  ;;  %17420 = vst [vmem:[#allocation182_spill] sm:$0xff] %v10204_v55  ;;  %v1689_v49 = vadd.f32 %v17422_v61, %v1669_v27  ;;  %v17423_v20 = vld [vmem:[#allocation122_spill] sm:$0xff]  ;;  %v17425_v51 = vld [vmem:[#allocation80_spill] sm:$0xff]  ;;  %v17427_v57 = vld [vmem:[#allocation165_spill] sm:$0xff] }
 0x2a3   : > { %v1790_v54 = vadd.f32 %v17421_v1, %v1770_v47  ;;  %v1792_v59 = vadd.f32 %v10056_v32, %v1772_v52  ;;  %v1690_v38 = vadd.f32 %v17423_v20, %v1670_v62  ;;  %v17424_v5 = vld [vmem:[#allocation34_spill] sm:$0xff]  ;;  %v17426_v30 = vld [vmem:[#allocation164_spill] sm:$0xff]  ;;  %v2504_v17 = vadd.f32 %v2496_v58, %v17427_v57  ;;  %v10220_v47 = vpop.permute.xlu1 %2719  ;;  %v17431_v61 = vld [vmem:[#allocation201_spill] sm:$0xff] }
 0x2a4   : > { %v2512_v44 = vmul.f32 %v17425_v51, %v17424_v5  ;;  %v2513_v11 = vmul.f32 %v10022_v7, %v17424_v5  ;;  %v2505_v60 = vadd.f32 %v2497_v12, %v17426_v30  ;;  %v17428_v63 = vld [vmem:[#allocation30_spill] sm:$0xff]  ;;  %v2762_v32 = vmul.f32 %v10199_v0, %v8958_v40  ;;  %v17430_v52 = vld [vmem:[#allocation204_spill] sm:$0xff]  ;;  %v17432_v33 = vld [vmem:[#allocation129_spill] sm:$0xff] }
 0x2a5   : > { %3379 = vrot.lane.b32.xlu0 %v17428_v63, %s8427_s16  ;;  %v17429_v27 = vld [vmem:[#allocation198_spill] sm:$0xff]  ;;  %v1849_v1 = vadd.f32 %v17430_v52, %v1792_v59  ;;  %v1691_v20 = vadd.f32 %v17431_v61, %v1671_v45  ;;  %v17433_v22 = vld [vmem:[#allocation131_spill] sm:$0xff]  ;;  %v17437_v45 = vld [vmem:[#allocation13_spill] sm:$0xff]  ;;  %v10247_v61 = vpop.permute.xlu0 %2825  ;;  %v1746_v55 = vadd.f32 %v10093_v13, %v1689_v49 }
 0x2a6   : > { %v1847_v62 = vadd.f32 %v17429_v27, %v1790_v54  ;;  %v10229_v12 = vsel %vm1624_vm5, %v17433_v22, %v17432_v33  ;;  %v17435_v58 = vld [vmem:[#allocation127_spill] sm:$0xff]  ;;  %v10241_v54 = vsel %vm1915_vm3, %v10008_v15, %v10220_v47  ;;  %2329 = vrot.lane.b32.xlu1 %v17437_v45, %s8452_s14  ;;  %v17438_v59 = vld [vmem:[#allocation212_spill] sm:$0xff]  ;;  %v2671_v27 = vadd.f32 %v10086_v9, %v2619_v19  ;;  %v17442_v33 = vld [vmem:[#allocation205_spill] sm:$0xff] }
 0x2a7   : > { %17434 = vst [vmem:[#allocation148_spill] sm:$0xff] %v10229_v12  ;;  %v10235_v30 = vsel %vm1624_vm5, %v17435_v58, %v17433_v22  ;;  %v1692_v57 = vadd.f32 %v17438_v59, %v1672_v24  ;;  %v2770_v52 = vadd.f32 %v2762_v32, %v2754_v8  ;;  %17439 = vst [vmem:[#allocation67_spill] sm:$0xff] %v10247_v61  ;;  %v17440_v22 = vld [vmem:[#allocation143_spill] sm:$0xff]  ;;  %v10261_v49 = vpop.permute.xlu1 %3283  ;;  %v17446_v59 = vld [vmem:[#allocation22_spill] sm:$0xff] }
 0x2a8   : > { %17436 = vst [vmem:[#allocation170_spill] sm:$0xff] %v10235_v30  ;;  %v1747_v58 = vadd.f32 %v17440_v22, %v1690_v38  ;;  %v2520_v7 = vadd.f32 %v2512_v44, %v2504_v17  ;;  %v2778_v41 = vmul.f32 %v10241_v54, %v17364_v53  ;;  %v17441_v15 = vld [vmem:[#allocation27_spill] sm:$0xff]  ;;  %v1867_v10 = vadd.f32 %v17442_v33, %v1847_v62  ;;  %v17445_v38 = vld [vmem:[#allocation174_spill] sm:$0xff]  ;;  %v17447_v33 = vld [vmem:[#allocation180_spill] sm:$0xff] }
 0x2a9   : > { %3457 = vrot.lane.b32.xlu0 %v17441_v15, %s8429_s13  ;;  %v1869_v24 = vadd.f32 %v10027_v50, %v1849_v1  ;;  %v17443_v9 = vld [vmem:[#allocation95_spill] sm:$0xff]  ;;  %v2528_v8 = vmul.f32 %v10235_v30, %v17284_v43  ;;  %v2521_v13 = vadd.f32 %v2513_v11, %v2505_v60  ;;  %17444 = vst [vmem:[#allocation150_spill] sm:$0xff] %v10261_v49  ;;  %v17448_v1 = vld [vmem:[#allocation189_spill] sm:$0xff]  ;;  %v10276_v60 = vpop.permute.xlu0 %3213  ;;  %v17451_v22 = vld [vmem:[#allocation176_spill] sm:$0xff] }
 0x2aa   : > { %v2679_v19 = vmul.f32 %v17443_v9, %v8932_v35  ;;  %v1748_v44 = vadd.f32 %v17445_v38, %v1691_v20  ;;  %v2529_v17 = vmul.f32 %v10229_v12, %v17284_v43  ;;  %v2786_v32 = vadd.f32 %v2778_v41, %v2770_v52  ;;  %2839 = vrot.lane.b32.xlu1 %v17446_v59, %s8437_s17  ;;  %v17452_v41 = vld [vmem:[#allocation183_spill] sm:$0xff]  ;;  %v17453_v12 = vld [vmem:[#allocation161_spill] sm:$0xff] }
 0x2ab   : > { %v1887_v50 = vadd.f32 %v10052_v25, %v1867_v10  ;;  %v1749_v62 = vadd.f32 %v17447_v33, %v1692_v57  ;;  %v10274_v11 = vsel %vm1818_vm4, %v17389_v14, %v17448_v1  ;;  %17450 = vst [vmem:[#allocation194_spill] sm:$0xff] %v10276_v60  ;;  %v1889_v20 = vadd.f32 %v10076_v48, %v1869_v24  ;;  %v17454_v10 = vld [vmem:[#allocation31_spill] sm:$0xff]  ;;  %v17455_v57 = vld [vmem:[#allocation192_spill] sm:$0xff]  ;;  %v10289_v24 = vpop.permute.xlu1 %8087  ;;  %v17483_v5 = vld [vmem:[#allocation25_spill] sm:$0xff] }
 0x2ac   : > { %17449 = vst [vmem:[#allocation169_spill] sm:$0xff] %v10274_v11  ;;  %v1766_v38 = vadd.f32 %v17451_v22, %v1746_v55  ;;  %v1767_v52 = vadd.f32 %v17452_v41, %v1747_v58  ;;  %v2687_v61 = vadd.f32 %v2679_v19, %v2671_v27  ;;  %v2536_v49 = vadd.f32 %v2528_v8, %v2520_v7  ;;  %v17456_v14 = vld [vmem:[#allocation207_spill] sm:$0xff]  ;;  %v17458_v55 = vld [vmem:[#allocation184_spill] sm:$0xff]  ;;  %v17460_v19 = vld [vmem:[#allocation18_spill] sm:$0xff] }
 0x2ad   : > { %v2802_v25 = vadd.f32 %v17453_v12, %v2786_v32  ;;  %4021 = vrot.lane.b32.xlu0 %v17454_v10, %s8421_s12  ;;  %v1944_v33 = vadd.f32 %v17455_v57, %v1887_v50  ;;  %v2580_v43 = vmul.f32 %v17456_v14, %v8904_v29  ;;  %v2581_v60 = vmul.f32 %v9745_v26, %v8904_v29  ;;  %v17459_v7 = vld [vmem:[#allocation100_spill] sm:$0xff]  ;;  %v17462_v50 = vld [vmem:[#allocation187_spill] sm:$0xff]  ;;  %v17465_v41 = vld [vmem:[#allocation186_spill] sm:$0xff] }
 0x2ae   : > { %v2537_v48 = vadd.f32 %v2529_v17, %v2521_v13  ;;  %17457 = vst [vmem:[#allocation195_spill] sm:$0xff] %v10289_v24  ;;  %v1768_v58 = vadd.f32 %v17458_v55, %v1748_v44  ;;  %v2596_v27 = vmul.f32 %v17459_v7, %v8930_v34  ;;  %v2695_v12 = vmul.f32 %v10274_v11, %v17319_v28  ;;  %v17461_v8 = vld [vmem:[#allocation124_spill] sm:$0xff]  ;;  %v10302_v13 = vpop.permute.xlu0 %3365  ;;  %v17464_v17 = vld [vmem:[#allocation209_spill] sm:$0xff]  ;;  %v17466_v14 = vld [vmem:[#allocation190_spill] sm:$0xff] }
 0x2af   : > { %2915 = vrot.lane.b32.xlu1 %v17460_v19, %s8443_s11  ;;  %v1946_v32 = vadd.f32 %v17461_v8, %v1889_v20  ;;  %v1769_v22 = vadd.f32 %v17462_v50, %v1749_v62  ;;  %v2597_v26 = vmul.f32 %v10118_v46, %v8930_v34  ;;  %17463 = vst [vmem:[#allocation74_spill] sm:$0xff] %v10302_v13  ;;  %v17467_v24 = vld [vmem:[#allocation135_spill] sm:$0xff]  ;;  %v17468_v62 = vld [vmem:[#allocation125_spill] sm:$0xff] }
 0x2b0   : > { %v1964_v44 = vadd.f32 %v17464_v17, %v1944_v33  ;;  %v1786_v57 = vadd.f32 %v17465_v41, %v1766_v38  ;;  %v1787_v55 = vadd.f32 %v17466_v14, %v1767_v52  ;;  %v10311_v7 = vsel %vm1721_vm2, %v17391_v18, %v17467_v24  ;;  %v17469_v33 = vld [vmem:[#allocation141_spill] sm:$0xff]  ;;  %v10318_v38 = vpop.permute.xlu1 %2357  ;;  %v17471_v52 = vld [vmem:[#allocation214_spill] sm:$0xff]  ;;  %v17472_v14 = vld [vmem:[#allocation203_spill] sm:$0xff] }
 0x2b1   : > { %v2703_v20 = vadd.f32 %v2695_v12, %v2687_v61  ;;  %v2588_v8 = vadd.f32 %v2580_v43, %v2536_v49  ;;  %2244 = vrot.lane.b32.xlu0 %v17460_v19, %s8448_s26  ;;  %v1966_v50 = vadd.f32 %v17468_v62, %v1946_v32  ;;  %v2589_v13 = vadd.f32 %v2581_v60, %v2537_v48  ;;  %v17473_v61 = vld [vmem:[#allocation45_spill] sm:$0xff]  ;;  %v17474_v49 = vld [vmem:[#allocation28_spill] sm:$0xff]  ;;  %v17475_v12 = vld [vmem:[#allocation210_spill] sm:$0xff] }
 0x2b2   : > { %v2747_v17 = vmul.f32 %v17469_v33, %v8952_v39  ;;  %17470 = vst [vmem:[#allocation113_spill] sm:$0xff] %v10318_v38  ;;  %v1984_v41 = vadd.f32 %v17471_v52, %v1964_v44  ;;  %v1788_v46 = vadd.f32 %v17472_v14, %v1768_v58  ;;  %v2763_v18 = vmul.f32 %v10047_v37, %v8958_v40  ;;  %v17476_v48 = vld [vmem:[#allocation151_spill] sm:$0xff]  ;;  %v10330_v33 = vpop.permute.xlu0 %2143  ;;  %v17479_v52 = vld [vmem:[#allocation172_spill] sm:$0xff] }
 0x2b3   : > { %v1986_v43 = vadd.f32 %v17473_v61, %v1966_v50  ;;  %3377 = vrot.lane.b32.xlu1 %v17474_v49, %s8427_s16  ;;  %v1789_v32 = vadd.f32 %v17475_v12, %v1769_v22  ;;  %v1843_v60 = vadd.f32 %v10188_v56, %v1786_v57  ;;  %17477 = vst [vmem:[#allocation211_spill] sm:$0xff] %v10330_v33  ;;  %v17478_v38 = vld [vmem:[#allocation147_spill] sm:$0xff]  ;;  %v17482_v61 = vld [vmem:[#allocation157_spill] sm:$0xff]  ;;  %v17484_v22 = vld [vmem:[#allocation196_spill] sm:$0xff] }
 0x2b4   : > { %v2004_v62 = vadd.f32 %v17476_v48, %v1984_v41  ;;  %v1844_v44 = vadd.f32 %v17478_v38, %v1787_v55  ;;  %v1845_v58 = vadd.f32 %v17479_v52, %v1788_v46  ;;  %v17480_v14 = vld [vmem:[#allocation171_spill] sm:$0xff]  ;;  %v2755_v29 = vadd.f32 %v2747_v17, %v2703_v20  ;;  %v17485_v57 = vld [vmem:[#allocation130_spill] sm:$0xff]  ;;  %v17489_v20 = vld [vmem:[#allocation173_spill] sm:$0xff] }
 0x2b5   : > { %v10335_v34 = vadd.f32 %v17480_v14, %v2802_v25  ;;  %v2604_v50 = vadd.f32 %v2596_v27, %v2588_v8  ;;  %v2006_v30 = vadd.f32 %v17482_v61, %v1986_v43  ;;  %2843 = vrot.lane.b32.xlu0 %v17483_v5, %s8437_s17  ;;  %v1846_v56 = vadd.f32 %v17484_v22, %v1789_v32  ;;  %v17487_v25 = vld [vmem:[#allocation162_spill] sm:$0xff]  ;;  %v10352_v27 = vpop.permute.xlu1 %2721  ;;  %v17493_v32 = vld [vmem:[#allocation24_spill] sm:$0xff]  ;;  %v17498_v52 = vld [vmem:[#allocation73_spill] sm:$0xff] }
 0x2b6   : > { %v10345_v41 = vsel %vm1721_vm2, %v17467_v24, %v17485_v57  ;;  %v2612_v46 = vmul.f32 %v10311_v7, %v8912_v31  ;;  %v10350_v55 = vadd.f32 %v17487_v25, %v2004_v62  ;;  %v1863_v8 = vadd.f32 %v17489_v20, %v1843_v60  ;;  %v17490_v43 = vld [vmem:[#allocation166_spill] sm:$0xff]  ;;  %v10368_v62 = vpop.permute.xlu0 %2234  ;;  %v17495_v60 = vld [vmem:[#allocation199_spill] sm:$0xff]  ;;  %v17509_v33 = vld [vmem:[#allocation36_spill] sm:$0xff] }
 0x2b7   : > { %17481 = vst [vmem:[#allocation76_spill] sm:$0xff] %v10335_v34  ;;  %17486 = vst [vmem:[#allocation122_spill] sm:$0xff] %v10345_v41  ;;  %v2605_v17 = vadd.f32 %v2597_v26, %v2589_v13  ;;  %v2771_v38 = vadd.f32 %v2763_v18, %v2755_v29  ;;  %v10356_v12 = vadd.f32 %v17490_v43, %v2006_v30  ;;  %3453 = vrot.lane.b32.xlu1 %v17493_v32, %s8429_s13  ;;  %v17496_v29 = vld [vmem:[#allocation123_spill] sm:$0xff]  ;;  %v17497_v30 = vld [vmem:[#allocation200_spill] sm:$0xff] }
 0x2b8   : > { %17488 = vst [vmem:[#allocation80_spill] sm:$0xff] %v10350_v55  ;;  %v10362_v24 = vsel %vm1915_vm3, %v10220_v47, %v10352_v27  ;;  %17494 = vst [vmem:[#allocation198_spill] sm:$0xff] %v10368_v62  ;;  %v1864_v26 = vadd.f32 %v17495_v60, %v1844_v44  ;;  %v1865_v13 = vadd.f32 %v17496_v29, %v1845_v58  ;;  %v17499_v14 = vld [vmem:[#allocation70_spill] sm:$0xff]  ;;  %v17502_v43 = vld [vmem:[#allocation15_spill] sm:$0xff] }
 0x2b9   : > { %17491 = vst [vmem:[#allocation164_spill] sm:$0xff] %v10356_v12  ;;  %17492 = vst [vmem:[#allocation165_spill] sm:$0xff] %v10362_v24  ;;  %v2779_v48 = vmul.f32 %v10362_v24, %v17364_v53  ;;  %v1866_v18 = vadd.f32 %v17497_v30, %v1846_v56  ;;  %v10377_v47 = vsel %vm1915_vm3, %v17499_v14, %v17498_v52  ;;  %v17501_v61 = vld [vmem:[#allocation78_spill] sm:$0xff]  ;;  %2993 = vrot.lane.b32.xlu0 %v17502_v43, %s8448_s26  ;;  %v17504_v56 = vld [vmem:[#allocation213_spill] sm:$0xff]  ;;  %v10389_v30 = vpop.permute.xlu1 %3287 }
 0x2ba   : > { %17500 = vst [vmem:[#allocation204_spill] sm:$0xff] %v10377_v47  ;;  %v1876_v22 = vmul.f32 %v17319_v28, %v17501_v61  ;;  %v2613_v25 = vmul.f32 %v10345_v41, %v8912_v31  ;;  %v2620_v20 = vadd.f32 %v2612_v46, %v2604_v50  ;;  %v17503_v44 = vld [vmem:[#allocation106_spill] sm:$0xff]  ;;  %v1878_v60 = vmul.f32 %v17319_v28, %v17504_v56  ;;  %v17506_v52 = vld [vmem:[#allocation83_spill] sm:$0xff]  ;;  %v17507_v62 = vld [vmem:[#allocation208_spill] sm:$0xff] }
 0x2bb   : > { %v1877_v58 = vmul.f32 %v17319_v28, %v17503_v44  ;;  %v2787_v29 = vadd.f32 %v2779_v48, %v2771_v38  ;;  %17505 = vst [vmem:[#allocation201_spill] sm:$0xff] %v10389_v30  ;;  %v1883_v14 = vadd.f32 %v17506_v52, %v1863_v8  ;;  %v1932_v34 = vmul.f32 %v8952_v39, %v10134_v23  ;;  %v17510_v38 = vld [vmem:[#allocation167_spill] sm:$0xff]  ;;  %v10405_v30 = vpop.permute.xlu0 %2725  ;;  %v17511_v12 = vld [vmem:[#allocation185_spill] sm:$0xff]  ;;  %v17518_v55 = vld [vmem:[#allocation14_spill] sm:$0xff] }
 0x2bc   : > { %v2664_v50 = vmul.f32 %v10082_v42, %v8938_v36  ;;  %v2621_v46 = vadd.f32 %v2613_v25, %v2605_v17  ;;  %v10400_v44 = vsel %vm1818_vm4, %v17448_v1, %v17507_v62  ;;  %3945 = vrot.lane.b32.xlu1 %v17509_v33, %s8420_s27  ;;  %v1884_v8 = vadd.f32 %v1876_v22, %v1864_v26  ;;  %v17521_v41 = vld [vmem:[#allocation177_spill] sm:$0xff] }
 0x2bd   : > { %17508 = vst [vmem:[#allocation131_spill] sm:$0xff] %v10400_v44  ;;  %v2803_v48 = vadd.f32 %v17510_v38, %v2787_v29  ;;  %v1885_v52 = vadd.f32 %v1877_v58, %v1865_v13  ;;  %v1886_v23 = vadd.f32 %v1878_v60, %v1866_v18  ;;  %v1954_v42 = vmul.f32 %v8958_v40, %v17511_v12  ;;  %v17512_v13 = vld [vmem:[#allocation114_spill] sm:$0xff]  ;;  %v10425_v22 = vpop.permute.xlu1 %2228  ;;  %v17525_v57 = vld [vmem:[#allocation37_spill] sm:$0xff] }
 0x2be   : > { %v1972_v17 = vmul.f32 %v17364_v53, %v17511_v12  ;;  %v2665_v1 = vmul.f32 %v17443_v9, %v8938_v36  ;;  %v2672_v25 = vadd.f32 %v2664_v50, %v2620_v20  ;;  %3381 = vrot.lane.b32.xlu0 %v17454_v10, %s8427_s16  ;;  %v1955_v29 = vmul.f32 %v8958_v40, %v10377_v47  ;;  %v17515_v9 = vld [vmem:[#allocation99_spill] sm:$0xff] }
 0x2bf   : > { %v1973_v26 = vmul.f32 %v17364_v53, %v10377_v47  ;;  %v10423_v18 = vsel %vm1818_vm4, %v17507_v62, %v17512_v13  ;;  %v1940_v12 = vadd.f32 %v1932_v34, %v1883_v14  ;;  %17514 = vst [vmem:[#allocation13_spill] sm:$0xff] %v10425_v22  ;;  %v17516_v20 = vld [vmem:[#allocation87_spill] sm:$0xff]  ;;  %v2680_v60 = vmul.f32 %v10112_v3, %v8932_v35  ;;  %v17519_v62 = vld [vmem:[#allocation202_spill] sm:$0xff]  ;;  %v17520_v14 = vld [vmem:[#allocation144_spill] sm:$0xff] }
 0x2c0   : > { %17513 = vst [vmem:[#allocation127_spill] sm:$0xff] %v10423_v18  ;;  %v10431_v58 = vsel %vm1915_vm3, %v17516_v20, %v17515_v9  ;;  %v2673_v50 = vadd.f32 %v2665_v1, %v2621_v46  ;;  %v2696_v38 = vmul.f32 %v10400_v44, %v17319_v28  ;;  %2333 = vrot.lane.b32.xlu1 %v17518_v55, %s8452_s14  ;;  %v17522_v47 = vld [vmem:[#allocation191_spill] sm:$0xff]  ;;  %v10444_v20 = vpop.permute.xlu0 %2831 }
 0x2c1   : > { %17517 = vst [vmem:[#allocation212_spill] sm:$0xff] %v10431_v58  ;;  %v1974_v34 = vmul.f32 %v17364_v53, %v17519_v62  ;;  %v1941_v22 = vadd.f32 %v17520_v14, %v1884_v8  ;;  %v1942_v13 = vadd.f32 %v17521_v41, %v1885_v52  ;;  %v1943_v9 = vadd.f32 %v17522_v47, %v1886_v23  ;;  %v17524_v3 = vld [vmem:[#allocation179_spill] sm:$0xff]  ;;  %v17526_v41 = vld [vmem:[#allocation193_spill] sm:$0xff]  ;;  %v10456_v62 = vpop.permute.xlu1 %2377 }
 0x2c2   : > { %17523 = vst [vmem:[#allocation143_spill] sm:$0xff] %v10444_v20  ;;  %v2681_v46 = vmul.f32 %v10274_v11, %v8932_v35  ;;  %v2688_v1 = vadd.f32 %v2680_v60, %v2672_v25  ;;  %v2697_v44 = vmul.f32 %v10423_v18, %v17319_v28  ;;  %v1960_v56 = vadd.f32 %v17524_v3, %v1940_v12  ;;  %v17528_v60 = vld [vmem:[#allocation19_spill] sm:$0xff]  ;;  %v17529_v18 = vld [vmem:[#allocation20_spill] sm:$0xff]  ;;  %v17530_v3 = vld [vmem:[#allocation57_spill] sm:$0xff] }
 0x2c3   : > { %3949 = vrot.lane.b32.xlu0 %v17525_v57, %s8420_s27  ;;  %v1975_v8 = vmul.f32 %v17364_v53, %v10431_v58  ;;  %v1961_v52 = vadd.f32 %v17526_v41, %v1941_v22  ;;  %v1962_v47 = vadd.f32 %v1954_v42, %v1942_v13  ;;  %v1963_v23 = vadd.f32 %v1955_v29, %v1943_v9  ;;  %v17532_v13 = vld [vmem:[#allocation168_spill] sm:$0xff] }
 0x2c4   : > { %17527 = vst [vmem:[#allocation205_spill] sm:$0xff] %v10456_v62  ;;  %v2689_v14 = vadd.f32 %v2681_v46, %v2673_v50  ;;  %v2704_v20 = vadd.f32 %v2696_v38, %v2688_v1  ;;  %v1980_v25 = vadd.f32 %v1972_v17, %v1960_v56  ;;  %2917 = vrot.lane.b32.xlu1 %v17528_v60, %s8443_s11  ;;  %v10464_v22 = vpop.permute.xlu0 %3293  ;;  %v17536_v1 = vld [vmem:[#allocation155_spill] sm:$0xff] }
 0x2c5   : > { %v2811_v12 = vmul.f32 %v17530_v3, %v17529_v18  ;;  %v2748_v11 = vmul.f32 %v10199_v0, %v8952_v39  ;;  %v1981_v28 = vadd.f32 %v1973_v26, %v1961_v52  ;;  %v1982_v58 = vadd.f32 %v1974_v34, %v1962_v47  ;;  %17531 = vst [vmem:[#allocation95_spill] sm:$0xff] %v10464_v22  ;;  %v17534_v26 = vld [vmem:[#allocation153_spill] sm:$0xff]  ;;  %v17535_v34 = vld [vmem:[#allocation154_spill] sm:$0xff] }
 0x2c6   : > { %v1983_v35 = vadd.f32 %v1975_v8, %v1963_v23  ;;  %v2705_v42 = vadd.f32 %v2697_v44, %v2689_v14  ;;  %v2749_v29 = vmul.f32 %v10047_v37, %v8952_v39  ;;  %v2000_v56 = vadd.f32 %v17532_v13, %v1980_v25  ;;  %v2724_v44 = vpop.permute.xlu1 %2723 }
 0x2c7   : > { %4025 = vrot.lane.b32.xlu0 %v17418_v4, %s8421_s12  ;;  %v10471_v17 = vadd.f32 %v2811_v12, %v2803_v48  ;;  %v2764_v50 = vmul.f32 %v10241_v54, %v8958_v40  ;;  %v2001_v0 = vadd.f32 %v17532_v13, %v1981_v28  ;;  %v2002_v38 = vadd.f32 %v17534_v26, %v1982_v58  ;;  %v17538_v28 = vld [vmem:[#allocation156_spill] sm:$0xff] }
 0x2c8   : > { %v2003_v9 = vadd.f32 %v17535_v34, %v1983_v35  ;;  %v2756_v46 = vadd.f32 %v2748_v11, %v2704_v20  ;;  %v2765_v37 = vmul.f32 %v10362_v24, %v8958_v40  ;;  %v10481_v8 = vadd.f32 %v17536_v1, %v2000_v56  ;;  %3301 = vrot.lane.b32.xlu1 %v17418_v4, %s8421_s12  ;;  %v17540_v35 = vld [vmem:[#allocation158_spill] sm:$0xff]  ;;  %v17542_v11 = vld [vmem:[#allocation159_spill] sm:$0xff]  ;;  %v10504_v47 = vpop.permute.xlu0 %3369  ;;  %v17547_v12 = vld [vmem:[#allocation60_spill] sm:$0xff] }
 0x2c9   : > { %17533 = vst [vmem:[#allocation174_spill] sm:$0xff] %v10471_v17  ;;  %v10486_v48 = vsel %vm1915_vm3, %v10352_v27, %v2724_v44  ;;  %v10491_v58 = vadd.f32 %v17538_v28, %v2001_v0  ;;  %v10494_v41 = vadd.f32 %v17540_v35, %v2002_v38  ;;  %v10502_v52 = vsel %vm1915_vm3, %v2724_v44, %v10405_v30  ;;  %v17548_v38 = vld [vmem:[#allocation26_spill] sm:$0xff]  ;;  %v17554_v35 = vld [vmem:[#allocation17_spill] sm:$0xff]  ;;  %v17561_v17 = vld [vmem:[#allocation107_spill] sm:$0xff] }
 0x2ca   : > { %17537 = vst [vmem:[#allocation180_spill] sm:$0xff] %v10481_v8  ;;  %v10497_v20 = vadd.f32 %v17542_v11, %v2003_v9  ;;  %17544 = vst [vmem:[#allocation161_spill] sm:$0xff] %v10502_v52  ;;  %v2757_v27 = vadd.f32 %v2749_v29, %v2705_v42  ;;  %v2780_v23 = vmul.f32 %v10486_v48, %v17364_v53  ;;  %v10511_v25 = vpop.permute.xlu1 %2827  ;;  %v16627_v13 = vunpack.i.h.bf16 %v17547_v12  ;;  %v17549_v42 = vld [vmem:[#allocation65_spill] sm:$0xff]  ;;  %v17552_v9 = vld [vmem:[#allocation58_spill] sm:$0xff] }
 0x2cb   : > { %17539 = vst [vmem:[#allocation189_spill] sm:$0xff] %v10491_v58  ;;  %17541 = vst [vmem:[#allocation176_spill] sm:$0xff] %v10494_v41  ;;  %2845 = vrot.lane.b32.xlu0 %v17493_v32, %s8437_s17  ;;  %v2772_v14 = vadd.f32 %v2764_v50, %v2756_v46  ;;  %v16626_v56 = vunpack.i.l.bf16 %v17547_v12  ;;  %v2781_v26 = vmul.f32 %v10502_v52, %v17364_v53  ;;  %v17550_v29 = vunpack.i.h.bf16 %v17549_v42  ;;  %v17576_v52 = vld [vmem:[#allocation98_spill] sm:$0xff] }
 0x2cc   : > { %17543 = vst [vmem:[#allocation183_spill] sm:$0xff] %v10497_v20  ;;  %17545 = vst [vmem:[#allocation192_spill] sm:$0xff] %v10504_v47  ;;  %v2773_v0 = vadd.f32 %v2765_v37, %v2757_v27  ;;  %3455 = vrot.lane.b32.xlu1 %v17548_v38, %s8429_s13  ;;  %v17551_v34 = vunpack.i.l.bf16 %v17549_v42  ;;  %v2796_v44 = vmul.f32 %v17552_v9, %v17460_v19  ;;  %v10528_v37 = vpop.permute.xlu0 %2236  ;;  %v17573_v8 = vmov 0.0   ;;  %v17593_v12 = vld [vmem:[#allocation118_spill] sm:$0xff]  ;;  %v17594_v42 = vld [vmem:[#allocation109_spill] sm:$0xff] }
 0x2cd   : > { %17546 = vst [vmem:[#allocation207_spill] sm:$0xff] %v10511_v25  ;;  %v2788_v46 = vadd.f32 %v2780_v23, %v2772_v14  ;;  %17553 = vst [vmem:[#allocation184_spill] sm:$0xff] %v10528_v37  ;;  %v2797_v1 = vmul.f32 %v17552_v9, %v17528_v60  ;;  %v17556_v23 = vld [vmem:[#allocation61_spill] sm:$0xff]  ;;  %v1646_v47 = vmul.f32 %v9586_v2, %v17561_v17 }
 0x2ce   : > { %v2160_v50 = vsel %vm2149_vm6, %v17551_v34, %v17550_v29  ;;  %v2789_v28 = vadd.f32 %v2781_v26, %v2773_v0  ;;  %v10534_v27 = vpop.permute.xlu1 %3291  ;;  %v2063_v29 = vsel %vm2052_vm7, %v16626_v56, %v16627_v13  ;;  %v17558_v0 = vld [vmem:[#allocation38_spill] sm:$0xff]  ;;  %v17559_v26 = vld [vmem:[#allocation47_spill] sm:$0xff]  ;;  %v17564_v13 = vld [vmem:[#allocation16_spill] sm:$0xff]  ;;  %v10589_v25 = vmul.f32 %v17552_v9, %v17518_v55 }
 0x2cf   : > { %2997 = vrot.lane.b32.xlu0 %v17554_v35, %s8448_s26  ;;  %v2804_v11 = vadd.f32 %v2796_v44, %v2788_v46  ;;  %17555 = vst [vmem:[#allocation124_spill] sm:$0xff] %v10534_v27  ;;  %v10543_v14 = vmul.f32 %v17556_v23, %v2160_v50  ;;  %v1595_v44 = vmul.f32 %v17559_v26, %v17518_v55  ;;  %v17567_v27 = vld [vmem:[#allocation96_spill] sm:$0xff]  ;;  %v17587_v35 = vld [vmem:[#allocation129_spill] sm:$0xff] }
 0x2d0   : > { %v10545_v34 = vadd.f32 %v2797_v1, %v2789_v28  ;;  %3947 = vrot.lane.b32.xlu1 %v17558_v0, %s8420_s27  ;;  %v2498_v46 = vmul.f32 %v17425_v51, %v9586_v2  ;;  %v10553_v62 = vpop.permute.xlu0 %2323  ;;  %v10559_v50 = vmul.f32 %v17552_v9, %v17437_v45  ;;  %v2454_v1 = vmul.f32 %v17559_v26, %v17446_v59  ;;  %v17563_v51 = vld [vmem:[#allocation33_spill] sm:$0xff] }
 0x2d1   : > { %17557 = vst [vmem:[#allocation187_spill] sm:$0xff] %v10543_v14  ;;  %17560 = vst [vmem:[#allocation209_spill] sm:$0xff] %v10553_v62  ;;  %v10565_v28 = vmul.f32 %v17559_v26, %v17493_v32  ;;  %v10569_v56 = vmul.f32 %v17559_v26, %v8838_v6  ;;  %v1597_v17 = vmul.f32 %v17559_v26, %v17564_v13 }
 0x2d2   : > { %v10577_v45 = vmul.f32 %v17559_v26, %v17483_v5  ;;  %v10581_v62 = vmul.f32 %v17559_v26, %v17548_v38  ;;  %v10583_v22 = vpop.permute.xlu1 %3387  ;;  %v1648_v37 = vmul.f32 %v9586_v2, %v17567_v27  ;;  %v10593_v14 = vmul.f32 %v17559_v26, %v17441_v15 }
 0x2d3   : > { %17562 = vst [vmem:[#allocation186_spill] sm:$0xff] %v10565_v28  ;;  %3383 = vrot.lane.b32.xlu0 %v17563_v51, %s8427_s16  ;;  %17566 = vst [vmem:[#allocation135_spill] sm:$0xff] %v10583_v22  ;;  %v10597_v20 = vmul.f32 %v17559_v26, %v17399_v16  ;;  %v10601_v41 = vmul.f32 %v17559_v26, %v17474_v49  ;;  %v17571_v22 = vld [vmem:[#allocation62_spill] sm:$0xff]  ;;  %v2506_v55 = vadd.f32 %v2498_v46, %v2454_v1 }
 0x2d4   : > { %17565 = vst [vmem:[#allocation190_spill] sm:$0xff] %v10581_v62  ;;  %17568 = vst [vmem:[#allocation125_spill] sm:$0xff] %v10593_v14  ;;  %v10604_v58 = vmul.f32 %v17571_v22, %v2063_v29  ;;  %8105 = vrot.lane.b32.xlu1 %v17573_v8, %s8421_s12  ;;  %v10610_v62 = vmul.f32 %v17559_v26, %v17428_v63  ;;  %v10612_v14 = vpop.permute.xlu0 %2833  ;;  %v1654_v28 = vadd.f32 %v1646_v47, %v1595_v44  ;;  %v17580_v44 = vld [vmem:[#allocation39_spill] sm:$0xff]  ;;  %v17581_v1 = vld [vmem:[#allocation34_spill] sm:$0xff] }
 0x2d5   : > { %17569 = vst [vmem:[#allocation141_spill] sm:$0xff] %v10597_v20  ;;  %17570 = vst [vmem:[#allocation214_spill] sm:$0xff] %v10601_v41  ;;  %v10616_v20 = vmul.f32 %v17530_v3, %v17564_v13  ;;  %v17577_v41 = vld [vmem:[#allocation82_spill] sm:$0xff]  ;;  %v10628_v46 = vmul.f32 %v17559_v26, %v17563_v51  ;;  %v2812_v47 = vmul.f32 %v17530_v3, %v17446_v59 }
 0x2d6   : > { %17572 = vst [vmem:[#allocation203_spill] sm:$0xff] %v10604_v58  ;;  %17574 = vst [vmem:[#allocation45_spill] sm:$0xff] %v10610_v62  ;;  %v1627_v29 = vsel %vm1624_vm5, %v17577_v41, %v17576_v52  ;;  %v10624_v58 = vmul.f32 %v17559_v26, %v17454_v10  ;;  %v17582_v62 = vld [vmem:[#allocation170_spill] sm:$0xff]  ;;  %v10638_v52 = vpop.permute.xlu1 %2232  ;;  %v1656_v8 = vadd.f32 %v1648_v37, %v1597_v17 }
 0x2d7   : > { %17575 = vst [vmem:[#allocation210_spill] sm:$0xff] %v10612_v14  ;;  %17579 = vst [vmem:[#allocation147_spill] sm:$0xff] %v10628_v46  ;;  %3951 = vrot.lane.b32.xlu0 %v17580_v44, %s8420_s27  ;;  %v1666_v14 = vmul.f32 %v17581_v1, %v17567_v27  ;;  %v2514_v41 = vmul.f32 %v17582_v62, %v17581_v1  ;;  %v17586_v46 = vld [vmem:[#allocation133_spill] sm:$0xff]  ;;  %v10654_v27 = vmul.f32 %v17530_v3, %v17460_v19 }
 0x2d8   : > { %17578 = vst [vmem:[#allocation151_spill] sm:$0xff] %v10624_v58  ;;  %17583 = vst [vmem:[#allocation172_spill] sm:$0xff] %v10638_v52  ;;  %v17584_v58 = vld [vmem:[#allocation21_spill] sm:$0xff]  ;;  %v10648_v22 = vsel %vm1624_vm5, %v17587_v35, %v17586_v46  ;;  %2335 = vrot.lane.b32.xlu1 %v17502_v43, %s8452_s14  ;;  %v10658_v37 = vmul.f32 %v17552_v9, %v17529_v18  ;;  %v10662_v17 = vmul.f32 %v17552_v9, %v17446_v59  ;;  %v10667_v23 = vpop.permute.xlu0 %3217 }
 0x2d9   : > { %v10642_v24 = vmul.f32 %v17552_v9, %v17584_v58  ;;  %17588 = vst [vmem:[#allocation157_spill] sm:$0xff] %v10648_v22  ;;  %v1668_v52 = vmul.f32 %v17581_v1, %v1627_v29  ;;  %v2522_v58 = vadd.f32 %v2514_v41, %v2506_v55  ;;  %v10665_v35 = vadd.f32 %v2812_v47, %v2804_v11 }
 0x2da   : > { %17589 = vst [vmem:[#allocation196_spill] sm:$0xff] %v10658_v37  ;;  %17590 = vst [vmem:[#allocation162_spill] sm:$0xff] %v10662_v17  ;;  %v1674_v43 = vadd.f32 %v1666_v14, %v1654_v28  ;;  %v10677_v37 = vmul.f32 %v17552_v9, %v8838_v6  ;;  %v10681_v55 = vmul.f32 %v17552_v9, %v17483_v5  ;;  %v17598_v14 = vld [vmem:[#allocation40_spill] sm:$0xff]  ;;  %v17608_v17 = vld [vmem:[#allocation97_spill] sm:$0xff] }
 0x2db   : > { %17585 = vst [vmem:[#allocation171_spill] sm:$0xff] %v10642_v24  ;;  %17591 = vst [vmem:[#allocation173_spill] sm:$0xff] %v10665_v35  ;;  %v1625_v24 = vsel %vm1624_vm5, %v17594_v42, %v17593_v12  ;;  %4029 = vrot.lane.b32.xlu0 %v17509_v33, %s8421_s12  ;;  %v10685_v11 = vmul.f32 %v17552_v9, %v17493_v32  ;;  %v1686_v28 = vmul.f32 %v17598_v14, %v1627_v29  ;;  %v10690_v42 = vpop.permute.xlu1 %2397 }
 0x2dc   : > { %17592 = vst [vmem:[#allocation166_spill] sm:$0xff] %v10667_v23  ;;  %17595 = vst [vmem:[#allocation199_spill] sm:$0xff] %v10677_v37  ;;  %v2530_v12 = vmul.f32 %v10648_v22, %v17598_v14  ;;  %v1676_v47 = vadd.f32 %v1668_v52, %v1656_v8  ;;  %v10694_v41 = vmul.f32 %v17552_v9, %v17548_v38  ;;  %2921 = vrot.lane.b32.xlu1 %v17529_v18, %s8443_s11  ;;  %v17605_v52 = vld [vmem:[#allocation181_spill] sm:$0xff]  ;;  %v10717_v35 = vpop.permute.xlu0 %3371 }
 0x2dd   : > { %17596 = vst [vmem:[#allocation123_spill] sm:$0xff] %v10681_v55  ;;  %17597 = vst [vmem:[#allocation200_spill] sm:$0xff] %v10685_v11  ;;  %v10700_v55 = vmul.f32 %v17552_v9, %v17441_v15  ;;  %v10704_v29 = vmul.f32 %v17552_v9, %v17399_v16  ;;  %v10708_v11 = vmul.f32 %v17552_v9, %v17474_v49  ;;  %v17609_v18 = vld [vmem:[#allocation85_spill] sm:$0xff] }
 0x2de   : > { %17599 = vst [vmem:[#allocation73_spill] sm:$0xff] %v10690_v42  ;;  %17600 = vst [vmem:[#allocation70_spill] sm:$0xff] %v10694_v41  ;;  %v10712_v8 = vmul.f32 %v17552_v9, %v17428_v63  ;;  %v17606_v41 = vld [vmem:[#allocation44_spill] sm:$0xff]  ;;  %v1688_v37 = vmul.f32 %v17598_v14, %v1625_v24  ;;  %v2538_v23 = vadd.f32 %v2530_v12, %v2522_v58  ;;  %v17612_v24 = vld [vmem:[#allocation35_spill] sm:$0xff] }
 0x2df   : > { %17601 = vst [vmem:[#allocation78_spill] sm:$0xff] %v10700_v55  ;;  %17602 = vst [vmem:[#allocation106_spill] sm:$0xff] %v10704_v29  ;;  %v1743_v42 = vmul.f32 %v17606_v41, %v17605_v52  ;;  %v1694_v55 = vadd.f32 %v1686_v28, %v1674_v43  ;;  %v1724_v29 = vsel %vm1721_vm2, %v17609_v18, %v17608_v17  ;;  %2847 = vrot.lane.b32.xlu0 %v17548_v38, %s8437_s17  ;;  %v17614_v43 = vld [vmem:[#allocation206_spill] sm:$0xff]  ;;  %v17615_v18 = vld [vmem:[#allocation100_spill] sm:$0xff]  ;;  %v10741_v12 = vpop.permute.xlu1 %2829 }
 0x2e0   : > { %17603 = vst [vmem:[#allocation83_spill] sm:$0xff] %v10708_v11  ;;  %17604 = vst [vmem:[#allocation208_spill] sm:$0xff] %v10712_v8  ;;  %v10727_v8 = vmul.f32 %v17552_v9, %v17454_v10  ;;  %v10731_v52 = vmul.f32 %v17552_v9, %v17418_v4  ;;  %v10735_v58 = vmul.f32 %v17552_v9, %v17612_v24  ;;  %2995 = vrot.lane.b32.xlu1 %v17564_v13, %s8448_s26 }
 0x2e1   : > { %17607 = vst [vmem:[#allocation167_spill] sm:$0xff] %v10717_v35  ;;  %v1745_v28 = vmul.f32 %v17606_v41, %v17614_v43  ;;  %v2582_v17 = vmul.f32 %v17615_v18, %v17606_v41  ;;  %17616 = vst [vmem:[#allocation14_spill] sm:$0xff] %v10741_v12  ;;  %v1696_v11 = vadd.f32 %v1688_v37, %v1676_v47  ;;  %v10762_v12 = vpop.permute.xlu0 %3937 }
 0x2e2   : > { %17610 = vst [vmem:[#allocation185_spill] sm:$0xff] %v10727_v8  ;;  %17611 = vst [vmem:[#allocation99_spill] sm:$0xff] %v10731_v52  ;;  %v1751_v35 = vadd.f32 %v1743_v42, %v1694_v55  ;;  %v17617_v8 = vld [vmem:[#allocation49_spill] sm:$0xff]  ;;  %v2813_v52 = vmul.f32 %v17530_v3, %v8838_v6  ;;  %v10755_v18 = vmul.f32 %v17552_v9, %v17509_v33  ;;  %v17621_v42 = vld [vmem:[#allocation108_spill] sm:$0xff] }
 0x2e3   : > { %17613 = vst [vmem:[#allocation87_spill] sm:$0xff] %v10735_v58  ;;  %v1763_v14 = vmul.f32 %v17617_v8, %v17614_v43  ;;  %v10751_v58 = vmul.f32 %v17552_v9, %v17563_v51  ;;  %v1765_v37 = vmul.f32 %v17617_v8, %v1724_v29  ;;  %v17620_v55 = vld [vmem:[#allocation117_spill] sm:$0xff]  ;;  %v2590_v43 = vadd.f32 %v2582_v17, %v2538_v23  ;;  %v10776_v23 = vpop.permute.xlu1 %3215 }
 0x2e4   : > { %17619 = vst [vmem:[#allocation144_spill] sm:$0xff] %v10755_v18  ;;  %v1722_v47 = vsel %vm1721_vm2, %v17621_v42, %v17620_v55  ;;  %17622 = vst [vmem:[#allocation177_spill] sm:$0xff] %v10762_v12  ;;  %v1753_v41 = vadd.f32 %v1745_v28, %v1696_v11  ;;  %v1783_v22 = vmul.f32 %v8912_v31, %v1724_v29  ;;  %3001 = vrot.lane.b32.xlu0 %v17528_v60, %s8448_s26  ;;  %v17628_v29 = vld [vmem:[#allocation178_spill] sm:$0xff] }
 0x2e5   : > { %17618 = vst [vmem:[#allocation202_spill] sm:$0xff] %v10751_v58  ;;  %v1771_v58 = vadd.f32 %v1763_v14, %v1751_v35  ;;  %v10768_v63 = vadd.f32 %v2813_v52, %v10545_v34  ;;  %v10772_v18 = vmul.f32 %v17552_v9, %v17558_v0  ;;  %v2598_v55 = vmul.f32 %v10311_v7, %v17617_v8  ;;  %v17629_v52 = vld [vmem:[#allocation130_spill] sm:$0xff] }
 0x2e6   : > { %17625 = vst [vmem:[#allocation193_spill] sm:$0xff] %v10776_v23  ;;  %v1773_v17 = vadd.f32 %v1765_v37, %v1753_v41  ;;  %v10780_v11 = vmul.f32 %v17552_v9, %v17525_v57  ;;  %v10784_v35 = vmul.f32 %v17552_v9, %v17580_v44  ;;  %v1840_v34 = vmul.f32 %v8938_v36, %v17501_v61  ;;  %v17631_v37 = vld [vmem:[#allocation102_spill] sm:$0xff] }
 0x2e7   : > { %17623 = vst [vmem:[#allocation191_spill] sm:$0xff] %v10768_v63  ;;  %17624 = vst [vmem:[#allocation179_spill] sm:$0xff] %v10772_v18  ;;  %v1785_v14 = vmul.f32 %v8912_v31, %v1722_v47  ;;  %v10793_v28 = vsel %vm1721_vm2, %v17629_v52, %v17628_v29  ;;  %3459 = vrot.lane.b32.xlu1 %v17399_v16, %s8429_s13  ;;  %v1791_v41 = vadd.f32 %v1783_v22, %v1771_v58  ;;  %v17632_v42 = vld [vmem:[#allocation86_spill] sm:$0xff]  ;;  %v17636_v52 = vld [vmem:[#allocation213_spill] sm:$0xff] }
 0x2e8   : > { %17626 = vst [vmem:[#allocation57_spill] sm:$0xff] %v10780_v11  ;;  %17627 = vst [vmem:[#allocation168_spill] sm:$0xff] %v10784_v35  ;;  %v1821_v9 = vsel %vm1818_vm4, %v17632_v42, %v17631_v37  ;;  %v2606_v35 = vadd.f32 %v2598_v55, %v2590_v43  ;;  %v10801_v11 = vpop.permute.xlu0 %2147  ;;  %v10805_v61 = vmul.f32 %v17559_v26, %v17612_v24  ;;  %v17637_v22 = vld [vmem:[#allocation50_spill] sm:$0xff]  ;;  %3385 = vrot.lane.b32.xlu0 %v17418_v4, %s8427_s16  ;;  %v17638_v37 = vld [vmem:[#allocation120_spill] sm:$0xff] }
 0x2e9   : > { %17630 = vst [vmem:[#allocation153_spill] sm:$0xff] %v10793_v28  ;;  %17633 = vst [vmem:[#allocation154_spill] sm:$0xff] %v10801_v11  ;;  %v10809_v47 = vmul.f32 %v17559_v26, %v17418_v4  ;;  %v1842_v18 = vmul.f32 %v8938_v36, %v17636_v52  ;;  %v1860_v58 = vmul.f32 %v17637_v22, %v17636_v52  ;;  %v17639_v42 = vld [vmem:[#allocation111_spill] sm:$0xff] }
 0x2ea   : > { %17634 = vst [vmem:[#allocation155_spill] sm:$0xff] %v10805_v61  ;;  %v1793_v43 = vadd.f32 %v1785_v14, %v1773_v17  ;;  %v1848_v55 = vadd.f32 %v1840_v34, %v1791_v41  ;;  %v1819_v61 = vsel %vm1818_vm4, %v17639_v42, %v17638_v37  ;;  %v2614_v63 = vmul.f32 %v10793_v28, %v8912_v31  ;;  %v17643_v34 = vld [vmem:[#allocation52_spill] sm:$0xff]  ;;  %v17649_v28 = vld [vmem:[#allocation217_spill] sm:$0xff]  ;;  %v17650_v31 = vld [vmem:[#allocation114_spill] sm:$0xff] }
 0x2eb   : > { %17635 = vst [vmem:[#allocation156_spill] sm:$0xff] %v10809_v47  ;;  %v10823_v47 = vpop.permute.xlu1 %3367  ;;  %v10827_v12 = vmul.f32 %v17559_v26, %v17509_v33  ;;  %v10831_v52 = vmul.f32 %v17559_v26, %v17558_v0  ;;  %v1862_v17 = vmul.f32 %v17637_v22, %v1821_v9  ;;  %v1880_v14 = vmul.f32 %v17643_v34, %v1821_v9  ;;  %v17644_v42 = vld [vmem:[#allocation204_spill] sm:$0xff] }
 0x2ec   : > { %17640 = vst [vmem:[#allocation158_spill] sm:$0xff] %v10823_v47  ;;  %4023 = vrot.lane.b32.xlu1 %v17563_v51, %s8421_s12  ;;  %v1850_v41 = vadd.f32 %v1842_v18, %v1793_v43  ;;  %v1868_v37 = vadd.f32 %v1860_v58, %v1848_v55  ;;  %v1937_v11 = vmul.f32 %v8952_v39, %v17644_v42  ;;  %v10839_v23 = vpop.permute.xlu0 %2325  ;;  %v17651_v58 = vld [vmem:[#allocation101_spill] sm:$0xff]  ;;  %v17653_v42 = vld [vmem:[#allocation126_spill] sm:$0xff] }
 0x2ed   : > { %17641 = vst [vmem:[#allocation159_spill] sm:$0xff] %v10827_v12  ;;  %17642 = vst [vmem:[#allocation58_spill] sm:$0xff] %v10831_v52  ;;  %v2622_v47 = vadd.f32 %v2614_v63, %v2606_v35  ;;  %v10843_v12 = vmul.f32 %v17559_v26, %v17525_v57  ;;  %v17647_v52 = vld [vmem:[#allocation41_spill] sm:$0xff]  ;;  %v1882_v9 = vmul.f32 %v17643_v34, %v1819_v61  ;;  %3565 = vrot.lane.b32.xlu0 %v8838_v6, %s8437_s17  ;;  %v17654_v61 = vld [vmem:[#allocation131_spill] sm:$0xff] }
 0x2ee   : > { %17645 = vst [vmem:[#allocation47_spill] sm:$0xff] %v10839_v23  ;;  %v10847_v60 = vmul.f32 %v17559_v26, %v17647_v52  ;;  %v10854_v18 = vsel %vm1818_vm4, %v17650_v31, %v17649_v28  ;;  %v1870_v63 = vadd.f32 %v1862_v17, %v1850_v41  ;;  %v1888_v35 = vadd.f32 %v1880_v14, %v1868_v37  ;;  %v17652_v43 = vld [vmem:[#allocation89_spill] sm:$0xff]  ;;  %v17657_v28 = vld [vmem:[#allocation212_spill] sm:$0xff] }
 0x2ef   : > { %17646 = vst [vmem:[#allocation107_spill] sm:$0xff] %v10843_v12  ;;  %v1918_v55 = vsel %vm1915_vm3, %v17652_v43, %v17651_v58  ;;  %v2682_v12 = vmul.f32 %v17654_v61, %v17637_v22  ;;  %v10866_v23 = vpop.permute.xlu1 %2145  ;;  %v10870_v31 = vmul.f32 %v17559_v26, %v17580_v44  ;;  %v1939_v17 = vmul.f32 %v8952_v39, %v17657_v28  ;;  %v17658_v58 = vld [vmem:[#allocation119_spill] sm:$0xff]  ;;  %v17659_v43 = vld [vmem:[#allocation110_spill] sm:$0xff]  ;;  %v17660_v22 = vld [vmem:[#allocation216_spill] sm:$0xff] }
 0x2f0   : > { %17648 = vst [vmem:[#allocation16_spill] sm:$0xff] %v10847_v60  ;;  %v2666_v60 = vmul.f32 %v17653_v42, %v8938_v36  ;;  %17655 = vst [vmem:[#allocation96_spill] sm:$0xff] %v10866_v23  ;;  %v1957_v14 = vmul.f32 %v8958_v40, %v17657_v28  ;;  %v1890_v41 = vadd.f32 %v1882_v9, %v1870_v63  ;;  %2337 = vrot.lane.b32.xlu1 %v17564_v13, %s8452_s14  ;;  %v10886_v36 = vpop.permute.xlu0 %2418 }
 0x2f1   : > { %17656 = vst [vmem:[#allocation98_spill] sm:$0xff] %v10870_v31  ;;  %v1945_v37 = vadd.f32 %v1937_v11, %v1888_v35  ;;  %v1916_v42 = vsel %vm1915_vm3, %v17659_v43, %v17658_v58  ;;  %v2499_v31 = vmul.f32 %v17660_v22, %v9586_v2  ;;  %v2698_v61 = vmul.f32 %v10854_v18, %v17643_v34  ;;  %v17663_v58 = vld [vmem:[#allocation42_spill] sm:$0xff] }
 0x2f2   : > { %v2674_v23 = vadd.f32 %v2666_v60, %v2622_v47  ;;  %17661 = vst [vmem:[#allocation82_spill] sm:$0xff] %v10886_v36  ;;  %v1959_v28 = vmul.f32 %v8958_v40, %v1918_v55  ;;  %v1977_v11 = vmul.f32 %v17364_v53, %v1918_v55  ;;  %v1947_v9 = vadd.f32 %v1939_v17, %v1890_v41  ;;  %v17689_v36 = vld [vmem:[#allocation68_spill] sm:$0xff] }
 0x2f3   : > { %v1965_v63 = vadd.f32 %v1957_v14, %v1945_v37  ;;  %3953 = vrot.lane.b32.xlu0 %v17647_v52, %s8420_s27  ;;  %v2750_v60 = vmul.f32 %v10241_v54, %v8952_v39  ;;  %v10894_v47 = vpop.permute.xlu1 %8095  ;;  %v2814_v22 = vmul.f32 %v17530_v3, %v17483_v5  ;;  %v10900_v43 = vmul.f32 %v17559_v26, %v17663_v58 }
 0x2f4   : > { %v2690_v35 = vadd.f32 %v2682_v12, %v2674_v23  ;;  %17662 = vst [vmem:[#allocation170_spill] sm:$0xff] %v10894_v47  ;;  %v1979_v55 = vmul.f32 %v17364_v53, %v1916_v42  ;;  %v1967_v17 = vadd.f32 %v1959_v28, %v1947_v9  ;;  %2923 = vrot.lane.b32.xlu1 %v17446_v59, %s8443_s11  ;;  %v10914_v37 = vpop.permute.xlu0 %2909 }
 0x2f5   : > { %17664 = vst [vmem:[#allocation133_spill] sm:$0xff] %v10900_v43  ;;  %v1985_v14 = vadd.f32 %v1977_v11, %v1965_v63  ;;  %v10907_v12 = vmul.f32 %v17530_v3, %v17493_v32  ;;  %v2500_v54 = vmul.f32 %v17582_v62, %v9586_v2  ;;  %v2507_v23 = vadd.f32 %v2499_v31, %v10569_v56  ;;  %v17667_v56 = vld [vmem:[#allocation148_spill] sm:$0xff] }
 0x2f6   : > { %v2706_v41 = vadd.f32 %v2698_v61, %v2690_v35  ;;  %v2766_v26 = vmul.f32 %v10486_v48, %v8958_v40  ;;  %17665 = vst [vmem:[#allocation129_spill] sm:$0xff] %v10914_v37  ;;  %v1987_v42 = vadd.f32 %v1979_v55, %v1967_v17  ;;  %v10921_v11 = vmul.f32 %v17530_v3, %v17548_v38  ;;  %v17670_v35 = vld [vmem:[#allocation136_spill] sm:$0xff]  ;;  %v17692_v37 = vld [vmem:[#allocation71_spill] sm:$0xff] }
 0x2f7   : > { %v2005_v28 = vadd.f32 %v10559_v50, %v1985_v14  ;;  %4105 = vrot.lane.b32.xlu0 %v17454_v10, %s8427_s16  ;;  %v10925_v62 = vmul.f32 %v17530_v3, %v17441_v15  ;;  %v2515_v61 = vmul.f32 %v17667_v56, %v17581_v1  ;;  %v10929_v9 = vpop.permute.xlu1 %2727  ;;  %v10933_v50 = vmul.f32 %v17530_v3, %v17399_v16 }
 0x2f8   : > { %v2758_v31 = vadd.f32 %v2750_v60, %v2706_v41  ;;  %v10937_v63 = vmul.f32 %v17530_v3, %v17474_v49  ;;  %v2482_v55 = vsel %vm1624_vm5, %v17586_v46, %v17670_v35  ;;  %v2007_v17 = vadd.f32 %v10589_v25, %v1987_v42  ;;  %2999 = vrot.lane.b32.xlu1 %v17460_v19, %s8448_s26  ;;  %v10958_v25 = vpop.permute.xlu0 %3297 }
 0x2f9   : > { %17666 = vst [vmem:[#allocation118_spill] sm:$0xff] %v10925_v62  ;;  %17668 = vst [vmem:[#allocation109_spill] sm:$0xff] %v10933_v50  ;;  %v10945_v14 = vadd.f32 %v10616_v20, %v2005_v28  ;;  %v10951_v60 = vsel %vm1915_vm3, %v10405_v30, %v10929_v9  ;;  %v2508_v41 = vadd.f32 %v2500_v54, %v10577_v45  ;;  %v17674_v30 = vld [vmem:[#allocation30_spill] sm:$0xff]  ;;  %v10974_v54 = vmul.f32 0.0, %v17530_v3  ;;  %v17679_v28 = vld [vmem:[#allocation40_spill] sm:$0xff] }
 0x2fa   : > { %17669 = vst [vmem:[#allocation181_spill] sm:$0xff] %v10937_v63  ;;  %v2523_v56 = vadd.f32 %v2515_v61, %v2507_v23  ;;  %v2774_v43 = vadd.f32 %v2766_v26, %v2758_v31  ;;  %v2782_v46 = vmul.f32 %v10951_v60, %v17364_v53  ;;  %17672 = vst [vmem:[#allocation85_spill] sm:$0xff] %v10958_v25  ;;  %v17678_v23 = vld [vmem:[#allocation157_spill] sm:$0xff]  ;;  %v17693_v25 = vld [vmem:[#allocation60_spill] sm:$0xff] }
 0x2fb   : > { %17671 = vst [vmem:[#allocation97_spill] sm:$0xff] %v10945_v14  ;;  %v10961_v20 = vadd.f32 %v10654_v27, %v2007_v17  ;;  %2341 = vrot.lane.b32.xlu0 %v17460_v19, %s8452_s14  ;;  %v10967_v42 = vmul.f32 %v17530_v3, %v17674_v30  ;;  %v10971_v45 = vmul.f32 %v17530_v3, %v17454_v10  ;;  %17677 = vst [vmem:[#allocation108_spill] sm:$0xff] %v10974_v54  ;;  %v10979_v31 = vpop.permute.xlu1 %2835  ;;  %v17703_v14 = vld [vmem:[#allocation84_spill] sm:$0xff]  ;;  %v17722_v19 = vld [vmem:[#allocation63_spill] sm:$0xff] }
 0x2fc   : > { %v2516_v26 = vmul.f32 %v17678_v23, %v17581_v1  ;;  %v2531_v27 = vmul.f32 %v2482_v55, %v17679_v28  ;;  %v2790_v61 = vadd.f32 %v2782_v46, %v2774_v43  ;;  %17680 = vst [vmem:[#allocation178_spill] sm:$0xff] %v10979_v31  ;;  %v10983_v17 = vmul.f32 %v17530_v3, %v17563_v51 }
 0x2fd   : > { %17673 = vst [vmem:[#allocation206_spill] sm:$0xff] %v10961_v20  ;;  %17675 = vst [vmem:[#allocation100_spill] sm:$0xff] %v10967_v42  ;;  %v17682_v42 = vld [vmem:[#allocation134_spill] sm:$0xff]  ;;  %3461 = vrot.lane.b32.xlu1 %v17474_v49, %s8429_s13  ;;  %v10993_v23 = vmul.f32 %v17530_v3, %v17418_v4  ;;  %v10997_v43 = vmul.f32 %v17530_v3, %v17612_v24  ;;  %v11001_v55 = vmul.f32 %v17530_v3, %v17509_v33 }
 0x2fe   : > { %17676 = vst [vmem:[#allocation117_spill] sm:$0xff] %v10971_v45  ;;  %17681 = vst [vmem:[#allocation130_spill] sm:$0xff] %v10983_v17  ;;  %v2481_v45 = vsel %vm1624_vm5, %v17670_v35, %v17682_v42  ;;  %v2524_v46 = vadd.f32 %v2516_v26, %v2508_v41  ;;  %v2539_v54 = vadd.f32 %v2531_v27, %v2523_v56  ;;  %v17686_v17 = vld [vmem:[#allocation171_spill] sm:$0xff]  ;;  %v11004_v35 = vpop.permute.xlu0 %3449  ;;  %v17694_v62 = vunpack.i.h.bf16 %v17693_v25  ;;  %v17695_v56 = vld [vmem:[#allocation72_spill] sm:$0xff] }
 0x2ff   : > { %17683 = vst [vmem:[#allocation102_spill] sm:$0xff] %v10993_v23  ;;  %17684 = vst [vmem:[#allocation86_spill] sm:$0xff] %v10997_v43  ;;  %v2806_v63 = vadd.f32 %v17686_v17, %v2790_v61  ;;  %v11008_v42 = vmul.f32 %v17530_v3, %v17558_v0  ;;  %v17690_v23 = vld [vmem:[#allocation65_spill] sm:$0xff]  ;;  %v17696_v26 = vld [vmem:[#allocation75_spill] sm:$0xff]  ;;  %v11028_v17 = vmul.f32 %v17530_v3, %v17525_v57  ;;  %v11037_v49 = vpop.permute.xlu1 %3295 }
 0x300   : > { %17685 = vst [vmem:[#allocation213_spill] sm:$0xff] %v11001_v55  ;;  %17687 = vst [vmem:[#allocation120_spill] sm:$0xff] %v11004_v35  ;;  %v17691_v50 = vunpack.i.h.bf16 %v17690_v23  ;;  %v2062_v41 = vsel %vm2052_vm7, %v17694_v62, %v17692_v37  ;;  %v2060_v27 = vsel %vm2052_vm7, %v17696_v26, %v17695_v56  ;;  %v17697_v61 = vld [vmem:[#allocation20_spill] sm:$0xff]  ;;  %v2532_v31 = vmul.f32 %v2481_v45, %v17679_v28  ;;  %v17717_v35 = vld [vmem:[#allocation59_spill] sm:$0xff] }
 0x301   : > { %17688 = vst [vmem:[#allocation111_spill] sm:$0xff] %v11008_v42  ;;  %3005 = vrot.lane.b32.xlu0 %v17697_v61, %s8448_s26  ;;  %17698 = vst [vmem:[#allocation204_spill] sm:$0xff] %v11028_v17  ;;  %v17699_v42 = vld [vmem:[#allocation44_spill] sm:$0xff]  ;;  %v11039_v20 = vadd.f32 %v2814_v22, %v2806_v63  ;;  %v2566_v61 = vsel %vm1721_vm2, %v17628_v29, %v17703_v14  ;;  %4027 = vrot.lane.b32.xlu1 %v17612_v24, %s8421_s12  ;;  %v17707_v63 = vld [vmem:[#allocation61_spill] sm:$0xff] }
 0x302   : > { %v2159_v43 = vsel %vm2149_vm6, %v17691_v50, %v17689_v36  ;;  %v2061_v50 = vsel %vm2052_vm7, %v17692_v37, %v17696_v26  ;;  %v17700_v55 = vld [vmem:[#allocation128_spill] sm:$0xff]  ;;  %17701 = vst [vmem:[#allocation114_spill] sm:$0xff] %v11037_v49  ;;  %v11049_v37 = vmul.f32 %v17530_v3, %v17647_v52  ;;  %v11057_v22 = vmul.f32 %v17530_v3, %v17663_v58  ;;  %v17709_v26 = vld [vmem:[#allocation77_spill] sm:$0xff]  ;;  %v11066_v49 = vpop.permute.xlu0 %3939 }
 0x303   : > { %v2583_v62 = vmul.f32 %v17700_v55, %v17699_v42  ;;  %17702 = vst [vmem:[#allocation101_spill] sm:$0xff] %v11039_v20  ;;  %v11053_v55 = vmul.f32 %v17530_v3, %v17580_v44  ;;  %v11060_v45 = vmul.f32 %v17707_v63, %v2159_v43  ;;  %v2059_v29 = vsel %vm2052_vm7, %v17695_v56, %v17709_v26  ;;  %v17712_v43 = vld [vmem:[#allocation69_spill] sm:$0xff]  ;;  %v17715_v56 = vld [vmem:[#allocation46_spill] sm:$0xff]  ;;  %v17726_v52 = vld [vmem:[#allocation64_spill] sm:$0xff] }
 0x304   : > { %17704 = vst [vmem:[#allocation89_spill] sm:$0xff] %v11049_v37  ;;  %17706 = vst [vmem:[#allocation212_spill] sm:$0xff] %v11057_v22  ;;  %v2540_v17 = vadd.f32 %v2532_v31, %v2524_v46  ;;  %v17711_v37 = vld [vmem:[#allocation62_spill] sm:$0xff]  ;;  %v17713_v22 = vld [vmem:[#allocation79_spill] sm:$0xff]  ;;  %v2584_v31 = vmul.f32 %v10311_v7, %v17699_v42  ;;  %v11095_v33 = vmul.f32 %v17717_v35, %v2061_v50 }
 0x305   : > { %17705 = vst [vmem:[#allocation126_spill] sm:$0xff] %v11053_v55  ;;  %17708 = vst [vmem:[#allocation119_spill] sm:$0xff] %v11060_v45  ;;  %v2591_v20 = vadd.f32 %v2583_v62, %v2539_v54  ;;  %v11069_v47 = vmul.f32 %v17711_v37, %v2062_v41  ;;  %v11072_v55 = vmul.f32 %v17711_v37, %v2061_v50  ;;  %3079 = vrot.lane.b32.xlu0 %v17564_v13, %s8452_s14  ;;  %v17714_v46 = vld [vmem:[#allocation122_spill] sm:$0xff] }
 0x306   : > { %17710 = vst [vmem:[#allocation110_spill] sm:$0xff] %v11066_v49  ;;  %v11075_v3 = vmul.f32 %v17711_v37, %v2060_v27  ;;  %v2157_v23 = vsel %vm2149_vm6, %v17713_v22, %v17712_v43  ;;  %v2158_v54 = vsel %vm2149_vm6, %v17689_v36, %v17713_v22  ;;  %v2599_v41 = vmul.f32 %v17714_v46, %v17617_v8  ;;  %v11092_v49 = vpop.permute.xlu1 %3373  ;;  %v17718_v36 = vld [vmem:[#allocation138_spill] sm:$0xff]  ;;  %v17719_v22 = vld [vmem:[#allocation17_spill] sm:$0xff]  ;;  %v11116_v15 = vpop.permute.xlu0 %2240 }
 0x307   : > { %v2615_v62 = vmul.f32 %v2566_v61, %v17715_v56  ;;  %17716 = vst [vmem:[#allocation216_spill] sm:$0xff] %v11092_v49  ;;  %v11098_v13 = vmul.f32 %v17717_v35, %v2060_v27  ;;  %v11101_v44 = vmul.f32 %v17711_v37, %v2059_v29  ;;  %v2565_v7 = vsel %vm1721_vm2, %v17703_v14, %v17718_v36  ;;  %v17720_v46 = vld [vmem:[#allocation81_spill] sm:$0xff] }
 0x308   : > { %2339 = vrot.lane.b32.xlu1 %v17719_v22, %s8452_s14  ;;  %v11110_v61 = vmul.f32 %v17717_v35, %v2059_v29  ;;  %v2156_v27 = vsel %vm2149_vm6, %v17712_v43, %v17720_v46  ;;  %v2592_v50 = vadd.f32 %v2584_v31, %v2540_v17  ;;  %v2607_v49 = vadd.f32 %v2599_v41, %v2591_v20  ;;  %v17728_v43 = vld [vmem:[#allocation88_spill] sm:$0xff]  ;;  %v17729_v17 = vld [vmem:[#allocation153_spill] sm:$0xff] }
 0x309   : > { %17721 = vst [vmem:[#allocation148_spill] sm:$0xff] %v11116_v15  ;;  %v11119_v59 = vmul.f32 %v17722_v19, %v2059_v29  ;;  %v11122_v14 = vmul.f32 %v17707_v63, %v2158_v54  ;;  %v11125_v36 = vmul.f32 %v17707_v63, %v2157_v23  ;;  %v11128_v45 = vmul.f32 %v17726_v52, %v2158_v54 }
 0x30a   : > { %3569 = vrot.lane.b32.xlu0 %v17493_v32, %s8437_s17  ;;  %v2155_v20 = vsel %vm2149_vm6, %v17720_v46, %v17728_v43  ;;  %v2600_v29 = vmul.f32 %v17729_v17, %v17617_v8  ;;  %v2616_v31 = vmul.f32 %v2565_v7, %v17715_v56  ;;  %v2623_v41 = vadd.f32 %v2615_v62, %v2607_v49  ;;  %v11139_v15 = vpop.permute.xlu1 %8100  ;;  %v17736_v46 = vld [vmem:[#allocation91_spill] sm:$0xff]  ;;  %v17738_v7 = vld [vmem:[#allocation169_spill] sm:$0xff]  ;;  %v11163_v56 = vpop.permute.xlu0 %2331 }
 0x30b   : > { %17723 = vst [vmem:[#allocation136_spill] sm:$0xff] %v11119_v59  ;;  %17724 = vst [vmem:[#allocation157_spill] sm:$0xff] %v11122_v14  ;;  %v11145_v54 = vmul.f32 %v17707_v63, %v2156_v27  ;;  %v17734_v14 = vld [vmem:[#allocation66_spill] sm:$0xff]  ;;  %v2058_v49 = vsel %vm2052_vm7, %v17709_v26, %v17736_v46 }
 0x30c   : > { %17725 = vst [vmem:[#allocation134_spill] sm:$0xff] %v11125_v36  ;;  %17727 = vst [vmem:[#allocation171_spill] sm:$0xff] %v11128_v45  ;;  %v11142_v36 = vmul.f32 %v17726_v52, %v2157_v23  ;;  %v11148_v45 = vmul.f32 %v17726_v52, %v2156_v27  ;;  %v11151_v57 = vmul.f32 %v17734_v14, %v2156_v27  ;;  %2925 = vrot.lane.b32.xlu1 %v8838_v6, %s8443_s11  ;;  %v17737_v23 = vld [vmem:[#allocation51_spill] sm:$0xff]  ;;  %v17743_v6 = vld [vmem:[#allocation140_spill] sm:$0xff] }
 0x30d   : > { %17730 = vst [vmem:[#allocation68_spill] sm:$0xff] %v11139_v15  ;;  %17732 = vst [vmem:[#allocation60_spill] sm:$0xff] %v11145_v54  ;;  %v2608_v62 = vadd.f32 %v2600_v29, %v2592_v50  ;;  %v2667_v17 = vmul.f32 %v17738_v7, %v17737_v23  ;;  %v17739_v15 = vld [vmem:[#allocation131_spill] sm:$0xff]  ;;  %v11166_v27 = vmul.f32 %v17707_v63, %v2155_v20  ;;  %v17744_v54 = vld [vmem:[#allocation182_spill] sm:$0xff] }
 0x30e   : > { %17731 = vst [vmem:[#allocation71_spill] sm:$0xff] %v11142_v36  ;;  %17733 = vst [vmem:[#allocation72_spill] sm:$0xff] %v11148_v45  ;;  %v2668_v36 = vmul.f32 %v17739_v15, %v17737_v23  ;;  %v2649_v26 = vsel %vm1818_vm4, %v17744_v54, %v17743_v6  ;;  %v17745_v50 = vld [vmem:[#allocation217_spill] sm:$0xff]  ;;  %3955 = vrot.lane.b32.xlu0 %v17663_v58, %s8420_s27  ;;  %v11186_v4 = vpop.permute.xlu1 %2238  ;;  %v11189_v6 = vmul.f32 %v17726_v52, %v2155_v20 }
 0x30f   : > { %17735 = vst [vmem:[#allocation75_spill] sm:$0xff] %v11151_v57  ;;  %17740 = vst [vmem:[#allocation128_spill] sm:$0xff] %v11163_v56  ;;  %v17742_v57 = vld [vmem:[#allocation103_spill] sm:$0xff]  ;;  %v2650_v15 = vsel %vm1818_vm4, %v17745_v50, %v17744_v54  ;;  %v2624_v29 = vadd.f32 %v2616_v31, %v2608_v62  ;;  %v2675_v7 = vadd.f32 %v2667_v17, %v2623_v41  ;;  %v17746_v56 = vld [vmem:[#allocation50_spill] sm:$0xff]  ;;  %v11208_v50 = vpop.permute.xlu0 %2913 }
 0x310   : > { %17741 = vst [vmem:[#allocation84_spill] sm:$0xff] %v11166_v27  ;;  %v2057_v45 = vsel %vm2052_vm7, %v17736_v46, %v17742_v57  ;;  %v17747_v27 = vld [vmem:[#allocation127_spill] sm:$0xff]  ;;  %v2684_v46 = vmul.f32 %v10854_v18, %v17746_v56  ;;  %17748 = vst [vmem:[#allocation77_spill] sm:$0xff] %v11186_v4  ;;  %v11192_v59 = vmul.f32 %v17734_v14, %v2155_v20  ;;  %v17751_v41 = vld [vmem:[#allocation21_spill] sm:$0xff] }
 0x311   : > { %v2683_v23 = vmul.f32 %v17747_v27, %v17746_v56  ;;  %v11195_v54 = vmul.f32 %v17711_v37, %v2058_v49  ;;  %v11198_v31 = vmul.f32 %v17717_v35, %v2058_v49  ;;  %3003 = vrot.lane.b32.xlu1 %v17751_v41, %s8448_s26  ;;  %v17752_v62 = vld [vmem:[#allocation92_spill] sm:$0xff]  ;;  %v2676_v17 = vadd.f32 %v2668_v36, %v2624_v29 }
 0x312   : > { %17749 = vst [vmem:[#allocation69_spill] sm:$0xff] %v11192_v59  ;;  %v2056_v18 = vsel %vm2052_vm7, %v17742_v57, %v17752_v62  ;;  %v2699_v27 = vmul.f32 %v2650_v15, %v17643_v34  ;;  %v2700_v20 = vmul.f32 %v2649_v26, %v17643_v34  ;;  %17753 = vst [vmem:[#allocation122_spill] sm:$0xff] %v11208_v50  ;;  %v17755_v41 = vld [vmem:[#allocation104_spill] sm:$0xff]  ;;  %4107 = vrot.lane.b32.xlu0 %v17563_v51, %s8427_s16  ;;  %v11230_v50 = vpop.permute.xlu1 %2327 }
 0x313   : > { %17750 = vst [vmem:[#allocation79_spill] sm:$0xff] %v11195_v54  ;;  %v11211_v58 = vmul.f32 %v17722_v19, %v2058_v49  ;;  %v11214_v4 = vmul.f32 %v17711_v37, %v2057_v45  ;;  %v17754_v54 = vld [vmem:[#allocation90_spill] sm:$0xff]  ;;  %v2154_v57 = vsel %vm2149_vm6, %v17728_v43, %v17755_v41  ;;  %v2691_v36 = vadd.f32 %v2683_v23, %v2675_v7  ;;  %v17756_v49 = vld [vmem:[#allocation165_spill] sm:$0xff] }
 0x314   : > { %v2153_v56 = vsel %vm2149_vm6, %v17755_v41, %v17754_v54  ;;  %v2692_v26 = vadd.f32 %v2684_v46, %v2676_v17  ;;  %v2751_v15 = vmul.f32 %v17756_v49, %v8952_v39  ;;  %v2752_v29 = vmul.f32 %v10486_v48, %v8952_v39  ;;  %17757 = vst [vmem:[#allocation138_spill] sm:$0xff] %v11230_v50  ;;  %v17760_v48 = vld [vmem:[#allocation161_spill] sm:$0xff]  ;;  %v11250_v49 = vpop.permute.xlu0 %3299  ;;  %v17782_v39 = vld [vmem:[#allocation115_spill] sm:$0xff] }
 0x315   : > { %v11233_v34 = vmul.f32 %v17711_v37, %v2056_v18  ;;  %v11236_v59 = vmul.f32 %v17717_v35, %v2057_v45  ;;  %v11239_v43 = vmul.f32 %v17717_v35, %v2056_v18  ;;  %v11242_v23 = vmul.f32 %v17722_v19, %v2057_v45  ;;  %3463 = vrot.lane.b32.xlu1 %v17674_v30, %s8429_s13 }
 0x316   : > { %v2707_v7 = vadd.f32 %v2699_v27, %v2691_v36  ;;  %v2708_v46 = vadd.f32 %v2700_v20, %v2692_v26  ;;  %v2767_v41 = vmul.f32 %v17760_v48, %v8958_v40  ;;  %v2768_v17 = vmul.f32 %v10951_v60, %v8958_v40  ;;  %17761 = vst [vmem:[#allocation88_spill] sm:$0xff] %v11250_v49  ;;  %v17764_v60 = vld [vmem:[#allocation105_spill] sm:$0xff]  ;;  %v2730_v48 = vpop.permute.xlu1 %2729 }
 0x317   : > { %17758 = vst [vmem:[#allocation17_spill] sm:$0xff] %v11233_v34  ;;  %17759 = vst [vmem:[#allocation81_spill] sm:$0xff] %v11239_v43  ;;  %v11253_v50 = vmul.f32 %v17722_v19, %v2056_v18  ;;  %v11256_v43 = vmul.f32 %v17707_v63, %v2154_v57  ;;  %v11259_v45 = vmul.f32 %v17707_v63, %v2153_v56  ;;  %2929 = vrot.lane.b32.xlu0 %v17493_v32, %s8443_s11  ;;  %v17774_v34 = vld [vmem:[#allocation137_spill] sm:$0xff] }
 0x318   : > { %v11262_v27 = vmul.f32 %v17726_v52, %v2154_v57  ;;  %v11267_v20 = vmul.f32 %v17726_v52, %v2153_v56  ;;  %v2055_v18 = vsel %vm2052_vm7, %v17752_v62, %v17764_v60  ;;  %v2759_v36 = vadd.f32 %v2751_v15, %v2707_v7  ;;  %v11289_v7 = vpop.permute.xlu0 %3451 }
 0x319   : > { %17762 = vst [vmem:[#allocation153_spill] sm:$0xff] %v11259_v45  ;;  %v2760_v26 = vadd.f32 %v2752_v29, %v2708_v46  ;;  %v11274_v63 = vmul.f32 %v17734_v14, %v2154_v57  ;;  %v11277_v49 = vmul.f32 %v17734_v14, %v2153_v56  ;;  %v17766_v45 = vld [vmem:[#allocation142_spill] sm:$0xff]  ;;  %3567 = vrot.lane.b32.xlu1 %v17483_v5, %s8437_s17  ;;  %17767 = vst [vmem:[#allocation131_spill] sm:$0xff] %v11289_v7  ;;  %v17783_v7 = vld [vmem:[#allocation197_spill] sm:$0xff] }
 0x31a   : > { %17763 = vst [vmem:[#allocation91_spill] sm:$0xff] %v11267_v20  ;;  %v2733_v32 = vsel %vm1915_vm3, %v2730_v48, %v17766_v45  ;;  %v2734_v20 = vsel %vm1915_vm3, %v10929_v9, %v2730_v48  ;;  %v2775_v62 = vadd.f32 %v2767_v41, %v2759_v36  ;;  %v11292_v56 = vmul.f32 %v17717_v35, %v2055_v18  ;;  %v17768_v45 = vld [vmem:[#allocation112_spill] sm:$0xff]  ;;  %v17769_v48 = vld [vmem:[#allocation121_spill] sm:$0xff] }
 0x31b   : > { %17765 = vst [vmem:[#allocation169_spill] sm:$0xff] %v11277_v49  ;;  %v2776_v15 = vadd.f32 %v2768_v17, %v2760_v26  ;;  %v2783_v29 = vmul.f32 %v2734_v20, %v17364_v53  ;;  %v2784_v57 = vmul.f32 %v2733_v32, %v17364_v53  ;;  %v11295_v46 = vmul.f32 %v17722_v19, %v2055_v18  ;;  %v17771_v20 = vld [vmem:[#allocation132_spill] sm:$0xff]  ;;  %v11316_v53 = vpop.permute.xlu1 %2837 }
 0x31c   : > { %v2054_v9 = vsel %vm2052_vm7, %v17764_v60, %v17768_v45  ;;  %v2053_v41 = vsel %vm2052_vm7, %v17768_v45, %v17769_v48  ;;  %3081 = vrot.lane.b32.xlu0 %v17719_v22, %s8452_s14  ;;  %v17770_v32 = vunpack.i.l.bf16 %v17693_v25  ;;  %v17772_v18 = vld [vmem:[#allocation152_spill] sm:$0xff]  ;;  %17773 = vst [vmem:[#allocation103_spill] sm:$0xff] %v11316_v53  ;;  %v3231_v22 = vsel %vm1624_vm5, %v17771_v20, %v17774_v34  ;;  %v17775_v45 = vld [vmem:[#allocation163_spill] sm:$0xff]  ;;  %v11336_v40 = vpop.permute.xlu0 %3943 }
 0x31d   : > { %v3232_v36 = vsel %vm1624_vm5, %v17772_v18, %v17771_v20  ;;  %v2791_v60 = vadd.f32 %v2783_v29, %v2775_v62  ;;  %v2792_v26 = vadd.f32 %v2784_v57, %v2776_v15  ;;  %v3230_v25 = vsel %vm1624_vm5, %v17774_v34, %v17775_v45  ;;  %4031 = vrot.lane.b32.xlu1 %v17558_v0, %s8421_s12  ;;  %v17777_v29 = vld [vmem:[#allocation196_spill] sm:$0xff]  ;;  %v17778_v20 = vld [vmem:[#allocation162_spill] sm:$0xff] }
 0x31e   : > { %v2064_v17 = vsel %vm2052_vm7, %v17769_v48, %v17770_v32  ;;  %v3233_v48 = vmul.f32 %v3232_v36, %v9586_v2  ;;  %v17776_v32 = vld [vmem:[#allocation146_spill] sm:$0xff]  ;;  %v3234_v15 = vmul.f32 %v3231_v22, %v9586_v2  ;;  %17779 = vst [vmem:[#allocation140_spill] sm:$0xff] %v11336_v40  ;;  %v11339_v34 = vmul.f32 %v17717_v35, %v2054_v9 }
 0x31f   : > { %v3229_v62 = vsel %vm1624_vm5, %v17775_v45, %v17776_v32  ;;  %v2807_v57 = vadd.f32 %v17777_v29, %v2791_v60  ;;  %v2808_v53 = vadd.f32 %v17778_v20, %v2792_v26  ;;  %v11342_v36 = vmul.f32 %v17722_v19, %v2054_v9  ;;  %v11358_v9 = vpop.permute.xlu1 %2911 }
 0x320   : > { %17780 = vst [vmem:[#allocation182_spill] sm:$0xff] %v11339_v34  ;;  %v11345_v0 = vmul.f32 %v17722_v19, %v2053_v41  ;;  %v3227_v22 = vsel %vm1624_vm5, %v17783_v7, %v17782_v39  ;;  %3467 = vrot.lane.b32.xlu0 %v17563_v51, %s8429_s13  ;;  %v3235_v60 = vmul.f32 %v3230_v25, %v9586_v2  ;;  %17784 = vst [vmem:[#allocation127_spill] sm:$0xff] %v11358_v9  ;;  %v17788_v51 = vld [vmem:[#allocation186_spill] sm:$0xff]  ;;  %v17789_v34 = vmov 0.0   ;;  %v17796_v9 = vld [vmem:[#allocation43_spill] sm:$0xff] }
 0x321   : > { %17781 = vst [vmem:[#allocation217_spill] sm:$0xff] %v11342_v36  ;;  %v3228_v26 = vsel %vm1624_vm5, %v17776_v32, %v17783_v7  ;;  %v11361_v41 = vadd.f32 %v10907_v12, %v2807_v57  ;;  %v11364_v45 = vadd.f32 %v10921_v11, %v2808_v53  ;;  %v11367_v29 = vmul.f32 %v17722_v19, %v2064_v17  ;;  %v17790_v32 = vld [vmem:[#allocation190_spill] sm:$0xff]  ;;  %v17791_v53 = vld [vmem:[#allocation116_spill] sm:$0xff]  ;;  %v11381_v17 = vpop.permute.xlu0 %2242 }
 0x322   : > { %v3249_v20 = vmul.f32 %v3230_v25, %v17581_v1  ;;  %v3236_v40 = vmul.f32 %v3229_v62, %v9586_v2  ;;  %v3241_v36 = vadd.f32 %v3233_v48, %v17788_v51  ;;  %8110 = vrot.lane.b32.xlu1 %v17789_v34, %s8427_s16  ;;  %v3250_v7 = vmul.f32 %v3229_v62, %v17581_v1 }
 0x323   : > { %17785 = vst [vmem:[#allocation92_spill] sm:$0xff] %v11361_v41  ;;  %17786 = vst [vmem:[#allocation90_spill] sm:$0xff] %v11364_v45  ;;  %v3242_v12 = vadd.f32 %v3234_v15, %v17790_v32  ;;  %v3238_v57 = vmul.f32 %v3227_v22, %v9586_v2  ;;  %v3226_v11 = vsel %vm1624_vm5, %v17782_v39, %v17791_v53  ;;  %v17793_v45 = vld [vmem:[#allocation48_spill] sm:$0xff]  ;;  %v17794_v41 = vld [vmem:[#allocation93_spill] sm:$0xff]  ;;  %v11399_v19 = vpop.permute.xlu1 %3375 }
 0x324   : > { %17787 = vst [vmem:[#allocation104_spill] sm:$0xff] %v11367_v29  ;;  %17792 = vst [vmem:[#allocation165_spill] sm:$0xff] %v11381_v17  ;;  %v3237_v25 = vmul.f32 %v3228_v26, %v9586_v2  ;;  %v3251_v51 = vmul.f32 %v3228_v26, %v17581_v1  ;;  %v3252_v48 = vmul.f32 %v3227_v22, %v17581_v1  ;;  %3575 = vrot.lane.b32.xlu0 %v17399_v16, %s8437_s17  ;;  %v17795_v15 = vld [vmem:[#allocation125_spill] sm:$0xff] }
 0x325   : > { %v3316_v62 = vsel %vm1721_vm2, %v17794_v41, %v17793_v45  ;;  %v3243_v32 = vadd.f32 %v3235_v60, %v17795_v15  ;;  %v3265_v39 = vmul.f32 %v3228_v26, %v17679_v28  ;;  %v3266_v17 = vmul.f32 %v3227_v22, %v17679_v28  ;;  %17797 = vst [vmem:[#allocation161_spill] sm:$0xff] %v11399_v19  ;;  %v17798_v29 = vld [vmem:[#allocation141_spill] sm:$0xff]  ;;  %v17801_v19 = vld [vmem:[#allocation214_spill] sm:$0xff] }
 0x326   : > { %v3225_v34 = vsel %vm1624_vm5, %v17791_v53, %v17796_v9  ;;  %v3244_v18 = vadd.f32 %v3236_v40, %v17798_v29  ;;  %v3257_v30 = vadd.f32 %v3249_v20, %v3241_v36  ;;  %v3239_v41 = vmul.f32 %v3226_v11, %v9586_v2  ;;  %2927 = vrot.lane.b32.xlu1 %v17483_v5, %s8443_s11  ;;  %v17799_v26 = vld [vmem:[#allocation45_spill] sm:$0xff]  ;;  %v11409_v53 = vpop.permute.xlu0 %2841 }
 0x327   : > { %v3253_v16 = vmul.f32 %v3226_v11, %v17581_v1  ;;  %v3258_v60 = vadd.f32 %v3250_v7, %v3242_v12  ;;  %v3246_v22 = vadd.f32 %v3238_v57, %v17799_v26  ;;  %v3267_v15 = vmul.f32 %v3226_v11, %v17679_v28  ;;  %17800 = vst [vmem:[#allocation105_spill] sm:$0xff] %v11409_v53  ;;  %v17802_v57 = vld [vmem:[#allocation150_spill] sm:$0xff]  ;;  %v17839_v53 = vld [vmem:[#allocation23_spill] sm:$0xff] }
 0x328   : > { %v3317_v35 = vmul.f32 %v3316_v62, %v17699_v42  ;;  %v3245_v49 = vadd.f32 %v3237_v25, %v17801_v19  ;;  %v3259_v40 = vadd.f32 %v3251_v51, %v3243_v32  ;;  %v3260_v36 = vadd.f32 %v3252_v48, %v3244_v18  ;;  %4111 = vrot.lane.b32.xlu0 %v17612_v24, %s8427_s16  ;;  %v11421_v62 = vpop.permute.xlu1 %3471  ;;  %v17804_v19 = vld [vmem:[#allocation151_spill] sm:$0xff]  ;;  %v17805_v51 = vld [vmem:[#allocation94_spill] sm:$0xff]  ;;  %v17806_v32 = vld [vmem:[#allocation80_spill] sm:$0xff] }
 0x329   : > { %v3240_v29 = vmul.f32 %v3225_v34, %v9586_v2  ;;  %v3273_v20 = vadd.f32 %v3265_v39, %v3257_v30  ;;  %v3274_v7 = vadd.f32 %v3266_v17, %v3258_v60  ;;  %v3254_v12 = vmul.f32 %v3225_v34, %v17581_v1  ;;  %17803 = vst [vmem:[#allocation142_spill] sm:$0xff] %v11421_v62  ;;  %v17807_v17 = vld [vmem:[#allocation15_spill] sm:$0xff]  ;;  %v17808_v26 = vld [vmem:[#allocation194_spill] sm:$0xff] }
 0x32a   : > { %v3315_v11 = vsel %vm1721_vm2, %v17793_v45, %v17802_v57  ;;  %v3247_v18 = vadd.f32 %v3239_v41, %v17804_v19  ;;  %v3261_v25 = vadd.f32 %v3253_v16, %v3245_v49  ;;  %v3314_v48 = vsel %vm1721_vm2, %v17802_v57, %v17805_v51  ;;  %3077 = vrot.lane.b32.xlu1 %v17807_v17, %s8452_s14  ;;  %v11437_v49 = vpop.permute.xlu0 %2919  ;;  %v17810_v41 = vld [vmem:[#allocation147_spill] sm:$0xff]  ;;  %v17813_v17 = vld [vmem:[#allocation189_spill] sm:$0xff] }
 0x32b   : > { %v2081_v30 = vadd.f32 %v11101_v44, %v17806_v32  ;;  %v3275_v39 = vadd.f32 %v3267_v15, %v3259_v40  ;;  %v3325_v60 = vadd.f32 %v3317_v35, %v3273_v20  ;;  %v3268_v45 = vmul.f32 %v3225_v34, %v17679_v28  ;;  %17809 = vst [vmem:[#allocation112_spill] sm:$0xff] %v11437_v49  ;;  %v17811_v44 = vld [vmem:[#allocation180_spill] sm:$0xff]  ;;  %v17812_v32 = vld [vmem:[#allocation203_spill] sm:$0xff]  ;;  %v17820_v49 = vld [vmem:[#allocation201_spill] sm:$0xff] }
 0x32c   : > { %v3224_v16 = vsel %vm1624_vm5, %v17796_v9, %v17808_v26  ;;  %v11440_v19 = vadd.f32 %v3240_v29, %v17810_v41  ;;  %v3318_v57 = vmul.f32 %v3315_v11, %v17699_v42  ;;  %v2077_v24 = vadd.f32 %v17812_v32, %v17811_v44  ;;  %2931 = vrot.lane.b32.xlu0 %v17548_v38, %s8443_s11  ;;  %v17814_v15 = vld [vmem:[#allocation164_spill] sm:$0xff]  ;;  %v11456_v11 = vpop.permute.xlu1 %3941  ;;  %v17817_v32 = vld [vmem:[#allocation183_spill] sm:$0xff] }
 0x32d   : > { %v2078_v35 = vadd.f32 %v11069_v47, %v17813_v17  ;;  %v11449_v34 = vadd.f32 %v3254_v12, %v3246_v22  ;;  %v3319_v9 = vmul.f32 %v3314_v48, %v17699_v42  ;;  %v2083_v40 = vadd.f32 %v11214_v4, %v17814_v15  ;;  %v17815_v29 = vld [vmem:[#allocation176_spill] sm:$0xff]  ;;  %17816 = vst [vmem:[#allocation121_spill] sm:$0xff] %v11456_v11  ;;  %v17818_v17 = vld [vmem:[#allocation195_spill] sm:$0xff] }
 0x32e   : > { %v2079_v20 = vadd.f32 %v11072_v55, %v17815_v29  ;;  %v3333_v41 = vmul.f32 %v3314_v48, %v17617_v8  ;;  %v3255_v44 = vmul.f32 %v3224_v16, %v17581_v1  ;;  %v2101_v47 = vadd.f32 %v11236_v59, %v2081_v30  ;;  %3465 = vrot.lane.b32.xlu1 %v17454_v10, %s8429_s13  ;;  %v11468_v29 = vpop.permute.xlu0 %3379 }
 0x32f   : > { %v2080_v22 = vadd.f32 %v11075_v3, %v17817_v32  ;;  %v3276_v12 = vadd.f32 %v3268_v45, %v3260_v36  ;;  %v3269_v4 = vmul.f32 %v3224_v16, %v17679_v28  ;;  %v8090_v15 = vunpack.i.h.bf16 %v17818_v17  ;;  %17819 = vst [vmem:[#allocation132_spill] sm:$0xff] %v11468_v29  ;;  %v17821_v36 = vld [vmem:[#allocation19_spill] sm:$0xff]  ;;  %v17822_v32 = vld [vmem:[#allocation53_spill] sm:$0xff] }
 0x330   : > { %v3326_v48 = vadd.f32 %v3318_v57, %v3274_v7  ;;  %v3313_v59 = vsel %vm1721_vm2, %v17805_v51, %v17820_v49  ;;  %v2097_v3 = vadd.f32 %v11095_v33, %v2077_v24  ;;  %v2098_v30 = vadd.f32 %v11098_v13, %v2078_v35  ;;  %3085 = vrot.lane.b32.xlu0 %v17821_v36, %s8452_s14  ;;  %v11484_v55 = vpop.permute.xlu1 %2329  ;;  %v17827_v35 = vld [vmem:[#allocation136_spill] sm:$0xff] }
 0x331   : > { %v3327_v45 = vadd.f32 %v3319_v9, %v3275_v39  ;;  %v2103_v16 = vadd.f32 %v11292_v56, %v2083_v40  ;;  %v3312_v7 = vsel %vm1721_vm2, %v17820_v49, %v17822_v32  ;;  %v2099_v57 = vadd.f32 %v11110_v61, %v2079_v20  ;;  %17823 = vst [vmem:[#allocation137_spill] sm:$0xff] %v11484_v55  ;;  %v17824_v56 = vld [vmem:[#allocation215_spill] sm:$0xff]  ;;  %v17828_v20 = vld [vmem:[#allocation32_spill] sm:$0xff]  ;;  %v17863_v55 = vld [vmem:[#allocation69_spill] sm:$0xff] }
 0x332   : > { %v3341_v51 = vadd.f32 %v3333_v41, %v3325_v60  ;;  %v11486_v29 = vadd.f32 %v3255_v44, %v3247_v18  ;;  %v2121_v33 = vadd.f32 %v11295_v46, %v2101_v47  ;;  %v2100_v24 = vadd.f32 %v11198_v31, %v2080_v22  ;;  %3571 = vrot.lane.b32.xlu1 %v17548_v38, %s8437_s17  ;;  %v11500_v60 = vpop.permute.xlu0 %3457  ;;  %v17826_v46 = vld [vmem:[#allocation211_spill] sm:$0xff] }
 0x333   : > { %v3277_v13 = vadd.f32 %v3269_v4, %v3261_v25  ;;  %v2256_v39 = vsel %vm2246_vm8, %v8090_v15, %v17824_v56  ;;  %v17825_v49 = vunpack.i.l.bf16 %v17818_v17  ;;  %v3320_v18 = vmul.f32 %v3313_v59, %v17699_v42 }
 0x334   : > { %v2152_v31 = vsel %vm2149_vm6, %v17754_v54, %v17826_v46  ;;  %v3321_v25 = vmul.f32 %v3312_v7, %v17699_v42  ;;  %v2117_v9 = vadd.f32 %v17827_v35, %v2097_v3  ;;  %v2118_v40 = vadd.f32 %v11211_v58, %v2098_v30  ;;  %3469 = vrot.lane.b32.xlu0 %v17828_v20, %s8429_s13  ;;  %v11515_v4 = vpop.permute.xlu1 %2839  ;;  %v17830_v54 = vld [vmem:[#allocation139_spill] sm:$0xff]  ;;  %v17831_v58 = vld [vmem:[#allocation60_spill] sm:$0xff] }
 0x335   : > { %v2257_v61 = vsel %vm2246_vm8, %v17825_v49, %v8090_v15  ;;  %v2123_v41 = vadd.f32 %v11345_v0, %v2103_v16  ;;  %v3334_v44 = vmul.f32 %v3313_v59, %v17617_v8  ;;  %v3335_v47 = vmul.f32 %v3312_v7, %v17617_v8  ;;  %17829 = vst [vmem:[#allocation163_spill] sm:$0xff] %v11515_v4  ;;  %v17832_v0 = vld [vmem:[#allocation37_spill] sm:$0xff]  ;;  %v17836_v4 = vld [vmem:[#allocation119_spill] sm:$0xff] }
 0x336   : > { %v2119_v22 = vadd.f32 %v11242_v23, %v2099_v57  ;;  %v11518_v15 = vmul.f32 %v17830_v54, %v2256_v39  ;;  %v11521_v3 = vmul.f32 %v17830_v54, %v2257_v61  ;;  %v2178_v30 = vadd.f32 %v17831_v58, %v2121_v33  ;;  %4033 = vrot.lane.b32.xlu1 %v17832_v0, %s8421_s12  ;;  %v17833_v57 = vld [vmem:[#allocation46_spill] sm:$0xff]  ;;  %v11530_v35 = vpop.permute.xlu0 %4021  ;;  %v17835_v61 = vld [vmem:[#allocation187_spill] sm:$0xff] }
 0x337   : > { %v2120_v36 = vadd.f32 %v11253_v50, %v2100_v24  ;;  %v2192_v59 = vmul.f32 %v17726_v52, %v2152_v31  ;;  %v2210_v16 = vmul.f32 %v17734_v14, %v2152_v31  ;;  %v3328_v23 = vadd.f32 %v3320_v18, %v3276_v12  ;;  %17834 = vst [vmem:[#allocation146_spill] sm:$0xff] %v11530_v35  ;;  %v17837_v58 = vld [vmem:[#allocation207_spill] sm:$0xff]  ;;  %v17844_v35 = vld [vmem:[#allocation13_spill] sm:$0xff] }
 0x338   : > { %v3349_v49 = vmul.f32 %v3312_v7, %v17833_v57  ;;  %v11532_v39 = vadd.f32 %v3321_v25, %v3277_v13  ;;  %v2174_v17 = vadd.f32 %v17835_v61, %v2117_v9  ;;  %v2175_v33 = vadd.f32 %v17836_v4, %v2118_v40  ;;  %v17838_v50 = vld [vmem:[#allocation67_spill] sm:$0xff]  ;;  %3649 = vrot.lane.b32.xlu0 %v17839_v53, %s8443_s11  ;;  %v17840_v13 = vld [vmem:[#allocation157_spill] sm:$0xff]  ;;  %v11548_v25 = vpop.permute.xlu1 %2915  ;;  %v17842_v40 = vld [vmem:[#allocation134_spill] sm:$0xff] }
 0x339   : > { %v2859_v24 = vsel %vm2052_vm7, %v17838_v50, %v17837_v58  ;;  %v2180_v12 = vadd.f32 %v11256_v43, %v2123_v41  ;;  %v11543_v18 = vadd.f32 %v3334_v44, %v3326_v48  ;;  %v11545_v7 = vadd.f32 %v3335_v47, %v3327_v45  ;;  %17841 = vst [vmem:[#allocation196_spill] sm:$0xff] %v11548_v25  ;;  %v17843_v61 = vld [vmem:[#allocation188_spill] sm:$0xff]  ;;  %v17847_v44 = vld [vmem:[#allocation198_spill] sm:$0xff] }
 0x33a   : > { %v2176_v31 = vadd.f32 %v17840_v13, %v2119_v22  ;;  %v2198_v9 = vadd.f32 %v11262_v27, %v2178_v30  ;;  %v2177_v4 = vadd.f32 %v17842_v40, %v2120_v36  ;;  %v2254_v50 = vsel %vm2246_vm8, %v17844_v35, %v17843_v61  ;;  %4109 = vrot.lane.b32.xlu1 %v17828_v20, %s8427_s16  ;;  %v17846_v41 = vld [vmem:[#allocation184_spill] sm:$0xff]  ;;  %v11571_v22 = vpop.permute.xlu0 %2244  ;;  %v17849_v36 = vld [vmem:[#allocation171_spill] sm:$0xff] }
 0x33b   : > { %v2255_v43 = vsel %vm2246_vm8, %v17824_v56, %v17844_v35  ;;  %v11562_v48 = vadd.f32 %v2192_v59, %v2180_v12  ;;  %v11564_v45 = vadd.f32 %v3349_v49, %v3341_v51  ;;  %v2861_v27 = vmul.f32 %v2859_v24, %v17711_v37  ;;  %17848 = vst [vmem:[#allocation115_spill] sm:$0xff] %v11571_v22  ;;  %v17850_v35 = vld [vmem:[#allocation71_spill] sm:$0xff]  ;;  %v17851_v40 = vld [vmem:[#allocation124_spill] sm:$0xff]  ;;  %v17852_v59 = vld [vmem:[#allocation41_spill] sm:$0xff] }
 0x33c   : > { %v2251_v47 = vsel %vm2246_vm8, %v17847_v44, %v17846_v41  ;;  %v11573_v30 = vadd.f32 %v2210_v16, %v2198_v9  ;;  %v2194_v56 = vadd.f32 %v17849_v36, %v2174_v17  ;;  %v2195_v13 = vadd.f32 %v17850_v35, %v2175_v33  ;;  %4037 = vrot.lane.b32.xlu0 %v17852_v59, %s8421_s12  ;;  %v17853_v49 = vld [vmem:[#allocation72_spill] sm:$0xff]  ;;  %v17854_v16 = vld [vmem:[#allocation95_spill] sm:$0xff]  ;;  %v11590_v33 = vpop.permute.xlu1 %3377 }
 0x33d   : > { %17845 = vst [vmem:[#allocation162_spill] sm:$0xff] %v11562_v48  ;;  %v3311_v51 = vsel %vm1721_vm2, %v17822_v32, %v17851_v40  ;;  %v2196_v24 = vadd.f32 %v17853_v49, %v2176_v31  ;;  %v2265_v12 = vmul.f32 %v17830_v54, %v2255_v43  ;;  %v2266_v22 = vmul.f32 %v17830_v54, %v2254_v50  ;;  %v17856_v36 = vld [vmem:[#allocation160_spill] sm:$0xff]  ;;  %v17858_v31 = vld [vmem:[#allocation22_spill] sm:$0xff]  ;;  %v17859_v49 = vld [vmem:[#allocation145_spill] sm:$0xff] }
 0x33e   : > { %v3310_v17 = vsel %vm1721_vm2, %v17851_v40, %v17854_v16  ;;  %17855 = vst [vmem:[#allocation197_spill] sm:$0xff] %v11590_v33  ;;  %v2197_v9 = vadd.f32 %v11189_v6, %v2177_v4  ;;  %v2283_v32 = vmul.f32 %v17856_v36, %v2255_v43  ;;  %v2284_v35 = vmul.f32 %v17856_v36, %v2254_v50  ;;  %v17860_v40 = vld [vmem:[#allocation149_spill] sm:$0xff]  ;;  %v11610_v4 = vpop.permute.xlu0 %2843  ;;  %v17862_v50 = vld [vmem:[#allocation75_spill] sm:$0xff] }
 0x33f   : > { %v11596_v59 = vmul.f32 %v17830_v54, %v2251_v47  ;;  %3007 = vrot.lane.b32.xlu1 %v17858_v31, %s8448_s26  ;;  %v11601_v25 = vadd.f32 %v2861_v27, %v17859_v49  ;;  %v11604_v11 = vmul.f32 %v17856_v36, %v2251_v47  ;;  %v11607_v33 = vmul.f32 %v17860_v40, %v2251_v47  ;;  %v17866_v16 = vld [vmem:[#allocation135_spill] sm:$0xff] }
 0x340   : > { %v3336_v6 = vmul.f32 %v3311_v51, %v17617_v8  ;;  %17861 = vst [vmem:[#allocation190_spill] sm:$0xff] %v11610_v4  ;;  %v2214_v43 = vadd.f32 %v17862_v50, %v2194_v56  ;;  %v2215_v41 = vadd.f32 %v17863_v55, %v2195_v13  ;;  %v11615_v2 = vmul.f32 %v3311_v51, %v17699_v42  ;;  %v17867_v50 = vld [vmem:[#allocation172_spill] sm:$0xff]  ;;  %v11632_v13 = vpop.permute.xlu1 %3453  ;;  %v17868_v4 = vld [vmem:[#allocation169_spill] sm:$0xff] }
 0x341   : > { %17857 = vst [vmem:[#allocation186_spill] sm:$0xff] %v11596_v59  ;;  %v11618_v27 = vmul.f32 %v3310_v17, %v17699_v42  ;;  %4189 = vrot.lane.b32.xlu0 %v17454_v10, %s8429_s13  ;;  %v2216_v47 = vadd.f32 %v11274_v63, %v2196_v24  ;;  %v3337_v49 = vmul.f32 %v3310_v17, %v17617_v8  ;;  %v17865_v59 = vld [vmem:[#allocation74_spill] sm:$0xff]  ;;  %v17870_v8 = vld [vmem:[#allocation143_spill] sm:$0xff] }
 0x342   : > { %v3400_v56 = vsel %vm1818_vm4, %v17866_v16, %v17865_v59  ;;  %v2253_v55 = vsel %vm2246_vm8, %v17843_v61, %v17867_v50  ;;  %v2217_v42 = vadd.f32 %v17868_v4, %v2197_v9  ;;  %v3350_v10 = vmul.f32 %v3311_v51, %v17833_v57  ;;  %v17869_v24 = vld [vmem:[#allocation210_spill] sm:$0xff] }
 0x343   : > { %17864 = vst [vmem:[#allocation116_spill] sm:$0xff] %v11618_v27  ;;  %v3351_v63 = vmul.f32 %v3310_v17, %v17833_v57  ;;  %v2856_v27 = vsel %vm2052_vm7, %v17870_v8, %v17869_v24  ;;  %v17871_v16 = vld [vmem:[#allocation18_spill] sm:$0xff]  ;;  %v2271_v52 = vadd.f32 %v11521_v3, %v2214_v43  ;;  %v2272_v61 = vadd.f32 %v11518_v15, %v2215_v41  ;;  %v11651_v17 = vpop.permute.xlu0 %2993  ;;  %v17873_v57 = vld [vmem:[#allocation51_spill] sm:$0xff] }
 0x344   : > { %3083 = vrot.lane.b32.xlu1 %v17871_v16, %s8452_s14  ;;  %v11645_v48 = vadd.f32 %v3336_v6, %v3328_v23  ;;  %v2252_v51 = vsel %vm2246_vm8, %v17867_v50, %v17847_v44  ;;  %17872 = vst [vmem:[#allocation48_spill] sm:$0xff] %v11651_v17  ;;  %v2273_v9 = vadd.f32 %v2265_v12, %v2216_v47  ;;  %v17874_v41 = vld [vmem:[#allocation14_spill] sm:$0xff]  ;;  %v17876_v6 = vld [vmem:[#allocation27_spill] sm:$0xff]  ;;  %v17891_v17 = vlaneseq }
 0x345   : > { %v2274_v4 = vadd.f32 %v2266_v22, %v2217_v42  ;;  %v3401_v24 = vmul.f32 %v3400_v56, %v17873_v57  ;;  %v2285_v31 = vmul.f32 %v17856_v36, %v2253_v55  ;;  %3011 = vrot.lane.b32.xlu0 %v17483_v5, %s8448_s26  ;;  %v11658_v15 = vadd.f32 %v3337_v49, %v11532_v39  ;;  %v11666_v42 = vpop.permute.xlu1 %3945  ;;  %v17877_v47 = vld [vmem:[#allocation59_spill] sm:$0xff] }
 0x346   : > { %v2864_v3 = vmul.f32 %v2856_v27, %v17711_v37  ;;  %v2267_v23 = vmul.f32 %v17830_v54, %v2253_v55  ;;  %v2858_v44 = vsel %vm2052_vm7, %v17837_v58, %v17874_v41  ;;  %17875 = vst [vmem:[#allocation125_spill] sm:$0xff] %v11666_v42  ;;  %v2291_v22 = vadd.f32 %v2283_v32, %v2271_v52 }
 0x347   : > { %v11669_v12 = vadd.f32 %v3350_v10, %v11543_v18  ;;  %v11672_v16 = vadd.f32 %v3351_v63, %v11545_v7  ;;  %v2286_v39 = vmul.f32 %v17856_v36, %v2252_v51  ;;  %v2292_v43 = vadd.f32 %v2284_v35, %v2272_v61  ;;  %v11683_v10 = vpop.permute.xlu0 %3381  ;;  %v17879_v35 = vld [vmem:[#allocation30_spill] sm:$0xff]  ;;  %v17882_v63 = vld [vmem:[#allocation152_spill] sm:$0xff]  ;;  %v17918_v36 = vld [vmem:[#allocation209_spill] sm:$0xff] }
 0x348   : > { %3573 = vrot.lane.b32.xlu1 %v17876_v6, %s8437_s17  ;;  %v2878_v49 = vmul.f32 %v2856_v27, %v17877_v47  ;;  %v2303_v56 = vmul.f32 %v17860_v40, %v2253_v55  ;;  %v2857_v52 = vsel %vm2052_vm7, %v17874_v41, %v17870_v8  ;;  %17878 = vst [vmem:[#allocation43_spill] sm:$0xff] %v11683_v10  ;;  %v17880_v27 = vld [vmem:[#allocation173_spill] sm:$0xff]  ;;  %v17883_v61 = vld [vmem:[#allocation166_spill] sm:$0xff]  ;;  %v17887_v41 = vld [vmem:[#allocation192_spill] sm:$0xff] }
 0x349   : > { %v3409_v58 = vadd.f32 %v3401_v24, %v11564_v45  ;;  %v2293_v18 = vadd.f32 %v2285_v31, %v2273_v9  ;;  %v2304_v7 = vmul.f32 %v17860_v40, %v2252_v51  ;;  %v2862_v32 = vmul.f32 %v2858_v44, %v17711_v37  ;;  %3579 = vrot.lane.b32.xlu0 %v17879_v35, %s8437_s17  ;;  %v11702_v31 = vpop.permute.xlu1 %2333  ;;  %v17889_v44 = vld [vmem:[#allocation39_spill] sm:$0xff] }
 0x34a   : > { %v11691_v50 = vadd.f32 %v2864_v3, %v17880_v27  ;;  %v11694_v55 = vmul.f32 %v17830_v54, %v2252_v51  ;;  %v2275_v8 = vadd.f32 %v2267_v23, %v11573_v30  ;;  %v3221_v45 = vsel %vm1624_vm5, %v17883_v61, %v17882_v63  ;;  %17884 = vst [vmem:[#allocation45_spill] sm:$0xff] %v11702_v31  ;;  %v17886_v3 = vld [vmem:[#allocation193_spill] sm:$0xff]  ;;  %v17888_v30 = vld [vmem:[#allocation158_spill] sm:$0xff]  ;;  %v17890_v63 = vld [vmem:[#allocation167_spill] sm:$0xff] }
 0x34b   : > { %v11704_v24 = vadd.f32 %v2286_v39, %v2274_v4  ;;  %v2863_v9 = vmul.f32 %v2857_v52, %v17711_v37  ;;  %v3223_v51 = vsel %vm1624_vm5, %v17808_v26, %v17886_v3  ;;  %v3398_v23 = vsel %vm1818_vm4, %v17888_v30, %v17887_v41  ;;  %v11727_v26 = vpop.permute.xlu0 %3949  ;;  %v17894_v31 = vld [vmem:[#allocation76_spill] sm:$0xff]  ;;  %v17917_v40 = vld [vmem:[#allocation47_spill] sm:$0xff] }
 0x34c   : > { %17881 = vst [vmem:[#allocation141_spill] sm:$0xff] %v11691_v50  ;;  %4035 = vrot.lane.b32.xlu1 %v17889_v44, %s8421_s12  ;;  %v11717_v27 = vadd.f32 %v2303_v56, %v2291_v22  ;;  %v3397_v4 = vsel %vm1818_vm4, %v17887_v41, %v17890_v63  ;;  %v2877_v39 = vmul.f32 %v2857_v52, %v17877_v47  ;;  %v11725_v35 = vshrl.u32 %v17891_v17, 7  ;;  %v17895_v52 = vld [vmem:[#allocation50_spill] sm:$0xff]  ;;  %v17900_v41 = vld [vmem:[#allocation36_spill] sm:$0xff]  ;;  %v17920_v54 = vld [vmem:[#allocation79_spill] sm:$0xff] }
 0x34d   : > { %17885 = vst [vmem:[#allocation214_spill] sm:$0xff] %v11704_v24  ;;  %17893 = vst [vmem:[#allocation151_spill] sm:$0xff] %v11727_v26  ;;  %v11729_v10 = vadd.f32 %v2304_v7, %v2292_v43  ;;  %v3272_v42 = vmul.f32 %v3221_v45, %v17679_v28  ;;  %v2870_v50 = vadd.f32 %v2862_v32, %v17894_v31  ;;  %3655 = vrot.lane.b32.xlu0 %v17548_v38, %s8443_s11  ;;  %v17896_v7 = vld [vmem:[#allocation216_spill] sm:$0xff]  ;;  %v17898_v31 = vld [vmem:[#allocation174_spill] sm:$0xff] }
 0x34e   : > { %17892 = vst [vmem:[#allocation150_spill] sm:$0xff] %v11725_v35  ;;  %v11734_v22 = vadd.f32 %v11607_v33, %v2293_v18  ;;  %v3222_v17 = vsel %vm1624_vm5, %v17886_v3, %v17883_v61  ;;  %v3256_v56 = vmul.f32 %v3223_v51, %v17581_v1  ;;  %v3417_v43 = vmul.f32 %v3398_v23, %v17895_v52  ;;  %v11750_v33 = vpop.permute.xlu1 %2917  ;;  %v17901_v26 = vld [vmem:[#allocation120_spill] sm:$0xff]  ;;  %v17914_v24 = vld [vmem:[#allocation54_spill] sm:$0xff] }
 0x34f   : > { %v11748_v32 = vsel %vm1818_vm4, %v17890_v63, %v17896_v7  ;;  %17897 = vst [vmem:[#allocation94_spill] sm:$0xff] %v11750_v33  ;;  %v11753_v18 = vmul.f32 %v3397_v4, %v17873_v57  ;;  %v11756_v45 = vmul.f32 %v3397_v4, %v17895_v52  ;;  %v11759_v61 = vadd.f32 %v2863_v9, %v17898_v31  ;;  %v11777_v9 = vpop.permute.xlu0 %4025  ;;  %v11788_v31 = vld [vmem:[#allocation7] sm:$0xff] }
 0x350   : > { %v11762_v3 = vadd.f32 %v11604_v11, %v2275_v8  ;;  %4113 = vrot.lane.b32.xlu1 %v17900_v41, %s8427_s16  ;;  %v11767_v63 = vadd.f32 %v2877_v39, %v11601_v25  ;;  %v3270_v33 = vmul.f32 %v3223_v51, %v17679_v28  ;;  %v3484_v4 = vsel %vm1915_vm3, %v11421_v62, %v17901_v26  ;;  %v17905_v51 = vld [vmem:[#allocation52_spill] sm:$0xff] }
 0x351   : > { %v11775_v38 = vsub.s32 0, %v11725_v35  ;;  %17903 = vst [vmem:[#allocation194_spill] sm:$0xff] %v11777_v9  ;;  %v11779_v11 = vadd.f32 %v2878_v49, %v2870_v50  ;;  %v3271_v8 = vmul.f32 %v3222_v17, %v17679_v28  ;;  %v3399_v25 = vsel %vm1818_vm4, %v17865_v59, %v17888_v30  ;;  %4117 = vrot.lane.b32.xlu0 %v17832_v0, %s8427_s16  ;;  %v17906_v9 = vld [vmem:[#allocation65_spill] sm:$0xff]  ;;  %v17908_v50 = vld [vmem:[#allocation154_spill] sm:$0xff] }
 0x352   : > { %17899 = vst [vmem:[#allocation80_spill] sm:$0xff] %v11762_v3  ;;  %v3433_v39 = vmul.f32 %v11748_v32, %v17905_v51  ;;  %v3264_v62 = vadd.f32 %v3256_v56, %v11440_v19  ;;  %v17907_v49 = vunpack.i.l.bf16 %v17906_v9  ;;  %v3425_v1 = vadd.f32 %v3417_v43, %v3409_v58  ;;  %v11804_v30 = vpop.permute.xlu1 %3301  ;;  %v17912_v3 = vld [vmem:[#allocation96_spill] sm:$0xff]  ;;  %v17913_v56 = vld [vmem:[#allocation170_spill] sm:$0xff]  ;;  %v17919_v0 = vld [vmem:[#allocation97_spill] sm:$0xff] }
 0x353   : > { %17902 = vst [vmem:[#allocation15_spill] sm:$0xff] %v11775_v38  ;;  %17904 = vst [vmem:[#allocation147_spill] sm:$0xff] %v11779_v11  ;;  %v17909_v11 = vld [vmem:[#allocation131_spill] sm:$0xff]  ;;  %v2150_v19 = vsel %vm2149_vm6, %v17912_v3, %v17908_v50  ;;  %v8098_v9 = vunpack.i.h.bf16 %v17913_v56  ;;  %v3278_v58 = vadd.f32 %v3270_v33, %v11449_v34  ;;  %v3402_v43 = vmul.f32 %v3399_v25, %v17873_v57 }
 0x354   : > { %v2161_v17 = vsel %vm2149_vm6, %v17908_v50, %v17907_v49  ;;  %v11802_v59 = vsel %vm1915_vm3, %v17909_v11, %v11632_v13  ;;  %17911 = vst [vmem:[#allocation203_spill] sm:$0xff] %v11804_v30  ;;  %v3485_v49 = vmul.f32 %v3484_v4, %v17914_v24  ;;  %3009 = vrot.lane.b32.xlu1 %v17839_v53, %s8448_s26  ;;  %v11822_v50 = vpop.permute.xlu0 %2845  ;;  %v17921_v34 = vld [vmem:[#allocation55_spill] sm:$0xff] }
 0x355   : > { %17910 = vst [vmem:[#allocation180_spill] sm:$0xff] %v11802_v59  ;;  %v3403_v30 = vmul.f32 %v3398_v23, %v17873_v57  ;;  %v11820_v28 = vrot.slane %v11788_v31, %v11775_v38  ;;  %17916 = vst [vmem:[#allocation164_spill] sm:$0xff] %v11822_v50  ;;  %v2352_v4 = vsel %vm2343_vm9, %v17918_v36, %v17917_v40  ;;  %4193 = vrot.lane.b32.xlu0 %v17828_v20, %s8429_s13  ;;  %v17922_v40 = vld [vmem:[#allocation206_spill] sm:$0xff] }
 0x356   : > { %v2082_v24 = vadd.f32 %v17920_v54, %v17919_v0  ;;  %v3441_v52 = vadd.f32 %v3433_v39, %v3425_v1  ;;  %v3501_v33 = vmul.f32 %v11802_v59, %v17921_v34  ;;  %v3279_v23 = vadd.f32 %v3271_v8, %v11486_v29  ;;  %v17923_v54 = vld [vmem:[#allocation17_spill] sm:$0xff]  ;;  %v17936_v20 = vld [vmem:[#allocation182_spill] sm:$0xff] }
 0x357   : > { %17915 = vst [vmem:[#allocation189_spill] sm:$0xff] %v11820_v28  ;;  %v11835_v25 = vadd.f32 %v3272_v42, %v3264_v62  ;;  %v11838_v38 = vmul.f32 %v17734_v14, %v2161_v17  ;;  %v2212_v50 = vmul.f32 %v17734_v14, %v2150_v19  ;;  %v11841_v28 = vpop.permute.xlu1 %3455  ;;  %v2084_v1 = vadd.f32 %v17923_v54, %v17922_v40  ;;  %v17926_v29 = vld [vmem:[#allocation21_spill] sm:$0xff] }
 0x358   : > { %v17924_v0 = vunpack.i.l.bf16 %v17913_v56  ;;  %v3493_v59 = vadd.f32 %v3485_v49, %v3441_v52  ;;  %v11853_v62 = vsel %vm1915_vm3, %v11841_v28, %v11500_v60  ;;  %3087 = vrot.lane.b32.xlu1 %v17926_v29, %s8452_s14  ;;  %v11858_v42 = vadd.f32 %v11615_v2, %v3278_v58  ;;  %v17927_v17 = vld [vmem:[#allocation113_spill] sm:$0xff]  ;;  %v11865_v52 = vpop.permute.xlu0 %2997  ;;  %v17930_v56 = vld [vmem:[#allocation56_spill] sm:$0xff]  ;;  %v17933_v58 = vld [vmem:[#allocation162_spill] sm:$0xff] }
 0x359   : > { %17925 = vst [vmem:[#allocation176_spill] sm:$0xff] %v11853_v62  ;;  %v3410_v40 = vadd.f32 %v3402_v43, %v11669_v12  ;;  %v11862_v8 = vadd.f32 %v3403_v30, %v11672_v16  ;;  %v2362_v19 = vmul.f32 %v17927_v17, %v2352_v4  ;;  %17928 = vst [vmem:[#allocation183_spill] sm:$0xff] %v11865_v52  ;;  %v17929_v49 = vld [vmem:[#allocation81_spill] sm:$0xff]  ;;  %v17931_v12 = vld [vmem:[#allocation22_spill] sm:$0xff] }
 0x35a   : > { %v2354_v39 = vsel %vm2343_vm9, %v17924_v0, %v8098_v9  ;;  %v2102_v54 = vadd.f32 %v17929_v49, %v2082_v24  ;;  %v2151_v0 = vsel %vm2149_vm6, %v17826_v46, %v17912_v3  ;;  %v3509_v29 = vadd.f32 %v3501_v33, %v3493_v59  ;;  %3091 = vrot.lane.b32.xlu0 %v17931_v12, %s8452_s14  ;;  %v17932_v16 = vld [vmem:[#allocation205_spill] sm:$0xff]  ;;  %v17940_v12 = vld [vmem:[#allocation64_spill] sm:$0xff] }
 0x35b   : > { %v3517_v2 = vmul.f32 %v11853_v62, %v17930_v56  ;;  %v2380_v30 = vmul.f32 %v17932_v16, %v2352_v4  ;;  %v2220_v43 = vadd.f32 %v2212_v50, %v17933_v58  ;;  %v2360_v52 = vmul.f32 %v17927_v17, %v2354_v39  ;;  %v11882_v49 = vpop.permute.xlu1 %3947  ;;  %v17938_v4 = vld [vmem:[#allocation28_spill] sm:$0xff]  ;;  %v17952_v16 = vld [vmem:[#allocation186_spill] sm:$0xff] }
 0x35c   : > { %v11880_v24 = vsub.s32 1, %v11725_v35  ;;  %17935 = vst [vmem:[#allocation19_spill] sm:$0xff] %v11882_v49  ;;  %v2104_v46 = vadd.f32 %v17936_v20, %v2084_v1  ;;  %v2353_v3 = vsel %vm2343_vm9, %v8098_v9, %v17918_v36  ;;  %v11889_v59 = vsub.s32 2, %v11725_v35  ;;  %3577 = vrot.lane.b32.xlu1 %v17938_v4, %s8437_s17  ;;  %v11900_v20 = vpop.permute.xlu0 %3383  ;;  %v17943_v36 = vld [vmem:[#allocation217_spill] sm:$0xff]  ;;  %v17945_v49 = vld [vmem:[#allocation95_spill] sm:$0xff] }
 0x35d   : > { %v3525_v33 = vadd.f32 %v3517_v2, %v3509_v29  ;;  %v11894_v50 = vadd.f32 %v11756_v45, %v3410_v40  ;;  %v11897_v39 = vadd.f32 %v2362_v19, %v11734_v22  ;;  %v2193_v58 = vmul.f32 %v17940_v12, %v2151_v0  ;;  %17941 = vst [vmem:[#allocation211_spill] sm:$0xff] %v11900_v20  ;;  %v17944_v2 = vld [vmem:[#allocation114_spill] sm:$0xff]  ;;  %v17946_v40 = vld [vmem:[#allocation199_spill] sm:$0xff] }
 0x35e   : > { %17934 = vst [vmem:[#allocation201_spill] sm:$0xff] %v11880_v24  ;;  %17937 = vst [vmem:[#allocation53_spill] sm:$0xff] %v11889_v59  ;;  %v11903_v1 = vsub.s32 3, %v11725_v35  ;;  %v2122_v9 = vadd.f32 %v17943_v36, %v2102_v54  ;;  %v2211_v29 = vmul.f32 %v17734_v14, %v2151_v0  ;;  %v3309_v45 = vsel %vm1721_vm2, %v17945_v49, %v17944_v2  ;;  %v17947_v20 = vld [vmem:[#allocation178_spill] sm:$0xff]  ;;  %v17949_v0 = vld [vmem:[#allocation116_spill] sm:$0xff] }
 0x35f   : > { %17939 = vst [vmem:[#allocation215_spill] sm:$0xff] %v11897_v39  ;;  %v3541_v62 = vadd.f32 %v17946_v40, %v3525_v33  ;;  %3657 = vrot.lane.b32.xlu0 %v17876_v6, %s8443_s11  ;;  %v2361_v22 = vmul.f32 %v17927_v17, %v2353_v3  ;;  %v2368_v19 = vadd.f32 %v2360_v52, %v11717_v27  ;;  %v17948_v12 = vld [vmem:[#allocation210_spill] sm:$0xff]  ;;  %v11921_v14 = vpop.permute.xlu1 %8105  ;;  %v17951_v39 = vld [vmem:[#allocation104_spill] sm:$0xff]  ;;  %v11956_v6 = vsub.s32 4, %v11725_v35 }
 0x360   : > { %17942 = vst [vmem:[#allocation136_spill] sm:$0xff] %v11903_v1  ;;  %v2855_v54 = vsel %vm2052_vm7, %v17948_v12, %v17947_v20  ;;  %v3331_v36 = vadd.f32 %v17949_v0, %v3279_v23  ;;  %17950 = vst [vmem:[#allocation60_spill] sm:$0xff] %v11921_v14  ;;  %v2124_v49 = vadd.f32 %v17951_v39, %v2104_v46  ;;  %3651 = vrot.lane.b32.xlu1 %v17483_v5, %s8443_s11  ;;  %v17955_v52 = vld [vmem:[#allocation46_spill] sm:$0xff]  ;;  %v11938_v3 = vpop.permute.xlu0 %3951  ;;  %v17960_v39 = vld [vmem:[#allocation84_spill] sm:$0xff] }
 0x361   : > { %v11925_v33 = vadd.f32 %v17952_v16, %v2220_v43  ;;  %v11929_v40 = vrot.slane %v11788_v31, %v11880_v24  ;;  %v11933_v27 = vrot.slane %v11788_v31, %v11889_v59  ;;  %v3352_v23 = vmul.f32 %v3309_v45, %v17955_v52  ;;  %17956 = vst [vmem:[#allocation207_spill] sm:$0xff] %v11938_v3  ;;  %v17958_v16 = vld [vmem:[#allocation118_spill] sm:$0xff]  ;;  %v17961_v59 = vld [vmem:[#allocation85_spill] sm:$0xff] }
 0x362   : > { %v11942_v46 = vrot.slane %v11788_v31, %v11903_v1  ;;  %v11945_v43 = vadd.f32 %v17958_v16, %v3541_v62  ;;  %v2179_v12 = vadd.f32 %v17960_v39, %v2122_v9  ;;  %v2865_v0 = vmul.f32 %v2855_v54, %v17711_v37  ;;  %17962 = vst [vmem:[#allocation188_spill] sm:$0xff] %v11956_v6  ;;  %v17968_v3 = vld [vmem:[#allocation49_spill] sm:$0xff] }
 0x363   : > { %17953 = vst [vmem:[#allocation187_spill] sm:$0xff] %v11929_v40  ;;  %17954 = vst [vmem:[#allocation119_spill] sm:$0xff] %v11933_v27  ;;  %v3308_v24 = vsel %vm1721_vm2, %v17944_v2, %v17961_v59  ;;  %4119 = vrot.lane.b32.xlu0 %v17889_v44, %s8427_s16  ;;  %v2879_v1 = vmul.f32 %v2855_v54, %v17877_v47  ;;  %v11961_v16 = vadd.f32 %v2361_v22, %v11729_v10  ;;  %v11965_v39 = vpop.permute.xlu1 %2335  ;;  %v17967_v2 = vld [vmem:[#allocation44_spill] sm:$0xff]  ;;  %v17969_v40 = vld [vmem:[#allocation161_spill] sm:$0xff] }
 0x364   : > { %17957 = vst [vmem:[#allocation157_spill] sm:$0xff] %v11942_v46  ;;  %17959 = vst [vmem:[#allocation134_spill] sm:$0xff] %v11945_v43  ;;  %v17963_v46 = vld [vmem:[#allocation63_spill] sm:$0xff]  ;;  %v11963_v9 = vadd.f32 %v2380_v30, %v2368_v19  ;;  %v17966_v43 = vld [vmem:[#allocation153_spill] sm:$0xff]  ;;  %v3324_v27 = vmul.f32 %v3309_v45, %v17967_v2  ;;  %v3338_v44 = vmul.f32 %v3309_v45, %v17968_v3 }
 0x365   : > { %v2893_v62 = vmul.f32 %v2855_v54, %v17963_v46  ;;  %17965 = vst [vmem:[#allocation198_spill] sm:$0xff] %v11965_v39  ;;  %v2181_v14 = vadd.f32 %v17966_v43, %v2124_v49  ;;  %v11974_v47 = vsel %vm1818_vm4, %v17896_v7, %v17969_v40  ;;  %v17970_v54 = vld [vmem:[#allocation38_spill] sm:$0xff]  ;;  %v3339_v10 = vmul.f32 %v3308_v24, %v17968_v3  ;;  %v17972_v49 = vld [vmem:[#allocation177_spill] sm:$0xff]  ;;  %v11985_v43 = vpop.permute.xlu0 %4029  ;;  %v17974_v2 = vld [vmem:[#allocation91_spill] sm:$0xff] }
 0x366   : > { %17964 = vst [vmem:[#allocation13_spill] sm:$0xff] %v11963_v9  ;;  %4115 = vrot.lane.b32.xlu1 %v17970_v54, %s8427_s16  ;;  %v3353_v30 = vmul.f32 %v3308_v24, %v17955_v52  ;;  %v3360_v22 = vadd.f32 %v3352_v23, %v11645_v48  ;;  %v17971_v19 = vld [vmem:[#allocation110_spill] sm:$0xff]  ;;  %17973 = vst [vmem:[#allocation171_spill] sm:$0xff] %v11985_v43  ;;  %v2199_v39 = vadd.f32 %v17974_v2, %v2179_v12  ;;  %v17975_v9 = vld [vmem:[#allocation191_spill] sm:$0xff] }
 0x367   : > { %v3971_v45 = vsel %vm1624_vm5, %v17972_v49, %v17971_v19  ;;  %v2201_v7 = vadd.f32 %v2193_v58, %v2181_v14  ;;  %v11989_v40 = vadd.f32 %v2865_v0, %v17975_v9  ;;  %4197 = vrot.lane.b32.xlu0 %v17900_v41, %s8429_s13  ;;  %v11995_v24 = vrot.slane %v11788_v31, %v11956_v6  ;;  %v17977_v43 = vld [vmem:[#allocation68_spill] sm:$0xff]  ;;  %v12006_v58 = vpop.permute.xlu1 %2921  ;;  %v17979_v2 = vld [vmem:[#allocation175_spill] sm:$0xff] }
 0x368   : > { %v11998_v48 = vadd.f32 %v2879_v1, %v11759_v61  ;;  %v12001_v23 = vadd.f32 %v2893_v62, %v11767_v63  ;;  %v8102_v19 = vunpack.i.l.bf16 %v17977_v43  ;;  %v3434_v14 = vmul.f32 %v11974_v47, %v17905_v51  ;;  %17978 = vst [vmem:[#allocation124_spill] sm:$0xff] %v12006_v58 }
 0x369   : > { %17976 = vst [vmem:[#allocation71_spill] sm:$0xff] %v11995_v24  ;;  %v2219_v12 = vadd.f32 %v2211_v29, %v2199_v39  ;;  %v12009_v0 = vadd.f32 %v3324_v27, %v11835_v25  ;;  %v12012_v9 = vadd.f32 %v3338_v44, %v11858_v42  ;;  %v3974_v61 = vmul.f32 %v3971_v45, %v17979_v2  ;;  %v12023_v41 = vpop.permute.xlu0 %2847  ;;  %v17989_v39 = vld [vmem:[#allocation155_spill] sm:$0xff]  ;;  %v17991_v45 = vld [vmem:[#allocation20_spill] sm:$0xff]  ;;  %v17997_v29 = vld [vmem:[#allocation138_spill] sm:$0xff] }
 0x36a   : > { %v17980_v1 = vmov 0.0   ;;  %v12017_v63 = vadd.f32 %v3339_v10, %v3331_v36  ;;  %v3361_v62 = vadd.f32 %v3353_v30, %v11658_v15  ;;  %v12021_v6 = vadd.f32 %v11753_v18, %v3360_v22  ;;  %17982 = vst [vmem:[#allocation145_spill] sm:$0xff] %v12023_v41  ;;  %v17986_v36 = vld [vmem:[#allocation77_spill] sm:$0xff]  ;;  %v17990_v22 = vld [vmem:[#allocation50_spill] sm:$0xff] }
 0x36b   : > { %8115 = vrot.lane.b32.xlu1 %v17980_v1, %s8429_s13  ;;  %v12026_v25 = vsub.s32 5, %v11725_v35  ;;  %v2221_v44 = vadd.f32 %v11838_v38, %v2201_v7  ;;  %v3483_v42 = vsel %vm1915_vm3, %v17901_v26, %v17909_v11  ;;  %v12037_v15 = vsel %vm1915_vm3, %v11632_v13, %v11841_v28  ;;  %3093 = vrot.lane.b32.xlu0 %v17839_v53, %s8452_s14  ;;  %v17987_v26 = vld [vmem:[#allocation184_spill] sm:$0xff]  ;;  %v12053_v13 = vpop.permute.xlu1 %2995  ;;  %v17998_v1 = vld [vmem:[#allocation47_spill] sm:$0xff]  ;;  %v18002_v24 = vld [vmem:[#allocation149_spill] sm:$0xff] }
 0x36c   : > { %17981 = vst [vmem:[#allocation72_spill] sm:$0xff] %v12017_v63  ;;  %17984 = vst [vmem:[#allocation69_spill] sm:$0xff] %v12037_v15  ;;  %v12042_v18 = vsub.s32 6, %v11725_v35  ;;  %v3972_v38 = vsel %vm1624_vm5, %v8102_v19, %v17972_v49  ;;  %v2250_v11 = vsel %vm2246_vm8, %v17987_v26, %v17986_v36  ;;  %v3442_v28 = vadd.f32 %v3434_v14, %v11894_v50  ;;  %v17992_v7 = vld [vmem:[#allocation148_spill] sm:$0xff]  ;;  %v17993_v14 = vld [vmem:[#allocation54_spill] sm:$0xff] }
 0x36d   : > { %17983 = vst [vmem:[#allocation75_spill] sm:$0xff] %v12026_v25  ;;  %17988 = vst [vmem:[#allocation172_spill] sm:$0xff] %v12053_v13  ;;  %v2276_v27 = vadd.f32 %v11694_v55, %v2219_v12  ;;  %v12057_v10 = vadd.f32 %v3974_v61, %v17989_v39  ;;  %v3405_v30 = vmul.f32 %v11748_v32, %v17873_v57  ;;  %v12072_v12 = vpop.permute.xlu0 %3001  ;;  %v17996_v39 = vld [vmem:[#allocation139_spill] sm:$0xff] }
 0x36e   : > { %17985 = vst [vmem:[#allocation74_spill] sm:$0xff] %v12042_v18  ;;  %v3419_v49 = vmul.f32 %v11748_v32, %v17990_v22  ;;  %v2249_v50 = vsel %vm2246_vm8, %v17986_v36, %v17992_v7  ;;  %v3486_v26 = vmul.f32 %v3483_v42, %v17993_v14  ;;  %v3502_v55 = vmul.f32 %v12037_v15, %v17921_v34 }
 0x36f   : > { %3089 = vrot.lane.b32.xlu1 %v17991_v45, %s8452_s14  ;;  %17994 = vst [vmem:[#allocation169_spill] sm:$0xff] %v12072_v12  ;;  %v12076_v61 = vrot.slane %v11788_v31, %v12026_v25  ;;  %v3973_v32 = vmul.f32 %v3972_v38, %v17979_v2  ;;  %v2270_v45 = vmul.f32 %v17996_v39, %v2250_v11  ;;  %v18000_v12 = vunpack.i.h.bf16 %v17977_v43  ;;  %v18001_v38 = vld [vmem:[#allocation160_spill] sm:$0xff]  ;;  %v12096_v13 = vpop.permute.xlu1 %3459 }
 0x370   : > { %v2351_v36 = vsel %vm2343_vm9, %v17998_v1, %v17997_v29  ;;  %3661 = vrot.lane.b32.xlu0 %v17938_v4, %s8443_s11  ;;  %v12088_v42 = vrot.slane %v11788_v31, %v12042_v18  ;;  %v2306_v35 = vmul.f32 %v18002_v24, %v2250_v11  ;;  %v3494_v39 = vadd.f32 %v3486_v26, %v3442_v28  ;;  %v18006_v28 = vld [vmem:[#allocation88_spill] sm:$0xff]  ;;  %v18012_v4 = vld [vmem:[#allocation205_spill] sm:$0xff] }
 0x371   : > { %17995 = vst [vmem:[#allocation143_spill] sm:$0xff] %v12076_v61  ;;  %v3961_v25 = vsel %vm1624_vm5, %v18000_v12, %v8102_v19  ;;  %v2288_v61 = vmul.f32 %v18001_v38, %v2250_v11  ;;  %v12098_v1 = vadd.f32 %v3405_v30, %v3361_v62  ;;  %v2289_v41 = vmul.f32 %v18001_v38, %v2249_v50  ;;  %v18005_v19 = vld [vmem:[#allocation24_spill] sm:$0xff]  ;;  %v12117_v26 = vpop.permute.xlu0 %3385 }
 0x372   : > { %17999 = vst [vmem:[#allocation18_spill] sm:$0xff] %v12088_v42  ;;  %v2307_v58 = vmul.f32 %v18002_v24, %v2249_v50  ;;  %v12106_v31 = vsel %vm1915_vm3, %v11500_v60, %v12096_v13  ;;  %v2363_v11 = vmul.f32 %v17927_v17, %v2351_v36  ;;  %v3307_v62 = vsel %vm1721_vm2, %v17961_v59, %v18006_v28  ;;  %v18008_v60 = vld [vmem:[#allocation40_spill] sm:$0xff]  ;;  %v18033_v28 = vld [vmem:[#allocation61_spill] sm:$0xff] }
 0x373   : > { %18003 = vst [vmem:[#allocation14_spill] sm:$0xff] %v12098_v1  ;;  %18004 = vst [vmem:[#allocation173_spill] sm:$0xff] %v12106_v31  ;;  %3653 = vrot.lane.b32.xlu1 %v18005_v19, %s8443_s11  ;;  %v3510_v30 = vadd.f32 %v3502_v55, %v3494_v39  ;;  %v3518_v50 = vmul.f32 %v12106_v31, %v17930_v56  ;;  %v12120_v12 = vadd.f32 %v3419_v49, %v11862_v8  ;;  %v18010_v43 = vld [vmem:[#allocation156_spill] sm:$0xff]  ;;  %v18011_v55 = vld [vmem:[#allocation214_spill] sm:$0xff] }
 0x374   : > { %18007 = vst [vmem:[#allocation152_spill] sm:$0xff] %v12117_v26  ;;  %v12123_v18 = vmul.f32 %v3961_v25, %v18008_v60  ;;  %v2278_v42 = vadd.f32 %v2270_v45, %v2221_v44  ;;  %v12126_v63 = vadd.f32 %v3973_v32, %v18010_v43  ;;  %3735 = vrot.lane.b32.xlu0 %v17483_v5, %s8448_s26  ;;  %v12132_v26 = vpop.permute.xlu1 %4023  ;;  %v18014_v49 = vld [vmem:[#allocation103_spill] sm:$0xff]  ;;  %v18015_v43 = vld [vmem:[#allocation128_spill] sm:$0xff]  ;;  %v18016_v44 = vld [vmem:[#allocation137_spill] sm:$0xff] }
 0x375   : > { %v2296_v59 = vadd.f32 %v2288_v61, %v2276_v27  ;;  %v2314_v39 = vadd.f32 %v2306_v35, %v18011_v55  ;;  %v2381_v31 = vmul.f32 %v18012_v4, %v2351_v36  ;;  %v3526_v15 = vadd.f32 %v3518_v50, %v3510_v30  ;;  %18013 = vst [vmem:[#allocation193_spill] sm:$0xff] %v12132_v26  ;;  %v18017_v27 = vld [vmem:[#allocation42_spill] sm:$0xff]  ;;  %v18019_v45 = vld [vmem:[#allocation80_spill] sm:$0xff]  ;;  %v18020_v30 = vld [vmem:[#allocation123_spill] sm:$0xff]  ;;  %v12162_v55 = vpop.permute.xlu0 %3565 }
 0x376   : > { %18009 = vst [vmem:[#allocation166_spill] sm:$0xff] %v12123_v18  ;;  %v3340_v8 = vmul.f32 %v3307_v62, %v17968_v3  ;;  %v2854_v25 = vsel %vm2052_vm7, %v17947_v20, %v18014_v49  ;;  %v12143_v32 = vsel %vm2343_vm9, %v18016_v44, %v18015_v43  ;;  %v12149_v35 = vsel %vm2343_vm9, %v17997_v29, %v18016_v44  ;;  %v18022_v26 = vld [vmem:[#allocation122_spill] sm:$0xff]  ;;  %v18023_v29 = vld [vmem:[#allocation127_spill] sm:$0xff]  ;;  %v18024_v5 = vld [vmem:[#allocation129_spill] sm:$0xff] }
 0x377   : > { %4039 = vrot.lane.b32.xlu1 %v18017_v27, %s8421_s12  ;;  %v12154_v61 = vadd.f32 %v2289_v41, %v11925_v33  ;;  %v12157_v20 = vadd.f32 %v2307_v58, %v18019_v45  ;;  %v12159_v36 = vadd.f32 %v2363_v11, %v2314_v39  ;;  %v3542_v50 = vadd.f32 %v18020_v30, %v3526_v15  ;;  %v18025_v33 = vld [vmem:[#allocation165_spill] sm:$0xff]  ;;  %v18041_v1 = vld [vmem:[#allocation140_spill] sm:$0xff] }
 0x378   : > { %18021 = vst [vmem:[#allocation158_spill] sm:$0xff] %v12162_v55  ;;  %v3354_v3 = vmul.f32 %v3307_v62, %v17955_v52  ;;  %v2942_v44 = vsel %vm2149_vm6, %v18023_v29, %v18022_v26  ;;  %v2943_v41 = vsel %vm2149_vm6, %v18024_v5, %v18023_v29  ;;  %v2248_v58 = vsel %vm2246_vm8, %v17992_v7, %v18025_v33  ;;  %v18026_v11 = vld [vmem:[#allocation73_spill] sm:$0xff]  ;;  %v12184_v45 = vpop.permute.xlu1 %2337 }
 0x379   : > { %18018 = vst [vmem:[#allocation192_spill] sm:$0xff] %v12154_v61  ;;  %4199 = vrot.lane.b32.xlu0 %v17970_v54, %s8429_s13  ;;  %v2894_v15 = vmul.f32 %v2854_v25, %v17963_v46  ;;  %v2400_v62 = vmul.f32 %v18026_v11, %v12149_v35  ;;  %v2401_v39 = vmul.f32 %v18026_v11, %v12143_v32  ;;  %18027 = vst [vmem:[#allocation167_spill] sm:$0xff] %v12184_v45  ;;  %v18028_v30 = vld [vmem:[#allocation109_spill] sm:$0xff]  ;;  %v18031_v54 = vld [vmem:[#allocation59_spill] sm:$0xff] }
 0x37a   : > { %v12187_v29 = vadd.f32 %v18028_v30, %v3542_v50  ;;  %v2389_v5 = vadd.f32 %v2381_v31, %v11961_v16  ;;  %v12191_v7 = vadd.f32 %v3340_v8, %v12009_v0  ;;  %v2866_v55 = vmul.f32 %v2854_v25, %v17711_v37  ;;  %v18032_v18 = vld [vmem:[#allocation33_spill] sm:$0xff]  ;;  %v18035_v30 = vld [vmem:[#allocation110_spill] sm:$0xff]  ;;  %v12204_v0 = vpop.permute.xlu0 %3953 }
 0x37b   : > { %v2880_v52 = vmul.f32 %v2854_v25, %v18031_v54  ;;  %4191 = vrot.lane.b32.xlu1 %v18032_v18, %s8429_s13  ;;  %v2945_v53 = vmul.f32 %v2943_v41, %v18033_v28  ;;  %v2946_v60 = vmul.f32 %v2942_v44, %v18033_v28  ;;  %v2290_v45 = vmul.f32 %v18001_v38, %v2248_v58  ;;  %v18034_v50 = vld [vmem:[#allocation121_spill] sm:$0xff]  ;;  %v18039_v38 = vld [vmem:[#allocation32_spill] sm:$0xff] }
 0x37c   : > { %18029 = vst [vmem:[#allocation76_spill] sm:$0xff] %v12187_v29  ;;  %18030 = vst [vmem:[#allocation216_spill] sm:$0xff] %v12191_v7  ;;  %v3970_v16 = vsel %vm1624_vm5, %v18035_v30, %v18034_v50  ;;  %v3362_v31 = vadd.f32 %v3354_v3, %v12012_v9  ;;  %v2308_v8 = vmul.f32 %v18002_v24, %v2248_v58  ;;  %v18037_v29 = vld [vmem:[#allocation197_spill] sm:$0xff]  ;;  %v18040_v7 = vld [vmem:[#allocation147_spill] sm:$0xff] }
 0x37d   : > { %18036 = vst [vmem:[#allocation174_spill] sm:$0xff] %v12204_v0  ;;  %v3406_v25 = vmul.f32 %v11974_v47, %v17873_v57  ;;  %v18038_v41 = vld [vmem:[#allocation161_spill] sm:$0xff]  ;;  %3585 = vrot.lane.b32.xlu0 %v18039_v38, %s8437_s17  ;;  %v2902_v30 = vadd.f32 %v2894_v15, %v18040_v7  ;;  %v3969_v3 = vsel %vm1624_vm5, %v18034_v50, %v18041_v1  ;;  %v12224_v57 = vpop.permute.xlu1 %2923  ;;  %v18048_v50 = vld [vmem:[#allocation34_spill] sm:$0xff] }
 0x37e   : > { %v12214_v44 = vsel %vm1818_vm4, %v18038_v41, %v18037_v29  ;;  %v18042_v9 = vld [vmem:[#allocation13_spill] sm:$0xff]  ;;  %v2409_v0 = vadd.f32 %v2401_v39, %v2389_v5  ;;  %18043 = vst [vmem:[#allocation120_spill] sm:$0xff] %v12224_v57  ;;  %v3420_v38 = vmul.f32 %v11974_v47, %v17990_v22  ;;  %v3975_v15 = vmul.f32 %v3970_v16, %v17979_v2 }
 0x37f   : > { %v2408_v58 = vadd.f32 %v2400_v62, %v18042_v9  ;;  %v18044_v18 = vld [vmem:[#allocation101_spill] sm:$0xff]  ;;  %3013 = vrot.lane.b32.xlu1 %v18005_v19, %s8448_s26  ;;  %v12238_v7 = vadd.f32 %v2945_v53, %v12001_v23  ;;  %v12240_v5 = vadd.f32 %v2946_v60, %v2902_v30  ;;  %v12242_v62 = vadd.f32 %v2290_v45, %v2278_v42  ;;  %v18049_v23 = vld [vmem:[#allocation82_spill] sm:$0xff] }
 0x380   : > { %v12227_v61 = vadd.f32 %v2866_v55, %v18044_v18  ;;  %v18045_v41 = vld [vmem:[#allocation141_spill] sm:$0xff]  ;;  %v3435_v18 = vmul.f32 %v12214_v44, %v17905_v51  ;;  %v2316_v55 = vadd.f32 %v2308_v8, %v2296_v59  ;;  %v12248_v39 = vadd.f32 %v3406_v25, %v3362_v31  ;;  %v18052_v59 = vld [vmem:[#allocation180_spill] sm:$0xff] }
 0x381   : > { %v12230_v29 = vadd.f32 %v2880_v52, %v18045_v41  ;;  %18046 = vst [vmem:[#allocation65_spill] sm:$0xff] %v12240_v5  ;;  %v12246_v52 = vpop.permute.xlu0 %4105  ;;  %v3976_v47 = vmul.f32 %v3969_v3, %v17979_v2  ;;  %v3989_v9 = vmul.f32 %v3970_v16, %v18048_v50  ;;  %3737 = vrot.lane.b32.xlu0 %v18005_v19, %s8448_s26  ;;  %v12263_v31 = vpop.permute.xlu1 %2999  ;;  %v18054_v16 = vld [vmem:[#allocation159_spill] sm:$0xff] }
 0x382   : > { %18047 = vst [vmem:[#allocation154_spill] sm:$0xff] %v12246_v52  ;;  %v3990_v53 = vmul.f32 %v3969_v3, %v18048_v50  ;;  %v12256_v42 = vadd.f32 %v18049_v23, %v2408_v58  ;;  %v12259_v60 = vadd.f32 %v18049_v23, %v2409_v0  ;;  %v3487_v45 = vmul.f32 %v18052_v59, %v17993_v14  ;;  %v18055_v0 = vld [vmem:[#allocation31_spill] sm:$0xff]  ;;  %v18056_v58 = vld [vmem:[#allocation105_spill] sm:$0xff] }
 0x383   : > { %18053 = vst [vmem:[#allocation209_spill] sm:$0xff] %v12263_v31  ;;  %v12266_v8 = vadd.f32 %v3420_v38, %v12021_v6  ;;  %v12269_v25 = vadd.f32 %v3975_v15, %v18054_v16  ;;  %v2364_v30 = vmul.f32 %v17927_v17, %v12149_v35  ;;  %v2365_v3 = vmul.f32 %v17927_v17, %v12143_v32  ;;  %v18057_v41 = vld [vmem:[#allocation163_spill] sm:$0xff]  ;;  %v18058_v15 = vld [vmem:[#allocation176_spill] sm:$0xff]  ;;  %v18060_v31 = vld [vmem:[#allocation58_spill] sm:$0xff] }
 0x384   : > { %18050 = vst [vmem:[#allocation131_spill] sm:$0xff] %v12256_v42  ;;  %18051 = vst [vmem:[#allocation96_spill] sm:$0xff] %v12259_v60  ;;  %3581 = vrot.lane.b32.xlu1 %v18055_v0, %s8437_s17  ;;  %v2852_v59 = vsel %vm2052_vm7, %v18057_v41, %v18056_v58  ;;  %v2853_v6 = vsel %vm2052_vm7, %v18014_v49, %v18057_v41  ;;  %v3443_v38 = vadd.f32 %v3435_v18, %v12120_v12  ;;  %v18063_v49 = vld [vmem:[#allocation189_spill] sm:$0xff] }
 0x385   : > { %v3503_v16 = vmul.f32 %v18058_v15, %v17921_v34  ;;  %v12288_v52 = vpop.permute.xlu0 %2341  ;;  %v12291_v57 = vadd.f32 %v3976_v47, %v18060_v31  ;;  %v12294_v5 = vadd.f32 %v3989_v9, %v12126_v63  ;;  %v2382_v14 = vmul.f32 %v18012_v4, %v12149_v35  ;;  %4123 = vrot.lane.b32.xlu0 %v18017_v27, %s8427_s16  ;;  %v18064_v47 = vld [vmem:[#allocation187_spill] sm:$0xff]  ;;  %v12309_v9 = vpop.permute.xlu1 %3461  ;;  %v18071_v27 = vld [vmem:[#allocation45_spill] sm:$0xff] }
 0x386   : > { %18059 = vst [vmem:[#allocation97_spill] sm:$0xff] %v12288_v52  ;;  %v2383_v17 = vmul.f32 %v18012_v4, %v12143_v32  ;;  %v12303_v12 = vadd.f32 %v3990_v53, %v12057_v10  ;;  %v4857_v18 = vmul.f32 %v18063_v49, %v12256_v42  ;;  %v4858_v31 = vmul.f32 %v18064_v47, %v12259_v60  ;;  %v18066_v53 = vld [vmem:[#allocation29_spill] sm:$0xff]  ;;  %v18069_v47 = vld [vmem:[#allocation215_spill] sm:$0xff] }
 0x387   : > { %18061 = vst [vmem:[#allocation79_spill] sm:$0xff] %v12291_v57  ;;  %v3495_v63 = vadd.f32 %v3487_v45, %v3443_v38  ;;  %v12312_v35 = vadd.f32 %v2364_v30, %v12157_v20  ;;  %v2867_v32 = vmul.f32 %v2853_v6, %v17711_v37  ;;  %v2868_v41 = vmul.f32 %v2852_v59, %v17711_v37 }
 0x388   : > { %18062 = vst [vmem:[#allocation206_spill] sm:$0xff] %v12303_v12  ;;  %v12320_v10 = vsel %vm1915_vm3, %v12096_v13, %v12309_v9  ;;  %3659 = vrot.lane.b32.xlu1 %v18066_v53, %s8443_s11  ;;  %v12324_v49 = vadd.f32 %v2365_v3, %v2316_v55  ;;  %v2881_v45 = vmul.f32 %v2853_v6, %v18031_v54  ;;  %v18087_v12 = vld [vmem:[#allocation197_spill] sm:$0xff] }
 0x389   : > { %18065 = vst [vmem:[#allocation17_spill] sm:$0xff] %v12320_v10  ;;  %v3511_v38 = vadd.f32 %v3503_v16, %v3495_v63  ;;  %v3519_v20 = vmul.f32 %v12320_v10, %v17930_v56  ;;  %v12329_v30 = vpop.permute.xlu0 %3005  ;;  %v2390_v37 = vadd.f32 %v2382_v14, %v18069_v47  ;;  %v12333_v52 = vadd.f32 %v2383_v17, %v12159_v36  ;;  %v18072_v63 = vld [vmem:[#allocation196_spill] sm:$0xff]  ;;  %v12350_v36 = vpop.permute.xlu1 %4027 }
 0x38a   : > { %18067 = vst [vmem:[#allocation21_spill] sm:$0xff] %v12324_v49  ;;  %18068 = vst [vmem:[#allocation81_spill] sm:$0xff] %v12329_v30  ;;  %v2882_v13 = vmul.f32 %v2852_v59, %v18031_v54  ;;  %v12340_v55 = vsel %vm2343_vm9, %v18015_v43, %v18071_v27  ;;  %3097 = vrot.lane.b32.xlu0 %v18005_v19, %s8452_s14  ;;  %v4957_v3 = vmul.f32 %v4857_v18, %v12256_v42  ;;  %v18074_v47 = vld [vmem:[#allocation92_spill] sm:$0xff]  ;;  %v18075_v43 = vld [vmem:[#allocation90_spill] sm:$0xff] }
 0x38b   : > { %18070 = vst [vmem:[#allocation22_spill] sm:$0xff] %v12333_v52  ;;  %v4958_v16 = vmul.f32 %v4858_v31, %v12259_v60  ;;  %v2941_v17 = vsel %vm2149_vm6, %v18022_v26, %v18072_v63  ;;  %v3527_v14 = vadd.f32 %v3519_v20, %v3511_v38  ;;  %18073 = vst [vmem:[#allocation162_spill] sm:$0xff] %v12350_v36  ;;  %v18076_v60 = vld [vmem:[#allocation35_spill] sm:$0xff]  ;;  %v18078_v38 = vld [vmem:[#allocation200_spill] sm:$0xff] }
 0x38c   : > { %v12353_v30 = vadd.f32 %v2867_v32, %v18074_v47  ;;  %v12356_v10 = vadd.f32 %v2868_v41, %v18075_v43  ;;  %v2895_v49 = vmul.f32 %v2853_v6, %v17963_v46  ;;  %v2896_v42 = vmul.f32 %v2852_v59, %v17963_v46  ;;  %4195 = vrot.lane.b32.xlu1 %v18076_v60, %s8429_s13  ;;  %v18077_v19 = vld [vmem:[#allocation115_spill] sm:$0xff] }
 0x38d   : > { %v2889_v52 = vadd.f32 %v2881_v45, %v11989_v40  ;;  %v2247_v26 = vsel %vm2246_vm8, %v18025_v33, %v18077_v19  ;;  %v2402_v32 = vmul.f32 %v18026_v11, %v12340_v55  ;;  %v3543_v41 = vadd.f32 %v18078_v38, %v3527_v14  ;;  %v12370_v20 = vpop.permute.xlu0 %3079  ;;  %v18080_v43 = vld [vmem:[#allocation195_spill] sm:$0xff]  ;;  %v12387_v38 = vpop.permute.xlu1 %2339 }
 0x38e   : > { %18079 = vst [vmem:[#allocation182_spill] sm:$0xff] %v12370_v20  ;;  %v4890_v6 = vsel %vm4889_vm10, %v4857_v18, 0.0  ;;  %v4891_v59 = vsel %vm4889_vm10, %v4858_v31, 0.0  ;;  %v12375_v47 = vadd.f32 %v2882_v13, %v12227_v61  ;;  %v2947_v40 = vmul.f32 %v2941_v17, %v18033_v28  ;;  %3665 = vrot.lane.b32.xlu0 %v18055_v0, %s8443_s11  ;;  %18082 = vst [vmem:[#allocation217_spill] sm:$0xff] %v12387_v38  ;;  %v18083_v31 = vld [vmem:[#allocation181_spill] sm:$0xff]  ;;  %v18085_v20 = vld [vmem:[#allocation64_spill] sm:$0xff] }
 0x38f   : > { %v4989_v33 = vsel %vm4889_vm10, %v4957_v3, 0.0  ;;  %v4990_v45 = vsel %vm4889_vm10, %v4958_v16, 0.0  ;;  %v18081_v14 = vunpack.i.l.bf16 %v18080_v43  ;;  %v12390_v61 = vadd.f32 %v18083_v31, %v3543_v41  ;;  %v18086_v3 = vld [vmem:[#allocation132_spill] sm:$0xff]  ;;  %v18088_v43 = vld [vmem:[#allocation26_spill] sm:$0xff]  ;;  %v18091_v41 = vld [vmem:[#allocation151_spill] sm:$0xff] }
 0x390   : > { %v2903_v13 = vadd.f32 %v2895_v49, %v11998_v48  ;;  %v2961_v36 = vmul.f32 %v2941_v17, %v18085_v20  ;;  %v2309_v60 = vmul.f32 %v18002_v24, %v2247_v26  ;;  %v3393_v16 = vsel %vm1818_vm4, %v18087_v12, %v18086_v3  ;;  %3015 = vrot.lane.b32.xlu1 %v18088_v43, %s8448_s26  ;;  %v18090_v17 = vld [vmem:[#allocation207_spill] sm:$0xff] }
 0x391   : > { %v2258_v18 = vsel %vm2246_vm8, %v18077_v19, %v18081_v14  ;;  %18084 = vst [vmem:[#allocation114_spill] sm:$0xff] %v12390_v61  ;;  %v12402_v19 = vadd.f32 %v2896_v42, %v12230_v29  ;;  %v18089_v14 = vld [vmem:[#allocation190_spill] sm:$0xff]  ;;  %v2410_v49 = vadd.f32 %v2402_v32, %v2390_v37  ;;  %v12412_v26 = vsel %vm1624_vm5, %v18091_v41, %v18090_v17  ;;  %v12414_v31 = vpop.permute.xlu0 %3569  ;;  %v18094_v42 = vld [vmem:[#allocation125_spill] sm:$0xff]  ;;  %v18098_v17 = vld [vmem:[#allocation43_spill] sm:$0xff] }
 0x392   : > { %v2851_v48 = vsel %vm2052_vm7, %v18056_v58, %v18089_v14  ;;  %18092 = vst [vmem:[#allocation95_spill] sm:$0xff] %v12412_v26  ;;  %18093 = vst [vmem:[#allocation199_spill] sm:$0xff] %v12414_v31  ;;  %v12416_v12 = vadd.f32 %v4891_v59, %v4890_v6  ;;  %v12418_v61 = vadd.f32 %v4990_v45, %v4989_v33  ;;  %3743 = vrot.lane.b32.xlu0 %v18066_v53, %s8448_s26  ;;  %v12433_v33 = vpop.permute.xlu1 %2925 }
 0x393   : > { %v2310_v29 = vmul.f32 %v18002_v24, %v2258_v18  ;;  %v3968_v58 = vsel %vm1624_vm5, %v18041_v1, %v18094_v42  ;;  %v12427_v37 = vadd.f32 %v2947_v40, %v2903_v13  ;;  %v3421_v32 = vmul.f32 %v12214_v44, %v17990_v22  ;;  %18095 = vst [vmem:[#allocation178_spill] sm:$0xff] %v12433_v33  ;;  %v18096_v18 = vld [vmem:[#allocation192_spill] sm:$0xff]  ;;  %v18097_v13 = vld [vmem:[#allocation33_spill] sm:$0xff]  ;;  %v18102_v33 = vld [vmem:[#allocation51_spill] sm:$0xff] }
 0x394   : > { %v3422_v6 = vmul.f32 %v3393_v16, %v17990_v22  ;;  %v3436_v59 = vmul.f32 %v3393_v16, %v17905_v51  ;;  %v12436_v45 = vadd.f32 %v2961_v36, %v12238_v7  ;;  %v2317_v24 = vadd.f32 %v2309_v60, %v18096_v18  ;;  %3583 = vrot.lane.b32.xlu1 %v18097_v13, %s8437_s17  ;;  %v18103_v13 = vld [vmem:[#allocation174_spill] sm:$0xff] }
 0x395   : > { %v2883_v1 = vmul.f32 %v2851_v48, %v18031_v54  ;;  %v3980_v40 = vmul.f32 %v12412_v26, %v17979_v2  ;;  %v2897_v31 = vmul.f32 %v2851_v48, %v17963_v46  ;;  %v3977_v38 = vmul.f32 %v3968_v58, %v17979_v2  ;;  %v12453_v60 = vpop.permute.xlu0 %3955 }
 0x396   : > { %v3392_v7 = vsel %vm1818_vm4, %v18086_v3, %v18098_v17  ;;  %v12451_v36 = vadd.f32 %v18049_v23, %v2410_v49  ;;  %18100 = vst [vmem:[#allocation116_spill] sm:$0xff] %v12453_v60  ;;  %v12456_v18 = vadd.f32 %v2310_v29, %v12242_v62  ;;  %v12460_v53 = vmul.f32 %v12214_v44, %v18102_v33  ;;  %v18105_v62 = vld [vmem:[#allocation14_spill] sm:$0xff]  ;;  %v12479_v23 = vpop.permute.xlu1 %3003 }
 0x397   : > { %v3991_v48 = vmul.f32 %v3968_v58, %v18048_v50  ;;  %v12467_v57 = vsel %vm1624_vm5, %v18103_v13, %v12453_v60  ;;  %4305 = vrot.lane.b32.xlu0 %v18055_v0, %s8437_s17  ;;  %v12472_v3 = vmul.f32 %v3393_v16, %v18102_v33  ;;  %v3429_v49 = vadd.f32 %v3421_v32, %v18105_v62  ;;  %v18109_v13 = vld [vmem:[#allocation133_spill] sm:$0xff]  ;;  %v18110_v16 = vld [vmem:[#allocation23_spill] sm:$0xff] }
 0x398   : > { %18099 = vst [vmem:[#allocation210_spill] sm:$0xff] %v12451_v36  ;;  %18101 = vst [vmem:[#allocation104_spill] sm:$0xff] %v12456_v18  ;;  %v12476_v29 = vadd.f32 %v3422_v6, %v12248_v39  ;;  %v3444_v44 = vadd.f32 %v3436_v59, %v12266_v8  ;;  %v18108_v18 = vld [vmem:[#allocation40_spill] sm:$0xff]  ;;  %v3437_v60 = vmul.f32 %v3392_v7, %v17905_v51  ;;  %3733 = vrot.lane.b32.xlu1 %v18110_v16, %s8448_s26  ;;  %v18112_v6 = vld [vmem:[#allocation107_spill] sm:$0xff] }
 0x399   : > { %18104 = vst [vmem:[#allocation186_spill] sm:$0xff] %v12467_v57  ;;  %18107 = vst [vmem:[#allocation84_spill] sm:$0xff] %v12479_v23  ;;  %v4005_v11 = vmul.f32 %v3968_v58, %v18108_v18  ;;  %v3988_v26 = vadd.f32 %v3980_v40, %v18109_v13  ;;  %v3996_v0 = vmul.f32 %v12467_v57, %v18048_v50  ;;  %v18113_v59 = vld [vmem:[#allocation119_spill] sm:$0xff]  ;;  %v12496_v62 = vpop.permute.xlu0 %4107  ;;  %v18115_v13 = vld [vmem:[#allocation113_spill] sm:$0xff] }
 0x39a   : > { %18106 = vst [vmem:[#allocation118_spill] sm:$0xff] %v12476_v29  ;;  %v12489_v32 = vadd.f32 %v2883_v1, %v12353_v30  ;;  %v2905_v39 = vadd.f32 %v2897_v31, %v2889_v52  ;;  %v12492_v8 = vadd.f32 %v3977_v38, %v18112_v6  ;;  %v4859_v58 = vmul.f32 %v18113_v59, %v12451_v36  ;;  %v18116_v57 = vld [vmem:[#allocation203_spill] sm:$0xff]  ;;  %v18117_v23 = vld [vmem:[#allocation88_spill] sm:$0xff]  ;;  %v18119_v1 = vld [vmem:[#allocation94_spill] sm:$0xff] }
 0x39b   : > { %18114 = vst [vmem:[#allocation153_spill] sm:$0xff] %v12496_v62  ;;  %v12499_v40 = vadd.f32 %v3991_v48, %v12269_v25  ;;  %v2366_v33 = vmul.f32 %v18115_v13, %v12340_v55  ;;  %v3306_v30 = vsel %vm1721_vm2, %v18117_v23, %v18116_v57  ;;  %v4004_v52 = vadd.f32 %v3996_v0, %v3988_v26  ;;  %v18118_v31 = vld [vmem:[#allocation112_spill] sm:$0xff]  ;;  %v18120_v6 = vld [vmem:[#allocation54_spill] sm:$0xff]  ;;  %v18121_v59 = vld [vmem:[#allocation69_spill] sm:$0xff]  ;;  %v12522_v0 = vpop.permute.xlu1 %3463 }
 0x39c   : > { %18111 = vst [vmem:[#allocation85_spill] sm:$0xff] %v12489_v32  ;;  %3099 = vrot.lane.b32.xlu0 %v18088_v43, %s8452_s14  ;;  %v12510_v38 = vmul.f32 %v3392_v7, %v17990_v22  ;;  %v2939_v25 = vsel %vm2149_vm6, %v18119_v1, %v18118_v31  ;;  %v2940_v48 = vsel %vm2149_vm6, %v18072_v63, %v18119_v1  ;;  %18122 = vst [vmem:[#allocation177_spill] sm:$0xff] %v12522_v0  ;;  %v18124_v16 = vld [vmem:[#allocation166_spill] sm:$0xff]  ;;  %v18126_v29 = vld [vmem:[#allocation41_spill] sm:$0xff] }
 0x39d   : > { %v3488_v23 = vmul.f32 %v18121_v59, %v18120_v6  ;;  %v12525_v26 = vadd.f32 %v4005_v11, %v12294_v5  ;;  %v12527_v7 = vadd.f32 %v3437_v60, %v3429_v49  ;;  %v2384_v62 = vmul.f32 %v18012_v4, %v12340_v55  ;;  %4121 = vrot.lane.b32.xlu1 %v18126_v29, %s8427_s16  ;;  %v18127_v1 = vld [vmem:[#allocation93_spill] sm:$0xff]  ;;  %v18128_v11 = vld [vmem:[#allocation46_spill] sm:$0xff]  ;;  %s7938_s16 = sshll.u32 %s8510_s25, 11 }
 0x39e   : > { %v12532_v32 = vadd.f32 %v18124_v16, %v4004_v52  ;;  %v4959_v63 = vmul.f32 %v4859_v58, %v12451_v36  ;;  %v3305_v59 = vsel %vm1721_vm2, %v18116_v57, %v18127_v1  ;;  %v3355_v5 = vmul.f32 %v3306_v30, %v18128_v11  ;;  %v18129_v60 = vld [vmem:[#allocation173_spill] sm:$0xff]  ;;  %v18133_v1 = vld [vmem:[#allocation164_spill] sm:$0xff] }
 0x39f   : > { %18123 = vst [vmem:[#allocation91_spill] sm:$0xff] %v12525_v26  ;;  %v3504_v49 = vmul.f32 %v18129_v60, %v17921_v34  ;;  %v12544_v26 = vpop.permute.xlu0 %2929  ;;  %v12546_v55 = vadd.f32 %v2366_v33, %v2317_v24  ;;  %v2948_v16 = vmul.f32 %v2940_v48, %v18033_v28  ;;  %v2949_v52 = vmul.f32 %v2939_v25, %v18033_v28  ;;  %v12564_v33 = vpop.permute.xlu1 %3567 }
 0x3a0   : > { %18125 = vst [vmem:[#allocation191_spill] sm:$0xff] %v12532_v32  ;;  %18130 = vst [vmem:[#allocation175_spill] sm:$0xff] %v12544_v26  ;;  %v2962_v36 = vmul.f32 %v2940_v48, %v18085_v20  ;;  %v18132_v32 = vld [vmem:[#allocation28_spill] sm:$0xff]  ;;  %v2963_v57 = vmul.f32 %v2939_v25, %v18085_v20  ;;  %v2850_v30 = vsel %vm2052_vm7, %v18089_v14, %v18133_v1  ;;  %v18135_v26 = vld [vmem:[#allocation66_spill] sm:$0xff] }
 0x3a1   : > { %18131 = vst [vmem:[#allocation77_spill] sm:$0xff] %v12546_v55  ;;  %3745 = vrot.lane.b32.xlu0 %v18132_v32, %s8448_s26  ;;  %v3496_v29 = vadd.f32 %v3488_v23, %v3444_v44  ;;  %v12562_v24 = vsel %vm1915_vm3, %v12309_v9, %v12522_v0  ;;  %18134 = vst [vmem:[#allocation184_spill] sm:$0xff] %v12564_v33  ;;  %v12567_v48 = vadd.f32 %v2384_v62, %v12312_v35  ;;  %v18136_v14 = vld [vmem:[#allocation25_spill] sm:$0xff]  ;;  %v18137_v23 = vld [vmem:[#allocation72_spill] sm:$0xff] }
 0x3a2   : > { %v4893_v32 = vsel %vm4889_vm10, %v4859_v58, 0.0  ;;  %v2977_v55 = vmul.f32 %v2939_v25, %v18135_v26  ;;  %v3356_v34 = vmul.f32 %v3305_v59, %v18128_v11  ;;  %3095 = vrot.lane.b32.xlu1 %v18136_v14, %s8452_s14  ;;  %v4992_v44 = vsel %vm4889_vm10, %v4959_v63, 0.0  ;;  %v18140_v63 = vld [vmem:[#allocation65_spill] sm:$0xff] }
 0x3a3   : > { %v3363_v1 = vadd.f32 %v3355_v5, %v18137_v23  ;;  %v3512_v9 = vadd.f32 %v3504_v49, %v3496_v29  ;;  %v3520_v33 = vmul.f32 %v12562_v24, %v17930_v56  ;;  %v12578_v0 = vpop.permute.xlu0 %3081  ;;  %v12581_v35 = vadd.f32 %v2948_v16, %v12402_v19  ;;  %v18142_v5 = vld [vmem:[#allocation19_spill] sm:$0xff]  ;;  %v12599_v49 = vpop.permute.xlu1 %4031 }
 0x3a4   : > { %18138 = vst [vmem:[#allocation155_spill] sm:$0xff] %v12578_v0  ;;  %v12583_v58 = vadd.f32 %v2949_v52, %v2905_v39  ;;  %v2884_v62 = vmul.f32 %v2850_v30, %v18031_v54  ;;  %v2898_v25 = vmul.f32 %v2850_v30, %v17963_v46  ;;  %v12590_v59 = vadd.f32 %v2962_v36, %v18140_v63  ;;  %v18144_v30 = vld [vmem:[#allocation216_spill] sm:$0xff]  ;;  %v18149_v23 = vld [vmem:[#allocation211_spill] sm:$0xff] }
 0x3a5   : > { %3819 = vrot.lane.b32.xlu0 %v18136_v14, %s8452_s14  ;;  %v12593_v29 = vadd.f32 %v2963_v57, %v12427_v37  ;;  %v3966_v19 = vsel %vm1624_vm5, %v18142_v5, %v18091_v41  ;;  %v3528_v39 = vadd.f32 %v3520_v33, %v3512_v9  ;;  %18143 = vst [vmem:[#allocation138_spill] sm:$0xff] %v12599_v49  ;;  %v18145_v57 = vld [vmem:[#allocation30_spill] sm:$0xff] }
 0x3a6   : > { %18139 = vst [vmem:[#allocation20_spill] sm:$0xff] %v12583_v58  ;;  %v12602_v16 = vadd.f32 %v4893_v32, %v12416_v12  ;;  %v12605_v52 = vadd.f32 %v4992_v44, %v12418_v61  ;;  %v12608_v36 = vadd.f32 %v2977_v55, %v12436_v45  ;;  %v3364_v37 = vadd.f32 %v3356_v34, %v18144_v30  ;;  %v18146_v61 = vld [vmem:[#allocation70_spill] sm:$0xff]  ;;  %v18147_v55 = vld [vmem:[#allocation60_spill] sm:$0xff] }
 0x3a7   : > { %18141 = vst [vmem:[#allocation148_spill] sm:$0xff] %v12593_v29  ;;  %3663 = vrot.lane.b32.xlu1 %v18145_v57, %s8443_s11  ;;  %v3415_v14 = vadd.f32 %v12460_v53, %v3363_v1  ;;  %v3489_v41 = vmul.f32 %v18058_v15, %v18120_v6  ;;  %v3967_v12 = vsel %vm1624_vm5, %v18094_v42, %v18142_v5  ;;  %v12621_v33 = vpop.permute.xlu0 %3467  ;;  %v8107_v1 = vunpack.i.l.bf16 %v18147_v55  ;;  %v18148_v15 = vld [vmem:[#allocation32_spill] sm:$0xff]  ;;  %v12639_v9 = vpop.permute.xlu1 %8110  ;;  %v18208_v58 = vld [vmem:[#allocation142_spill] sm:$0xff] }
 0x3a8   : > { %v3544_v32 = vadd.f32 %v18146_v61, %v3528_v39  ;;  %v12624_v45 = vadd.f32 %v2884_v62, %v12356_v10  ;;  %v12627_v34 = vadd.f32 %v2898_v25, %v12375_v47  ;;  %v3979_v53 = vmul.f32 %v3966_v19, %v17979_v2  ;;  %18150 = vst [vmem:[#allocation47_spill] sm:$0xff] %v12639_v9  ;;  %v18151_v47 = vld [vmem:[#allocation100_spill] sm:$0xff]  ;;  %v18153_v39 = vld [vmem:[#allocation198_spill] sm:$0xff] }
 0x3a9   : > { %4309 = vrot.lane.b32.xlu0 %v18148_v15, %s8437_s17  ;;  %v3993_v44 = vmul.f32 %v3966_v19, %v18048_v50  ;;  %v4007_v42 = vmul.f32 %v3966_v19, %v18108_v18  ;;  %v3391_v10 = vsel %vm1818_vm4, %v18098_v17, %v18149_v23  ;;  %v3978_v25 = vmul.f32 %v3967_v12, %v17979_v2  ;;  %v18164_v9 = vld [vmem:[#allocation44_spill] sm:$0xff] }
 0x3aa   : > { %v12642_v62 = vadd.f32 %v18151_v47, %v3544_v32  ;;  %v3992_v63 = vmul.f32 %v3967_v12, %v18048_v50  ;;  %v2347_v19 = vsel %vm2343_vm9, %v18071_v27, %v18153_v39  ;;  %v12654_v17 = vadd.f32 %v3489_v41, %v12527_v7  ;;  %v18155_v47 = vld [vmem:[#allocation16_spill] sm:$0xff]  ;;  %v18158_v41 = vld [vmem:[#allocation73_spill] sm:$0xff] }
 0x3ab   : > { %3739 = vrot.lane.b32.xlu1 %v18088_v43, %s8448_s26  ;;  %v4006_v30 = vmul.f32 %v3967_v12, %v18108_v18  ;;  %v3416_v61 = vadd.f32 %v12472_v3, %v3364_v37  ;;  %v12659_v2 = vadd.f32 %v12510_v38, %v3415_v14  ;;  %v12661_v32 = vpop.permute.xlu0 %3575  ;;  %v12664_v5 = vadd.f32 %v3979_v53, %v18155_v47  ;;  %v18157_v38 = vld [vmem:[#allocation95_spill] sm:$0xff]  ;;  %v12681_v53 = vpop.permute.xlu1 %2927  ;;  %v18160_v47 = vld [vmem:[#allocation98_spill] sm:$0xff] }
 0x3ac   : > { %18152 = vst [vmem:[#allocation156_spill] sm:$0xff] %v12642_v62  ;;  %18154 = vst [vmem:[#allocation214_spill] sm:$0xff] %v12661_v32  ;;  %v3424_v27 = vmul.f32 %v3391_v10, %v17990_v22  ;;  %v3438_v0 = vmul.f32 %v3391_v10, %v17905_v51  ;;  %v18156_v62 = vld [vmem:[#allocation146_spill] sm:$0xff]  ;;  %v12674_v3 = vadd.f32 %v3993_v44, %v12492_v8  ;;  %v18161_v22 = vld [vmem:[#allocation79_spill] sm:$0xff]  ;;  %v18162_v8 = vunpack.i.h.bf16 %v18147_v55 }
 0x3ad   : > { %v4056_v7 = vsel %vm1721_vm2, %v8107_v1, %v18156_v62  ;;  %3669 = vrot.lane.b32.xlu0 %v18148_v15, %s8443_s11  ;;  %v3994_v37 = vmul.f32 %v18157_v38, %v18048_v50  ;;  %v4008_v14 = vmul.f32 %v18157_v38, %v18108_v18  ;;  %v2403_v12 = vmul.f32 %v18158_v41, %v2347_v19  ;;  %v12683_v10 = vld [vmem:[#allocation7 + $0x8] sm:$0xff]  ;;  %v18163_v38 = vld [vmem:[#allocation37_spill] sm:$0xff]  ;;  %v18169_v55 = vld [vmem:[#allocation24_spill] sm:$0xff] }
 0x3ae   : > { %18159 = vst [vmem:[#allocation103_spill] sm:$0xff] %v12681_v53  ;;  %v3986_v32 = vadd.f32 %v3978_v25, %v18160_v47  ;;  %v4000_v54 = vadd.f32 %v3992_v63, %v18161_v22  ;;  %v12688_v15 = vadd.f32 %v4007_v42, %v12499_v40  ;;  %v4045_v44 = vsel %vm1721_vm2, %v18162_v8, %v8107_v1  ;;  %v18165_v25 = vld [vmem:[#allocation124_spill] sm:$0xff]  ;;  %v18167_v42 = vld [vmem:[#allocation206_spill] sm:$0xff] }
 0x3af   : > { %4201 = vrot.lane.b32.xlu1 %v18163_v38, %s8429_s13  ;;  %v4057_v49 = vmul.f32 %v4056_v7, %v18164_v9  ;;  %v2367_v53 = vmul.f32 %v18115_v13, %v2347_v19  ;;  %v2385_v43 = vmul.f32 %v18012_v4, %v2347_v19  ;;  %v2938_v22 = vsel %vm2149_vm6, %v18118_v31, %v18165_v25  ;;  %v12703_v40 = vpop.permute.xlu0 %4111  ;;  %v18168_v47 = vld [vmem:[#allocation118_spill] sm:$0xff]  ;;  %v18170_v7 = vld [vmem:[#allocation15_spill] sm:$0xff] }
 0x3b0   : > { %18166 = vst [vmem:[#allocation128_spill] sm:$0xff] %v12703_v40  ;;  %v12706_v63 = vadd.f32 %v4006_v30, %v18167_v42  ;;  %v3432_v1 = vadd.f32 %v3424_v27, %v3416_v61  ;;  %v3446_v8 = vadd.f32 %v3438_v0, %v18168_v47  ;;  %v12713_v13 = vrot.slane %v12683_v10, %v18170_v7  ;;  %v18175_v40 = vld [vmem:[#allocation22_spill] sm:$0xff]  ;;  %v12723_v42 = vpop.permute.xlu1 %3077  ;;  %v18177_v61 = vld [vmem:[#allocation135_spill] sm:$0xff]  ;;  %v18178_v27 = vld [vmem:[#allocation152_spill] sm:$0xff] }
 0x3b1   : > { %3821 = vrot.lane.b32.xlu0 %v18169_v55, %s8452_s14  ;;  %v12716_v19 = vmul.f32 %v4045_v44, %v18128_v11  ;;  %v12718_v38 = vadd.f32 %v3994_v37, %v3986_v32  ;;  %v12720_v31 = vadd.f32 %v4008_v14, %v4000_v54  ;;  %v2411_v30 = vadd.f32 %v2403_v12, %v18175_v40  ;;  %v18179_v32 = vld [vmem:[#allocation35_spill] sm:$0xff]  ;;  %v18180_v37 = vld [vmem:[#allocation104_spill] sm:$0xff]  ;;  %v18182_v12 = vld [vmem:[#allocation21_spill] sm:$0xff] }
 0x3b2   : > { %18171 = vst [vmem:[#allocation137_spill] sm:$0xff] %v12713_v13  ;;  %18176 = vst [vmem:[#allocation127_spill] sm:$0xff] %v12723_v42  ;;  %v2950_v0 = vmul.f32 %v2938_v22, %v18033_v28  ;;  %v3490_v55 = vmul.f32 %v18129_v60, %v18120_v6  ;;  %v3389_v47 = vsel %vm1818_vm4, %v18178_v27, %v18177_v61  ;;  %v18184_v40 = vld [vmem:[#allocation91_spill] sm:$0xff]  ;;  %v18186_v42 = vld [vmem:[#allocation145_spill] sm:$0xff] }
 0x3b3   : > { %18172 = vst [vmem:[#allocation80_spill] sm:$0xff] %v12716_v19  ;;  %18173 = vst [vmem:[#allocation123_spill] sm:$0xff] %v12718_v38  ;;  %v3390_v54 = vsel %vm1818_vm4, %v18149_v23, %v18178_v27  ;;  %3587 = vrot.lane.b32.xlu1 %v18179_v32, %s8437_s17  ;;  %v12739_v14 = vadd.f32 %v2367_v53, %v18180_v37  ;;  %v12742_v44 = vadd.f32 %v2385_v43, %v18182_v12  ;;  %v12748_v61 = vpop.permute.xlu0 %2931  ;;  %v18187_v23 = vld [vmem:[#allocation164_spill] sm:$0xff]  ;;  %v18188_v19 = vld [vmem:[#allocation55_spill] sm:$0xff] }
 0x3b4   : > { %18174 = vst [vmem:[#allocation122_spill] sm:$0xff] %v12720_v31  ;;  %v2964_v60 = vmul.f32 %v2938_v22, %v18085_v20  ;;  %v12746_v7 = vadd.f32 %v4057_v49, %v18184_v40  ;;  %18185 = vst [vmem:[#allocation121_spill] sm:$0xff] %v12748_v61  ;;  %v2978_v13 = vmul.f32 %v2938_v22, %v18135_v26  ;;  %v18189_v53 = vld [vmem:[#allocation17_spill] sm:$0xff]  ;;  %v18190_v12 = vld [vmem:[#allocation42_spill] sm:$0xff]  ;;  %v3466_v31 = vpop.permute.xlu1 %3465 }
 0x3b5   : > { %18181 = vst [vmem:[#allocation165_spill] sm:$0xff] %v12739_v14  ;;  %18183 = vst [vmem:[#allocation109_spill] sm:$0xff] %v12742_v44  ;;  %v2849_v27 = vsel %vm2052_vm7, %v18187_v23, %v18186_v42  ;;  %v3505_v37 = vmul.f32 %v18189_v53, %v18188_v19  ;;  %v3506_v43 = vmul.f32 %v12562_v24, %v18188_v19  ;;  %4207 = vrot.lane.b32.xlu0 %v18190_v12, %s8429_s13  ;;  %v18191_v49 = vld [vmem:[#allocation82_spill] sm:$0xff]  ;;  %v18193_v61 = vld [vmem:[#allocation67_spill] sm:$0xff] }
 0x3b6   : > { %v12762_v40 = vadd.f32 %v18191_v49, %v2411_v30  ;;  %v2860_v22 = vsel %vm2052_vm7, %v18186_v42, %v18193_v61  ;;  %v3439_v38 = vmul.f32 %v3390_v54, %v17905_v51  ;;  %v3440_v23 = vmul.f32 %v3389_v47, %v17905_v51  ;;  %v18195_v30 = vld [vmem:[#allocation177_spill] sm:$0xff]  ;;  %v18196_v32 = vld [vmem:[#allocation27_spill] sm:$0xff]  ;;  %v18207_v44 = vld [vmem:[#allocation106_spill] sm:$0xff] }
 0x3b7   : > { %v12771_v57 = vadd.f32 %v2950_v0, %v12627_v34  ;;  %v3498_v14 = vadd.f32 %v3490_v55, %v3446_v8  ;;  %v3475_v12 = vsel %vm1915_vm3, %v3466_v31, %v12621_v33  ;;  %v3476_v11 = vsel %vm1915_vm3, %v18195_v30, %v3466_v31  ;;  %3741 = vrot.lane.b32.xlu1 %v18196_v32, %s8448_s26  ;;  %v18197_v54 = vld [vmem:[#allocation167_spill] sm:$0xff]  ;;  %v12792_v55 = vpop.permute.xlu0 %3085  ;;  %v18199_v30 = vld [vmem:[#allocation38_spill] sm:$0xff] }
 0x3b8   : > { %18192 = vst [vmem:[#allocation110_spill] sm:$0xff] %v12762_v40  ;;  %v2899_v42 = vmul.f32 %v2849_v27, %v17963_v46  ;;  %v12786_v34 = vsel %vm2343_vm9, %v18153_v39, %v18197_v54  ;;  %v3491_v8 = vmul.f32 %v18189_v53, %v18120_v6  ;;  %v3492_v0 = vmul.f32 %v12562_v24, %v18120_v6  ;;  %v12802_v24 = vpop.permute.xlu1 %3571  ;;  %v18201_v6 = vld [vmem:[#allocation183_spill] sm:$0xff] }
 0x3b9   : > { %18194 = vst [vmem:[#allocation161_spill] sm:$0xff] %v12771_v57  ;;  %18198 = vst [vmem:[#allocation147_spill] sm:$0xff] %v12792_v55  ;;  %v3513_v31 = vadd.f32 %v3505_v37, %v12654_v17  ;;  %v3514_v47 = vadd.f32 %v3506_v43, %v3498_v14  ;;  %v3521_v61 = vmul.f32 %v3476_v11, %v17930_v56  ;;  %4315 = vrot.lane.b32.xlu0 %v18199_v30, %s8437_s17  ;;  %v18202_v55 = vld [vmem:[#allocation172_spill] sm:$0xff] }
 0x3ba   : > { %v3522_v27 = vmul.f32 %v3475_v12, %v17930_v56  ;;  %v3447_v39 = vadd.f32 %v3439_v38, %v12659_v2  ;;  %v3448_v51 = vadd.f32 %v3440_v23, %v3432_v1  ;;  %v3507_v53 = vmul.f32 %v3476_v11, %v18188_v19  ;;  %18200 = vst [vmem:[#allocation140_spill] sm:$0xff] %v12802_v24  ;;  %v18203_v14 = vld [vmem:[#allocation48_spill] sm:$0xff]  ;;  %v18204_v2 = vld [vmem:[#allocation39_spill] sm:$0xff]  ;;  %v18205_v11 = vld [vmem:[#allocation157_spill] sm:$0xff] }
 0x3bb   : > { %v3508_v32 = vmul.f32 %v3475_v12, %v18188_v19  ;;  %v3026_v17 = vsel %vm2246_vm8, %v18202_v55, %v18201_v6  ;;  %v3027_v37 = vsel %vm2246_vm8, %v18203_v14, %v18202_v55  ;;  %v3529_v43 = vadd.f32 %v3521_v61, %v3513_v31  ;;  %4203 = vrot.lane.b32.xlu1 %v18204_v2, %s8429_s13  ;;  %v3470_v19 = vpop.permute.xlu0 %3469  ;;  %v18206_v24 = vld [vmem:[#allocation78_spill] sm:$0xff] }
 0x3bc   : > { %v3530_v30 = vadd.f32 %v3522_v27, %v3514_v47  ;;  %v4860_v38 = vmul.f32 %v18205_v11, %v12762_v40  ;;  %v2404_v1 = vmul.f32 %v18158_v41, %v12786_v34  ;;  %v3499_v12 = vadd.f32 %v3491_v8, %v3447_v39  ;;  %v18209_v47 = vld [vmem:[#allocation31_spill] sm:$0xff]  ;;  %v18213_v39 = vld [vmem:[#allocation130_spill] sm:$0xff] }
 0x3bd   : > { %v3500_v23 = vadd.f32 %v3492_v0, %v3448_v51  ;;  %v3545_v57 = vadd.f32 %v18206_v24, %v3529_v43  ;;  %v3473_v55 = vsel %vm1915_vm3, %v3470_v19, %v18208_v58  ;;  %v3474_v31 = vsel %vm1915_vm3, %v12621_v33, %v3470_v19  ;;  %3749 = vrot.lane.b32.xlu0 %v18209_v47, %s8448_s26  ;;  %v12830_v0 = vpop.permute.xlu1 %4033  ;;  %v18211_v33 = vld [vmem:[#allocation117_spill] sm:$0xff] }
 0x3be   : > { %v3546_v29 = vadd.f32 %v18207_v44, %v3530_v30  ;;  %v3515_v61 = vadd.f32 %v3507_v53, %v3499_v12  ;;  %v3523_v51 = vmul.f32 %v3474_v31, %v17930_v56  ;;  %v3524_v8 = vmul.f32 %v3473_v55, %v17930_v56  ;;  %v18210_v30 = vld [vmem:[#allocation33_spill] sm:$0xff] }
 0x3bf   : > { %v3516_v27 = vadd.f32 %v3508_v32, %v3500_v23  ;;  %v12833_v44 = vadd.f32 %v2964_v60, %v12581_v35  ;;  %v2900_v58 = vmul.f32 %v2860_v22, %v17963_v46  ;;  %4307 = vrot.lane.b32.xlu1 %v18210_v30, %s8437_s17  ;;  %v12839_v19 = vadd.f32 %v18211_v33, %v3545_v57  ;;  %v12846_v23 = vpop.permute.xlu0 %3649  ;;  %v18216_v60 = vld [vmem:[#allocation139_spill] sm:$0xff]  ;;  %v18217_v31 = vld [vmem:[#allocation193_spill] sm:$0xff] }
 0x3c0   : > { %v12842_v53 = vadd.f32 %v18213_v39, %v3546_v29  ;;  %v4960_v32 = vmul.f32 %v4860_v38, %v12762_v40  ;;  %v2412_v24 = vadd.f32 %v2404_v1, %v12567_v48  ;;  %v3531_v43 = vadd.f32 %v3523_v51, %v3515_v61  ;;  %18215 = vst [vmem:[#allocation141_spill] sm:$0xff] %v12846_v23  ;;  %v18218_v57 = vld [vmem:[#allocation29_spill] sm:$0xff]  ;;  %v18220_v1 = vld [vmem:[#allocation83_spill] sm:$0xff] }
 0x3c1   : > { %18212 = vst [vmem:[#allocation13_spill] sm:$0xff] %v12839_v19  ;;  %v3532_v12 = vadd.f32 %v3524_v8, %v3516_v27  ;;  %v2986_v35 = vadd.f32 %v2978_v13, %v12590_v59  ;;  %v3029_v22 = vmul.f32 %v3027_v37, %v18216_v60  ;;  %v3030_v55 = vmul.f32 %v3026_v17, %v18216_v60  ;;  %v18219_v33 = vld [vmem:[#allocation85_spill] sm:$0xff]  ;;  %v18221_v27 = vld [vmem:[#allocation208_spill] sm:$0xff]  ;;  %v12860_v8 = vpop.permute.xlu1 %4109  ;;  %v18269_v19 = vld [vmem:[#allocation30_spill] sm:$0xff] }
 0x3c2   : > { %18214 = vst [vmem:[#allocation101_spill] sm:$0xff] %v12842_v53  ;;  %v4055_v29 = vsel %vm1721_vm2, %v18156_v62, %v18217_v31  ;;  %3827 = vrot.lane.b32.xlu0 %v18218_v57, %s8452_s14  ;;  %v2907_v48 = vadd.f32 %v2899_v42, %v18219_v33  ;;  %v3547_v61 = vadd.f32 %v18220_v1, %v3531_v43  ;;  %v18222_v13 = vld [vmem:[#allocation201_spill] sm:$0xff]  ;;  %v4895_v17 = vsel %vm4889_vm10, %v4860_v38, 0.0  ;;  %v18224_v62 = vld [vmem:[#allocation194_spill] sm:$0xff] }
 0x3c3   : > { %v3548_v51 = vadd.f32 %v18221_v27, %v3532_v12  ;;  %v12864_v59 = vrot.slane %v12683_v10, %v18222_v13  ;;  %v12868_v37 = vadd.f32 %v2900_v58, %v12624_v45  ;;  %v4054_v42 = vsel %vm1721_vm2, %v18217_v31, %v18224_v62  ;;  %3667 = vrot.lane.b32.xlu1 %v18210_v30, %s8443_s11  ;;  %v18225_v39 = vld [vmem:[#allocation53_spill] sm:$0xff]  ;;  %v18228_v45 = vld [vmem:[#allocation174_spill] sm:$0xff]  ;;  %v18229_v58 = vld [vmem:[#allocation207_spill] sm:$0xff]  ;;  %v12889_v31 = vpop.permute.xlu0 %4037 }
 0x3c4   : > { %v12878_v43 = vrot.slane %v12683_v10, %v18225_v39  ;;  %v4994_v12 = vsel %vm4889_vm10, %v4960_v32, 0.0  ;;  %v4058_v57 = vmul.f32 %v4055_v29, %v18164_v9  ;;  %v12883_v38 = vadd.f32 %v18191_v49, %v2412_v24  ;;  %18230 = vst [vmem:[#allocation105_spill] sm:$0xff] %v12889_v31  ;;  %v18231_v10 = vld [vmem:[#allocation102_spill] sm:$0xff]  ;;  %v18235_v40 = vld [vmem:[#allocation49_spill] sm:$0xff] }
 0x3c5   : > { %18223 = vst [vmem:[#allocation34_spill] sm:$0xff] %v12864_v59  ;;  %v3964_v33 = vsel %vm1624_vm5, %v18229_v58, %v18228_v45  ;;  %v12892_v1 = vadd.f32 %v3029_v22, %v12608_v36  ;;  %v12894_v27 = vadd.f32 %v3030_v55, %v2986_v35  ;;  %v12899_v32 = vadd.f32 %v18231_v10, %v3547_v61  ;;  %v18233_v24 = vld [vmem:[#allocation86_spill] sm:$0xff]  ;;  %v18236_v58 = vld [vmem:[#allocation120_spill] sm:$0xff]  ;;  %v12910_v35 = vpop.permute.xlu1 %3007  ;;  %v18259_v53 = vld [vmem:[#allocation109_spill] sm:$0xff] }
 0x3c6   : > { %18226 = vst [vmem:[#allocation180_spill] sm:$0xff] %v12878_v43  ;;  %18227 = vst [vmem:[#allocation159_spill] sm:$0xff] %v12883_v38  ;;  %4389 = vrot.lane.b32.xlu0 %v18209_v47, %s8443_s11  ;;  %v12902_v29 = vadd.f32 %v18233_v24, %v3548_v51  ;;  %v4059_v11 = vmul.f32 %v4054_v42, %v18164_v9  ;;  %v4073_v45 = vmul.f32 %v4054_v42, %v18235_v40  ;;  %v18237_v22 = vld [vmem:[#allocation150_spill] sm:$0xff]  ;;  %v18239_v42 = vld [vmem:[#allocation23_spill] sm:$0xff] }
 0x3c7   : > { %18232 = vst [vmem:[#allocation163_spill] sm:$0xff] %v12899_v32  ;;  %v2937_v36 = vsel %vm2149_vm6, %v18165_v25, %v18236_v58  ;;  %v12913_v55 = vsub.s32 7, %v18237_v22  ;;  %v4896_v61 = vadd.f32 %v4895_v17, %v12602_v16  ;;  %v4995_v10 = vadd.f32 %v4994_v12, %v12605_v52  ;;  %3817 = vrot.lane.b32.xlu1 %v18239_v42, %s8452_s14  ;;  %v18240_v25 = vld [vmem:[#allocation71_spill] sm:$0xff]  ;;  %v18241_v43 = vld [vmem:[#allocation217_spill] sm:$0xff]  ;;  %v12932_v52 = vpop.permute.xlu0 %4189 }
 0x3c8   : > { %18234 = vst [vmem:[#allocation176_spill] sm:$0xff] %v12902_v29  ;;  %v2386_v51 = vmul.f32 %v18012_v4, %v12786_v34  ;;  %v3995_v24 = vmul.f32 %v3964_v33, %v18048_v50  ;;  %v12923_v39 = vadd.f32 %v4058_v57, %v12706_v63  ;;  %v4861_v13 = vmul.f32 %v18240_v25, %v12883_v38  ;;  %v18243_v63 = vld [vmem:[#allocation97_spill] sm:$0xff] }
 0x3c9   : > { %18238 = vst [vmem:[#allocation58_spill] sm:$0xff] %v12913_v55  ;;  %v4009_v22 = vmul.f32 %v3964_v33, %v18108_v18  ;;  %v2345_v16 = vsel %vm2343_vm9, %v18197_v54, %v18241_v43  ;;  %18242 = vst [vmem:[#allocation215_spill] sm:$0xff] %v12932_v52  ;;  %v2951_v50 = vmul.f32 %v2937_v36, %v18033_v28  ;;  %v18244_v33 = vld [vmem:[#allocation209_spill] sm:$0xff]  ;;  %v12951_v25 = vpop.permute.xlu1 %3083 }
 0x3ca   : > { %v2965_v34 = vmul.f32 %v2937_v36, %v18085_v20  ;;  %v2979_v17 = vmul.f32 %v2937_v36, %v18135_v26  ;;  %v2344_v12 = vsel %vm2343_vm9, %v18241_v43, %v18243_v63  ;;  %3751 = vrot.lane.b32.xlu0 %v18210_v30, %s8448_s26  ;;  %v4067_v57 = vadd.f32 %v4059_v11, %v12688_v15  ;;  %v8282_v36 = vld [vmem:[#allocation7] sm:$0xff] }
 0x3cb   : > { %v12945_v54 = vadd.f32 %v4073_v45, %v12746_v7  ;;  %v3025_v42 = vsel %vm2246_vm8, %v18201_v6, %v18244_v33  ;;  %18245 = vst [vmem:[#allocation45_spill] sm:$0xff] %v12951_v25  ;;  %v12954_v59 = vrot.slane %v8282_v36, %v12913_v55  ;;  %v18247_v43 = vld [vmem:[#allocation77_spill] sm:$0xff]  ;;  %v12958_v14 = vadd.f32 %v3995_v24, %v12664_v5  ;;  %v12971_v5 = vpop.permute.xlu0 %3011 }
 0x3cc   : > { %v2394_v29 = vadd.f32 %v2386_v51, %v18247_v43  ;;  %v18248_v15 = vld [vmem:[#allocation169_spill] sm:$0xff]  ;;  %v2405_v11 = vmul.f32 %v18158_v41, %v2345_v16  ;;  %v4897_v45 = vsel %vm4889_vm10, %v4861_v13, 0.0  ;;  %v4961_v36 = vmul.f32 %v4861_v13, %v12883_v38  ;;  %18250 = vst [vmem:[#allocation92_spill] sm:$0xff] %v12971_v5  ;;  %v18251_v43 = vld [vmem:[#allocation20_spill] sm:$0xff]  ;;  %v18253_v38 = vld [vmem:[#allocation171_spill] sm:$0xff] }
 0x3cd   : > { %18246 = vst [vmem:[#allocation196_spill] sm:$0xff] %v12954_v59  ;;  %v3024_v7 = vsel %vm2246_vm8, %v18244_v33, %v18248_v15  ;;  %v18249_v6 = vld [vmem:[#allocation41_spill] sm:$0xff]  ;;  %v4017_v55 = vadd.f32 %v4009_v22, %v12674_v3  ;;  %v2406_v51 = vmul.f32 %v18158_v41, %v2344_v12  ;;  %v12973_v24 = vadd.f32 %v2951_v50, %v2907_v48  ;;  %v18252_v33 = vld [vmem:[#allocation148_spill] sm:$0xff]  ;;  %v18254_v3 = vld [vmem:[#allocation162_spill] sm:$0xff] }
 0x3ce   : > { %4205 = vrot.lane.b32.xlu1 %v18249_v6, %s8429_s13  ;;  %v12976_v59 = vadd.f32 %v2965_v34, %v18251_v43  ;;  %v2987_v56 = vadd.f32 %v2979_v17, %v18252_v33  ;;  %v3031_v32 = vmul.f32 %v3025_v42, %v18216_v60  ;;  %4319 = vrot.lane.b32.xlu0 %v18204_v2, %s8437_s17  ;;  %v18255_v50 = vld [vmem:[#allocation178_spill] sm:$0xff]  ;;  %v12995_v17 = vpop.permute.xlu1 %3573  ;;  %s16313_s13 = scalar_lea.vmem [#allocation9], %s7833_s30 }
 0x3cf   : > { %v3032_v13 = vmul.f32 %v3024_v7, %v18216_v60  ;;  %v4052_v22 = vsel %vm1721_vm2, %v18254_v3, %v18253_v38  ;;  %v4053_v48 = vsel %vm1721_vm2, %v18224_v62, %v18254_v3  ;;  %v2936_v34 = vsel %vm2149_vm6, %v18236_v58, %v18255_v50  ;;  %v18257_v43 = vld [vmem:[#allocation170_spill] sm:$0xff]  ;;  %v18260_v62 = vld [vmem:[#allocation35_spill] sm:$0xff]  ;;  %v18261_v58 = vld [vmem:[#allocation160_spill] sm:$0xff] }
 0x3d0   : > { %v12997_v12 = vadd.f32 %v4897_v45, %v4896_v61  ;;  %v18258_v33 = vunpack.i.l.bf16 %v18257_v43  ;;  %v2387_v23 = vmul.f32 %v18012_v4, %v2345_v16  ;;  %v2413_v6 = vadd.f32 %v2405_v11, %v18259_v53 }
 0x3d1   : > { %v4996_v3 = vsel %vm4889_vm10, %v4961_v36, 0.0  ;;  %v3045_v5 = vmul.f32 %v3025_v42, %v18261_v58  ;;  %v3046_v61 = vmul.f32 %v3024_v7, %v18261_v58  ;;  %v2414_v45 = vadd.f32 %v2406_v51, %v2394_v29  ;;  %v18266_v51 = vld [vmem:[#allocation46_spill] sm:$0xff] }
 0x3d2   : > { %18256 = vst [vmem:[#allocation90_spill] sm:$0xff] %v12997_v12  ;;  %v2355_v52 = vsel %vm2343_vm9, %v18243_v63, %v18258_v33  ;;  %4311 = vrot.lane.b32.xlu1 %v18260_v62, %s8437_s17  ;;  %v13011_v12 = vpop.permute.xlu0 %3579  ;;  %v4060_v43 = vmul.f32 %v4053_v48, %v18164_v9  ;;  %v4061_v63 = vmul.f32 %v4052_v22, %v18164_v9  ;;  %v13023_v29 = vpop.permute.xlu1 %4035 }
 0x3d3   : > { %18262 = vst [vmem:[#allocation115_spill] sm:$0xff] %v13011_v12  ;;  %v4074_v16 = vmul.f32 %v4053_v48, %v18235_v40  ;;  %v2980_v53 = vmul.f32 %v2936_v34, %v18135_v26  ;;  %4395 = vrot.lane.b32.xlu0 %v18260_v62, %s8443_s11  ;;  %v13019_v11 = vadd.f32 %v3031_v32, %v2987_v56  ;;  %18264 = vst [vmem:[#allocation195_spill] sm:$0xff] %v13023_v29  ;;  %v18267_v12 = vld [vmem:[#allocation165_spill] sm:$0xff] }
 0x3d4   : > { %v2407_v42 = vmul.f32 %v18158_v41, %v2355_v52  ;;  %v4075_v7 = vmul.f32 %v4052_v22, %v18235_v40  ;;  %v13025_v36 = vadd.f32 %v4996_v3, %v4995_v10  ;;  %v4089_v33 = vmul.f32 %v4052_v22, %v18266_v51 }
 0x3d5   : > { %18263 = vst [vmem:[#allocation200_spill] sm:$0xff] %v13019_v11  ;;  %v2395_v4 = vadd.f32 %v2387_v23, %v18267_v12  ;;  %v13030_v48 = vadd.f32 %v18191_v49, %v2413_v6  ;;  %v13035_v56 = vadd.f32 %v3045_v5, %v12892_v1  ;;  %v13038_v32 = vadd.f32 %v3046_v61, %v12894_v27  ;;  %v18274_v23 = vld [vmem:[#allocation122_spill] sm:$0xff]  ;;  %v18275_v61 = vld [vmem:[#allocation68_spill] sm:$0xff] }
 0x3d6   : > { %18265 = vst [vmem:[#allocation181_spill] sm:$0xff] %v13025_v36  ;;  %3747 = vrot.lane.b32.xlu1 %v18269_v19, %s8448_s26  ;;  %v13041_v52 = vadd.f32 %v18191_v49, %v2414_v45  ;;  %v2952_v10 = vmul.f32 %v2936_v34, %v18033_v28  ;;  %v13044_v22 = vpop.permute.xlu0 %3655  ;;  %v13047_v12 = vadd.f32 %v4060_v43, %v18274_v23  ;;  %v18276_v45 = vunpack.i.h.bf16 %v18275_v61  ;;  %v18277_v11 = vld [vmem:[#allocation116_spill] sm:$0xff]  ;;  %v18278_v23 = vld [vmem:[#allocation81_spill] sm:$0xff]  ;;  %v18286_v61 = vld [vmem:[#allocation186_spill] sm:$0xff] }
 0x3d7   : > { %18268 = vst [vmem:[#allocation132_spill] sm:$0xff] %v13030_v48  ;;  %18270 = vst [vmem:[#allocation197_spill] sm:$0xff] %v13035_v56  ;;  %v13049_v6 = vadd.f32 %v4061_v63, %v4017_v55  ;;  %v4082_v3 = vadd.f32 %v4074_v16, %v12923_v39  ;;  %v2988_v1 = vadd.f32 %v2980_v53, %v12833_v44  ;;  %3831 = vrot.lane.b32.xlu0 %v18269_v19, %s8452_s14  ;;  %v18279_v55 = vld [vmem:[#allocation84_spill] sm:$0xff]  ;;  %v13069_v44 = vpop.permute.xlu1 %4113  ;;  %v18283_v16 = vld [vmem:[#allocation26_spill] sm:$0xff] }
 0x3d8   : > { %18271 = vst [vmem:[#allocation190_spill] sm:$0xff] %v13038_v32  ;;  %18272 = vst [vmem:[#allocation151_spill] sm:$0xff] %v13041_v52  ;;  %v13055_v27 = vadd.f32 %v4075_v7, %v4067_v57  ;;  %v2966_v5 = vmul.f32 %v2936_v34, %v18085_v20  ;;  %v3962_v43 = vsel %vm1624_vm5, %v18277_v11, %v18276_v45  ;;  %v18282_v34 = vld [vmem:[#allocation143_spill] sm:$0xff]  ;;  %v18284_v53 = vld [vmem:[#allocation18_spill] sm:$0xff] }
 0x3d9   : > { %18273 = vst [vmem:[#allocation125_spill] sm:$0xff] %v13044_v22  ;;  %v13067_v39 = vsel %vm2246_vm8, %v18279_v55, %v18278_v23  ;;  %v13072_v19 = vadd.f32 %v4089_v33, %v12945_v54  ;;  %v13074_v57 = vadd.f32 %v2407_v42, %v2395_v4  ;;  %v4862_v63 = vmul.f32 %v18282_v34, %v13030_v48  ;;  %v18287_v54 = vld [vmem:[#allocation199_spill] sm:$0xff]  ;;  %v18288_v33 = vld [vmem:[#allocation184_spill] sm:$0xff]  ;;  %v18290_v32 = vld [vmem:[#allocation138_spill] sm:$0xff] }
 0x3da   : > { %18280 = vst [vmem:[#allocation192_spill] sm:$0xff] %v13067_v39  ;;  %3823 = vrot.lane.b32.xlu1 %v18283_v16, %s8452_s14  ;;  %v13082_v11 = vmul.f32 %v18284_v53, %v13041_v52  ;;  %v13085_v7 = vadd.f32 %v2952_v10, %v12868_v37  ;;  %v4010_v45 = vmul.f32 %v18286_v61, %v18108_v18  ;;  %v13093_v42 = vpop.permute.xlu0 %4117  ;;  %v18291_v10 = vld [vmem:[#allocation36_spill] sm:$0xff]  ;;  %v18292_v61 = vld [vmem:[#allocation161_spill] sm:$0xff]  ;;  %v18299_v52 = vld [vmem:[#allocation175_spill] sm:$0xff] }
 0x3db   : > { %18281 = vst [vmem:[#allocation43_spill] sm:$0xff] %v13074_v57  ;;  %v3598_v4 = vsel %vm2052_vm7, %v18288_v33, %v18287_v54  ;;  %18289 = vst [vmem:[#allocation40_spill] sm:$0xff] %v13093_v42  ;;  %v4011_v34 = vmul.f32 %v3962_v43, %v18108_v18  ;;  %v3040_v16 = vadd.f32 %v3032_v13, %v2988_v1  ;;  %4397 = vrot.lane.b32.xlu0 %v18291_v10, %s8443_s11  ;;  %v18294_v18 = vld [vmem:[#allocation153_spill] sm:$0xff]  ;;  %v18295_v13 = vld [vmem:[#allocation154_spill] sm:$0xff]  ;;  %v13119_v49 = vpop.permute.xlu1 %3009 }
 0x3dc   : > { %18285 = vst [vmem:[#allocation14_spill] sm:$0xff] %v13082_v11  ;;  %v3048_v53 = vmul.f32 %v13067_v39, %v18261_v58  ;;  %v4051_v37 = vsel %vm1721_vm2, %v18253_v38, %v18290_v32  ;;  %v2974_v36 = vadd.f32 %v2966_v5, %v18292_v61  ;;  %v13109_v56 = vsel %vm2246_vm8, %v18248_v15, %v18279_v55  ;;  %v18296_v43 = vld [vmem:[#allocation158_spill] sm:$0xff]  ;;  %v18298_v61 = vld [vmem:[#allocation47_spill] sm:$0xff] }
 0x3dd   : > { %18293 = vst [vmem:[#allocation133_spill] sm:$0xff] %v13109_v56  ;;  %v4139_v1 = vsel %vm1818_vm4, %v18295_v13, %v18294_v18  ;;  %v3599_v38 = vsel %vm2052_vm7, %v18296_v43, %v18288_v33  ;;  %v18297_v57 = vld [vmem:[#allocation62_spill] sm:$0xff]  ;;  %v8112_v11 = vunpack.i.l.bf16 %v18298_v61  ;;  %v18300_v28 = vld [vmem:[#allocation103_spill] sm:$0xff]  ;;  %v13134_v33 = vsel %vm4889_vm10, %v4862_v63, 0.0 }
 0x3de   : > { %v3602_v5 = vmul.f32 %v3598_v4, %v18297_v57  ;;  %v2934_v15 = vsel %vm2149_vm6, %v18300_v28, %v18299_v52  ;;  %v2935_v55 = vsel %vm2149_vm6, %v18255_v50, %v18300_v28  ;;  %4313 = vrot.lane.b32.xlu1 %v18291_v10, %s8437_s17  ;;  %18301 = vst [vmem:[#allocation107_spill] sm:$0xff] %v13134_v33  ;;  %v18303_v43 = vld [vmem:[#allocation123_spill] sm:$0xff]  ;;  %v13141_v46 = vpop.permute.xlu0 %4193  ;;  %v18310_v33 = vld [vmem:[#allocation121_spill] sm:$0xff] }
 0x3df   : > { %v13137_v4 = vmul.f32 %v4862_v63, %v13030_v48  ;;  %v4018_v22 = vadd.f32 %v4010_v45, %v18303_v43  ;;  %v4090_v41 = vmul.f32 %v4051_v37, %v18266_v51  ;;  %18304 = vst [vmem:[#allocation88_spill] sm:$0xff] %v13141_v46  ;;  %v13144_v31 = vadd.f32 %v4011_v34, %v12958_v14  ;;  %v18306_v63 = vld [vmem:[#allocation51_spill] sm:$0xff]  ;;  %v13158_v34 = vpop.permute.xlu1 %3087 }
 0x3e0   : > { %v3033_v28 = vmul.f32 %v13109_v56, %v18216_v60  ;;  %v3034_v50 = vmul.f32 %v13067_v39, %v18216_v60  ;;  %v13150_v10 = vadd.f32 %v3048_v53, %v3040_v16  ;;  %3755 = vrot.lane.b32.xlu0 %v18260_v62, %s8448_s26  ;;  %v4142_v45 = vmul.f32 %v4139_v1, %v18306_v63 }
 0x3e1   : > { %18302 = vst [vmem:[#allocation203_spill] sm:$0xff] %v13137_v4  ;;  %v3601_v43 = vmul.f32 %v3599_v38, %v18297_v57  ;;  %v2981_v48 = vmul.f32 %v2935_v55, %v18135_v26  ;;  %v2982_v14 = vmul.f32 %v2934_v15, %v18135_v26  ;;  %18307 = vst [vmem:[#allocation94_spill] sm:$0xff] %v13158_v34  ;;  %v18308_v4 = vld [vmem:[#allocation76_spill] sm:$0xff] }
 0x3e2   : > { %18305 = vst [vmem:[#allocation112_spill] sm:$0xff] %v13150_v10  ;;  %v13161_v56 = vadd.f32 %v3602_v5, %v18308_v4  ;;  %v4062_v39 = vmul.f32 %v4051_v37, %v18164_v9  ;;  %v4076_v53 = vmul.f32 %v4051_v37, %v18235_v40  ;;  %v4140_v16 = vsel %vm1818_vm4, %v8112_v11, %v18295_v13  ;;  %v18311_v4 = vld [vmem:[#allocation129_spill] sm:$0xff]  ;;  %v13179_v46 = vpop.permute.xlu0 %3091  ;;  %v18313_v34 = vld [vmem:[#allocation140_spill] sm:$0xff] }
 0x3e3   : > { %3671 = vrot.lane.b32.xlu1 %v18260_v62, %s8443_s11  ;;  %v4098_v1 = vadd.f32 %v4090_v41, %v4082_v3  ;;  %v2933_v5 = vsel %vm2149_vm6, %v18299_v52, %v18310_v33  ;;  %v2944_v37 = vsel %vm2149_vm6, %v18310_v33, %v18311_v4  ;;  %18312 = vst [vmem:[#allocation166_spill] sm:$0xff] %v13179_v46  ;;  %v18314_v3 = vld [vmem:[#allocation42_spill] sm:$0xff] }
 0x3e4   : > { %18309 = vst [vmem:[#allocation69_spill] sm:$0xff] %v13161_v56  ;;  %v2967_v13 = vmul.f32 %v2935_v55, %v18085_v20  ;;  %v2968_v56 = vmul.f32 %v2934_v15, %v18085_v20  ;;  %v3597_v41 = vsel %vm2052_vm7, %v18287_v54, %v18313_v34  ;;  %v13191_v52 = vsel %vm1721_vm2, %v12830_v0, %v13023_v29  ;;  %v18315_v33 = vld [vmem:[#allocation134_spill] sm:$0xff]  ;;  %v13198_v20 = vpop.permute.xlu1 %3577  ;;  %v18316_v29 = vld [vmem:[#allocation27_spill] sm:$0xff] }
 0x3e5   : > { %4323 = vrot.lane.b32.xlu0 %v18314_v3, %s8437_s17  ;;  %v3609_v4 = vadd.f32 %v3601_v43, %v18315_v33  ;;  %v4141_v55 = vmul.f32 %v4140_v16, %v18306_v63  ;;  %v2989_v15 = vadd.f32 %v2981_v48, %v12976_v59  ;;  %v2990_v38 = vadd.f32 %v2982_v14, %v2974_v36  ;;  %v18319_v36 = vld [vmem:[#allocation59_spill] sm:$0xff] }
 0x3e6   : > { %v13200_v46 = vadd.f32 %v4062_v39, %v4018_v22  ;;  %v4084_v54 = vadd.f32 %v4076_v53, %v13047_v12  ;;  %v2983_v62 = vmul.f32 %v2933_v5, %v18135_v26  ;;  %v2984_v10 = vmul.f32 %v2944_v37, %v18135_v26  ;;  %v13217_v12 = vpop.permute.xlu0 %3657  ;;  %v18331_v26 = vld [vmem:[#allocation52_spill] sm:$0xff] }
 0x3e7   : > { %3825 = vrot.lane.b32.xlu1 %v18316_v29, %s8452_s14  ;;  %v18317_v43 = vunpack.i.h.bf16 %v18298_v61  ;;  %v3603_v59 = vmul.f32 %v3597_v41, %v18297_v57  ;;  %v3617_v48 = vmul.f32 %v3597_v41, %v18319_v36  ;;  %v4092_v22 = vmul.f32 %v13191_v52, %v18266_v51 }
 0x3e8   : > { %v2975_v39 = vadd.f32 %v2967_v13, %v12973_v24  ;;  %v2976_v14 = vadd.f32 %v2968_v56, %v13085_v7  ;;  %v4050_v29 = vsel %vm1721_vm2, %v18290_v32, %v12830_v0  ;;  %v3041_v53 = vadd.f32 %v3033_v28, %v2989_v15  ;;  %v13234_v56 = vpop.permute.xlu1 %3651  ;;  %v18320_v0 = vld [vmem:[#allocation128_spill] sm:$0xff] }
 0x3e9   : > { %v13211_v16 = vsel %vm1818_vm4, %v18317_v43, %v8112_v11  ;;  %v4150_v11 = vadd.f32 %v4142_v45, %v4098_v1  ;;  %4473 = vrot.lane.b32.xlu0 %v18209_v47, %s8448_s26  ;;  %v13227_v5 = vadd.f32 %v3034_v50, %v2990_v38  ;;  %v4138_v37 = vsel %vm1818_vm4, %v18294_v18, %v12860_v8  ;;  %v18322_v18 = vld [vmem:[#allocation37_spill] sm:$0xff] }
 0x3ea   : > { %18318 = vst [vmem:[#allocation93_spill] sm:$0xff] %v13211_v16  ;;  %v4149_v24 = vadd.f32 %v4141_v55, %v13072_v19  ;;  %v2991_v7 = vadd.f32 %v2983_v62, %v2975_v39  ;;  %v13236_v13 = vadd.f32 %v2984_v10, %v2976_v14  ;;  %v4137_v32 = vsel %vm1818_vm4, %v12860_v8, %v18320_v0  ;;  %v18323_v19 = vld [vmem:[#allocation114_spill] sm:$0xff]  ;;  %v13256_v1 = vpop.permute.xlu0 %4119  ;;  %v18329_v16 = vld [vmem:[#allocation147_spill] sm:$0xff] }
 0x3eb   : > { %v13246_v28 = vsel %vm2246_vm8, %v18278_v23, %v12910_v35  ;;  %4317 = vrot.lane.b32.xlu1 %v18322_v18, %s8437_s17  ;;  %v13251_v50 = vadd.f32 %v3603_v59, %v18323_v19  ;;  %v13253_v62 = vadd.f32 %v3617_v48, %v3609_v4  ;;  %v4063_v10 = vmul.f32 %v4050_v29, %v18164_v9  ;;  %v18325_v4 = vld [vmem:[#allocation50_spill] sm:$0xff]  ;;  %v18337_v18 = vld [vmem:[#allocation195_spill] sm:$0xff] }
 0x3ec   : > { %18321 = vst [vmem:[#allocation173_spill] sm:$0xff] %v13246_v28  ;;  %v4100_v45 = vadd.f32 %v4092_v22, %v4084_v54  ;;  %18324 = vst [vmem:[#allocation25_spill] sm:$0xff] %v13256_v1  ;;  %v4077_v8 = vmul.f32 %v4050_v29, %v18235_v40  ;;  %v4091_v38 = vmul.f32 %v4050_v29, %v18266_v51  ;;  %v13274_v43 = vpop.permute.xlu1 %4115  ;;  %v18327_v59 = vld [vmem:[#allocation214_spill] sm:$0xff]  ;;  %v18328_v29 = vld [vmem:[#allocation149_spill] sm:$0xff] }
 0x3ed   : > { %v4143_v23 = vmul.f32 %v4138_v37, %v18306_v63  ;;  %v13265_v41 = vsel %vm2246_vm8, %v12910_v35, %v13119_v49  ;;  %3835 = vrot.lane.b32.xlu0 %v18210_v30, %s8452_s14  ;;  %v4144_v33 = vmul.f32 %v4137_v32, %v18306_v63  ;;  %v4157_v55 = vmul.f32 %v4138_v37, %v18325_v4 }
 0x3ee   : > { %v4158_v15 = vmul.f32 %v4137_v32, %v18325_v4  ;;  %v3035_v54 = vmul.f32 %v13246_v28, %v18216_v60  ;;  %18326 = vst [vmem:[#allocation72_spill] sm:$0xff] %v13274_v43  ;;  %v3595_v35 = vsel %vm2052_vm7, %v12995_v17, %v18327_v59  ;;  %v3596_v48 = vsel %vm2052_vm7, %v18313_v34, %v12995_v17  ;;  %v13304_v32 = vpop.permute.xlu0 %4197 }
 0x3ef   : > { %v13288_v22 = vsel %vm1818_vm4, %v13093_v42, %v13256_v1  ;;  %v13294_v39 = vsel %vm1818_vm4, %v13069_v44, %v13274_v43  ;;  %4391 = vrot.lane.b32.xlu1 %v18210_v30, %s8443_s11  ;;  %v3049_v14 = vmul.f32 %v13246_v28, %v18261_v58  ;;  %v3064_v17 = vmul.f32 %v13265_v41, %v18328_v29  ;;  %v18338_v43 = vld [vmem:[#allocation112_spill] sm:$0xff] }
 0x3f0   : > { %v4152_v34 = vadd.f32 %v4144_v33, %v4100_v45  ;;  %v4160_v37 = vmul.f32 %v13294_v39, %v18325_v4  ;;  %v4071_v19 = vadd.f32 %v4063_v10, %v13144_v31  ;;  %v4085_v1 = vadd.f32 %v4077_v8, %v13049_v6  ;;  %v13321_v6 = vpop.permute.xlu1 %8115 }
 0x3f1   : > { %v4099_v61 = vadd.f32 %v4091_v38, %v13055_v27  ;;  %v13313_v28 = vsel %vm2343_vm9, %v12951_v25, %v18329_v16  ;;  %4403 = vrot.lane.b32.xlu0 %v18204_v2, %s8443_s11  ;;  %v3604_v45 = vmul.f32 %v3596_v48, %v18297_v57  ;;  %v3605_v33 = vmul.f32 %v3595_v35, %v18297_v57  ;;  %v18334_v25 = vld [vmem:[#allocation28_spill] sm:$0xff]  ;;  %v18336_v2 = vld [vmem:[#allocation105_spill] sm:$0xff] }
 0x3f2   : > { %18330 = vst [vmem:[#allocation65_spill] sm:$0xff] %v13313_v28  ;;  %v4176_v31 = vmul.f32 %v13288_v22, %v18331_v26  ;;  %v4168_v10 = vadd.f32 %v4160_v37, %v4152_v34  ;;  %18332 = vst [vmem:[#allocation19_spill] sm:$0xff] %v13321_v6  ;;  %v4165_v8 = vadd.f32 %v4157_v55, %v4149_v24  ;;  %v13334_v34 = vpop.permute.xlu0 %3093  ;;  %v18344_v55 = vld [vmem:[#allocation156_spill] sm:$0xff] }
 0x3f3   : > { %v4151_v27 = vadd.f32 %v4143_v23, %v4099_v61  ;;  %v13323_v38 = vadd.f32 %v4158_v15, %v4150_v11  ;;  %v3043_v30 = vadd.f32 %v3035_v54, %v2991_v7  ;;  %3829 = vrot.lane.b32.xlu1 %v18334_v25, %s8452_s14  ;;  %v13327_v16 = vadd.f32 %v3049_v14, %v3041_v53  ;;  %v18341_v61 = vld [vmem:[#allocation113_spill] sm:$0xff]  ;;  %v18342_v53 = vld [vmem:[#allocation63_spill] sm:$0xff] }
 0x3f4   : > { %v4048_v47 = vsel %vm1721_vm2, %v18337_v18, %v18336_v2  ;;  %v3072_v42 = vadd.f32 %v3064_v17, %v18338_v43  ;;  %18339 = vst [vmem:[#allocation211_spill] sm:$0xff] %v13334_v34  ;;  %v13336_v37 = vadd.f32 %v4176_v31, %v4168_v10  ;;  %v3116_v11 = vmul.f32 %v13313_v28, %v18341_v61  ;;  %v18343_v23 = vld [vmem:[#allocation35_spill] sm:$0xff]  ;;  %v18345_v15 = vld [vmem:[#allocation13_spill] sm:$0xff]  ;;  %v13355_v14 = vpop.permute.xlu1 %3089 }
 0x3f5   : > { %18333 = vst [vmem:[#allocation216_spill] sm:$0xff] %v13323_v38  ;;  %18335 = vst [vmem:[#allocation70_spill] sm:$0xff] %v13327_v16  ;;  %v3618_v24 = vmul.f32 %v3596_v48, %v18319_v36  ;;  %v3619_v25 = vmul.f32 %v3595_v35, %v18319_v36  ;;  %v3633_v7 = vmul.f32 %v3595_v35, %v18342_v53  ;;  %4479 = vrot.lane.b32.xlu0 %v18343_v23, %s8448_s26  ;;  %v18354_v23 = vld [vmem:[#allocation69_spill] sm:$0xff] }
 0x3f6   : > { %18340 = vst [vmem:[#allocation100_spill] sm:$0xff] %v13336_v37  ;;  %v3612_v18 = vadd.f32 %v3604_v45, %v18344_v55  ;;  %v13347_v54 = vadd.f32 %v3605_v33, %v18345_v15  ;;  %v4064_v43 = vmul.f32 %v13191_v52, %v18164_v9  ;;  %v4136_v48 = vsel %vm1818_vm4, %v18320_v0, %v13069_v44  ;;  %v18347_v45 = vld [vmem:[#allocation166_spill] sm:$0xff]  ;;  %v18350_v44 = vld [vmem:[#allocation32_spill] sm:$0xff]  ;;  %v18352_v15 = vld [vmem:[#allocation205_spill] sm:$0xff] }
 0x3f7   : > { %18346 = vst [vmem:[#allocation198_spill] sm:$0xff] %v13355_v14  ;;  %v4078_v35 = vmul.f32 %v13191_v52, %v18235_v40  ;;  %v4079_v17 = vmul.f32 %v4048_v47, %v18235_v40  ;;  %v13364_v33 = vsel %vm2343_vm9, %v18347_v45, %v13334_v34  ;;  %v18348_v9 = vld [vmem:[#allocation94_spill] sm:$0xff]  ;;  %4393 = vrot.lane.b32.xlu1 %v18350_v44, %s8443_s11  ;;  %v18351_v52 = vld [vmem:[#allocation92_spill] sm:$0xff]  ;;  %v13381_v34 = vpop.permute.xlu0 %3661  ;;  %v18357_v37 = vld [vmem:[#allocation191_spill] sm:$0xff] }
 0x3f8   : > { %v13370_v31 = vsel %vm2343_vm9, %v18348_v9, %v13355_v14  ;;  %v4093_v0 = vmul.f32 %v4048_v47, %v18266_v51  ;;  %v3019_v10 = vsel %vm2246_vm8, %v13119_v49, %v18351_v52  ;;  %v3124_v55 = vadd.f32 %v3116_v11, %v3072_v42  ;;  %18353 = vst [vmem:[#allocation146_spill] sm:$0xff] %v13381_v34  ;;  %v18355_v47 = vld [vmem:[#allocation41_spill] sm:$0xff] }
 0x3f9   : > { %18349 = vst [vmem:[#allocation16_spill] sm:$0xff] %v13370_v31  ;;  %v3132_v28 = vmul.f32 %v13370_v31, %v18352_v15  ;;  %v3626_v16 = vadd.f32 %v3618_v24, %v18354_v23  ;;  %v3627_v14 = vadd.f32 %v3619_v25, %v13251_v50  ;;  %v4159_v45 = vmul.f32 %v4136_v48, %v18325_v4  ;;  %v18356_v11 = vld [vmem:[#allocation73_spill] sm:$0xff]  ;;  %v3654_v50 = vpop.permute.xlu1 %3653 }
 0x3fa   : > { %v4173_v9 = vmul.f32 %v4136_v48, %v18331_v26  ;;  %4405 = vrot.lane.b32.xlu0 %v18355_v47, %s8443_s11  ;;  %v3036_v49 = vmul.f32 %v13265_v41, %v18216_v60  ;;  %v3594_v42 = vsel %vm2052_vm7, %v18327_v59, %v13198_v20  ;;  %v3148_v24 = vmul.f32 %v13364_v33, %v18356_v11 }
 0x3fb   : > { %v3140_v23 = vadd.f32 %v3132_v28, %v3124_v55  ;;  %v13398_v25 = vadd.f32 %v3633_v7, %v13253_v62  ;;  %v4072_v34 = vadd.f32 %v4064_v43, %v18357_v37  ;;  %v3050_v15 = vmul.f32 %v13265_v41, %v18261_v58  ;;  %3753 = vrot.lane.b32.xlu1 %v18350_v44, %s8448_s26  ;;  %v13413_v62 = vpop.permute.xlu0 %3735  ;;  %v18362_v41 = vld [vmem:[#allocation115_spill] sm:$0xff]  ;;  %v18367_v55 = vld [vmem:[#allocation101_spill] sm:$0xff] }
 0x3fc   : > { %v3051_v60 = vmul.f32 %v3019_v10, %v18261_v58  ;;  %v4086_v59 = vadd.f32 %v4078_v35, %v13200_v46  ;;  %v13407_v38 = vadd.f32 %v4079_v17, %v4071_v19  ;;  %v13409_v11 = vadd.f32 %v4093_v0, %v4085_v1  ;;  %v18363_v19 = vld [vmem:[#allocation38_spill] sm:$0xff] }
 0x3fd   : > { %v13411_v28 = vadd.f32 %v3148_v24, %v3140_v23  ;;  %v13416_v37 = vmul.f32 %v4136_v48, %v18306_v63  ;;  %v13418_v7 = vadd.f32 %v4159_v45, %v4151_v27  ;;  %v3593_v43 = vsel %vm2052_vm7, %v13198_v20, %v18362_v41  ;;  %v13436_v17 = vpop.permute.xlu1 %4039 }
 0x3fe   : > { %18358 = vst [vmem:[#allocation95_spill] sm:$0xff] %v13407_v38  ;;  %18359 = vst [vmem:[#allocation98_spill] sm:$0xff] %v13409_v11  ;;  %v3606_v46 = vmul.f32 %v3594_v42, %v18297_v57  ;;  %4483 = vrot.lane.b32.xlu0 %v18363_v19, %s8448_s26  ;;  %v13427_v1 = vadd.f32 %v4173_v9, %v4165_v8  ;;  %v13430_v35 = vadd.f32 %v3036_v49, %v13236_v13  ;;  %v18365_v9 = vld [vmem:[#allocation125_spill] sm:$0xff]  ;;  %v18376_v11 = vld [vmem:[#allocation215_spill] sm:$0xff] }
 0x3ff   : > { %18360 = vst [vmem:[#allocation79_spill] sm:$0xff] %v13411_v28  ;;  %18361 = vst [vmem:[#allocation44_spill] sm:$0xff] %v13416_v37  ;;  %v13433_v48 = vmul.f32 %v3019_v10, %v18328_v29  ;;  %v3620_v27 = vmul.f32 %v3594_v42, %v18319_v36  ;;  %v3058_v45 = vadd.f32 %v3050_v15, %v13227_v5  ;;  %4321 = vrot.lane.b32.xlu1 %v18355_v47, %s8437_s17  ;;  %v13455_v5 = vpop.permute.xlu0 %4199  ;;  %v18370_v38 = vld [vmem:[#allocation141_spill] sm:$0xff] }
 0x400   : > { %v13439_v20 = vadd.f32 %v3051_v60, %v3043_v30  ;;  %v3634_v0 = vmul.f32 %v3594_v42, %v18342_v53  ;;  %v4047_v8 = vsel %vm1721_vm2, %v18336_v2, %v13436_v17  ;;  %v3607_v13 = vmul.f32 %v3593_v43, %v18297_v57  ;;  %18366 = vst [vmem:[#allocation206_spill] sm:$0xff] %v13455_v5 }
 0x401   : > { %18364 = vst [vmem:[#allocation124_spill] sm:$0xff] %v13433_v48  ;;  %v3680_v10 = vsel %vm2149_vm6, %v18365_v9, %v13217_v12  ;;  %v4080_v30 = vmul.f32 %v4047_v8, %v18235_v40  ;;  %v4094_v60 = vmul.f32 %v4047_v8, %v18266_v51  ;;  %v13458_v15 = vadd.f32 %v3606_v46, %v18367_v55  ;;  %v4192_v28 = vpop.permute.xlu1 %4191  ;;  %v18369_v46 = vld [vmem:[#allocation61_spill] sm:$0xff] }
 0x402   : > { %v3621_v2 = vmul.f32 %v3593_v43, %v18319_v36  ;;  %v3635_v49 = vmul.f32 %v3593_v43, %v18342_v53  ;;  %4407 = vrot.lane.b32.xlu0 %v18314_v3, %s8443_s11  ;;  %v13465_v24 = vadd.f32 %v3620_v27, %v3612_v18  ;;  %v4146_v40 = vmul.f32 %v13294_v39, %v18306_v63 }
 0x403   : > { %18368 = vst [vmem:[#allocation118_spill] sm:$0xff] %v13458_v15  ;;  %v4088_v23 = vadd.f32 %v4080_v30, %v4072_v34  ;;  %v4102_v8 = vadd.f32 %v4094_v60, %v4086_v59  ;;  %v3642_v48 = vadd.f32 %v3634_v0, %v3626_v16  ;;  %v13470_v55 = vmul.f32 %v3680_v10, %v18369_v46  ;;  %v18372_v34 = vld [vmem:[#allocation40_spill] sm:$0xff]  ;;  %v13493_v42 = vpop.permute.xlu0 %3585 }
 0x404   : > { %v3683_v43 = vsel %vm2149_vm6, %v18370_v38, %v13234_v56  ;;  %v13480_v18 = vsel %vm1915_vm3, %v13304_v32, %v13455_v5  ;;  %4399 = vrot.lane.b32.xlu1 %v18363_v19, %s8443_s11  ;;  %v4148_v16 = vmul.f32 %v13288_v22, %v18306_v63  ;;  %v18373_v59 = vld [vmem:[#allocation72_spill] sm:$0xff]  ;;  %v3643_v38 = vadd.f32 %v3635_v49, %v3627_v14 }
 0x405   : > { %18371 = vst [vmem:[#allocation24_spill] sm:$0xff] %v13480_v18  ;;  %v13490_v27 = vsel %vm1818_vm4, %v18373_v59, %v18372_v34  ;;  %v18374_v0 = vld [vmem:[#allocation80_spill] sm:$0xff]  ;;  %v4154_v60 = vadd.f32 %v4146_v40, %v4102_v8  ;;  %v4162_v37 = vmul.f32 %v13288_v22, %v18325_v4  ;;  %v18377_v63 = vunpack.i.l.bf16 %v13321_v6  ;;  %v18378_v34 = vld [vmem:[#allocation31_spill] sm:$0xff]  ;;  %v13512_v22 = vpop.permute.xlu1 %3013 }
 0x406   : > { %v4104_v30 = vadd.f32 %v18374_v0, %v4088_v23  ;;  %v18375_v5 = vld [vmem:[#allocation64_spill] sm:$0xff]  ;;  %4557 = vrot.lane.b32.xlu0 %v18378_v34, %s8452_s14  ;;  %v3685_v23 = vmul.f32 %v3683_v43, %v18369_v46  ;;  %v3681_v14 = vsel %vm2149_vm6, %v3654_v50, %v18365_v9  ;;  %v4175_v40 = vmul.f32 %v13490_v27, %v18331_v26 }
 0x407   : > { %v3702_v3 = vmul.f32 %v3680_v10, %v18375_v5  ;;  %v4224_v15 = vsel %vm1915_vm3, %v18377_v63, %v18376_v11  ;;  %v3682_v10 = vsel %vm2149_vm6, %v13234_v56, %v3654_v50  ;;  %v4174_v63 = vmul.f32 %v13294_v39, %v18331_v26  ;;  %v18381_v50 = vld [vmem:[#allocation54_spill] sm:$0xff]  ;;  %v13533_v39 = vpop.permute.xlu0 %3737 }
 0x408   : > { %v13514_v49 = vadd.f32 %v4148_v16, %v4104_v30  ;;  %v13524_v8 = vsel %vm2246_vm8, %v18351_v52, %v13512_v22  ;;  %3833 = vrot.lane.b32.xlu1 %v18378_v34, %s8452_s14  ;;  %v13528_v56 = vadd.f32 %v4162_v37, %v4154_v60  ;;  %v4225_v9 = vmul.f32 %v4224_v15, %v18381_v50  ;;  %v18383_v16 = vld [vmem:[#allocation163_spill] sm:$0xff] }
 0x409   : > { %v3066_v43 = vmul.f32 %v13524_v8, %v18328_v29  ;;  %18382 = vst [vmem:[#allocation152_spill] sm:$0xff] %v13533_v39  ;;  %v13536_v59 = vadd.f32 %v3607_v13, %v18383_v16  ;;  %v13539_v0 = vadd.f32 %v3621_v2, %v13347_v54  ;;  %v3686_v52 = vmul.f32 %v3682_v10, %v18369_v46  ;;  %v13557_v10 = vpop.permute.xlu1 %3581 }
 0x40a   : > { %18379 = vst [vmem:[#allocation22_spill] sm:$0xff] %v13514_v49  ;;  %18380 = vst [vmem:[#allocation135_spill] sm:$0xff] %v13528_v56  ;;  %v3687_v30 = vmul.f32 %v3681_v14, %v18369_v46  ;;  %v3701_v37 = vmul.f32 %v3681_v14, %v18375_v5  ;;  %v3766_v15 = vsel %vm2246_vm8, %v13413_v62, %v13533_v39  ;;  %v18384_v60 = vmov 0.0   ;;  %v18386_v14 = vld [vmem:[#allocation216_spill] sm:$0xff] }
 0x40b   : > { %8125 = vrot.lane.b32.xlu0 %v18384_v60, %s8443_s11  ;;  %v3693_v13 = vadd.f32 %v3685_v23, %v13398_v25  ;;  %v13553_v54 = vmul.f32 %v13490_v27, %v18325_v4  ;;  %v3118_v2 = vmul.f32 %v13370_v31, %v18341_v61  ;;  %v3074_v34 = vadd.f32 %v3066_v43, %v3058_v45  ;;  %v18387_v39 = vld [vmem:[#allocation88_spill] sm:$0xff]  ;;  %v18388_v23 = vld [vmem:[#allocation37_spill] sm:$0xff] }
 0x40c   : > { %v4182_v16 = vadd.f32 %v4174_v63, %v18386_v14  ;;  %v4183_v6 = vadd.f32 %v4175_v40, %v13418_v7  ;;  %v4222_v56 = vsel %vm1915_vm3, %v4192_v28, %v18387_v39  ;;  %v3592_v25 = vsel %vm2052_vm7, %v18362_v41, %v13557_v10  ;;  %4401 = vrot.lane.b32.xlu1 %v18388_v23, %s8443_s11  ;;  %v18389_v31 = vld [vmem:[#allocation205_spill] sm:$0xff]  ;;  %v13574_v40 = vpop.permute.xlu0 %4123  ;;  %s7731_s11 = scalar_lea.sflag [#allocation6], %s8630_s20 }
 0x40d   : > { %18385 = vst [vmem:[#allocation104_spill] sm:$0xff] %v13553_v54  ;;  %v3134_v45 = vmul.f32 %v13364_v33, %v18389_v31  ;;  %v4233_v43 = vadd.f32 %v4225_v9, %v13427_v1  ;;  %v3126_v63 = vadd.f32 %v3118_v2, %v3074_v34  ;;  %v3636_v7 = vmul.f32 %v3592_v25, %v18342_v53  ;;  %v18390_v54 = vld [vmem:[#allocation60_spill] sm:$0xff]  ;;  %v18392_v2 = vld [vmem:[#allocation55_spill] sm:$0xff] }
 0x40e   : > { %v3694_v14 = vadd.f32 %v3686_v52, %v3642_v48  ;;  %v3695_v49 = vadd.f32 %v3687_v30, %v3643_v38  ;;  %v3709_v4 = vadd.f32 %v3701_v37, %v3693_v13  ;;  %v4223_v41 = vsel %vm1915_vm3, %v18376_v11, %v4192_v28  ;;  %v3660_v48 = vpop.permute.xlu1 %3659  ;;  %v18393_v11 = vld [vmem:[#allocation146_spill] sm:$0xff] }
 0x40f   : > { %4561 = vrot.lane.b32.xlu0 %v18350_v44, %s8452_s14  ;;  %v18391_v26 = vunpack.i.h.bf16 %v18390_v54  ;;  %v4227_v9 = vmul.f32 %v4222_v56, %v18381_v50  ;;  %v4241_v34 = vmul.f32 %v4222_v56, %v18392_v2  ;;  %v3644_v38 = vadd.f32 %v3636_v7, %v13465_v24  ;;  %v18396_v24 = vld [vmem:[#allocation56_spill] sm:$0xff] }
 0x410   : > { %v4244_v52 = vmul.f32 %v13480_v18, %v18392_v2  ;;  %v13594_v28 = vsel %vm2149_vm6, %v3660_v48, %v18393_v11  ;;  %v13599_v30 = vsel %vm2149_vm6, %v13217_v12, %v3660_v48  ;;  %v4258_v56 = vmul.f32 %v13480_v18, %v18396_v24  ;;  %v13611_v7 = vpop.permute.xlu0 %3097  ;;  %v18397_v11 = vld [vmem:[#allocation66_spill] sm:$0xff] }
 0x411   : > { %v4046_v1 = vsel %vm1721_vm2, %v13436_v17, %v18391_v26  ;;  %v18394_v26 = vld [vmem:[#allocation33_spill] sm:$0xff]  ;;  %v13603_v17 = vadd.f32 %v3134_v45, %v3126_v63  ;;  %v4226_v37 = vmul.f32 %v4223_v41, %v18381_v50  ;;  %v3696_v13 = vadd.f32 %v13470_v55, %v3644_v38  ;;  %v18398_v38 = vld [vmem:[#allocation139_spill] sm:$0xff] }
 0x412   : > { %4475 = vrot.lane.b32.xlu1 %v18394_v26, %s8448_s26  ;;  %v3703_v54 = vmul.f32 %v13599_v30, %v18375_v5  ;;  %v3704_v12 = vmul.f32 %v13594_v28, %v18375_v5  ;;  %v3710_v48 = vadd.f32 %v3702_v3, %v3694_v14  ;;  %v3717_v45 = vmul.f32 %v13599_v30, %v18397_v11  ;;  %v4196_v18 = vpop.permute.xlu1 %4195 }
 0x413   : > { %18395 = vst [vmem:[#allocation21_spill] sm:$0xff] %v13603_v17  ;;  %v3718_v63 = vmul.f32 %v13594_v28, %v18397_v11  ;;  %4489 = vrot.lane.b32.xlu0 %v18355_v47, %s8448_s26  ;;  %v4235_v41 = vadd.f32 %v4227_v9, %v4183_v6  ;;  %v4249_v55 = vadd.f32 %v4241_v34, %v4233_v43 }
 0x414   : > { %v3770_v26 = vmul.f32 %v3766_v15, %v18398_v38  ;;  %v13622_v17 = vadd.f32 %v3703_v54, %v3695_v49  ;;  %v13624_v31 = vadd.f32 %v3704_v12, %v3696_v13  ;;  %v13626_v5 = vadd.f32 %v3717_v45, %v3709_v4  ;;  %v13644_v43 = vpop.permute.xlu0 %3665 }
 0x415   : > { %v3726_v3 = vadd.f32 %v3718_v63, %v3710_v48  ;;  %v13631_v14 = vsel %vm1915_vm3, %v4196_v18, %v13304_v32  ;;  %v3052_v6 = vmul.f32 %v13524_v8, %v18261_v58  ;;  %v4221_v49 = vsel %vm1915_vm3, %v18387_v39, %v4196_v18  ;;  %18399 = vst [vmem:[#allocation91_spill] sm:$0xff] %v13644_v43  ;;  %v18400_v48 = vld [vmem:[#allocation100_spill] sm:$0xff] }
 0x416   : > { %8120 = vrot.lane.b32.xlu1 %v18384_v60, %s8437_s17  ;;  %v4243_v4 = vmul.f32 %v13631_v14, %v18392_v2  ;;  %v4257_v15 = vmul.f32 %v13631_v14, %v18396_v24  ;;  %v4234_v32 = vadd.f32 %v4226_v37, %v4182_v16  ;;  %v4228_v9 = vmul.f32 %v4221_v49, %v18381_v50  ;;  %v3016_v12 = vpop.permute.xlu1 %3015  ;;  %v18401_v63 = vld [vmem:[#allocation48_spill] sm:$0xff]  ;;  %s7745_s17 = sshll.u32 %s16313_s13, 4  ;;  %s16329_s17 = int_to_ptr.vmem [resolvable:$true] %s7745_s17 }
 0x417   : > { %v4242_v34 = vmul.f32 %v4221_v49, %v18392_v2  ;;  %4567 = vrot.lane.b32.xlu0 %v18363_v19, %s8452_s14  ;;  %v13650_v8 = vadd.f32 %v3770_v26, %v3726_v3  ;;  %v3608_v18 = vmul.f32 %v3592_v25, %v18297_v57  ;;  %v3622_v39 = vmul.f32 %v3592_v25, %v18319_v36  ;;  %v18402_v26 = vld [vmem:[#allocation185_spill] sm:$0xff] }
 0x418   : > { %v13654_v13 = vadd.f32 %v4243_v4, %v4235_v41  ;;  %v4265_v54 = vadd.f32 %v4257_v15, %v4249_v55  ;;  %v4236_v45 = vadd.f32 %v4228_v9, %v18400_v48  ;;  %v3017_v37 = vsel %vm2246_vm8, %v13512_v22, %v3016_v12  ;;  %v13669_v49 = vpop.permute.xlu0 %3743 }
 0x419   : > { %v4250_v16 = vadd.f32 %v4242_v34, %v4234_v32  ;;  %v3028_v19 = vsel %vm2246_vm8, %v3016_v12, %v18401_v63  ;;  %v3060_v25 = vadd.f32 %v3052_v6, %v13430_v35  ;;  %v3067_v55 = vmul.f32 %v3017_v37, %v18328_v29  ;;  %v18403_v34 = vld [vmem:[#allocation176_spill] sm:$0xff]  ;;  %v18404_v12 = vld [vmem:[#allocation213_spill] sm:$0xff] }
 0x41a   : > { %4477 = vrot.lane.b32.xlu1 %v18350_v44, %s8448_s26  ;;  %v4281_v41 = vadd.f32 %v18402_v26, %v4265_v54  ;;  %v3068_v3 = vmul.f32 %v3028_v19, %v18328_v29  ;;  %v3120_v22 = vmul.f32 %v13364_v33, %v18341_v61  ;;  %v4095_v4 = vmul.f32 %v4046_v1, %v18266_v51  ;;  %v3584_v9 = vpop.permute.xlu1 %3583  ;;  %v18406_v1 = vld [vmem:[#allocation118_spill] sm:$0xff] }
 0x41b   : > { %v13674_v15 = vadd.f32 %v4244_v52, %v4236_v45  ;;  %v4266_v32 = vadd.f32 %v4258_v56, %v4250_v16  ;;  %4569 = vrot.lane.b32.xlu0 %v18388_v23, %s8452_s14  ;;  %v13679_v35 = vadd.f32 %v3067_v55, %v13439_v20  ;;  %v3616_v54 = vadd.f32 %v3608_v18, %v18403_v34  ;;  %v18407_v20 = vld [vmem:[#allocation202_spill] sm:$0xff] }
 0x41c   : > { %v3076_v6 = vadd.f32 %v3068_v3, %v3060_v25  ;;  %v13683_v48 = vadd.f32 %v18404_v12, %v4281_v41  ;;  %v3590_v51 = vsel %vm2052_vm7, %v3584_v9, %v13493_v42  ;;  %v3591_v33 = vsel %vm2052_vm7, %v13557_v10, %v3584_v9  ;;  %v13699_v63 = vpop.permute.xlu0 %4305  ;;  %v18410_v25 = vld [vmem:[#allocation111_spill] sm:$0xff]  ;;  %v18413_v9 = vld [vmem:[#allocation98_spill] sm:$0xff] }
 0x41d   : > { %v3630_v52 = vadd.f32 %v3622_v39, %v18406_v1  ;;  %v4282_v56 = vadd.f32 %v18407_v20, %v4266_v32  ;;  %v3623_v18 = vmul.f32 %v3591_v33, %v18319_v36  ;;  %v3624_v45 = vmul.f32 %v3590_v51, %v18319_v36  ;;  %18408 = vst [vmem:[#allocation164_spill] sm:$0xff] %v13699_v63  ;;  %v18415_v12 = vld [vmem:[#allocation94_spill] sm:$0xff] }
 0x41e   : > { %18405 = vst [vmem:[#allocation145_spill] sm:$0xff] %v13683_v48  ;;  %3837 = vrot.lane.b32.xlu1 %v18350_v44, %s8452_s14  ;;  %v3637_v16 = vmul.f32 %v3591_v33, %v18342_v53  ;;  %v3638_v37 = vmul.f32 %v3590_v51, %v18342_v53  ;;  %v3689_v10 = vmul.f32 %v13599_v30, %v18369_v46  ;;  %v18409_v44 = vld [vmem:[#allocation39_spill] sm:$0xff]  ;;  %v13718_v30 = vpop.permute.xlu1 %3733  ;;  %v18420_v1 = vld [vmem:[#allocation198_spill] sm:$0xff] }
 0x41f   : > { %v3690_v39 = vmul.f32 %v13594_v28, %v18369_v46  ;;  %4571 = vrot.lane.b32.xlu0 %v18409_v44, %s8452_s14  ;;  %v13707_v19 = vadd.f32 %v3120_v22, %v3076_v6  ;;  %v13710_v26 = vadd.f32 %v18410_v25, %v4282_v56  ;;  %v13713_v41 = vadd.f32 %v3623_v18, %v13536_v59  ;;  %v18414_v28 = vld [vmem:[#allocation44_spill] sm:$0xff]  ;;  %v18416_v51 = vld [vmem:[#allocation147_spill] sm:$0xff] }
 0x420   : > { %v13715_v55 = vadd.f32 %v3624_v45, %v3616_v54  ;;  %v3645_v3 = vadd.f32 %v3637_v16, %v13539_v0  ;;  %v3646_v32 = vadd.f32 %v3638_v37, %v3630_v52  ;;  %18412 = vst [vmem:[#allocation67_spill] sm:$0xff] %v13718_v30  ;;  %v4153_v34 = vadd.f32 %v18414_v28, %v18413_v9  ;;  %v18417_v6 = vld [vmem:[#allocation95_spill] sm:$0xff]  ;;  %v18418_v0 = vld [vmem:[#allocation36_spill] sm:$0xff]  ;;  %v18419_v54 = vld [vmem:[#allocation166_spill] sm:$0xff]  ;;  %v3100_v18 = vpop.permute.xlu0 %3099 }
 0x421   : > { %18411 = vst [vmem:[#allocation17_spill] sm:$0xff] %v13710_v26  ;;  %v13726_v22 = vsel %vm2343_vm9, %v18416_v51, %v18415_v12  ;;  %v4103_v33 = vadd.f32 %v4095_v4, %v18417_v6  ;;  %v3767_v59 = vsel %vm2246_vm8, %v13718_v30, %v13413_v62  ;;  %v13739_v52 = vsel %vm2343_vm9, %v18420_v1, %v18419_v54  ;;  %v18422_v45 = vld [vmem:[#allocation70_spill] sm:$0xff]  ;;  %v18423_v16 = vld [vmem:[#allocation124_spill] sm:$0xff]  ;;  %v18424_v62 = vld [vmem:[#allocation51_spill] sm:$0xff] }
 0x422   : > { %4481 = vrot.lane.b32.xlu1 %v18418_v0, %s8448_s26  ;;  %18421 = vst [vmem:[#allocation177_spill] sm:$0xff] %v13739_v52  ;;  %v13741_v20 = vadd.f32 %v3689_v10, %v3645_v3  ;;  %v13743_v56 = vadd.f32 %v3690_v39, %v3646_v32  ;;  %v3769_v4 = vmul.f32 %v3767_v59, %v18398_v38  ;;  %v18425_v28 = vld [vmem:[#allocation42_spill] sm:$0xff]  ;;  %v18426_v10 = vld [vmem:[#allocation52_spill] sm:$0xff]  ;;  %v18427_v3 = vld [vmem:[#allocation93_spill] sm:$0xff]  ;;  %v4122_v59 = vpop.permute.xlu1 %4121 }
 0x423   : > { %v3073_v37 = vadd.f32 %v18423_v16, %v18422_v45  ;;  %v4147_v25 = vmul.f32 %v13490_v27, %v18424_v62  ;;  %v3101_v9 = vsel %vm2343_vm9, %v13611_v7, %v3100_v18  ;;  %4575 = vrot.lane.b32.xlu0 %v18425_v28, %s8452_s14  ;;  %v4180_v39 = vmul.f32 %v18427_v3, %v18426_v10  ;;  %v18428_v12 = vld [vmem:[#allocation47_spill] sm:$0xff]  ;;  %v18430_v54 = vld [vmem:[#allocation104_spill] sm:$0xff]  ;;  %v18431_v45 = vld [vmem:[#allocation205_spill] sm:$0xff] }
 0x424   : > { %v3117_v32 = vmul.f32 %v13726_v22, %v18341_v61  ;;  %v18429_v51 = vunpack.i.h.bf16 %v18428_v12  ;;  %v13765_v27 = vadd.f32 %v3769_v4, %v13626_v5  ;;  %v4169_v1 = vadd.f32 %v18430_v54, %v4153_v34  ;;  %v18432_v3 = vld [vmem:[#allocation25_spill] sm:$0xff]  ;;  %v18434_v5 = vld [vmem:[#allocation50_spill] sm:$0xff]  ;;  %v13782_v26 = vpop.permute.xlu0 %3745 }
 0x425   : > { %v3133_v16 = vmul.f32 %v13739_v52, %v18431_v45  ;;  %v4131_v62 = vsel %vm1818_vm4, %v4122_v59, %v13574_v40  ;;  %v4132_v12 = vsel %vm1818_vm4, %v18432_v3, %v4122_v59  ;;  %v4155_v30 = vadd.f32 %v4147_v25, %v4103_v33  ;;  %18435 = vst [vmem:[#allocation167_spill] sm:$0xff] %v13782_v26 }
 0x426   : > { %v4130_v6 = vsel %vm1818_vm4, %v13574_v40, %v18429_v51  ;;  %v18433_v51 = vld [vmem:[#allocation35_spill] sm:$0xff]  ;;  %v4163_v4 = vmul.f32 %v4132_v12, %v18434_v5  ;;  %v4164_v36 = vmul.f32 %v4131_v62, %v18434_v5  ;;  %v4177_v34 = vmul.f32 %v4132_v12, %v18426_v10  ;;  %v18436_v40 = vld [vmem:[#allocation24_spill] sm:$0xff]  ;;  %v3096_v47 = vpop.permute.xlu1 %3095 }
 0x427   : > { %3839 = vrot.lane.b32.xlu1 %v18433_v51, %s8452_s14  ;;  %v4178_v54 = vmul.f32 %v4131_v62, %v18426_v10  ;;  %v4230_v48 = vmul.f32 %v18436_v40, %v18381_v50  ;;  %v4179_v57 = vmul.f32 %v4130_v6, %v18426_v10  ;;  %v4229_v33 = vmul.f32 %v13631_v14, %v18381_v50  ;;  %v18437_v62 = vld [vmem:[#allocation22_spill] sm:$0xff]  ;;  %v18438_v5 = vld [vmem:[#allocation135_spill] sm:$0xff] }
 0x428   : > { %v13793_v25 = vsel %vm2246_vm8, %v13669_v49, %v13782_v26  ;;  %4579 = vrot.lane.b32.xlu0 %v18384_v60, %s8452_s14  ;;  %v4171_v59 = vadd.f32 %v4163_v4, %v4155_v30  ;;  %v4172_v3 = vadd.f32 %v4164_v36, %v18437_v62  ;;  %v4185_v12 = vadd.f32 %v4177_v34, %v4169_v1  ;;  %v18439_v6 = vld [vmem:[#allocation127_spill] sm:$0xff] }
 0x429   : > { %v4186_v40 = vadd.f32 %v4178_v54, %v18438_v5  ;;  %v3125_v10 = vadd.f32 %v3117_v32, %v3073_v37  ;;  %v3119_v14 = vmul.f32 %v13739_v52, %v18341_v61  ;;  %v3112_v63 = vsel %vm2343_vm9, %v3100_v18, %v18439_v6  ;;  %v13817_v32 = vpop.permute.xlu0 %3819  ;;  %v18440_v4 = vld [vmem:[#allocation211_spill] sm:$0xff]  ;;  %v18441_v54 = vld [vmem:[#allocation73_spill] sm:$0xff]  ;;  %v18447_v5 = vld [vmem:[#allocation14_spill] sm:$0xff] }
 0x42a   : > { %v3102_v26 = vsel %vm2343_vm9, %v3096_v47, %v13611_v7  ;;  %v13809_v36 = vadd.f32 %v4179_v57, %v4171_v59  ;;  %v13811_v30 = vadd.f32 %v4180_v39, %v4172_v3  ;;  %v13813_v1 = vadd.f32 %v4229_v33, %v4185_v12  ;;  %v3664_v33 = vpop.permute.xlu1 %3663  ;;  %v18442_v3 = vld [vmem:[#allocation21_spill] sm:$0xff] }
 0x42b   : > { %4485 = vrot.lane.b32.xlu1 %v18388_v23, %s8448_s26  ;;  %v13815_v37 = vadd.f32 %v4230_v48, %v4186_v40  ;;  %v3103_v18 = vsel %vm2343_vm9, %v18440_v4, %v3096_v47  ;;  %v3136_v34 = vmul.f32 %v3102_v26, %v18431_v45  ;;  %v3141_v7 = vadd.f32 %v3133_v16, %v3125_v10  ;;  %v18446_v16 = vld [vmem:[#allocation151_spill] sm:$0xff] }
 0x42c   : > { %v3150_v62 = vmul.f32 %v3102_v26, %v18441_v54  ;;  %v3152_v57 = vmul.f32 %v3112_v63, %v18441_v54  ;;  %v3127_v23 = vadd.f32 %v3119_v14, %v13679_v35  ;;  %v3135_v39 = vmul.f32 %v3103_v18, %v18431_v45  ;;  %v18444_v26 = vld [vmem:[#allocation146_spill] sm:$0xff]  ;;  %v18445_v35 = vld [vmem:[#allocation33_spill] sm:$0xff] }
 0x42d   : > { %v3149_v48 = vmul.f32 %v3103_v18, %v18441_v54  ;;  %v3144_v59 = vadd.f32 %v3136_v34, %v13707_v19  ;;  %v13835_v47 = vsel %vm2149_vm6, %v3664_v33, %v13644_v43  ;;  %v13840_v63 = vsel %vm2149_vm6, %v18444_v26, %v3664_v33  ;;  %v13849_v4 = vpop.permute.xlu0 %4309  ;;  %v18449_v18 = vld [vmem:[#allocation90_spill] sm:$0xff]  ;;  %v18450_v34 = vld [vmem:[#allocation107_spill] sm:$0xff]  ;;  %v18452_v33 = vld [vmem:[#allocation64_spill] sm:$0xff] }
 0x42e   : > { %v13830_v12 = vadd.f32 %v3150_v62, %v18442_v3  ;;  %v4963_v40 = vmul.f32 %v18447_v5, %v18446_v16  ;;  %v3151_v19 = vmul.f32 %v3101_v9, %v18441_v54  ;;  %v3143_v10 = vadd.f32 %v3135_v39, %v3127_v23  ;;  %v3740_v39 = vpop.permute.xlu1 %3739  ;;  %v18471_v43 = vld [vmem:[#allocation173_spill] sm:$0xff] }
 0x42f   : > { %4559 = vrot.lane.b32.xlu1 %v18445_v35, %s8452_s14  ;;  %v13847_v14 = vadd.f32 %v3149_v48, %v3141_v7  ;;  %v4900_v62 = vadd.f32 %v18450_v34, %v18449_v18  ;;  %v13853_v3 = vadd.f32 %v3152_v57, %v3144_v59  ;;  %v3705_v26 = vmul.f32 %v13840_v63, %v18452_v33  ;;  %v18455_v48 = vld [vmem:[#allocation133_spill] sm:$0xff]  ;;  %v18456_v18 = vld [vmem:[#allocation155_spill] sm:$0xff] }
 0x430   : > { %18443 = vst [vmem:[#allocation183_spill] sm:$0xff] %v13830_v12  ;;  %v3706_v35 = vmul.f32 %v13835_v47, %v18452_v33  ;;  %v18453_v12 = vld [vmem:[#allocation182_spill] sm:$0xff]  ;;  %v13863_v7 = vadd.f32 %v3151_v19, %v3143_v10  ;;  %v3719_v23 = vmul.f32 %v13840_v63, %v18397_v11  ;;  %v3720_v57 = vmul.f32 %v13835_v47, %v18397_v11  ;;  %v18459_v19 = vld [vmem:[#allocation192_spill] sm:$0xff] }
 0x431   : > { %18448 = vst [vmem:[#allocation172_spill] sm:$0xff] %v13847_v14  ;;  %18451 = vst [vmem:[#allocation78_spill] sm:$0xff] %v13853_v3  ;;  %v3111_v9 = vsel %vm2343_vm9, %v18439_v6, %v18453_v12  ;;  %v3061_v59 = vmul.f32 %v18455_v48, %v18328_v29  ;;  %v3110_v34 = vsel %vm2343_vm9, %v18453_v12, %v18456_v18  ;;  %v18460_v3 = vld [vmem:[#allocation45_spill] sm:$0xff] }
 0x432   : > { %18454 = vst [vmem:[#allocation106_spill] sm:$0xff] %v13863_v7  ;;  %v13876_v16 = vadd.f32 %v3705_v26, %v13741_v20  ;;  %v13879_v6 = vadd.f32 %v3706_v35, %v13743_v56  ;;  %v3062_v10 = vmul.f32 %v18459_v19, %v18328_v29  ;;  %v3109_v7 = vsel %vm2343_vm9, %v18456_v18, %v18460_v3  ;;  %v13893_v20 = vpop.permute.xlu0 %3669  ;;  %v18462_v56 = vld [vmem:[#allocation203_spill] sm:$0xff]  ;;  %v18463_v19 = vld [vmem:[#allocation152_spill] sm:$0xff]  ;;  %v18465_v18 = vld [vmem:[#allocation82_spill] sm:$0xff] }
 0x433   : > { %4487 = vrot.lane.b32.xlu1 %v18409_v44, %s8448_s26  ;;  %v3727_v14 = vadd.f32 %v3719_v23, %v13622_v17  ;;  %v13891_v12 = vadd.f32 %v3720_v57, %v13624_v31  ;;  %18461 = vst [vmem:[#allocation130_spill] sm:$0xff] %v13893_v20  ;;  %v4998_v26 = vsel %vm4889_vm10, %v18462_v56, 0.0  ;;  %v3047_v44 = vmul.f32 %v18455_v48, %v18261_v58  ;;  %v18464_v3 = vld [vmem:[#allocation43_spill] sm:$0xff]  ;;  %v4202_v56 = vpop.permute.xlu1 %4201  ;;  %v18468_v48 = vld [vmem:[#allocation197_spill] sm:$0xff] }
 0x434   : > { %18457 = vst [vmem:[#allocation142_spill] sm:$0xff] %v13876_v16  ;;  %18458 = vst [vmem:[#allocation117_spill] sm:$0xff] %v13879_v6  ;;  %v3113_v35 = vmul.f32 %v3111_v9, %v18341_v61  ;;  %v3765_v6 = vsel %vm2246_vm8, %v18463_v19, %v3740_v39  ;;  %v13905_v17 = vadd.f32 %v18465_v18, %v18464_v3  ;;  %v4901_v31 = vsel %vm4889_vm10, %v18447_v5, 0.0  ;;  %v18469_v3 = vld [vmem:[#allocation181_spill] sm:$0xff]  ;;  %v18470_v5 = vld [vmem:[#allocation190_spill] sm:$0xff] }
 0x435   : > { %v3114_v23 = vmul.f32 %v3110_v34, %v18341_v61  ;;  %v3771_v57 = vmul.f32 %v3765_v6, %v18398_v38  ;;  %v13911_v16 = vadd.f32 %v4901_v31, %v4900_v62  ;;  %v13914_v9 = vsel %vm4889_vm10, %v4963_v40, 0.0  ;;  %v18472_v40 = vld [vmem:[#allocation200_spill] sm:$0xff] }
 0x436   : > { %18466 = vst [vmem:[#allocation193_spill] sm:$0xff] %v13905_v17  ;;  %v3069_v11 = vadd.f32 %v3061_v59, %v18468_v48  ;;  %v3129_v19 = vmul.f32 %v3109_v7, %v18431_v45  ;;  %v13921_v33 = vadd.f32 %v4998_v26, %v18469_v3  ;;  %v3070_v34 = vadd.f32 %v3062_v10, %v18470_v5  ;;  %v13926_v31 = vpop.permute.xlu0 %3821  ;;  %v18473_v26 = vld [vmem:[#allocation196_spill] sm:$0xff]  ;;  %v18474_v10 = vld [vmem:[#allocation206_spill] sm:$0xff] }
 0x437   : > { %18467 = vst [vmem:[#allocation29_spill] sm:$0xff] %v13911_v16  ;;  %4563 = vrot.lane.b32.xlu1 %v18433_v51, %s8452_s14  ;;  %v3063_v20 = vmul.f32 %v18471_v43, %v18328_v29  ;;  %v3779_v62 = vadd.f32 %v3771_v57, %v3727_v14  ;;  %v3055_v16 = vadd.f32 %v3047_v44, %v18472_v40  ;;  %v3588_v14 = vpop.permute.xlu1 %3587 }
 0x438   : > { %v3121_v52 = vadd.f32 %v3113_v35, %v3069_v11  ;;  %v3145_v59 = vmul.f32 %v13726_v22, %v18441_v54  ;;  %v3785_v48 = vmul.f32 %v3765_v6, %v18261_v58  ;;  %v13932_v51 = vadd.f32 %v3114_v23, %v3070_v34 }
 0x439   : > { %v13936_v3 = vmul.f32 %v18473_v26, %v13905_v17  ;;  %v4218_v43 = vsel %vm1915_vm3, %v18474_v10, %v4202_v56  ;;  %v3850_v11 = vsel %vm2343_vm9, %v13817_v32, %v13926_v31  ;;  %v3071_v23 = vadd.f32 %v3063_v20, %v3055_v16 }
 0x43a   : > { %v3137_v44 = vadd.f32 %v3129_v19, %v3121_v52  ;;  %v3793_v35 = vadd.f32 %v3785_v48, %v13765_v27  ;;  %v4231_v6 = vmul.f32 %v4218_v43, %v18381_v50  ;;  %v4245_v57 = vmul.f32 %v4218_v43, %v18392_v2  ;;  %v13954_v40 = vpop.permute.xlu0 %4207  ;;  %v18475_v48 = vld [vmem:[#allocation158_spill] sm:$0xff] }
 0x43b   : > { %4565 = vrot.lane.b32.xlu1 %v18418_v0, %s8452_s14  ;;  %v4259_v5 = vmul.f32 %v4218_v43, %v18396_v24  ;;  %v3589_v34 = vsel %vm2052_vm7, %v13493_v42, %v3588_v14  ;;  %v3115_v52 = vmul.f32 %v3109_v7, %v18341_v61  ;;  %v3600_v0 = vsel %vm2052_vm7, %v3588_v14, %v18475_v48  ;;  %v3742_v43 = vpop.permute.xlu1 %3741  ;;  %v18476_v14 = vld [vmem:[#allocation99_spill] sm:$0xff] }
 0x43c   : > { %v3153_v19 = vadd.f32 %v3145_v59, %v3137_v44  ;;  %v13958_v27 = vadd.f32 %v4231_v6, %v13809_v36  ;;  %v13964_v16 = vadd.f32 %v4245_v57, %v13813_v1  ;;  %v3639_v10 = vmul.f32 %v3589_v34, %v18342_v53 }
 0x43d   : > { %v4267_v20 = vadd.f32 %v4259_v5, %v13654_v13  ;;  %v3640_v42 = vmul.f32 %v3600_v0, %v18342_v53  ;;  %v3788_v7 = vmul.f32 %v13793_v25, %v18261_v58  ;;  %v3691_v36 = vmul.f32 %v13840_v63, %v18369_v46 }
 0x43e   : > { %v13976_v59 = vsel %vm2246_vm8, %v3742_v43, %v13669_v49  ;;  %v3764_v1 = vsel %vm2246_vm8, %v3740_v39, %v3742_v43  ;;  %v3692_v13 = vmul.f32 %v13835_v47, %v18369_v46  ;;  %v3647_v6 = vadd.f32 %v3639_v10, %v13713_v41  ;;  %v13987_v57 = vpop.permute.xlu0 %4315 }
 0x43f   : > { %4491 = vrot.lane.b32.xlu1 %v18425_v28, %s8448_s26  ;;  %v4283_v44 = vadd.f32 %v18476_v14, %v4267_v20  ;;  %v3648_v63 = vadd.f32 %v3640_v42, %v13715_v55  ;;  %v3802_v49 = vmul.f32 %v13793_v25, %v18328_v29  ;;  %v3772_v5 = vmul.f32 %v3764_v1, %v18398_v38  ;;  %v13997_v34 = vpop.permute.xlu1 %4203  ;;  %v18477_v55 = vld [vmem:[#allocation204_spill] sm:$0xff] }
 0x440   : > { %v3786_v39 = vmul.f32 %v3764_v1, %v18261_v58  ;;  %v3787_v28 = vmul.f32 %v13976_v59, %v18261_v58  ;;  %v3801_v47 = vmul.f32 %v13976_v59, %v18328_v29  ;;  %v3699_v41 = vadd.f32 %v3691_v36, %v3647_v6 }
 0x441   : > { %v3700_v48 = vadd.f32 %v3692_v13, %v3648_v63  ;;  %v14000_v0 = vadd.f32 %v18477_v55, %v4283_v44  ;;  %v3780_v20 = vadd.f32 %v3772_v5, %v13891_v12  ;;  %v4217_v43 = vsel %vm1915_vm3, %v4202_v56, %v13997_v34  ;;  %v18484_v55 = vld [vmem:[#allocation62_spill] sm:$0xff] }
 0x442   : > { %v3794_v10 = vadd.f32 %v3786_v39, %v13650_v8  ;;  %v14004_v42 = vadd.f32 %v3787_v28, %v3779_v62  ;;  %v14011_v1 = vadd.f32 %v3801_v47, %v3793_v35  ;;  %v4232_v36 = vmul.f32 %v4217_v43, %v18381_v50  ;;  %v14016_v12 = vpop.permute.xlu0 %3749  ;;  %v18478_v8 = vld [vmem:[#allocation65_spill] sm:$0xff]  ;;  %v18483_v47 = vld [vmem:[#allocation87_spill] sm:$0xff] }
 0x443   : > { %8130 = vrot.lane.b32.xlu1 %v18384_v60, %s8448_s26  ;;  %v4246_v13 = vmul.f32 %v4217_v43, %v18392_v2  ;;  %v4260_v14 = vmul.f32 %v4217_v43, %v18396_v24  ;;  %v3130_v62 = vmul.f32 %v18478_v8, %v18431_v45  ;;  %v3854_v44 = vmul.f32 %v3850_v11, %v18341_v61  ;;  %v4308_v39 = vpop.permute.xlu1 %4307  ;;  %s8343_s26 = scalar_lea.vmem %s16329_s17, 2048 }
 0x444   : > { %v14021_v6 = vadd.f32 %v3788_v7, %v3780_v20  ;;  %v3810_v56 = vadd.f32 %v3802_v49, %v3794_v10  ;;  %v3131_v35 = vmul.f32 %v13726_v22, %v18431_v45  ;;  %v14026_v63 = vadd.f32 %v4232_v36, %v13811_v30  ;;  %v18480_v7 = vld [vmem:[#allocation164_spill] sm:$0xff]  ;;  %v18481_v30 = vld [vmem:[#allocation41_spill] sm:$0xff]  ;;  %p8344_p6 = scmp.ne.s32.totalorder %s16329_s17, %s8343_s26 }
 0x445   : > { %v14029_v50 = vadd.f32 %v4246_v13, %v13815_v37  ;;  %v4268_v5 = vadd.f32 %v4260_v14, %v13674_v15  ;;  %v14033_v28 = vadd.f32 %v3153_v19, %v18465_v18  ;;  %v4338_v11 = vsel %vm2052_vm7, %v4308_v39, %v13849_v4  ;;  %v18485_v13 = vld [vmem:[#allocation16_spill] sm:$0xff] }
 0x446   : > { %v4339_v22 = vsel %vm2052_vm7, %v18480_v7, %v4308_v39  ;;  %v14043_v49 = vadd.f32 %v3854_v44, %v3810_v56  ;;  %v3123_v37 = vadd.f32 %v3115_v52, %v3071_v23  ;;  %v4342_v19 = vmul.f32 %v4338_v11, %v18484_v55  ;;  %v14048_v10 = vpop.permute.xlu0 %3827  ;;  %v18486_v52 = vld [vmem:[#allocation145_spill] sm:$0xff]  ;;  %v18488_v11 = vld [vmem:[#allocation126_spill] sm:$0xff]  ;;  %p8345_p9 = pnand %p8344_p6, %p8581_p8 }
 0x447   : > { %18479 = vst [vmem:[#allocation85_spill] sm:$0xff] %v14033_v28  ;;  %4573 = vrot.lane.b32.xlu1 %v18481_v30, %s8452_s14  ;;  %v4284_v15 = vadd.f32 %v18483_v47, %v4268_v5  ;;  %v4341_v20 = vmul.f32 %v4339_v22, %v18484_v55  ;;  %v5001_v43 = vadd.f32 %v13914_v9, %v13921_v33  ;;  %v18487_v56 = vld [vmem:[#allocation17_spill] sm:$0xff]  ;;  %v3668_v39 = vpop.permute.xlu1 %3667  ;;  %v18491_v30 = vld [vmem:[#allocation130_spill] sm:$0xff] }
 0x448   : > { %18482 = vst [vmem:[#allocation83_spill] sm:$0xff] %v14043_v49  ;;  %v3138_v36 = vadd.f32 %v3130_v62, %v13932_v51  ;;  %v3146_v14 = vmul.f32 %v18485_v13, %v18441_v54  ;;  %v4964_v8 = vmul.f32 %v13936_v3, %v13905_v17  ;;  %v3139_v23 = vadd.f32 %v3131_v35, %v3123_v37  ;;  %v18489_v33 = vld [vmem:[#allocation137_spill] sm:$0xff]  ;;  %v18492_v37 = vld [vmem:[#allocation91_spill] sm:$0xff]  ;;  %v18494_v13 = vld [vmem:[#allocation66_spill] sm:$0xff]  ;;  %p8346_p12 = pneg %p8345_p9 }
 0x449   : > { %v14058_v44 = vadd.f32 %v4341_v20, %v18486_v52  ;;  %v14061_v5 = vadd.f32 %v4342_v19, %v18487_v56  ;;  %v14064_v22 = vadd.f32 %v18488_v11, %v4284_v15  ;;  %v4865_v9 = vmul.f32 %v18489_v33, %v14033_v28  ;;  %v18490_v51 = vld [vmem:[#allocation177_spill] sm:$0xff]  ;;  %v18493_v20 = vld [vmem:[#allocation64_spill] sm:$0xff]  ;;  %v18497_v7 = vld [vmem:[#allocation142_spill] sm:$0xff] }
 0x44a   : > { %v3147_v62 = vmul.f32 %v18490_v51, %v18441_v54  ;;  %v3674_v35 = vsel %vm2149_vm6, %v3668_v39, %v18491_v30  ;;  %v3675_v47 = vsel %vm2149_vm6, %v18492_v37, %v3668_v39  ;;  %v14082_v11 = vpop.permute.xlu0 %4389  ;;  %v18496_v51 = vld [vmem:[#allocation19_spill] sm:$0xff]  ;;  %v3154_v26 = vadd.f32 %v3146_v14, %v3138_v36  ;;  %v18500_v49 = vld [vmem:[#allocation136_spill] sm:$0xff] }
 0x44b   : > { %4577 = vrot.lane.b32.xlu1 %v18384_v60, %s8452_s14  ;;  %v3707_v15 = vmul.f32 %v3675_v47, %v18493_v20  ;;  %v3708_v19 = vmul.f32 %v3674_v35, %v18493_v20  ;;  %v3721_v52 = vmul.f32 %v3675_v47, %v18494_v13  ;;  %v3722_v56 = vmul.f32 %v3674_v35, %v18494_v13  ;;  %v18498_v47 = vld [vmem:[#allocation117_spill] sm:$0xff]  ;;  %v14095_v35 = vpop.permute.xlu1 %3817  ;;  %s8453_s14 = smov [#allocation9]  }
 0x44c   : > { %18495 = vst [vmem:[#allocation208_spill] sm:$0xff] %v14082_v11  ;;  %v8118_v33 = vunpack.i.h.bf16 %v18496_v51  ;;  %v3774_v17 = vmul.f32 %v13793_v25, %v18398_v38  ;;  %v3773_v39 = vmul.f32 %v13976_v59, %v18398_v38  ;;  %18499 = vst [vmem:[#allocation194_spill] sm:$0xff] %v14095_v35  ;;  %v14097_v11 = vld [vmem:[#allocation7 + $0x8] sm:$0xff]  ;;  %v3155_v25 = vadd.f32 %v3147_v62, %v3139_v23  ;;  %v18504_v62 = vld [vmem:[#allocation188_spill] sm:$0xff]  ;;  %s8347_s29 = sshll.u32 %s8453_s14, 4  ;;  %s8348_s29 = int_to_ptr.vmem [resolvable:$false] %s8347_s29 }
 0x44d   : > { %v14089_v37 = vadd.f32 %v3707_v15, %v3699_v41  ;;  %v14091_v60 = vadd.f32 %v3708_v19, %v3700_v48  ;;  %v3729_v20 = vadd.f32 %v3721_v52, %v18497_v7  ;;  %v3730_v46 = vadd.f32 %v3722_v56, %v18498_v47  ;;  %v18506_v52 = vld [vmem:[#allocation29_spill] sm:$0xff]  ;;  %s8349_s7 = scalar_lea.vmem %s8348_s29, 4096  ;;  %p8350_p13 = scmp.lt.s32.totalorder %s16329_s17, %s8348_s29 }
 0x44e   : > { %v14101_v36 = vrot.slane %v14097_v11, %v18500_v49  ;;  %v4903_v59 = vsel %vm4889_vm10, %v13936_v3, 0.0  ;;  %v3851_v41 = vsel %vm2343_vm9, %v14095_v35, %v13817_v32  ;;  %v5002_v48 = vsel %vm4889_vm10, %v4964_v8, 0.0  ;;  %v14115_v19 = vpop.permute.xlu0 %3751  ;;  %v18510_v35 = vld [vmem:[#allocation79_spill] sm:$0xff]  ;;  %p8351_p0 = scmp.lt.s32.totalorder %s8349_s7, %s8343_s26 }
 0x44f   : > { %v14110_v7 = vadd.f32 %v3773_v39, %v3729_v20  ;;  %v14112_v14 = vadd.f32 %v3774_v17, %v3730_v46  ;;  %v3853_v15 = vmul.f32 %v3851_v41, %v18341_v61  ;;  %18502 = vst [vmem:[#allocation207_spill] sm:$0xff] %v14115_v19  ;;  %v14118_v23 = vadd.f32 %v3154_v26, %v18465_v18  ;;  %v4206_v39 = vpop.permute.xlu1 %4205 }
 0x450   : > { %18501 = vst [vmem:[#allocation174_spill] sm:$0xff] %v14101_v36  ;;  %v14122_v3 = vrot.slane %v14097_v11, %v18504_v62  ;;  %v4904_v56 = vadd.f32 %v4903_v59, %v18506_v52  ;;  %v5003_v32 = vadd.f32 %v5002_v48, %v5001_v43  ;;  %v4905_v8 = vsel %vm4889_vm10, %v4865_v9, 0.0  ;;  %p8352_p5 = por %p8351_p0, %p8350_p13 }
 0x451   : > { %18503 = vst [vmem:[#allocation102_spill] sm:$0xff] %v14118_v23  ;;  %v18507_v20 = vunpack.i.l.bf16 %v18496_v51  ;;  %v4214_v17 = vsel %vm1915_vm3, %v13954_v40, %v8118_v33  ;;  %v14134_v26 = vadd.f32 %v3853_v15, %v14011_v1  ;;  %v4965_v47 = vmul.f32 %v4865_v9, %v14033_v28 }
 0x452   : > { %18505 = vst [vmem:[#allocation86_spill] sm:$0xff] %v14122_v3  ;;  %v14138_v59 = vadd.f32 %v3155_v25, %v18465_v18  ;;  %v4215_v43 = vsel %vm1915_vm3, %v4206_v39, %v13954_v40  ;;  %v4216_v51 = vsel %vm1915_vm3, %v13997_v34, %v4206_v39  ;;  %v14150_v9 = vpop.permute.xlu0 %4319  ;;  %v18509_v25 = vld [vmem:[#allocation34_spill] sm:$0xff]  ;;  %v4906_v52 = vadd.f32 %v4905_v8, %v4904_v56  ;;  %v18512_v56 = vld [vmem:[#allocation180_spill] sm:$0xff]  ;;  %p8353_p10 = pnand %p8352_p5, %p8346_p12 }
 0x453   : > { %v4213_v46 = vsel %vm1915_vm3, %v8118_v33, %v18507_v20  ;;  %v4247_v41 = vmul.f32 %v4216_v51, %v18392_v2  ;;  %v4248_v33 = vmul.f32 %v4215_v43, %v18392_v2  ;;  %v4261_v1 = vmul.f32 %v4216_v51, %v18396_v24  ;;  %v4312_v28 = vpop.permute.xlu1 %4311 }
 0x454   : > { %18508 = vst [vmem:[#allocation49_spill] sm:$0xff] %v14138_v59  ;;  %v4262_v48 = vmul.f32 %v4215_v43, %v18396_v24  ;;  %v4866_v15 = vmul.f32 %v18509_v25, %v14118_v23  ;;  %v4263_v40 = vmul.f32 %v4214_v17, %v18396_v24  ;;  %v4264_v20 = vmul.f32 %v4213_v46, %v18396_v24  ;;  %v18513_v46 = vld [vmem:[#allocation144_spill] sm:$0xff]  ;;  %v18514_v17 = vld [vmem:[#allocation179_spill] sm:$0xff] }
 0x455   : > { %v4255_v34 = vadd.f32 %v4247_v41, %v13958_v27  ;;  %v4256_v39 = vadd.f32 %v4248_v33, %v14026_v63  ;;  %v4269_v2 = vadd.f32 %v4261_v1, %v13964_v16  ;;  %v5004_v43 = vsel %vm4889_vm10, %v4965_v47, 0.0  ;;  %v18516_v1 = vld [vmem:[#allocation59_spill] sm:$0xff] }
 0x456   : > { %v4270_v51 = vadd.f32 %v4262_v48, %v14029_v50  ;;  %v14163_v62 = vadd.f32 %v18510_v35, %v18465_v18  ;;  %v4867_v8 = vmul.f32 %v18512_v56, %v14138_v59  ;;  %v4337_v24 = vsel %vm2052_vm7, %v13849_v4, %v4312_v28  ;;  %v14172_v41 = vpop.permute.xlu0 %4395  ;;  %v18517_v48 = vld [vmem:[#allocation57_spill] sm:$0xff] }
 0x457   : > { %v4271_v27 = vadd.f32 %v4263_v40, %v4255_v34  ;;  %v4272_v63 = vadd.f32 %v4264_v20, %v4256_v39  ;;  %v4285_v16 = vadd.f32 %v18513_v46, %v4269_v2  ;;  %18515 = vst [vmem:[#allocation150_spill] sm:$0xff] %v14172_v41  ;;  %v4966_v47 = vmul.f32 %v4866_v15, %v14118_v23  ;;  %v18518_v20 = vld [vmem:[#allocation168_spill] sm:$0xff]  ;;  %v3748_v39 = vpop.permute.xlu1 %3747  ;;  %v18520_v2 = vld [vmem:[#allocation89_spill] sm:$0xff] }
 0x458   : > { %18511 = vst [vmem:[#allocation120_spill] sm:$0xff] %v14163_v62  ;;  %v4286_v50 = vadd.f32 %v18514_v17, %v4270_v51  ;;  %v14179_v35 = vsel %vm2246_vm8, %v14016_v12, %v14115_v19  ;;  %v4343_v33 = vmul.f32 %v4337_v24, %v18484_v55  ;;  %v4357_v4 = vmul.f32 %v4337_v24, %v18516_v1  ;;  %v18521_v46 = vld [vmem:[#allocation212_spill] sm:$0xff]  ;;  %v18536_v19 = vld [vmem:[#allocation141_spill] sm:$0xff] }
 0x459   : > { %v14184_v40 = vadd.f32 %v18517_v48, %v4271_v27  ;;  %v14187_v34 = vadd.f32 %v18518_v20, %v4272_v63  ;;  %v4301_v51 = vadd.f32 %v18520_v2, %v4285_v16  ;;  %v14198_v24 = vsel %vm2246_vm8, %v3748_v39, %v14016_v12  ;;  %v18522_v27 = vld [vmem:[#allocation167_spill] sm:$0xff] }
 0x45a   : > { %v14191_v17 = vadd.f32 %v18521_v46, %v4286_v50  ;;  %v4351_v56 = vadd.f32 %v4343_v33, %v14000_v0  ;;  %v4365_v25 = vadd.f32 %v4357_v4, %v14058_v44  ;;  %v14203_v63 = vsel %vm2246_vm8, %v18522_v27, %v3748_v39  ;;  %v14210_v44 = vpop.permute.xlu0 %3831 }
 0x45b   : > { %18519 = vst [vmem:[#allocation23_spill] sm:$0xff] %v14187_v34  ;;  %v4907_v48 = vsel %vm4889_vm10, %v4866_v15, 0.0  ;;  %v5005_v16 = vadd.f32 %v5004_v43, %v5003_v32  ;;  %v3789_v50 = vmul.f32 %v14203_v63, %v18261_v58  ;;  %v3790_v0 = vmul.f32 %v14198_v24, %v18261_v58  ;;  %v3824_v2 = vpop.permute.xlu1 %3823 }
 0x45c   : > { %v4868_v12 = vmul.f32 %v14101_v36, %v14163_v62  ;;  %v4967_v33 = vmul.f32 %v4867_v8, %v14138_v59  ;;  %v3803_v4 = vmul.f32 %v14203_v63, %v18328_v29  ;;  %v3804_v15 = vmul.f32 %v14198_v24, %v18328_v29 }
 0x45d   : > { %v5006_v32 = vsel %vm4889_vm10, %v4966_v47, 0.0  ;;  %v3805_v43 = vmul.f32 %v14179_v35, %v18328_v29  ;;  %v3797_v20 = vadd.f32 %v3789_v50, %v14110_v7  ;;  %v14224_v39 = vadd.f32 %v3790_v0, %v14112_v14  ;;  %v18524_v47 = vld [vmem:[#allocation75_spill] sm:$0xff] }
 0x45e   : > { %v4908_v46 = vadd.f32 %v4907_v48, %v4906_v52  ;;  %v3811_v27 = vadd.f32 %v3803_v4, %v14004_v42  ;;  %v14228_v36 = vadd.f32 %v3804_v15, %v14021_v6  ;;  %v3849_v59 = vsel %vm2343_vm9, %v13926_v31, %v3824_v2  ;;  %v14239_v50 = vpop.permute.xlu0 %4397  ;;  %v18527_v48 = vld [vmem:[#allocation74_spill] sm:$0xff]  ;;  %v18531_v31 = vld [vmem:[#allocation172_spill] sm:$0xff] }
 0x45f   : > { %18523 = vst [vmem:[#allocation217_spill] sm:$0xff] %v14224_v39  ;;  %v14235_v23 = vrot.slane %v14097_v11, %v18524_v47  ;;  %v3855_v7 = vmul.f32 %v3849_v59, %v18341_v61  ;;  %v3869_v14 = vmul.f32 %v3849_v59, %v18431_v45  ;;  %18526 = vst [vmem:[#allocation209_spill] sm:$0xff] %v14239_v50  ;;  %v18529_v6 = vld [vmem:[#allocation58_spill] sm:$0xff]  ;;  %v4909_v34 = vsel %vm4889_vm10, %v4867_v8, 0.0 }
 0x460   : > { %v3813_v52 = vadd.f32 %v3805_v43, %v3797_v20  ;;  %v14243_v42 = vrot.slane %v14097_v11, %v18527_v48  ;;  %v14247_v0 = vrot.slane %v14097_v11, %v18529_v6  ;;  %v14251_v4 = vadd.f32 %v18531_v31, %v18465_v18  ;;  %v4314_v20 = vpop.permute.xlu1 %4313 }
 0x461   : > { %18525 = vst [vmem:[#allocation97_spill] sm:$0xff] %v14235_v23  ;;  %v5007_v15 = vadd.f32 %v5006_v32, %v5005_v16  ;;  %v4968_v59 = vmul.f32 %v4868_v12, %v14163_v62  ;;  %v3863_v39 = vadd.f32 %v3855_v7, %v3811_v27  ;;  %v3877_v43 = vadd.f32 %v3869_v14, %v14134_v26 }
 0x462   : > { %18528 = vst [vmem:[#allocation77_spill] sm:$0xff] %v14243_v42  ;;  %18530 = vst [vmem:[#allocation169_spill] sm:$0xff] %v14247_v0  ;;  %v5008_v50 = vsel %vm4889_vm10, %v4967_v33, 0.0  ;;  %v4910_v41 = vadd.f32 %v4909_v34, %v4908_v46  ;;  %v4335_v11 = vsel %vm2052_vm7, %v4314_v20, %v13987_v57  ;;  %v4336_v31 = vsel %vm2052_vm7, %v4312_v28, %v4314_v20  ;;  %v14266_v26 = vpop.permute.xlu0 %3755  ;;  %v18534_v33 = vld [vmem:[#allocation183_spill] sm:$0xff] }
 0x463   : > { %18532 = vst [vmem:[#allocation20_spill] sm:$0xff] %v14251_v4  ;;  %v4344_v16 = vmul.f32 %v4336_v31, %v18484_v55  ;;  %v4345_v8 = vmul.f32 %v4335_v11, %v18484_v55  ;;  %v4358_v32 = vmul.f32 %v4336_v31, %v18516_v1  ;;  %v4359_v27 = vmul.f32 %v4335_v11, %v18516_v1 }
 0x464   : > { %18533 = vst [vmem:[#allocation148_spill] sm:$0xff] %v14266_v26  ;;  %v14270_v34 = vadd.f32 %v18534_v33, %v18465_v18  ;;  %v4869_v46 = vmul.f32 %v14122_v3, %v14251_v4  ;;  %v5009_v7 = vadd.f32 %v5008_v50, %v5007_v15  ;;  %v4373_v28 = vmul.f32 %v4335_v11, %v18342_v53  ;;  %v3672_v29 = vpop.permute.xlu1 %3671 }
 0x465   : > { %v4352_v14 = vadd.f32 %v4344_v16, %v14064_v22  ;;  %v4353_v20 = vadd.f32 %v4345_v8, %v4301_v51  ;;  %v4366_v62 = vadd.f32 %v4358_v32, %v14061_v5  ;;  %v4367_v31 = vadd.f32 %v4359_v27, %v4351_v56  ;;  %v18537_v51 = vld [vmem:[#allocation106_spill] sm:$0xff] }
 0x466   : > { %18535 = vst [vmem:[#allocation171_spill] sm:$0xff] %v14270_v34  ;;  %v4911_v6 = vsel %vm4889_vm10, %v4868_v12, 0.0  ;;  %v4381_v26 = vadd.f32 %v4373_v28, %v4365_v25  ;;  %v3673_v33 = vsel %vm2149_vm6, %v18491_v30, %v3672_v29  ;;  %v3684_v50 = vsel %vm2149_vm6, %v3672_v29, %v18536_v19  ;;  %v14287_v56 = vpop.permute.xlu0 %4323  ;;  %v18539_v12 = vld [vmem:[#allocation78_spill] sm:$0xff] }
 0x467   : > { %v4912_v15 = vadd.f32 %v4911_v6, %v4910_v41  ;;  %v5010_v11 = vsel %vm4889_vm10, %v4968_v59, 0.0  ;;  %v3723_v22 = vmul.f32 %v3673_v33, %v18494_v13  ;;  %v3724_v5 = vmul.f32 %v3684_v50, %v18494_v13 }
 0x468   : > { %v14291_v25 = vadd.f32 %v18537_v51, %v18465_v18  ;;  %v14295_v30 = vadd.f32 %v18539_v12, %v18465_v18  ;;  %v4870_v29 = vmul.f32 %v14235_v23, %v14270_v34  ;;  %v5011_v19 = vadd.f32 %v5010_v11, %v5009_v7  ;;  %v3826_v8 = vpop.permute.xlu1 %3825  ;;  %v18542_v11 = vld [vmem:[#allocation108_spill] sm:$0xff]  ;;  %v18543_v12 = vld [vmem:[#allocation83_spill] sm:$0xff] }
 0x469   : > { %v4969_v41 = vmul.f32 %v4869_v46, %v14251_v4  ;;  %v3775_v6 = vmul.f32 %v14203_v63, %v18398_v38  ;;  %v3731_v59 = vadd.f32 %v3723_v22, %v14089_v37  ;;  %v3732_v16 = vadd.f32 %v3724_v5, %v14091_v60  ;;  %v18554_v4 = vld [vmem:[#allocation53_spill] sm:$0xff] }
 0x46a   : > { %18538 = vst [vmem:[#allocation162_spill] sm:$0xff] %v14291_v25  ;;  %18540 = vst [vmem:[#allocation178_spill] sm:$0xff] %v14295_v30  ;;  %v3791_v32 = vmul.f32 %v14179_v35, %v18261_v58  ;;  %v3776_v27 = vmul.f32 %v14198_v24, %v18398_v38  ;;  %v3847_v7 = vsel %vm2343_vm9, %v3826_v8, %v14048_v10  ;;  %v14316_v50 = vpop.permute.xlu0 %4473 }
 0x46b   : > { %v3848_v28 = vsel %vm2343_vm9, %v3824_v2, %v3826_v8  ;;  %v3783_v33 = vadd.f32 %v3775_v6, %v3731_v59  ;;  %v3857_v37 = vmul.f32 %v3847_v7, %v18341_v61  ;;  %18541 = vst [vmem:[#allocation170_spill] sm:$0xff] %v14316_v50  ;;  %v3871_v35 = vmul.f32 %v3847_v7, %v18431_v45 }
 0x46c   : > { %v3856_v63 = vmul.f32 %v3848_v28, %v18341_v61  ;;  %v3870_v60 = vmul.f32 %v3848_v28, %v18431_v45  ;;  %v3885_v24 = vmul.f32 %v3847_v7, %v18441_v54  ;;  %v4303_v22 = vadd.f32 %v18542_v11, %v14184_v40  ;;  %v4318_v59 = vpop.permute.xlu1 %4317 }
 0x46d   : > { %v14322_v5 = vadd.f32 %v3776_v27, %v3732_v16  ;;  %v14325_v51 = vadd.f32 %v3857_v37, %v3813_v52  ;;  %v14328_v8 = vadd.f32 %v3791_v32, %v3783_v33  ;;  %v14330_v28 = vadd.f32 %v3871_v35, %v3863_v39 }
 0x46e   : > { %v3864_v2 = vadd.f32 %v3856_v63, %v14228_v36  ;;  %v3878_v6 = vadd.f32 %v3870_v60, %v18543_v12  ;;  %v3893_v23 = vadd.f32 %v3885_v24, %v3877_v43  ;;  %v4333_v7 = vsel %vm2052_vm7, %v4318_v59, %v14150_v9  ;;  %v14342_v27 = vpop.permute.xlu0 %3835 }
 0x46f   : > { %v4334_v40 = vsel %vm2052_vm7, %v13987_v57, %v4318_v59  ;;  %v4347_v52 = vmul.f32 %v4333_v7, %v18484_v55  ;;  %v4361_v32 = vmul.f32 %v4333_v7, %v18516_v1  ;;  %v4913_v39 = vsel %vm4889_vm10, %v4869_v46, 0.0 }
 0x470   : > { %v4346_v36 = vmul.f32 %v4334_v40, %v18484_v55  ;;  %v4360_v16 = vmul.f32 %v4334_v40, %v18516_v1  ;;  %v5012_v43 = vsel %vm4889_vm10, %v4969_v41, 0.0  ;;  %v4374_v33 = vmul.f32 %v4334_v40, %v18342_v53  ;;  %v4392_v24 = vpop.permute.xlu1 %4391  ;;  %v18546_v41 = vld [vmem:[#allocation208_spill] sm:$0xff] }
 0x471   : > { %v4375_v63 = vmul.f32 %v4333_v7, %v18342_v53  ;;  %v14351_v37 = vadd.f32 %v4347_v52, %v4303_v22  ;;  %v14355_v35 = vadd.f32 %v4361_v32, %v4353_v20  ;;  %v4970_v12 = vmul.f32 %v4870_v29, %v14270_v34  ;;  %v18547_v22 = vld [vmem:[#allocation61_spill] sm:$0xff] }
 0x472   : > { %v14349_v57 = vadd.f32 %v4346_v36, %v14191_v17  ;;  %v14353_v60 = vadd.f32 %v4360_v16, %v4352_v14  ;;  %v4382_v59 = vadd.f32 %v4374_v33, %v4366_v62  ;;  %v4423_v40 = vsel %vm2149_vm6, %v18546_v41, %v4392_v24  ;;  %v14366_v14 = vpop.permute.xlu0 %4403  ;;  %v4691_v33 = vld [vmem:[#allocation7 + $0x10] sm:$0xff] }
 0x473   : > { %18545 = vst [vmem:[#allocation160_spill] sm:$0xff] %v14355_v35  ;;  %v14358_v46 = vadd.f32 %v4375_v63, %v4367_v31  ;;  %v4871_v17 = vmul.f32 %v14243_v42, %v14291_v25  ;;  %v4914_v7 = vadd.f32 %v4913_v39, %v4912_v15  ;;  %v4425_v36 = vmul.f32 %v4423_v40, %v18547_v22  ;;  %v18549_v40 = vld [vmem:[#allocation15_spill] sm:$0xff] }
 0x474   : > { %18544 = vst [vmem:[#allocation109_spill] sm:$0xff] %v14349_v57  ;;  %v5013_v20 = vadd.f32 %v5012_v43, %v5011_v19  ;;  %v3830_v16 = vpop.permute.xlu1 %3829  ;;  %v4872_v62 = vmul.f32 %v14247_v0, %v14295_v30  ;;  %v4915_v31 = vsel %vm4889_vm10, %v4870_v29, 0.0  ;;  %v5014_v32 = vsel %vm4889_vm10, %v4970_v12, 0.0 }
 0x475   : > { %v14368_v52 = vadd.f32 %v4425_v36, %v4381_v26  ;;  %v3846_v15 = vsel %vm2343_vm9, %v14048_v10, %v3830_v16  ;;  %v4916_v39 = vadd.f32 %v4915_v31, %v4914_v7  ;;  %v4971_v63 = vmul.f32 %v4871_v17, %v14291_v25 }
 0x476   : > { %v14381_v26 = vsel %vm2343_vm9, %v3830_v16, %v14210_v44  ;;  %v3872_v19 = vmul.f32 %v3846_v15, %v18431_v45  ;;  %v14384_v43 = vpop.permute.xlu0 %4479  ;;  %v5015_v29 = vadd.f32 %v5014_v32, %v5013_v20  ;;  %v3886_v12 = vmul.f32 %v3846_v15, %v18441_v54  ;;  %v18552_v16 = vld [vmem:[#allocation201_spill] sm:$0xff] }
 0x477   : > { %18548 = vst [vmem:[#allocation46_spill] sm:$0xff] %v14384_v43  ;;  %v14388_v36 = vrot.slane %v4691_v33, %v18549_v40  ;;  %v14391_v10 = vadd.f32 %v3893_v23, %v18465_v18  ;;  %v4917_v0 = vsel %vm4889_vm10, %v4871_v17, 0.0  ;;  %v14397_v42 = vrot.slane %v4691_v33, %v18552_v16 }
 0x478   : > { %v14393_v7 = vadd.f32 %v3872_v19, %v3864_v2  ;;  %v4394_v31 = vpop.permute.xlu1 %4393  ;;  %v3887_v3 = vmul.f32 %v14381_v26, %v18441_v54  ;;  %v3894_v20 = vadd.f32 %v3886_v12, %v3878_v6  ;;  %v4918_v32 = vadd.f32 %v4917_v0, %v4916_v39 }
 0x479   : > { %18550 = vst [vmem:[#allocation165_spill] sm:$0xff] %v14388_v36  ;;  %18551 = vst [vmem:[#allocation30_spill] sm:$0xff] %v14391_v10  ;;  %v4972_v25 = vmul.f32 %v4872_v62, %v14295_v30  ;;  %v5016_v34 = vsel %vm4889_vm10, %v4971_v63, 0.0  ;;  %v4422_v23 = vsel %vm2149_vm6, %v4392_v24, %v4394_v31  ;;  %v14408_v17 = vrot.slane %v4691_v33, %v18554_v4  ;;  %v18558_v63 = vld [vmem:[#allocation188_spill] sm:$0xff] }
 0x47a   : > { %18553 = vst [vmem:[#allocation122_spill] sm:$0xff] %v14397_v42  ;;  %v14405_v2 = vpop.permute.xlu0 %4405  ;;  %v5017_v19 = vadd.f32 %v5016_v34, %v5015_v29  ;;  %v4426_v43 = vmul.f32 %v4422_v23, %v18547_v22  ;;  %v14412_v38 = vrot.slane %v4691_v33, %v18500_v49  ;;  %v4873_v0 = vmul.f32 %v14388_v36, %v14391_v10  ;;  %v14425_v29 = vld [vmem:[#allocation7 + $0x18] sm:$0xff] }
 0x47b   : > { %18555 = vst [vmem:[#allocation68_spill] sm:$0xff] %v14408_v17  ;;  %v14417_v6 = vadd.f32 %v3894_v20, %v18465_v18  ;;  %v14420_v24 = vrot.slane %v4691_v33, %v18558_v63  ;;  %v14423_v34 = vrot.slane %v4691_v33, %v18524_v47  ;;  %18561 = vst [vmem:[#allocation186_spill] sm:$0xff] %v14425_v29  ;;  %v4919_v12 = vsel %vm4889_vm10, %v4872_v62, 0.0 }
 0x47c   : > { %18556 = vst [vmem:[#allocation116_spill] sm:$0xff] %v14412_v38  ;;  %v3754_v39 = vpop.permute.xlu1 %3753  ;;  %v3895_v23 = vadd.f32 %v3887_v3, %v14330_v28  ;;  %v14429_v30 = vadd.f32 %v4426_v43, %v4382_v59  ;;  %v14432_v36 = vrot.slane %v4691_v33, %v18527_v48  ;;  %v4920_v20 = vadd.f32 %v4919_v12, %v4918_v32  ;;  %v18563_v38 = vld [vmem:[#allocation207_spill] sm:$0xff] }
 0x47d   : > { %18557 = vst [vmem:[#allocation81_spill] sm:$0xff] %v14417_v6  ;;  %18559 = vst [vmem:[#allocation84_spill] sm:$0xff] %v14420_v24  ;;  %v5018_v50 = vsel %vm4889_vm10, %v4972_v25, 0.0  ;;  %v3758_v24 = vsel %vm2246_vm8, %v18563_v38, %v3754_v39  ;;  %v14445_v3 = vrot.slane %v14425_v29, %v18549_v40  ;;  %v14449_v28 = vrot.slane %v14425_v29, %v18552_v16 }
 0x47e   : > { %18560 = vst [vmem:[#allocation26_spill] sm:$0xff] %v14423_v34  ;;  %18562 = vst [vmem:[#allocation199_spill] sm:$0xff] %v14432_v36  ;;  %v14438_v57 = vpop.permute.xlu0 %4483  ;;  %v18564_v34 = vld [vmem:[#allocation58_spill] sm:$0xff]  ;;  %v5019_v62 = vadd.f32 %v5018_v50, %v5017_v19  ;;  %v14453_v25 = vrot.slane %v14425_v29, %v18554_v4  ;;  %v4973_v38 = vmul.f32 %v4873_v0, %v14391_v10  ;;  %v18569_v50 = vld [vmem:[#allocation149_spill] sm:$0xff] }
 0x47f   : > { %v14441_v35 = vrot.slane %v4691_v33, %v18564_v34  ;;  %18566 = vst [vmem:[#allocation138_spill] sm:$0xff] %v14445_v3  ;;  %18567 = vst [vmem:[#allocation161_spill] sm:$0xff] %v14449_v28  ;;  %v4874_v59 = vmul.f32 %v14397_v42, %v14417_v6  ;;  %v3792_v33 = vmul.f32 %v3758_v24, %v18261_v58  ;;  %v18571_v19 = vld [vmem:[#allocation150_spill] sm:$0xff]  ;;  %v18574_v10 = vld [vmem:[#allocation217_spill] sm:$0xff] }
 0x480   : > { %18568 = vst [vmem:[#allocation153_spill] sm:$0xff] %v14453_v25  ;;  %v3806_v43 = vmul.f32 %v3758_v24, %v18569_v50  ;;  %v4322_v32 = vpop.permute.xlu1 %4321  ;;  %v14461_v40 = vadd.f32 %v3895_v23, %v18465_v18  ;;  %v4421_v16 = vsel %vm2149_vm6, %v4394_v31, %v18571_v19  ;;  %v14468_v4 = vrot.slane %v14425_v29, %v18500_v49  ;;  %v18576_v31 = vld [vmem:[#allocation209_spill] sm:$0xff]  ;;  %v18579_v28 = vld [vmem:[#allocation64_spill] sm:$0xff]  ;;  %v18580_v3 = vld [vmem:[#allocation23_spill] sm:$0xff] }
 0x481   : > { %18565 = vst [vmem:[#allocation184_spill] sm:$0xff] %v14441_v35  ;;  %v14472_v12 = vrot.slane %v14425_v29, %v18558_v63  ;;  %v3858_v42 = vmul.f32 %v3846_v15, %v18341_v61  ;;  %v3800_v24 = vadd.f32 %v3792_v33, %v14322_v5  ;;  %v14481_v25 = vrot.slane %v14425_v29, %v18524_v47  ;;  %v18578_v63 = vld [vmem:[#allocation148_spill] sm:$0xff] }
 0x482   : > { %18570 = vst [vmem:[#allocation154_spill] sm:$0xff] %v14461_v40  ;;  %18572 = vst [vmem:[#allocation175_spill] sm:$0xff] %v14468_v4  ;;  %v3814_v34 = vadd.f32 %v3806_v43, %v18574_v10  ;;  %v14477_v23 = vpop.permute.xlu0 %4407  ;;  %v4420_v49 = vsel %vm2149_vm6, %v18571_v19, %v18576_v31  ;;  %v18577_v4 = vld [vmem:[#allocation67_spill] sm:$0xff]  ;;  %v4921_v5 = vsel %vm4889_vm10, %v4873_v0, 0.0  ;;  %v3873_v10 = vmul.f32 %v14381_v26, %v18431_v45 }
 0x483   : > { %18573 = vst [vmem:[#allocation103_spill] sm:$0xff] %v14472_v12  ;;  %18575 = vst [vmem:[#allocation123_spill] sm:$0xff] %v14481_v25  ;;  %v3768_v15 = vsel %vm2246_vm8, %v18578_v63, %v18577_v4  ;;  %v5020_v33 = vsel %vm4889_vm10, %v4973_v38, 0.0  ;;  %v4974_v47 = vmul.f32 %v4874_v59, %v14417_v6  ;;  %v4427_v43 = vmul.f32 %v4421_v16, %v18547_v22 }
 0x484   : > { %v14497_v25 = vadd.f32 %v3858_v42, %v3814_v34  ;;  %v14499_v12 = vpop.permute.xlu1 %4399  ;;  %v4875_v19 = vmul.f32 %v14408_v17, %v14461_v40  ;;  %v4441_v4 = vmul.f32 %v4421_v16, %v18579_v28  ;;  %v4304_v0 = vadd.f32 %v18542_v11, %v18580_v3 }
 0x485   : > { %v14508_v35 = vrot.slane %v14425_v29, %v18527_v48  ;;  %v14511_v38 = vmul.f32 %v4420_v49, %v18547_v22  ;;  %v4442_v42 = vmul.f32 %v4420_v49, %v18579_v28  ;;  %v3808_v34 = vmul.f32 %v3768_v15, %v18569_v50 }
 0x486   : > { %v4922_v6 = vadd.f32 %v4921_v5, %v4920_v20  ;;  %v14515_v36 = vpop.permute.xlu0 %4557  ;;  %v5021_v17 = vadd.f32 %v5020_v33, %v5019_v62  ;;  %v3859_v16 = vmul.f32 %v14381_v26, %v18341_v61  ;;  %v3881_v11 = vadd.f32 %v3873_v10, %v14325_v51 }
 0x487   : > { %18581 = vst [vmem:[#allocation76_spill] sm:$0xff] %v14508_v35  ;;  %18582 = vst [vmem:[#allocation121_spill] sm:$0xff] %v14515_v36  ;;  %v4416_v48 = vsel %vm2149_vm6, %v14366_v14, %v14405_v2  ;;  %v4923_v3 = vsel %vm4889_vm10, %v4874_v59, 0.0  ;;  %v5022_v49 = vsel %vm4889_vm10, %v4974_v47, 0.0  ;;  %v4435_v15 = vadd.f32 %v4427_v43, %v14358_v46 }
 0x488   : > { %v3757_v20 = vsel %vm2246_vm8, %v3754_v39, %v18578_v63  ;;  %v3834_v62 = vpop.permute.xlu1 %3833  ;;  %v4975_v26 = vmul.f32 %v4875_v19, %v14461_v40  ;;  %v4449_v51 = vadd.f32 %v4441_v4, %v14368_v52  ;;  %v4331_v5 = vsel %vm2052_vm7, %v4322_v32, %v14287_v56 }
 0x489   : > { %v3844_v59 = vsel %vm2343_vm9, %v14210_v44, %v3834_v62  ;;  %v14539_v10 = vmul.f32 %v4416_v48, %v18547_v22  ;;  %v14542_v46 = vmul.f32 %v4416_v48, %v18579_v28  ;;  %v4332_v39 = vsel %vm2052_vm7, %v14150_v9, %v4322_v32 }
 0x48a   : > { %v3843_v52 = vsel %vm2343_vm9, %v3834_v62, %v14342_v27  ;;  %v8126_v63 = vpop.permute.xlu0 %8125  ;;  %v4924_v33 = vadd.f32 %v4923_v3, %v4922_v6  ;;  %v5023_v47 = vadd.f32 %v5022_v49, %v5021_v17  ;;  %v3807_v43 = vmul.f32 %v3757_v20, %v18569_v50 }
 0x48b   : > { %v3888_v44 = vmul.f32 %v3844_v59, %v18441_v54  ;;  %v4925_v4 = vsel %vm4889_vm10, %v4875_v19, 0.0  ;;  %v14554_v40 = vmul.f32 %v4416_v48, %v18494_v13  ;;  %v4363_v35 = vmul.f32 %v4331_v5, %v18516_v1 }
 0x48c   : > { %v8128_v29 = vunpack.i.h.bf16 %v8126_v63  ;;  %v4402_v9 = vpop.permute.xlu1 %4401  ;;  %v5024_v32 = vsel %vm4889_vm10, %v4975_v26, 0.0  ;;  %v4376_v62 = vmul.f32 %v4332_v39, %v18342_v53  ;;  %v3889_v6 = vmul.f32 %v3843_v52, %v18441_v54 }
 0x48d   : > { %v3896_v17 = vadd.f32 %v3888_v44, %v14393_v7  ;;  %v4348_v3 = vmul.f32 %v4332_v39, %v18484_v55  ;;  %v4377_v49 = vmul.f32 %v4331_v5, %v18342_v53  ;;  %v4419_v19 = vsel %vm2149_vm6, %v18576_v31, %v14499_v12 }
 0x48e   : > { %v4424_v48 = vsel %vm2149_vm6, %v8128_v29, %v18546_v41  ;;  %v14570_v20 = vpop.permute.xlu0 %4561  ;;  %v14572_v26 = vadd.f32 %v4925_v4, %v4924_v33  ;;  %v14574_v36 = vadd.f32 %v5024_v32, %v5023_v47  ;;  %v14577_v7 = vadd.f32 %v4442_v42, %v14429_v30 }
 0x48f   : > { %18583 = vst [vmem:[#allocation129_spill] sm:$0xff] %v14570_v20  ;;  %v3815_v55 = vadd.f32 %v3807_v43, %v14328_v8  ;;  %v3816_v5 = vadd.f32 %v3808_v34, %v3800_v24  ;;  %v4362_v44 = vmul.f32 %v4332_v39, %v18516_v1  ;;  %v14582_v31 = vadd.f32 %v4363_v35, %v14351_v37  ;;  %v18585_v34 = vld [vmem:[#allocation160_spill] sm:$0xff] }
 0x490   : > { %v4415_v41 = vsel %vm2149_vm6, %v14405_v2, %v14477_v23  ;;  %v14588_v33 = vpop.permute.xlu1 %4475  ;;  %v4384_v47 = vadd.f32 %v4376_v62, %v14353_v60  ;;  %v4429_v30 = vmul.f32 %v4419_v19, %v18547_v22  ;;  %v3897_v42 = vadd.f32 %v3889_v6, %v3881_v11  ;;  %v18587_v62 = vld [vmem:[#allocation109_spill] sm:$0xff] }
 0x491   : > { %v14593_v8 = vadd.f32 %v3896_v17, %v18465_v18  ;;  %v4356_v24 = vadd.f32 %v4348_v3, %v4304_v0  ;;  %v4385_v39 = vadd.f32 %v4377_v49, %v18585_v34  ;;  %v4443_v37 = vmul.f32 %v4419_v19, %v18579_v28 }
 0x492   : > { %v4457_v35 = vmul.f32 %v4419_v19, %v18494_v13  ;;  %v14598_v43 = vpop.permute.xlu0 %4489  ;;  %v3860_v2 = vmul.f32 %v3844_v59, %v18341_v61  ;;  %v3867_v4 = vadd.f32 %v3859_v16, %v3815_v55  ;;  %v3874_v60 = vmul.f32 %v3844_v59, %v18431_v45  ;;  %v18589_v16 = vld [vmem:[#allocation116_spill] sm:$0xff] }
 0x493   : > { %18584 = vst [vmem:[#allocation140_spill] sm:$0xff] %v14593_v8  ;;  %18586 = vst [vmem:[#allocation134_spill] sm:$0xff] %v14598_v43  ;;  %v8127_v32 = vunpack.i.l.bf16 %v8126_v63  ;;  %v14603_v11 = vadd.f32 %v4362_v44, %v18587_v62  ;;  %v14606_v6 = vmul.f32 %v4415_v41, %v18579_v28  ;;  %v14609_v0 = vmul.f32 %v4415_v41, %v18494_v13 }
 0x494   : > { %v3875_v17 = vmul.f32 %v3843_v52, %v18431_v45  ;;  %v8121_v3 = vpop.permute.xlu1 %8120  ;;  %v4437_v49 = vadd.f32 %v4429_v30, %v4385_v39  ;;  %v14613_v19 = vadd.f32 %v3897_v42, %v18465_v18  ;;  %v4876_v59 = vmul.f32 %v18589_v16, %v14593_v8 }
 0x495   : > { %v4436_v63 = vadd.f32 %v14511_v38, %v4384_v47  ;;  %v4451_v55 = vadd.f32 %v4443_v37, %v4435_v15  ;;  %v4465_v44 = vadd.f32 %v4457_v35, %v4449_v51  ;;  %v8123_v34 = vunpack.i.h.bf16 %v8121_v3  ;;  %v18590_v51 = vld [vmem:[#allocation164_spill] sm:$0xff] }
 0x496   : > { %18588 = vst [vmem:[#allocation27_spill] sm:$0xff] %v14613_v19  ;;  %v8122_v62 = vunpack.i.l.bf16 %v8121_v3  ;;  %v14618_v43 = vpop.permute.xlu0 %4567  ;;  %v14620_v41 = vadd.f32 %v3860_v2, %v3816_v5  ;;  %v3882_v52 = vadd.f32 %v3874_v60, %v14497_v25  ;;  %v4413_v30 = vsel %vm2149_vm6, %v8127_v32, %v8128_v29  ;;  %v18591_v29 = vld [vmem:[#allocation84_spill] sm:$0xff]  ;;  %v18593_v3 = vld [vmem:[#allocation170_spill] sm:$0xff] }
 0x497   : > { %v4414_v42 = vsel %vm2149_vm6, %v14477_v23, %v8127_v32  ;;  %v14628_v39 = vadd.f32 %v3875_v17, %v3867_v4  ;;  %v4418_v38 = vsel %vm2149_vm6, %v14499_v12, %v4402_v9  ;;  %v4340_v25 = vsel %vm2052_vm7, %v8123_v34, %v18590_v51 }
 0x498   : > { %v4330_v15 = vsel %vm2052_vm7, %v14287_v56, %v8122_v62  ;;  %v4478_v5 = vpop.permute.xlu1 %4477  ;;  %v4877_v47 = vmul.f32 %v18591_v29, %v14613_v19  ;;  %v4976_v23 = vmul.f32 %v4876_v59, %v14593_v8  ;;  %v4417_v37 = vsel %vm2149_vm6, %v4402_v9, %v14366_v14 }
 0x499   : > { %v4364_v12 = vmul.f32 %v4330_v15, %v18516_v1  ;;  %v14647_v35 = vmul.f32 %v4424_v48, %v18494_v13  ;;  %v4448_v56 = vmul.f32 %v4414_v42, %v18579_v28  ;;  %v14651_v2 = vmul.f32 %v4414_v42, %v18494_v13 }
 0x49a   : > { %v14654_v4 = vmul.f32 %v4413_v30, %v18494_v13  ;;  %v4927_v60 = vsel %vm4889_vm10, %v4876_v59, 0.0  ;;  %v4444_v32 = vmul.f32 %v4418_v38, %v18579_v28  ;;  %v4380_v14 = vmul.f32 %v4340_v25, %v18342_v53  ;;  %v14659_v9 = vpop.permute.xlu0 %4569 }
 0x49b   : > { %v4372_v17 = vadd.f32 %v4364_v12, %v4356_v24  ;;  %v4431_v1 = vmul.f32 %v4417_v37, %v18547_v22  ;;  %v4445_v48 = vmul.f32 %v4417_v37, %v18579_v28  ;;  %v4507_v42 = vsel %vm2246_vm8, %v18593_v3, %v14588_v33 }
 0x49c   : > { %18592 = vst [vmem:[#allocation128_spill] sm:$0xff] %v14654_v4  ;;  %v4329_v30 = vsel %vm2052_vm7, %v8122_v62, %v8123_v34  ;;  %v3838_v59 = vpop.permute.xlu1 %3837  ;;  %v4977_v51 = vmul.f32 %v4877_v47, %v14613_v19  ;;  %v5026_v24 = vsel %vm4889_vm10, %v4976_v23, 0.0  ;;  %v4458_v25 = vmul.f32 %v4418_v38, %v18494_v13  ;;  %v18594_v4 = vld [vmem:[#allocation139_spill] sm:$0xff] }
 0x49d   : > { %v4388_v12 = vadd.f32 %v4380_v14, %v4372_v17  ;;  %v4928_v29 = vadd.f32 %v4927_v60, %v14572_v26  ;;  %v4430_v28 = vmul.f32 %v4418_v38, %v18547_v22  ;;  %v4459_v16 = vmul.f32 %v4417_v37, %v18494_v13 }
 0x49e   : > { %v4378_v8 = vmul.f32 %v4330_v15, %v18342_v53  ;;  %v4452_v3 = vadd.f32 %v4444_v32, %v4436_v63  ;;  %v4509_v20 = vmul.f32 %v4507_v42, %v18594_v4  ;;  %v4379_v34 = vmul.f32 %v4329_v30, %v18342_v53  ;;  %v18595_v15 = vld [vmem:[#allocation46_spill] sm:$0xff]  ;;  %v14692_v37 = vpop.permute.xlu0 %4571 }
 0x49f   : > { %v3842_v62 = vsel %vm2343_vm9, %v14342_v27, %v3838_v59  ;;  %v4929_v23 = vsel %vm4889_vm10, %v4877_v47, 0.0  ;;  %v5027_v17 = vadd.f32 %v5026_v24, %v14574_v36  ;;  %v4453_v26 = vadd.f32 %v4445_v48, %v4437_v49 }
 0x4a0   : > { %v3890_v22 = vmul.f32 %v3842_v62, %v18441_v54  ;;  %v4482_v38 = vpop.permute.xlu1 %4481  ;;  %v5028_v13 = vsel %vm4889_vm10, %v4977_v51, 0.0  ;;  %v4466_v63 = vadd.f32 %v4458_v25, %v14577_v7  ;;  %v4505_v53 = vsel %vm2246_vm8, %v4478_v5, %v18595_v15 }
 0x4a1   : > { %v4506_v27 = vsel %vm2246_vm8, %v14588_v33, %v4478_v5  ;;  %v4467_v47 = vadd.f32 %v4459_v16, %v4451_v55  ;;  %v4386_v36 = vadd.f32 %v4378_v8, %v14603_v11  ;;  %v4440_v49 = vadd.f32 %v14539_v10, %v4388_v12 }
 0x4a2   : > { %v3898_v60 = vadd.f32 %v3890_v22, %v3882_v52  ;;  %v14696_v32 = vadd.f32 %v4929_v23, %v4928_v29  ;;  %v4517_v14 = vadd.f32 %v4509_v20, %v4465_v44  ;;  %v4387_v7 = vadd.f32 %v4379_v34, %v14582_v31  ;;  %v18597_v31 = vld [vmem:[#allocation194_spill] sm:$0xff]  ;;  %v14723_v51 = vpop.permute.xlu0 %4575 }
 0x4a3   : > { %v4468_v48 = vadd.f32 %v14554_v40, %v4452_v3  ;;  %v14700_v42 = vadd.f32 %v5028_v13, %v5027_v17  ;;  %v4510_v30 = vmul.f32 %v4506_v27, %v18594_v4  ;;  %v4511_v33 = vmul.f32 %v4505_v53, %v18594_v4 }
 0x4a4   : > { %v4469_v16 = vadd.f32 %v14609_v0, %v4453_v26  ;;  %v3840_v55 = vpop.permute.xlu1 %3839  ;;  %v4525_v8 = vmul.f32 %v4505_v53, %v18261_v58  ;;  %v3876_v10 = vmul.f32 %v3842_v62, %v18431_v45  ;;  %v14708_v11 = vadd.f32 %v3898_v60, %v18465_v18  ;;  %v18598_v62 = vld [vmem:[#allocation26_spill] sm:$0xff] }
 0x4a5   : > { %v3841_v20 = vsel %vm2343_vm9, %v3838_v59, %v3840_v55  ;;  %v4438_v40 = vadd.f32 %v4430_v28, %v4386_v36  ;;  %v3852_v44 = vsel %vm2343_vm9, %v3840_v55, %v18597_v31  ;;  %v4456_v5 = vadd.f32 %v4448_v56, %v4440_v49 }
 0x4a6   : > { %18596 = vst [vmem:[#allocation114_spill] sm:$0xff] %v14708_v11  ;;  %v3891_v52 = vmul.f32 %v3841_v20, %v18441_v54  ;;  %v4439_v0 = vadd.f32 %v4431_v1, %v4387_v7  ;;  %v4586_v29 = vsel %vm2343_vm9, %v14618_v43, %v14659_v9  ;;  %v4504_v3 = vsel %vm2246_vm8, %v18595_v15, %v4482_v38 }
 0x4a7   : > { %v3892_v59 = vmul.f32 %v3852_v44, %v18441_v54  ;;  %v4518_v24 = vadd.f32 %v4510_v30, %v4466_v63  ;;  %v4519_v25 = vadd.f32 %v4511_v33, %v4467_v47  ;;  %v4503_v56 = vsel %vm2246_vm8, %v4482_v38, %v14438_v57  ;;  %v18600_v30 = vld [vmem:[#allocation199_spill] sm:$0xff] }
 0x4a8   : > { %v3899_v1 = vadd.f32 %v3891_v52, %v14628_v39  ;;  %v4486_v12 = vpop.permute.xlu1 %4485  ;;  %v4533_v28 = vadd.f32 %v4525_v8, %v4517_v14  ;;  %v3884_v34 = vadd.f32 %v3876_v10, %v14620_v41  ;;  %v4878_v23 = vmul.f32 %v18598_v62, %v14708_v11  ;;  %v14768_v14 = vpop.permute.xlu0 %4579 }
 0x4a9   : > { %v14734_v17 = vadd.f32 %v14647_v35, %v4456_v5  ;;  %v4585_v26 = vsel %vm2343_vm9, %v14659_v9, %v14692_v37  ;;  %v4512_v22 = vmul.f32 %v4504_v3, %v18594_v4  ;;  %v4454_v39 = vadd.f32 %v14542_v46, %v4438_v40  ;;  %v18602_v5 = vld [vmem:[#allocation121_spill] sm:$0xff] }
 0x4aa   : > { %v14742_v38 = vadd.f32 %v3899_v1, %v18465_v18  ;;  %v14746_v41 = vmul.f32 %v4586_v29, %v18341_v61  ;;  %v4513_v13 = vmul.f32 %v4503_v56, %v18594_v4  ;;  %v4526_v35 = vmul.f32 %v4504_v3, %v18261_v58  ;;  %v18603_v3 = vld [vmem:[#allocation129_spill] sm:$0xff] }
 0x4ab   : > { %v3900_v63 = vadd.f32 %v3892_v59, %v3884_v34  ;;  %v14751_v15 = vmul.f32 %v4586_v29, %v18431_v45  ;;  %v14754_v9 = vmul.f32 %v4586_v29, %v18441_v54  ;;  %v4527_v53 = vmul.f32 %v4503_v56, %v18261_v58 }
 0x4ac   : > { %18599 = vst [vmem:[#allocation214_spill] sm:$0xff] %v14742_v38  ;;  %v4541_v27 = vmul.f32 %v4503_v56, %v18569_v50  ;;  %v4560_v47 = vpop.permute.xlu1 %4559  ;;  %v4978_v46 = vmul.f32 %v4878_v23, %v14708_v11  ;;  %v14760_v36 = vmul.f32 %v4585_v26, %v18341_v61  ;;  %v14763_v49 = vmul.f32 %v4585_v26, %v18431_v45 }
 0x4ad   : > { %v14766_v60 = vmul.f32 %v4585_v26, %v18441_v54  ;;  %v4520_v7 = vadd.f32 %v4512_v22, %v4468_v48  ;;  %v4879_v33 = vmul.f32 %v18600_v30, %v14742_v38  ;;  %v4470_v55 = vadd.f32 %v14651_v2, %v4454_v39  ;;  %v18605_v26 = vld [vmem:[#allocation128_spill] sm:$0xff] }
 0x4ae   : > { %v4502_v8 = vsel %vm2246_vm8, %v14438_v57, %v4486_v12  ;;  %v14776_v10 = vadd.f32 %v4513_v13, %v4469_v16  ;;  %v4534_v20 = vadd.f32 %v4526_v35, %v4518_v24  ;;  %v14779_v40 = vadd.f32 %v3900_v63, %v18465_v18 }
 0x4af   : > { %v4455_v31 = vadd.f32 %v14606_v6, %v4439_v0  ;;  %v4931_v44 = vsel %vm4889_vm10, %v4878_v23, 0.0  ;;  %v4535_v48 = vadd.f32 %v4527_v53, %v4519_v25  ;;  %v4549_v52 = vadd.f32 %v4541_v27, %v4533_v28  ;;  %v18604_v28 = vld [vmem:[#allocation184_spill] sm:$0xff]  ;;  %v18606_v27 = vld [vmem:[#allocation134_spill] sm:$0xff] }
 0x4b0   : > { %18601 = vst [vmem:[#allocation28_spill] sm:$0xff] %v14779_v40  ;;  %v4592_v2 = vsel %vm2343_vm9, %v14768_v14, %v18602_v5  ;;  %v4488_v29 = vpop.permute.xlu1 %4487  ;;  %v5030_v57 = vsel %vm4889_vm10, %v4978_v46, 0.0  ;;  %v4514_v16 = vmul.f32 %v4502_v8, %v18594_v4  ;;  %v4590_v59 = vsel %vm2343_vm9, %v4560_v47, %v18603_v3 }
 0x4b1   : > { %v4591_v6 = vsel %vm2343_vm9, %v18602_v5, %v4560_v47  ;;  %v4933_v0 = vsel %vm4889_vm10, %v4879_v33, 0.0  ;;  %v4979_v24 = vmul.f32 %v4879_v33, %v14742_v38  ;;  %v4542_v25 = vmul.f32 %v4502_v8, %v18569_v50 }
 0x4b2   : > { %v4501_v56 = vsel %vm2246_vm8, %v4486_v12, %v4488_v29  ;;  %v4932_v1 = vadd.f32 %v4931_v44, %v14696_v32  ;;  %v4880_v34 = vmul.f32 %v18604_v28, %v14779_v40  ;;  %v4528_v23 = vmul.f32 %v4502_v8, %v18261_v58 }
 0x4b3   : > { %v4471_v22 = vadd.f32 %v18605_v26, %v4455_v31  ;;  %v14806_v39 = vmul.f32 %v4592_v2, %v18441_v54  ;;  %v4593_v13 = vmul.f32 %v4591_v6, %v18341_v61  ;;  %v4594_v35 = vmul.f32 %v4590_v59, %v18341_v61 }
 0x4b4   : > { %v4543_v63 = vmul.f32 %v4501_v56, %v18569_v50  ;;  %v4564_v53 = vpop.permute.xlu1 %4563  ;;  %v5031_v12 = vadd.f32 %v5030_v57, %v14700_v42  ;;  %v4934_v32 = vadd.f32 %v4933_v0, %v4932_v1  ;;  %v4500_v47 = vsel %vm2246_vm8, %v4488_v29, %v18606_v27 }
 0x4b5   : > { %v4589_v46 = vsel %vm2343_vm9, %v18603_v3, %v4564_v53  ;;  %v5032_v33 = vsel %vm4889_vm10, %v4979_v24, 0.0  ;;  %v4522_v8 = vadd.f32 %v4514_v16, %v4470_v55  ;;  %v4550_v31 = vadd.f32 %v4542_v25, %v4534_v20 }
 0x4b6   : > { %v4595_v44 = vmul.f32 %v4589_v46, %v18341_v61  ;;  %v4935_v5 = vsel %vm4889_vm10, %v4880_v34, 0.0  ;;  %v4980_v2 = vmul.f32 %v4880_v34, %v14779_v40  ;;  %v4536_v42 = vadd.f32 %v4528_v23, %v4520_v7 }
 0x4b7   : > { %v4609_v57 = vmul.f32 %v4589_v46, %v18431_v45  ;;  %v4601_v59 = vadd.f32 %v4593_v13, %v4549_v52  ;;  %v4602_v6 = vadd.f32 %v4594_v35, %v4550_v31  ;;  %v4544_v29 = vmul.f32 %v4500_v47, %v18569_v50 }
 0x4b8   : > { %v4551_v0 = vadd.f32 %v4543_v63, %v4535_v48  ;;  %v4566_v1 = vpop.permute.xlu1 %4565  ;;  %v14824_v3 = vadd.f32 %v4935_v5, %v4934_v32  ;;  %v5033_v24 = vadd.f32 %v5032_v33, %v5031_v12  ;;  %v5034_v48 = vsel %vm4889_vm10, %v4980_v2, 0.0 }
 0x4b9   : > { %v4587_v55 = vsel %vm2343_vm9, %v4566_v1, %v14618_v43  ;;  %v4588_v20 = vsel %vm2343_vm9, %v4564_v53, %v4566_v1  ;;  %v4529_v34 = vmul.f32 %v4501_v56, %v18261_v58  ;;  %v4617_v23 = vadd.f32 %v4609_v57, %v4601_v59 }
 0x4ba   : > { %v4603_v16 = vadd.f32 %v4595_v44, %v4551_v0  ;;  %v4596_v7 = vmul.f32 %v4588_v20, %v18341_v61  ;;  %v4610_v52 = vmul.f32 %v4588_v20, %v18431_v45  ;;  %v4611_v25 = vmul.f32 %v4587_v55, %v18431_v45 }
 0x4bb   : > { %v4625_v26 = vmul.f32 %v4587_v55, %v18441_v54  ;;  %v4515_v13 = vmul.f32 %v4501_v56, %v18594_v4  ;;  %v4552_v43 = vadd.f32 %v4544_v29, %v4536_v42  ;;  %v4516_v12 = vmul.f32 %v4500_v47, %v18594_v4 }
 0x4bc   : > { %v4618_v35 = vadd.f32 %v4610_v52, %v4602_v6  ;;  %v4619_v63 = vadd.f32 %v4611_v25, %v4603_v16  ;;  %v4492_v53 = vpop.permute.xlu1 %4491  ;;  %v4530_v32 = vmul.f32 %v4500_v47, %v18261_v58  ;;  %v14846_v2 = vadd.f32 %v5034_v48, %v5033_v24  ;;  %v18610_v6 = vld [vmem:[#allocation138_spill] sm:$0xff]  ;;  %v18612_v48 = vld [vmem:[#allocation153_spill] sm:$0xff] }
 0x4bd   : > { %v4633_v46 = vadd.f32 %v4625_v26, %v4617_v23  ;;  %v4499_v33 = vsel %vm2246_vm8, %v18606_v27, %v4492_v53  ;;  %v4604_v31 = vadd.f32 %v4596_v7, %v4552_v43  ;;  %v4537_v42 = vadd.f32 %v4529_v34, %v14776_v10 }
 0x4be   : > { %v4634_v44 = vadd.f32 %v14754_v9, %v4618_v35  ;;  %v4635_v5 = vadd.f32 %v14766_v60, %v4619_v63  ;;  %v4531_v56 = vmul.f32 %v4499_v33, %v18261_v58  ;;  %v4545_v47 = vmul.f32 %v4499_v33, %v18569_v50 }
 0x4bf   : > { %v14850_v4 = vadd.f32 %v4633_v46, %v18465_v18  ;;  %v4523_v57 = vadd.f32 %v4515_v13, %v4471_v22  ;;  %v4597_v59 = vmul.f32 %v4587_v55, %v18341_v61  ;;  %v4524_v24 = vadd.f32 %v4516_v12, %v14734_v17  ;;  %v18611_v55 = vld [vmem:[#allocation161_spill] sm:$0xff]  ;;  %v18613_v17 = vld [vmem:[#allocation170_spill] sm:$0xff] }
 0x4c0   : > { %v14855_v27 = vadd.f32 %v4634_v44, %v18465_v18  ;;  %v14858_v9 = vadd.f32 %v4635_v5, %v18465_v18  ;;  %v8131_v60 = vpop.permute.xlu1 %8130  ;;  %v4553_v0 = vadd.f32 %v4545_v47, %v4537_v42  ;;  %v4538_v20 = vadd.f32 %v4530_v32, %v4522_v8 }
 0x4c1   : > { %18607 = vst [vmem:[#allocation105_spill] sm:$0xff] %v14850_v4  ;;  %v4881_v29 = vmul.f32 %v18610_v6, %v14850_v4  ;;  %v8133_v10 = vunpack.i.h.bf16 %v8131_v60  ;;  %v8132_v1 = vunpack.i.l.bf16 %v8131_v60  ;;  %v4620_v22 = vadd.f32 %v14751_v15, %v4604_v31 }
 0x4c2   : > { %18608 = vst [vmem:[#allocation195_spill] sm:$0xff] %v14855_v27  ;;  %18609 = vst [vmem:[#allocation112_spill] sm:$0xff] %v14858_v9  ;;  %v4539_v16 = vadd.f32 %v4531_v56, %v4523_v57  ;;  %v4882_v7 = vmul.f32 %v18611_v55, %v14855_v27  ;;  %v4605_v52 = vadd.f32 %v4597_v59, %v4553_v0 }
 0x4c3   : > { %v4497_v25 = vsel %vm2246_vm8, %v8132_v1, %v8133_v10  ;;  %v4883_v34 = vmul.f32 %v18612_v48, %v14858_v9  ;;  %v4937_v23 = vsel %vm4889_vm10, %v4881_v29, 0.0  ;;  %v4498_v26 = vsel %vm2246_vm8, %v4492_v53, %v8132_v1 }
 0x4c4   : > { %v4508_v15 = vsel %vm2246_vm8, %v8133_v10, %v18613_v17  ;;  %v4547_v8 = vmul.f32 %v4497_v25, %v18569_v50  ;;  %v4574_v13 = vpop.permute.xlu1 %4573  ;;  %v4981_v43 = vmul.f32 %v4881_v29, %v14850_v4  ;;  %v4532_v35 = vmul.f32 %v4498_v26, %v18261_v58 }
 0x4c5   : > { %v4546_v63 = vmul.f32 %v4498_v26, %v18569_v50  ;;  %v4548_v12 = vmul.f32 %v4508_v15, %v18569_v50  ;;  %v4583_v53 = vsel %vm2343_vm9, %v4574_v13, %v14723_v51  ;;  %v4584_v46 = vsel %vm2343_vm9, %v14692_v37, %v4574_v13  ;;  %v18616_v26 = vld [vmem:[#allocation175_spill] sm:$0xff] }
 0x4c6   : > { %v4555_v32 = vadd.f32 %v4547_v8, %v4539_v16  ;;  %v4621_v33 = vadd.f32 %v14763_v49, %v4605_v52  ;;  %v4540_v31 = vadd.f32 %v4532_v35, %v4524_v24  ;;  %v4600_v5 = vmul.f32 %v4584_v46, %v18341_v61  ;;  %v18620_v35 = vld [vmem:[#allocation58_spill] sm:$0xff] }
 0x4c7   : > { %v4554_v44 = vadd.f32 %v4546_v63, %v4538_v20  ;;  %v4614_v58 = vmul.f32 %v4584_v46, %v18431_v45  ;;  %v4615_v50 = vmul.f32 %v4583_v53, %v18431_v45  ;;  %v4628_v42 = vmul.f32 %v4584_v46, %v18441_v54  ;;  %v18621_v63 = vld [vmem:[#allocation186_spill] sm:$0xff]  ;;  %v18624_v46 = vld [vmem:[#allocation123_spill] sm:$0xff] }
 0x4c8   : > { %v4607_v56 = vadd.f32 %v14760_v36, %v4555_v32  ;;  %v4629_v47 = vmul.f32 %v4583_v53, %v18441_v54  ;;  %v4578_v57 = vpop.permute.xlu1 %4577  ;;  %v4556_v59 = vadd.f32 %v4548_v12, %v4540_v31  ;;  %v4938_v21 = vadd.f32 %v4937_v23, %v14824_v3  ;;  %v18619_v23 = vld [vmem:[#allocation103_spill] sm:$0xff] }
 0x4c9   : > { %v4606_v37 = vadd.f32 %v14746_v41, %v4554_v44  ;;  %v4581_v49 = vsel %vm2343_vm9, %v4578_v57, %v14768_v14  ;;  %v4582_v61 = vsel %vm2343_vm9, %v14723_v51, %v4578_v57  ;;  %v4636_v36 = vadd.f32 %v4628_v42, %v4620_v22 }
 0x4ca   : > { %v4623_v60 = vadd.f32 %v4615_v50, %v4607_v56  ;;  %v4637_v29 = vadd.f32 %v4629_v47, %v4621_v33  ;;  %v4616_v0 = vmul.f32 %v4582_v61, %v18431_v45  ;;  %v4608_v10 = vadd.f32 %v4600_v5, %v4556_v59  ;;  %v18625_v56 = vld [vmem:[#allocation76_spill] sm:$0xff] }
 0x4cb   : > { %v4622_v1 = vadd.f32 %v4614_v58, %v4606_v37  ;;  %v4630_v24 = vmul.f32 %v4582_v61, %v18441_v54  ;;  %v4631_v20 = vmul.f32 %v4581_v49, %v18441_v54  ;;  %v14905_v41 = vadd.f32 %v4636_v36, %v18465_v18 }
 0x4cc   : > { %v14908_v14 = vadd.f32 %v4637_v29, %v18465_v18  ;;  %v4939_v51 = vsel %vm4889_vm10, %v4882_v7, 0.0  ;;  %v5036_v22 = vsel %vm4889_vm10, %v4981_v43, 0.0  ;;  %v4624_v16 = vadd.f32 %v4616_v0, %v4608_v10 }
 0x4cd   : > { %18614 = vst [vmem:[#allocation113_spill] sm:$0xff] %v14905_v41  ;;  %v4638_v45 = vadd.f32 %v4630_v24, %v4622_v1  ;;  %v4639_v52 = vadd.f32 %v4631_v20, %v4623_v60  ;;  %v4982_v25 = vmul.f32 %v4882_v7, %v14855_v27  ;;  %v4884_v54 = vmul.f32 %v18616_v26, %v14905_v41 }
 0x4ce   : > { %18615 = vst [vmem:[#allocation63_spill] sm:$0xff] %v14908_v14  ;;  %v4940_v17 = vadd.f32 %v4939_v51, %v4938_v21  ;;  %v4941_v15 = vsel %vm4889_vm10, %v4883_v34, 0.0  ;;  %v4640_v8 = vadd.f32 %v14806_v39, %v4624_v16  ;;  %v4885_v43 = vmul.f32 %v18619_v23, %v14908_v14 }
 0x4cf   : > { %v14919_v13 = vadd.f32 %v4638_v45, %v18465_v18  ;;  %v14922_v3 = vadd.f32 %v4639_v52, %v18465_v18  ;;  %v14928_v7 = vrot.slane %v18621_v63, %v18620_v35  ;;  %v4943_v32 = vsel %vm4889_vm10, %v4884_v54, 0.0 }
 0x4d0   : > { %v4942_v12 = vadd.f32 %v4941_v15, %v4940_v17  ;;  %v5037_v53 = vadd.f32 %v5036_v22, %v14846_v2  ;;  %v14933_v39 = vadd.f32 %v4640_v8, %v18465_v18  ;;  %v4983_v31 = vmul.f32 %v4883_v34, %v14858_v9 }
 0x4d1   : > { %18617 = vst [vmem:[#allocation156_spill] sm:$0xff] %v14919_v13  ;;  %18618 = vst [vmem:[#allocation13_spill] sm:$0xff] %v14922_v3  ;;  %v4886_v33 = vmul.f32 %v18624_v46, %v14919_v13  ;;  %v4984_v44 = vmul.f32 %v4884_v54, %v14905_v41  ;;  %v5038_v58 = vsel %vm4889_vm10, %v4982_v25, 0.0  ;;  %v4887_v50 = vmul.f32 %v18625_v56, %v14922_v3 }
 0x4d2   : > { %18622 = vst [vmem:[#allocation32_spill] sm:$0xff] %v14928_v7  ;;  %18623 = vst [vmem:[#allocation92_spill] sm:$0xff] %v14933_v39  ;;  %v4944_v5 = vadd.f32 %v4943_v32, %v4942_v12  ;;  %v4945_v42 = vsel %vm4889_vm10, %v4885_v43, 0.0  ;;  %v4985_v18 = vmul.f32 %v4885_v43, %v14908_v14  ;;  %v5039_v57 = vadd.f32 %v5038_v58, %v5037_v53  ;;  %v18627_v53 = vld [vmem:[#allocation131_spill] sm:$0xff] }
 0x4d3   : > { %v4947_v2 = vsel %vm4889_vm10, %v4886_v33, 0.0  ;;  %v4888_v59 = vmul.f32 %v14928_v7, %v14933_v39  ;;  %v4986_v34 = vmul.f32 %v4886_v33, %v14919_v13  ;;  %v5040_v37 = vsel %vm4889_vm10, %v4983_v31, 0.0  ;;  %v18628_v31 = vld [vmem:[#allocation96_spill] sm:$0xff] }
 0x4d4   : > { %v4946_v47 = vadd.f32 %v4945_v42, %v4944_v5  ;;  %v5042_v49 = vsel %vm4889_vm10, %v4984_v44, 0.0  ;;  %v5041_v60 = vadd.f32 %v5040_v37, %v5039_v57  ;;  %v4949_v36 = vsel %vm4889_vm10, %v4887_v50, 0.0  ;;  %v18629_v5 = vld [vmem:[#allocation210_spill] sm:$0xff]  ;;  %v18634_v37 = vld [vmem:[#allocation85_spill] sm:$0xff] }
 0x4d5   : > { %v4951_v10 = vsel %vm4889_vm10, %v4888_v59, 0.0  ;;  %v4987_v1 = vmul.f32 %v4887_v50, %v14922_v3  ;;  %v5044_v24 = vsel %vm4889_vm10, %v4985_v18, 0.0  ;;  %v5046_v20 = vsel %vm4889_vm10, %v4986_v34, 0.0  ;;  %v18630_v50 = vld [vmem:[#allocation110_spill] sm:$0xff]  ;;  %v18632_v18 = vld [vmem:[#allocation132_spill] sm:$0xff] }
 0x4d6   : > { %v4948_v61 = vadd.f32 %v4947_v2, %v4946_v47  ;;  %v5043_v0 = vadd.f32 %v5042_v49, %v5041_v60  ;;  %v4988_v22 = vmul.f32 %v4888_v59, %v14933_v39  ;;  %v18631_v2 = vld [vmem:[#allocation159_spill] sm:$0xff]  ;;  %v18675_v39 = vld [vmem:[#allocation120_spill] sm:$0xff] }
 0x4d7   : > { %v5048_v45 = vsel %vm4889_vm10, %v4987_v1, 0.0  ;;  %v18633_v59 = vld [vmem:[#allocation151_spill] sm:$0xff] }
 0x4d8   : > { %v4950_v29 = vadd.f32 %v4949_v36, %v4948_v61  ;;  %v5045_v51 = vadd.f32 %v5044_v24, %v5043_v0  ;;  %v5050_v25 = vsel %vm4889_vm10, %v4988_v22, 0.0  ;;  %v18635_v61 = vld [vmem:[#allocation102_spill] sm:$0xff]  ;;  %v18636_v36 = vld [vmem:[#allocation49_spill] sm:$0xff]  ;;  %v18637_v0 = vld [vmem:[#allocation20_spill] sm:$0xff] }
 0x4d9   : > { %v18638_v1 = vld [vmem:[#allocation171_spill] sm:$0xff]  ;;  %v18641_v22 = vld [vmem:[#allocation178_spill] sm:$0xff] }
 0x4da   : > { %v4952_v21 = vadd.f32 %v4951_v10, %v4950_v29  ;;  %v5047_v16 = vadd.f32 %v5046_v20, %v5045_v51 }
 0x4dc   : > { %4953 = vadd.xlane.f32.xlu1 %v4952_v21  ;;  %v5049_v52 = vadd.f32 %v5048_v45, %v5047_v16  ;;  %v18640_v21 = vld [vmem:[#allocation162_spill] sm:$0xff] }
 0x4dd   : > { %v18642_v45 = vld [vmem:[#allocation30_spill] sm:$0xff] }
 0x4de   : > { %v5051_v54 = vadd.f32 %v5050_v25, %v5049_v52  ;;  %v18643_v25 = vld [vmem:[#allocation81_spill] sm:$0xff] }
 0x4e0   : > { %5052 = vadd.xlane.f32.xlu0 %v5051_v54 }
 0x569   : > { %v4954_v17 = vpop.xlane.xlu1 %4953 }
 0x56a   : > { %v14958_v15 = vmul.f32 0.0003644315, %v4954_v17  ;;  %v18644_v17 = vld [vmem:[#allocation154_spill] sm:$0xff] }
 0x56c   : > { %18626 = vst [vmem:[#allocation69_spill] sm:$0xff] %v14958_v15  ;;  %v5055_v35 = vmul.f32 %v14958_v15, %v14958_v15  ;;  %v5058_v33 = vsub.f32 %v18627_v53, %v14958_v15  ;;  %v5059_v44 = vsub.f32 %v18628_v31, %v14958_v15  ;;  %v5060_v58 = vsub.f32 %v18629_v5, %v14958_v15 }
 0x56d   : > { %v5053_v8 = vpop.xlane.xlu0 %5052  ;;  %v5062_v47 = vsub.f32 %v18631_v2, %v14958_v15  ;;  %v5064_v34 = vsub.f32 %v18633_v59, %v14958_v15  ;;  %v5066_v49 = vsub.f32 %v18634_v37, %v14958_v15  ;;  %v5068_v29 = vsub.f32 %v18636_v36, %v14958_v15 }
 0x56e   : > { %v5054_v43 = vmul.f32 0.0003644315, %v5053_v8  ;;  %v5070_v10 = vsub.f32 %v18637_v0, %v14958_v15  ;;  %v5072_v51 = vsub.f32 %v18640_v21, %v14958_v15  ;;  %v5074_v52 = vsub.f32 %v18642_v45, %v14958_v15 }
 0x56f   : > { %v5076_v8 = vsub.f32 %v18644_v17, %v14958_v15  ;;  %v5082_v54 = vsub.f32 %v14850_v4, %v14958_v15  ;;  %v5088_v42 = vsub.f32 %v14922_v3, %v14958_v15  ;;  %v5069_v62 = vsub.f32 %v18675_v39, %v14958_v15 }
 0x570   : > { %v5056_v63 = vsub.f32 %v5054_v43, %v5055_v35  ;;  %v18645_v43 = vld [vmem:[#allocation140_spill] sm:$0xff]  ;;  %v5084_v35 = vsub.f32 %v14858_v9, %v14958_v15  ;;  %v18678_v17 = vsub.f32 %v18632_v18, %v14958_v15  ;;  %v18679_v0 = vsub.f32 %v18635_v61, %v14958_v15 }
 0x572   : > { %v5057_v12 = vmax.f32 %v5056_v63, 0.0  ;;  %v5078_v63 = vsub.f32 %v14613_v19, %v14958_v15 }
 0x574   : > { %v5090_v32 = vadd.f32 1e-05, %v5057_v12  ;;  %v5086_v12 = vsub.f32 %v14908_v14, %v14958_v15 }
 0x576   : > { %8150 = vrsqrt.f32 %v5090_v32  ;;  %v5080_v32 = vsub.f32 %v14742_v38, %v14958_v15 }
 0x580   : > { %v14986_v20 = vpop.eup %8150 }
 0x581   : > { %18639 = vst [vmem:[#allocation191_spill] sm:$0xff] %v14986_v20  ;;  %v5093_v57 = vmul.f32 %v14986_v20, %v5059_v44  ;;  %v5092_v56 = vmul.f32 %v14986_v20, %v5058_v33  ;;  %v15025_v24 = vmul.f32 %v14986_v20, %v5060_v58  ;;  %v15028_v7 = vmul.f32 %v14986_v20, %v5062_v47 }
 0x582   : > { %v15031_v60 = vmul.f32 %v14986_v20, %v5064_v34  ;;  %v15034_v23 = vmul.f32 %v14986_v20, %v5066_v49  ;;  %v15037_v44 = vmul.f32 %v14986_v20, %v5068_v29  ;;  %v15040_v16 = vmul.f32 %v14986_v20, %v5070_v10 }
 0x583   : > { %18646 = vst [vmem:[#allocation115_spill] sm:$0xff] %v15028_v7  ;;  %v15043_v33 = vmul.f32 %v14986_v20, %v5072_v51  ;;  %v15046_v58 = vmul.f32 %v14986_v20, %v5074_v52  ;;  %v15049_v47 = vmul.f32 %v14986_v20, %v5076_v8  ;;  %v15052_v34 = vmul.f32 %v14986_v20, %v5078_v63 }
 0x584   : > { %18647 = vst [vmem:[#allocation38_spill] sm:$0xff] %v15031_v60  ;;  %18648 = vst [vmem:[#allocation125_spill] sm:$0xff] %v15034_v23  ;;  %v15055_v49 = vmul.f32 %v14986_v20, %v5080_v32  ;;  %v15058_v29 = vmul.f32 %v14986_v20, %v5082_v54  ;;  %v15060_v10 = vmul.f32 0.70710677, %v5093_v57  ;;  %v15063_v51 = vmul.f32 %v14986_v20, %v5084_v35 }
 0x585   : > { %18649 = vst [vmem:[#allocation101_spill] sm:$0xff] %v15037_v44  ;;  %18650 = vst [vmem:[#allocation40_spill] sm:$0xff] %v15040_v16  ;;  %v15066_v52 = vmul.f32 %v14986_v20, %v5086_v12  ;;  %v15068_v3 = vmul.f32 0.70710677, %v5092_v56  ;;  %v15071_v8 = vmul.f32 0.70710677, %v15025_v24  ;;  %v15074_v63 = vmul.f32 %v14986_v20, %v5088_v42 }
 0x586   : > { %18651 = vst [vmem:[#allocation72_spill] sm:$0xff] %v15043_v33  ;;  %18652 = vst [vmem:[#allocation80_spill] sm:$0xff] %v15046_v58  ;;  %v15077_v32 = vmul.f32 0.70710677, %v15028_v7  ;;  %v15080_v54 = vmul.f32 0.70710677, %v15031_v60  ;;  %v15154_v41 = vmul.f32 %v14986_v20, %v18678_v17 }
 0x587   : > { %18653 = vst [vmem:[#allocation215_spill] sm:$0xff] %v15049_v47  ;;  %18654 = vst [vmem:[#allocation31_spill] sm:$0xff] %v15052_v34  ;;  %v15083_v35 = vmul.f32 0.70710677, %v15034_v23  ;;  %v15085_v46 = vmul.f32 0.5, %v5093_v57  ;;  %v15093_v48 = vmul.f32 0.5, %v5092_v56 }
 0x588   : > { %18655 = vst [vmem:[#allocation54_spill] sm:$0xff] %v15055_v49  ;;  %18656 = vst [vmem:[#allocation163_spill] sm:$0xff] %v15058_v29  ;;  %v15088_v12 = vmul.f32 0.70710677, %v15037_v44  ;;  %v15091_v14 = vmul.f32 0.70710677, %v15040_v16 }
 0x589   : > { %18657 = vst [vmem:[#allocation216_spill] sm:$0xff] %v15063_v51  ;;  %18658 = vst [vmem:[#allocation88_spill] sm:$0xff] %v15066_v52  ;;  %v15098_v26 = vmul.f32 0.70710677, %v15043_v33  ;;  %v15101_v9 = vmul.f32 0.70710677, %v15046_v58  ;;  %v15181_v58 = vmul.f32 %v14986_v20, %v18679_v0 }
 0x58a   : > { %18659 = vst [vmem:[#allocation37_spill] sm:$0xff] %v15074_v63  ;;  %18660 = vst [vmem:[#allocation60_spill] sm:$0xff] %v15077_v32  ;;  %v15104_v57 = vand.u32 2147483647, %v15060_v10  ;;  %v15107_v6 = vmul.f32 0.70710677, %v15049_v47 }
 0x58b   : > { %18661 = vst [vmem:[#allocation55_spill] sm:$0xff] %v15080_v54  ;;  %18662 = vst [vmem:[#allocation56_spill] sm:$0xff] %v15083_v35  ;;  %v15110_v55 = vmul.f32 0.70710677, %v15052_v34  ;;  %v15113_v56 = vmul.f32 0.70710677, %v15055_v49 }
 0x58c   : > { %18663 = vst [vmem:[#allocation100_spill] sm:$0xff] %v15088_v12  ;;  %18664 = vst [vmem:[#allocation48_spill] sm:$0xff] %v15091_v14  ;;  %v18671_v42 = vld [vmem:[#allocation193_spill] sm:$0xff]  ;;  %v15118_v30 = vmul.f32 0.70710677, %v15058_v29  ;;  %v18677_v29 = vsub.f32 %v18630_v50, %v14958_v15  ;;  %vm5829_vm11 = vcmp.ge.f32.partialorder %v15060_v10, 0.0 }
 0x58d   : > { %18665 = vst [vmem:[#allocation185_spill] sm:$0xff] %v15093_v48  ;;  %18666 = vst [vmem:[#allocation176_spill] sm:$0xff] %v15098_v26  ;;  %v5065_v4 = vsub.f32 %v18671_v42, %v14958_v15  ;;  %v15121_v28 = vmul.f32 0.70710677, %v15063_v51  ;;  %v15124_v38 = vmul.f32 0.70710677, %v15066_v52 }
 0x58e   : > { %18667 = vst [vmem:[#allocation213_spill] sm:$0xff] %v15101_v9  ;;  %18668 = vst [vmem:[#allocation118_spill] sm:$0xff] %v15107_v6  ;;  %v15129_v19 = vmul.f32 0.70710677, %v15074_v63  ;;  %v15132_v49 = vand.u32 2147483647, %v15068_v3  ;;  %v15141_v51 = vmul.f32 %v14986_v20, %v18677_v29 }
 0x58f   : > { %18669 = vst [vmem:[#allocation202_spill] sm:$0xff] %v15110_v55  ;;  %18670 = vst [vmem:[#allocation39_spill] sm:$0xff] %v15113_v56  ;;  %v15135_v13 = vand.u32 2147483647, %v15071_v8  ;;  %v15144_v52 = vand.u32 2147483647, %v15077_v32  ;;  %v15166_v47 = vmul.f32 %v14986_v20, %v5065_v4 }
 0x590   : > { %18672 = vst [vmem:[#allocation111_spill] sm:$0xff] %v15118_v30  ;;  %18673 = vst [vmem:[#allocation98_spill] sm:$0xff] %v15121_v28  ;;  %v15147_v34 = vand.u32 2147483647, %v15080_v54  ;;  %v5221_v63 = vmul.f32 0.3275911, %v15104_v57 }
 0x591   : > { %18674 = vst [vmem:[#allocation44_spill] sm:$0xff] %v15124_v38  ;;  %18676 = vst [vmem:[#allocation94_spill] sm:$0xff] %v15129_v19  ;;  %v15157_v27 = vand.u32 2147483647, %v15083_v35  ;;  %v15160_v29 = vand.u32 2147483647, %v15088_v12  ;;  %v18690_v35 = vsub.f32 %v14708_v11, %v14958_v15 }
 0x592   : > { %v15163_v45 = vand.u32 2147483647, %v15091_v14  ;;  %v15169_v40 = vand.u32 2147483647, %v15098_v26  ;;  %v15172_v21 = vand.u32 2147483647, %v15101_v9  ;;  %v15193_v9 = vmul.f32 %v14986_v20, %v5069_v62 }
 0x593   : > { %v15175_v17 = vand.u32 2147483647, %v15107_v6  ;;  %18680 = vst [vmem:[#allocation147_spill] sm:$0xff] %v15181_v58  ;;  %v15184_v33 = vand.u32 2147483647, %v15110_v55  ;;  %v5253_v0 = vadd.f32 1.0, %v5221_v63  ;;  %v18682_v55 = vsub.f32 %v18638_v1, %v14958_v15 }
 0x594   : > { %v15187_v4 = vand.u32 2147483647, %v15113_v56  ;;  %v15190_v26 = vand.u32 2147483647, %v15118_v30  ;;  %18681 = vst [vmem:[#allocation95_spill] sm:$0xff] %v15193_v9  ;;  %vm5828_vm12 = vcmp.ge.f32.partialorder %v15068_v3, 0.0 }
 0x595   : > { %v15196_v6 = vand.u32 2147483647, %v15121_v28  ;;  %v15199_v16 = vand.u32 2147483647, %v15124_v38  ;;  %v15205_v39 = vmul.f32 %v14986_v20, %v18682_v55  ;;  %v15208_v56 = vand.u32 2147483647, %v15129_v19 }
 0x596   : > { %v5220_v30 = vmul.f32 0.3275911, %v15132_v49  ;;  %v5222_v62 = vmul.f32 0.3275911, %v15135_v13  ;;  %v18684_v28 = vsub.f32 %v18641_v22, %v14958_v15  ;;  %v5224_v63 = vmul.f32 0.3275911, %v15144_v52 }
 0x597   : > { %18683 = vst [vmem:[#allocation36_spill] sm:$0xff] %v15205_v39  ;;  %v5226_v1 = vmul.f32 0.3275911, %v15147_v34  ;;  %v5228_v55 = vmul.f32 0.3275911, %v15157_v27  ;;  %v18686_v19 = vsub.f32 %v18643_v25, %v14958_v15  ;;  %8152 = vrcp.f32 %v5253_v0 }
 0x598   : > { %v15216_v38 = vmul.f32 %v14986_v20, %v18684_v28  ;;  %v5230_v14 = vmul.f32 0.3275911, %v15160_v29  ;;  %v5232_v37 = vmul.f32 0.3275911, %v15163_v45  ;;  %v5234_v22 = vmul.f32 0.3275911, %v15169_v40 }
 0x599   : > { %v15225_v36 = vmul.f32 %v14986_v20, %v18686_v19  ;;  %v18688_v28 = vsub.f32 %v18645_v43, %v14958_v15  ;;  %v5236_v12 = vmul.f32 0.3275911, %v15172_v21  ;;  %v5238_v44 = vmul.f32 0.3275911, %v15175_v17 }
 0x59a   : > { %18685 = vst [vmem:[#allocation166_spill] sm:$0xff] %v15216_v38  ;;  %v5240_v25 = vmul.f32 0.3275911, %v15184_v33  ;;  %v5242_v19 = vmul.f32 0.3275911, %v15187_v4  ;;  %v15246_v43 = vmul.f32 %v14986_v20, %v18690_v35  ;;  %v5252_v38 = vadd.f32 1.0, %v5220_v30 }
 0x59b   : > { %18687 = vst [vmem:[#allocation198_spill] sm:$0xff] %v15225_v36  ;;  %v15234_v61 = vmul.f32 %v14986_v20, %v18688_v28  ;;  %v5244_v36 = vmul.f32 0.3275911, %v15190_v26  ;;  %v5246_v23 = vmul.f32 0.3275911, %v15196_v6  ;;  %v5254_v42 = vadd.f32 1.0, %v5222_v62 }
 0x59c   : > { %18691 = vst [vmem:[#allocation124_spill] sm:$0xff] %v15246_v43  ;;  %v5248_v28 = vmul.f32 0.3275911, %v15199_v16  ;;  %v5256_v59 = vadd.f32 1.0, %v5224_v63  ;;  %v5258_v0 = vadd.f32 1.0, %v5226_v1  ;;  %v5260_v39 = vadd.f32 1.0, %v5228_v55 }
 0x59d   : > { %18689 = vst [vmem:[#allocation70_spill] sm:$0xff] %v15234_v61  ;;  %v5250_v61 = vmul.f32 0.3275911, %v15208_v56  ;;  %v5262_v18 = vadd.f32 1.0, %v5230_v14  ;;  %v5264_v50 = vadd.f32 1.0, %v5232_v37  ;;  %v5266_v2 = vadd.f32 1.0, %v5234_v22 }
 0x59e   : > { %v5268_v60 = vadd.f32 1.0, %v5236_v12  ;;  %v5270_v5 = vadd.f32 1.0, %v5238_v44  ;;  %v5272_v54 = vadd.f32 1.0, %v5240_v25  ;;  %v5274_v9 = vadd.f32 1.0, %v5242_v19 }
 0x59f   : > { %v5276_v11 = vadd.f32 1.0, %v5244_v36  ;;  %v15250_v15 = vadd.f32 1.0, %v5246_v23  ;;  %v15252_v35 = vadd.f32 1.0, %v5248_v28  ;;  %v15254_v20 = vadd.f32 1.0, %v5250_v61 }
 0x5a0   : > { %8154 = vrcp.f32 %v5252_v38  ;;  %v5637_v30 = vsub.f32 0.0, %v15104_v57  ;;  %v5636_v1 = vsub.f32 0.0, %v15132_v49  ;;  %v5638_v14 = vsub.f32 0.0, %v15135_v13 }
 0x5a1   : > { %8156 = vrcp.f32 %v5254_v42  ;;  %v5640_v37 = vsub.f32 0.0, %v15144_v52  ;;  %v5642_v22 = vsub.f32 0.0, %v15147_v34  ;;  %v5644_v23 = vsub.f32 0.0, %v15157_v27  ;;  %v15266_v44 = vpop.eup %8152 }
 0x5a2   : > { %8158 = vrcp.f32 %v5256_v59  ;;  %v5646_v36 = vsub.f32 0.0, %v15160_v29  ;;  %v5648_v61 = vsub.f32 0.0, %v15163_v45  ;;  %v5650_v38 = vsub.f32 0.0, %v15169_v40 }
 0x5a3   : > { %8160 = vrcp.f32 %v5258_v0  ;;  %v5652_v25 = vsub.f32 0.0, %v15172_v21  ;;  %v5654_v12 = vsub.f32 0.0, %v15175_v17  ;;  %v5656_v42 = vsub.f32 0.0, %v15184_v33 }
 0x5a4   : > { %v5658_v59 = vsub.f32 0.0, %v15187_v4  ;;  %v5669_v62 = vmul.f32 %v5637_v30, %v15104_v57  ;;  %8162 = vrcp.f32 %v5260_v39  ;;  %v5349_v63 = vmul.f32 1.0614054, %v15266_v44 }
 0x5a5   : > { %v5660_v55 = vsub.f32 0.0, %v15190_v26  ;;  %v5662_v19 = vsub.f32 0.0, %v15196_v6  ;;  %8164 = vrcp.f32 %v5262_v18  ;;  %v5664_v28 = vsub.f32 0.0, %v15199_v16 }
 0x5a6   : > { %v5666_v0 = vsub.f32 0.0, %v15208_v56  ;;  %v5668_v43 = vmul.f32 %v5636_v1, %v15132_v49  ;;  %8166 = vrcp.f32 %v5264_v50  ;;  %v5381_v32 = vadd.f32 -1.4531521, %v5349_v63 }
 0x5a7   : > { %v5670_v7 = vmul.f32 %v5638_v14, %v15135_v13  ;;  %v5672_v57 = vmul.f32 %v5640_v37, %v15144_v52  ;;  %8168 = vrcp.f32 %v5266_v2  ;;  %v5674_v39 = vmul.f32 %v5642_v22, %v15147_v34 }
 0x5a8   : > { %v5676_v30 = vmul.f32 %v5644_v23, %v15157_v27  ;;  %v5702_v53 = vmul.f32 1.442695, %v5669_v62  ;;  %8170 = vrcp.f32 %v5268_v60  ;;  %v5413_v18 = vmul.f32 %v15266_v44, %v5381_v32 }
 0x5a9   : > { %v5678_v48 = vmul.f32 %v5646_v36, %v15160_v29  ;;  %v5680_v58 = vmul.f32 %v5648_v61, %v15163_v45  ;;  %8172 = vrcp.f32 %v5270_v5  ;;  %v5682_v13 = vmul.f32 %v5650_v38, %v15169_v40 }
 0x5aa   : > { %v15285_v49 = vpop.eup %8154  ;;  %v5684_v50 = vmul.f32 %v5652_v25, %v15172_v21  ;;  %v5686_v2 = vmul.f32 %v5654_v12, %v15175_v17  ;;  %8174 = vrcp.f32 %v5272_v54  ;;  %v5445_v27 = vadd.f32 1.4214138, %v5413_v18 }
 0x5ab   : > { %v15290_v34 = vpop.eup %8156  ;;  %v5688_v60 = vmul.f32 %v5656_v42, %v15184_v33  ;;  %v5690_v52 = vmul.f32 %v5658_v59, %v15187_v4  ;;  %v5692_v45 = vmul.f32 %v5660_v55, %v15190_v26  ;;  %v5694_v5 = vmul.f32 %v5662_v19, %v15196_v6 }
 0x5ac   : > { %v15294_v32 = vpop.eup %8158  ;;  %v5696_v40 = vmul.f32 %v5664_v28, %v15199_v16  ;;  %8176 = vpow2.f32 %v5702_v53  ;;  %v5477_v29 = vmul.f32 %v15266_v44, %v5445_v27  ;;  %v15303_v54 = vmul.f32 %v5666_v0, %v15208_v56 }
 0x5ad   : > { %v15299_v21 = vpop.eup %8160  ;;  %8178 = vrcp.f32 %v5274_v9  ;;  %v5700_v33 = vmul.f32 1.442695, %v5668_v43  ;;  %v5704_v17 = vmul.f32 1.442695, %v5670_v7  ;;  %v5708_v4 = vmul.f32 1.442695, %v5672_v57 }
 0x5ae   : > { %18692 = vst [vmem:[#allocation51_spill] sm:$0xff] %v15303_v54  ;;  %8180 = vrcp.f32 %v5276_v11  ;;  %v15306_v1 = vmul.f32 0.70710677, %v15141_v51  ;;  %v15308_v26 = vpop.eup %8162  ;;  %v5509_v6 = vadd.f32 -0.28449672, %v5477_v29  ;;  %vm5830_vm13 = vcmp.ge.f32.partialorder %v15071_v8, 0.0 }
 0x5af   : > { %8182 = vrcp.f32 %v15250_v15  ;;  %v5712_v53 = vmul.f32 1.442695, %v5674_v39  ;;  %v5348_v9 = vmul.f32 1.0614054, %v15285_v49  ;;  %v15312_v16 = vpop.eup %8164  ;;  %v5716_v56 = vmul.f32 1.442695, %v5676_v30 }
 0x5b0   : > { %8184 = vrcp.f32 %v15252_v35  ;;  %v5720_v43 = vmul.f32 1.442695, %v5678_v48  ;;  %v15316_v11 = vand.u32 2147483647, %v15306_v1  ;;  %v15318_v7 = vpop.eup %8166  ;;  %v5541_v14 = vmul.f32 %v15266_v44, %v5509_v6 }
 0x5b1   : > { %v5724_v37 = vmul.f32 1.442695, %v5680_v58  ;;  %v5380_v22 = vadd.f32 -1.4531521, %v5348_v9  ;;  %v5350_v15 = vmul.f32 1.0614054, %v15290_v34  ;;  %v15322_v23 = vpop.eup %8168  ;;  %8186 = vrcp.f32 %v15254_v20 }
 0x5b2   : > { %v5728_v36 = vmul.f32 1.442695, %v5682_v13  ;;  %v5732_v61 = vmul.f32 1.442695, %v5684_v50  ;;  %v15325_v35 = vmul.f32 1.442695, %v5686_v2  ;;  %v15327_v48 = vpop.eup %8170  ;;  %8188 = vpow2.f32 %v5700_v33 }
 0x5b3   : > { %v5573_v38 = vadd.f32 0.2548296, %v5541_v14  ;;  %v5223_v25 = vmul.f32 0.3275911, %v15316_v11  ;;  %v5412_v12 = vmul.f32 %v15285_v49, %v5380_v22  ;;  %v5382_v42 = vadd.f32 -1.4531521, %v5350_v15  ;;  %v15331_v58 = vpop.eup %8172 }
 0x5b4   : > { %v15333_v59 = vmul.f32 1.442695, %v5688_v60  ;;  %v15335_v62 = vmul.f32 1.442695, %v5690_v52  ;;  %v15337_v20 = vmul.f32 1.442695, %v5692_v45  ;;  %v15339_v63 = vpop.eup %8174  ;;  %8190 = vpow2.f32 %v5704_v17 }
 0x5b5   : > { %v5605_v55 = vmul.f32 %v15266_v44, %v5573_v38  ;;  %v5444_v19 = vadd.f32 1.4214138, %v5412_v12  ;;  %v5414_v28 = vmul.f32 %v15290_v34, %v5382_v42  ;;  %8192 = vpow2.f32 %v5708_v4 }
 0x5b6   : > { %v8177_v0 = vpop.eup %8176  ;;  %v15343_v57 = vmul.f32 1.442695, %v5694_v5  ;;  %v15345_v39 = vmul.f32 1.442695, %v5696_v40  ;;  %v15348_v30 = vmul.f32 0.70710677, %v15154_v41  ;;  %8194 = vpow2.f32 %v5712_v53 }
 0x5b7   : > { %v15350_v18 = vpop.eup %8178  ;;  %v5765_v13 = vmul.f32 %v8177_v0, %v5605_v55  ;;  %v5255_v50 = vadd.f32 1.0, %v5223_v25  ;;  %v5476_v2 = vmul.f32 %v15285_v49, %v5444_v19  ;;  %v5446_v44 = vadd.f32 1.4214138, %v5414_v28 }
 0x5b8   : > { %18693 = vst [vmem:[#allocation42_spill] sm:$0xff] %v15345_v39  ;;  %v15353_v27 = vpop.eup %8180  ;;  %v5193_v60 = vand.u32 2147483647, %v15348_v30  ;;  %v15358_v52 = vmul.f32 0.70710677, %v15166_v47  ;;  %8196 = vpow2.f32 %v5716_v56  ;;  %v5639_v17 = vsub.f32 0.0, %v15316_v11 }
 0x5b9   : > { %v15360_v45 = vpop.eup %8182  ;;  %v5797_v5 = vsub.f32 1.0, %v5765_v13  ;;  %v5508_v40 = vadd.f32 -0.28449672, %v5476_v2  ;;  %v5478_v29 = vmul.f32 %v15290_v34, %v5446_v44  ;;  %8198 = vpow2.f32 %v5720_v43 }
 0x5ba   : > { %v15363_v33 = vpop.eup %8184  ;;  %v5225_v4 = vmul.f32 0.3275911, %v5193_v60  ;;  %v15367_v6 = vand.u32 2147483647, %v15358_v52  ;;  %8200 = vrcp.f32 %v5255_v50  ;;  %v15373_v56 = vmul.f32 0.5, %v15141_v51 }
 0x5bb   : > { %18694 = vst [vmem:[#allocation52_spill] sm:$0xff] %v15363_v33  ;;  %v5861_v53 = vsub.f32 0.0, %v5797_v5  ;;  %v5540_v9 = vmul.f32 %v15285_v49, %v5508_v40  ;;  %v5510_v14 = vadd.f32 -0.28449672, %v5478_v29  ;;  %v15370_v22 = vpop.eup %8186  ;;  %8202 = vpow2.f32 %v5724_v37 }
 0x5bc   : > { %18695 = vst [vmem:[#allocation93_spill] sm:$0xff] %v15370_v22  ;;  %v5257_v15 = vadd.f32 1.0, %v5225_v4  ;;  %v5227_v43 = vmul.f32 0.3275911, %v15367_v6  ;;  %8204 = vpow2.f32 %v5728_v36  ;;  %v8189_v42 = vpop.eup %8188  ;;  %v5641_v19 = vsub.f32 0.0, %v5193_v60  ;;  %v18701_v22 = vld [vmem:[#allocation189_spill] sm:$0xff] }
 0x5bd   : > { %v5893_v38 = vsel %vm5829_vm11, %v5797_v5, %v5861_v53  ;;  %v5572_v25 = vadd.f32 0.2548296, %v5540_v9  ;;  %v5542_v12 = vmul.f32 %v15290_v34, %v5510_v14  ;;  %v5671_v51 = vmul.f32 %v5639_v17, %v15316_v11 }
 0x5be   : > { %v5925_v55 = vadd.f32 1.0, %v5893_v38  ;;  %8206 = vrcp.f32 %v5257_v15  ;;  %v5259_v37 = vadd.f32 1.0, %v5227_v43  ;;  %v8191_v28 = vpop.eup %8190  ;;  %v15387_v50 = vmul.f32 0.5, %v15025_v24 }
 0x5bf   : > { %8208 = vpow2.f32 %v5732_v61  ;;  %v5604_v0 = vmul.f32 %v15285_v49, %v5572_v25  ;;  %v5574_v36 = vadd.f32 0.2548296, %v5542_v12  ;;  %v15382_v13 = vpop.eup %8192  ;;  %v5352_v2 = vmul.f32 1.0614054, %v15294_v32  ;;  %v18696_v25 = vld [vmem:[#allocation147_spill] sm:$0xff] }
 0x5c0   : > { %8210 = vpow2.f32 %v15325_v35  ;;  %v5957_v10 = vmul.f32 %v5925_v55, %v15085_v46  ;;  %v15392_v11 = vpop.eup %8194  ;;  %v15395_v61 = vmul.f32 0.5, %v15154_v41  ;;  %v5673_v35 = vmul.f32 %v5641_v19, %v5193_v60  ;;  %v18697_v55 = vld [vmem:[#allocation187_spill] sm:$0xff] }
 0x5c1   : > { %v5764_v44 = vmul.f32 %v8189_v42, %v5604_v0  ;;  %v5606_v5 = vmul.f32 %v15290_v34, %v5574_v36  ;;  %8212 = vrcp.f32 %v5259_v37  ;;  %v5384_v40 = vadd.f32 -1.4531521, %v5352_v2 }
 0x5c2   : > { %v6021_v49 = vrot.slane %v5957_v10, 4  ;;  %v15397_v46 = vpop.eup %8196  ;;  %v5706_v24 = vmul.f32 1.442695, %v5671_v51  ;;  %v5354_v4 = vmul.f32 1.0614054, %v15299_v21  ;;  %v15404_v9 = vmul.f32 0.5, %v15166_v47 }
 0x5c3   : > { %v5796_v29 = vsub.f32 1.0, %v5764_v44  ;;  %v5766_v17 = vmul.f32 %v8191_v28, %v5606_v5  ;;  %v15400_v53 = vpop.eup %8198  ;;  %v5643_v14 = vsub.f32 0.0, %v15367_v6  ;;  %v5416_v41 = vmul.f32 %v15294_v32, %v5384_v40 }
 0x5c4   : > { %v6085_v34 = vmul.f32 %v6021_v49, %v18628_v31  ;;  %v15408_v60 = vpop.eup %8200  ;;  %v5386_v38 = vadd.f32 -1.4531521, %v5354_v4  ;;  %v15411_v12 = vmul.f32 0.70710677, %v18696_v25  ;;  %v5710_v47 = vmul.f32 1.442695, %v5673_v35 }
 0x5c5   : > { %v5860_v15 = vsub.f32 0.0, %v5796_v29  ;;  %v5798_v43 = vsub.f32 1.0, %v5766_v17  ;;  %v15413_v42 = vpop.eup %8202  ;;  %v5351_v31 = vmul.f32 1.0614054, %v15408_v60  ;;  %v5448_v37 = vadd.f32 1.4214138, %v5416_v41 }
 0x5c6   : > { %v6117_v19 = vmul.f32 %v6085_v34, %v18697_v55  ;;  %v15417_v28 = vpop.eup %8204  ;;  %v5418_v36 = vmul.f32 %v15299_v21, %v5386_v38  ;;  %v15423_v10 = vand.u32 2147483647, %v15411_v12  ;;  %8214 = vpow2.f32 %v5706_v24  ;;  %v18698_v41 = vld [vmem:[#allocation185_spill] sm:$0xff] }
 0x5c7   : > { %v5892_v51 = vsel %vm5828_vm12, %v5796_v29, %v5860_v15  ;;  %v5862_v0 = vsub.f32 0.0, %v5798_v43  ;;  %v5383_v44 = vadd.f32 -1.4531521, %v5351_v31  ;;  %v5480_v49 = vmul.f32 %v15294_v32, %v5448_v37 }
 0x5c8   : > { %v15425_v2 = vpop.eup %8206  ;;  %7884 = vmatprep.subr.msk.mxu0 %vm334_vm0, %v6117_v19  ;;  %v5924_v5 = vadd.f32 1.0, %v5892_v51  ;;  %v5450_v29 = vadd.f32 1.4214138, %v5418_v36  ;;  %v5229_v17 = vmul.f32 0.3275911, %v15423_v10  ;;  %v5675_v24 = vmul.f32 %v5643_v14, %v15367_v6  ;;  %v18699_v14 = vld [vmem:[#allocation131_spill] sm:$0xff] }
 0x5c9   : > { %v15429_v35 = vpop.eup %8208  ;;  %v5894_v3 = vsel %vm5830_vm13, %v5798_v43, %v5862_v0  ;;  %v5353_v40 = vmul.f32 1.0614054, %v15425_v2  ;;  %v5415_v34 = vmul.f32 %v15408_v60, %v5383_v44  ;;  %v5512_v38 = vadd.f32 -0.28449672, %v5480_v49 }
 0x5ca   : > { %v15435_v4 = vpop.eup %8210  ;;  %v5956_v15 = vmul.f32 %v5924_v5, %v18698_v41  ;;  %8216 = vpow2.f32 %v5710_v47  ;;  %v5482_v8 = vmul.f32 %v15299_v21, %v5450_v29  ;;  %v5261_v43 = vadd.f32 1.0, %v5229_v17  ;;  %v18700_v47 = vld [vmem:[#allocation115_spill] sm:$0xff] }
 0x5cb   : > { %v15440_v55 = vpop.eup %8212  ;;  %v5385_v19 = vadd.f32 -1.4531521, %v5353_v40  ;;  %v5447_v31 = vadd.f32 1.4214138, %v5415_v34  ;;  %v5926_v51 = vadd.f32 1.0, %v5894_v3  ;;  %v5544_v44 = vmul.f32 %v15294_v32, %v5512_v38 }
 0x5cc   : > { %v6020_v37 = vrot.slane %v5956_v15, 4  ;;  %v5355_v0 = vmul.f32 1.0614054, %v15440_v55  ;;  %v5514_v5 = vadd.f32 -0.28449672, %v5482_v8  ;;  %8218 = vrcp.f32 %v5261_v43  ;;  %v18702_v43 = vld [vmem:[#allocation60_spill] sm:$0xff] }
 0x5cd   : > { %v5417_v36 = vmul.f32 %v15425_v2, %v5385_v19  ;;  %v5479_v6 = vmul.f32 %v15408_v60, %v5447_v31  ;;  %v15449_v41 = vmul.f32 0.5, %v18700_v47  ;;  %v5714_v17 = vmul.f32 1.442695, %v5675_v24  ;;  %v15456_v38 = vld [vmem:[%s16384_s5] sm:$0xf]  ;;  %v18704_v47 = vld [vmem:[#allocation55_spill] sm:$0xff] }
 0x5ce   : > { %v6084_v49 = vmul.f32 %v6020_v37, %v18699_v14  ;;  %v5387_v40 = vadd.f32 -1.4531521, %v5355_v0  ;;  %v5576_v34 = vadd.f32 0.2548296, %v5544_v44  ;;  %v5546_v3 = vmul.f32 %v15299_v21, %v5514_v5 }
 0x5cf   : > { %v5449_v29 = vadd.f32 1.4214138, %v5417_v36  ;;  %v5511_v15 = vadd.f32 -0.28449672, %v5479_v6  ;;  %vm5832_vm14 = vcmp.ge.f32.partialorder %v18702_v43, 0.0  ;;  %v5958_v31 = vmul.f32 %v5926_v51, %v15387_v50  ;;  %v18703_v6 = vld [vmem:[#allocation95_spill] sm:$0xff] }
 0x5d0   : > { %v6116_v19 = vmul.f32 %v6084_v49, %v18701_v22  ;;  %v5419_v8 = vmul.f32 %v15440_v55, %v5387_v40  ;;  %v5608_v24 = vmul.f32 %v15294_v32, %v5576_v34  ;;  %v5578_v0 = vadd.f32 0.2548296, %v5546_v3  ;;  %v8215_v36 = vpop.eup %8214 }
 0x5d1   : > { %v5481_v37 = vmul.f32 %v15425_v2, %v5449_v29  ;;  %v5543_v44 = vmul.f32 %v15408_v60, %v5511_v15  ;;  %v5645_v5 = vsub.f32 0.0, %v15423_v10  ;;  %v15467_v14 = vmul.f32 0.70710677, %v18703_v6 }
 0x5d2   : > { %7885 = vmatpush1.msk.msra.mxu0 %vm334_vm0, %v6116_v19  ;;  %v5451_v22 = vadd.f32 1.4214138, %v5419_v8  ;;  %8220 = vpow2.f32 %v5714_v17  ;;  %v5768_v51 = vmul.f32 %v15382_v13, %v5608_v24  ;;  %v5610_v32 = vmul.f32 %v15299_v21, %v5578_v0 }
 0x5d3   : > { %7886 = vmatmul.mubr.msk.f32.vlgmr.msra.gmra.mrb[16].mxu0 %vm330_vm1, %v15456_v38  ;;  %v5513_v50 = vadd.f32 -0.28449672, %v5481_v37  ;;  %v5575_v49 = vadd.f32 0.2548296, %v5543_v44  ;;  %vm5834_vm15 = vcmp.ge.f32.partialorder %v18704_v47, 0.0  ;;  %v18705_v34 = vmov 0.0  }
 0x5d4   : > { %v5483_v40 = vmul.f32 %v15440_v55, %v5451_v22  ;;  %v5199_v29 = vand.u32 2147483647, %v15467_v14  ;;  %6454 = vmatprep.mubr.f32.mxu0 %v18705_v34  ;;  %v8217_v3 = vpop.eup %8216  ;;  %vm5831_vm2 = vcmp.ge.f32.partialorder %v15306_v1, 0.0  ;;  %v6022_v15 = vrot.slane %v5958_v31, 4 }
 0x5d5   : > { %v5545_v19 = vmul.f32 %v15425_v2, %v5513_v50  ;;  %v5800_v17 = vsub.f32 1.0, %v5768_v51  ;;  %v5770_v13 = vmul.f32 %v15392_v11, %v5610_v32  ;;  %v5607_v21 = vmul.f32 %v15408_v60, %v5575_v49 }
 0x5d6   : > { %v5515_v8 = vadd.f32 -0.28449672, %v5483_v40  ;;  %v5677_v37 = vmul.f32 %v5645_v5, %v15423_v10  ;;  %v5231_v24 = vmul.f32 0.3275911, %v5199_v29  ;;  %v15482_v0 = vpop.eup %8218  ;;  %v5647_v33 = vsub.f32 0.0, %v5199_v29 }
 0x5d7   : > { %v5577_v44 = vadd.f32 0.2548296, %v5545_v19  ;;  %v5864_v22 = vsub.f32 0.0, %v5800_v17  ;;  %v5802_v39 = vsub.f32 1.0, %v5770_v13  ;;  %v5767_v54 = vmul.f32 %v8215_v36, %v5607_v21 }
 0x5d8   : > { %vm5833_vm3 = vcmp.ge.f32.partialorder %v15348_v30, 0.0  ;;  %v5547_v31 = vmul.f32 %v15440_v55, %v5515_v8  ;;  %v5357_v50 = vmul.f32 1.0614054, %v15482_v0  ;;  %v5263_v11 = vadd.f32 1.0, %v5231_v24  ;;  %v18706_v24 = vld [vmem:[#allocation210_spill] sm:$0xff]  ;;  %v18709_v30 = vld [vmem:[#allocation159_spill] sm:$0xff] }
 0x5d9   : > { %v5609_v60 = vmul.f32 %v15425_v2, %v5577_v44  ;;  %v5896_v10 = vsel %vm5832_vm14, %v5800_v17, %v5864_v22  ;;  %v5866_v5 = vsub.f32 0.0, %v5802_v39  ;;  %v5356_v51 = vmul.f32 1.0614054, %v15308_v26 }
 0x5da   : > { %v5799_v32 = vsub.f32 1.0, %v5767_v54  ;;  %v5579_v49 = vadd.f32 0.2548296, %v5547_v31  ;;  %v5928_v40 = vadd.f32 1.0, %v5896_v10  ;;  %v5389_v19 = vadd.f32 -1.4531521, %v5357_v50 }
 0x5db   : > { %v5769_v36 = vmul.f32 %v8217_v3, %v5609_v60  ;;  %vm5835_vm4 = vcmp.ge.f32.partialorder %v15358_v52, 0.0  ;;  %v5898_v13 = vsel %vm5834_vm15, %v5802_v39, %v5866_v5  ;;  %8222 = vrcp.f32 %v5263_v11  ;;  %v18707_v5 = vld [vmem:[#allocation38_spill] sm:$0xff] }
 0x5dc   : > { %v5863_v21 = vsub.f32 0.0, %v5799_v32  ;;  %v5611_v2 = vmul.f32 %v15440_v55, %v5579_v49  ;;  %v5960_v43 = vmul.f32 %v5928_v40, %v15449_v41  ;;  %v5718_v17 = vmul.f32 1.442695, %v5677_v37  ;;  %v8221_v8 = vpop.eup %8220  ;;  %v18708_v40 = vld [vmem:[#allocation119_spill] sm:$0xff] }
 0x5dd   : > { %v6086_v44 = vmul.f32 %v6022_v15, %v18706_v24  ;;  %v5801_v54 = vsub.f32 1.0, %v5769_v36  ;;  %v5421_v22 = vmul.f32 %v15482_v0, %v5389_v19  ;;  %v5388_v31 = vadd.f32 -1.4531521, %v5356_v51 }
 0x5de   : > { %v5895_v3 = vsel %vm5831_vm2, %v5799_v32, %v5863_v21  ;;  %v5771_v50 = vmul.f32 %v8221_v8, %v5611_v2  ;;  %v5930_v47 = vadd.f32 1.0, %v5898_v13  ;;  %v5679_v39 = vmul.f32 %v5647_v33, %v5199_v29 }
 0x5df   : > { %v5927_v11 = vadd.f32 1.0, %v5895_v3  ;;  %v5865_v60 = vsub.f32 0.0, %v5801_v54  ;;  %v5453_v10 = vadd.f32 1.4214138, %v5421_v22  ;;  %v5420_v55 = vmul.f32 %v15308_v26, %v5388_v31 }
 0x5e0   : > { %v5803_v41 = vsub.f32 1.0, %v5771_v50  ;;  %v6024_v37 = vrot.slane %v5960_v43, 4  ;;  %v5130_v49 = vmul.f32 0.5, %v18707_v5  ;;  %8224 = vpow2.f32 %v5718_v17 }
 0x5e1   : > { %v5959_v15 = vmul.f32 %v5927_v11, %v15373_v56  ;;  %v5897_v51 = vsel %vm5833_vm3, %v5801_v54, %v5865_v60  ;;  %v5485_v1 = vmul.f32 %v15482_v0, %v5453_v10  ;;  %v5452_v32 = vadd.f32 1.4214138, %v5420_v55  ;;  %v18711_v60 = vld [vmem:[#allocation157_spill] sm:$0xff] }
 0x5e2   : > { %v6118_v33 = vmul.f32 %v6086_v44, %v18708_v40  ;;  %v5929_v29 = vadd.f32 1.0, %v5897_v51  ;;  %v5867_v19 = vsub.f32 0.0, %v5803_v41  ;;  %v5962_v36 = vmul.f32 %v5930_v47, %v5130_v49  ;;  %v18710_v44 = vld [vmem:[#allocation110_spill] sm:$0xff]  ;;  %v18713_v49 = vld [vmem:[#allocation71_spill] sm:$0xff] }
 0x5e3   : > { %v6023_v13 = vrot.slane %v5959_v15, 4  ;;  %v5517_v21 = vadd.f32 -0.28449672, %v5485_v1  ;;  %v5722_v2 = vmul.f32 1.442695, %v5679_v39  ;;  %v5484_v43 = vmul.f32 %v15308_v26, %v5452_v32 }
 0x5e4   : > { %v5961_v17 = vmul.f32 %v5929_v29, %v15395_v61  ;;  %v5899_v56 = vsel %vm5835_vm4, %v5803_v41, %v5867_v19  ;;  %v6088_v8 = vmul.f32 %v6024_v37, %v18709_v30  ;;  %v5358_v24 = vmul.f32 1.0614054, %v15312_v16  ;;  %v18712_v37 = vld [vmem:[#allocation132_spill] sm:$0xff] }
 0x5e5   : > { %v15513_v54 = vpop.eup %8222  ;;  %v6087_v22 = vmul.f32 %v6023_v13, %v18710_v44  ;;  %v5931_v31 = vadd.f32 1.0, %v5899_v56  ;;  %v5549_v3 = vmul.f32 %v15482_v0, %v5517_v21  ;;  %v5516_v50 = vadd.f32 -0.28449672, %v5484_v43  ;;  %v18714_v19 = vld [vmem:[#allocation36_spill] sm:$0xff]  ;;  %v18715_v13 = vld [vmem:[#allocation143_spill] sm:$0xff] }
 0x5e6   : > { %v6025_v47 = vrot.slane %v5961_v17, 4  ;;  %v6026_v39 = vrot.slane %v5962_v36, 4  ;;  %v5359_v11 = vmul.f32 1.0614054, %v15513_v54  ;;  %v5390_v61 = vadd.f32 -1.4531521, %v5358_v24 }
 0x5e7   : > { %v6119_v52 = vmul.f32 %v6087_v22, %v18711_v60  ;;  %v5963_v10 = vmul.f32 %v5931_v31, %v15404_v9  ;;  %v5581_v55 = vadd.f32 0.2548296, %v5549_v3  ;;  %v5548_v41 = vmul.f32 %v15308_v26, %v5516_v50  ;;  %v18716_v43 = vld [vmem:[#allocation151_spill] sm:$0xff]  ;;  %v18718_v3 = vld [vmem:[#allocation166_spill] sm:$0xff] }
 0x5e8   : > { %v6089_v5 = vmul.f32 %v6025_v47, %v18712_v37  ;;  %v6120_v15 = vmul.f32 %v6088_v8, %v18713_v49  ;;  %v5391_v51 = vadd.f32 -1.4531521, %v5359_v11  ;;  %v5422_v1 = vmul.f32 %v15312_v16, %v5390_v61  ;;  %v18717_v8 = vld [vmem:[#allocation193_spill] sm:$0xff]  ;;  %v18719_v47 = vld [vmem:[#allocation196_spill] sm:$0xff]  ;;  %v18720_v60 = vld [vmem:[#allocation18_spill] sm:$0xff] }
 0x5e9   : > { %7887 = vmatprep.subr.msk.mxu1 %vm334_vm0, %v6119_v52  ;;  %v6027_v32 = vrot.slane %v5963_v10, 4  ;;  %v5613_v40 = vmul.f32 %v15482_v0, %v5581_v55  ;;  %v5580_v29 = vadd.f32 0.2548296, %v5548_v41  ;;  %v15527_v36 = vmul.f32 0.70710677, %v18714_v19 }
 0x5ea   : > { %v8225_v9 = vpop.eup %8224  ;;  %7888 = vmatpush1.msk.msra.mxu1 %vm334_vm0, %v6118_v33  ;;  %v6121_v21 = vmul.f32 %v6089_v5, %v18715_v13  ;;  %v6090_v17 = vmul.f32 %v6026_v39, %v18716_v43  ;;  %v5423_v56 = vmul.f32 %v15513_v54, %v5391_v51  ;;  %v5454_v30 = vadd.f32 1.4214138, %v5422_v1  ;;  %v18722_v13 = vld [vmem:[#allocation125_spill] sm:$0xff] }
 0x5eb   : > { %7889 = vmatmul.mubr.msk.f32.vlgmr.msra.gmra.mrb[16].mxu1 %vm330_vm1, %v15456_v38  ;;  %v6091_v24 = vmul.f32 %v6027_v32, %v18717_v8  ;;  %v5773_v0 = vmul.f32 %v8225_v9, %v5613_v40  ;;  %v5612_v44 = vmul.f32 %v15308_v26, %v5580_v29  ;;  %v15538_v22 = vand.u32 2147483647, %v15527_v36  ;;  %v18721_v29 = vld [vmem:[#allocation56_spill] sm:$0xff] }
 0x5ec   : > { %7890 = vmatprep.subr.msk.mxu0 %vm334_vm0, %v6121_v21  ;;  %v5455_v33 = vadd.f32 1.4214138, %v5423_v56  ;;  %8226 = vpow2.f32 %v5722_v2  ;;  %6525 = vmatprep.mubr.f32.mxu1 %v18705_v34  ;;  %v5486_v31 = vmul.f32 %v15312_v16, %v5454_v30  ;;  %v15544_v50 = vmul.f32 0.70710677, %v18718_v3 }
 0x5ed   : > { %v6123_v39 = vmul.f32 %v6091_v24, %v18719_v47  ;;  %7891 = vmatpush1.msk.msra.mxu0 %vm334_vm0, %v6120_v15  ;;  %v5805_v11 = vsub.f32 1.0, %v5773_v0  ;;  %v5772_v26 = vmul.f32 %v15397_v46, %v5612_v44  ;;  %v5233_v61 = vmul.f32 0.3275911, %v15538_v22  ;;  %v18723_v24 = vld [vmem:[#allocation101_spill] sm:$0xff] }
 0x5ee   : > { %v6122_v52 = vmul.f32 %v6090_v17, %v18720_v60  ;;  %v5487_v2 = vmul.f32 %v15513_v54, %v5455_v33  ;;  %7892 = vmatmul.mubr.msk.f32.vlgmr.msra.gmra.mrb[18].mxu0 %vm330_vm1, %v15456_v38  ;;  %v5518_v10 = vadd.f32 -0.28449672, %v5486_v31  ;;  %v15555_v55 = vand.u32 2147483647, %v15544_v50  ;;  %v18725_v60 = vld [vmem:[#allocation102_spill] sm:$0xff] }
 0x5ef   : > { %8228 = vpow2.f32 %v15333_v59  ;;  %7893 = vmatprep.subr.msk.mxu1 %vm334_vm0, %v6123_v39  ;;  %v5869_v41 = vsub.f32 0.0, %v5805_v11  ;;  %v5804_v37 = vsub.f32 1.0, %v5772_v26  ;;  %v5265_v46 = vadd.f32 1.0, %v5233_v61  ;;  %6596 = vmatprep.mubr.f32.mxu0 %v18705_v34  ;;  %v18724_v26 = vld [vmem:[#allocation100_spill] sm:$0xff] }
 0x5f0   : > { %7894 = vmatpush1.msk.msra.mxu1 %vm334_vm0, %v6122_v52  ;;  %vm5837_vm5 = vcmp.ge.f32.partialorder %v15411_v12, 0.0  ;;  %v5519_v5 = vadd.f32 -0.28449672, %v5487_v2  ;;  %v5550_v49 = vmul.f32 %v15312_v16, %v5518_v10  ;;  %v5235_v15 = vmul.f32 0.3275911, %v15555_v55 }
 0x5f1   : > { %v5133_v51 = vmul.f32 0.5, %v18696_v25  ;;  %v5901_v1 = vsel %vm5837_vm5, %v5805_v11, %v5869_v41  ;;  %7895 = vmatmul.mubr.msk.f32.vlgmr.msra.gmra.mrb[18].mxu1 %vm330_vm1, %v15456_v38  ;;  %v5868_v59 = vsub.f32 0.0, %v5804_v37  ;;  %8230 = vrcp.f32 %v5265_v46 }
 0x5f2   : > { %v5933_v32 = vadd.f32 1.0, %v5901_v1  ;;  %v5551_v40 = vmul.f32 %v15513_v54, %v5519_v5  ;;  %vm5836_vm6 = vcmp.ge.f32.partialorder %v18721_v29, 0.0  ;;  %v5582_v9 = vadd.f32 0.2548296, %v5550_v49  ;;  %6667 = vmatprep.mubr.f32.mxu1 %v18705_v34  ;;  %v18726_v49 = vld [vmem:[#allocation34_spill] sm:$0xff]  ;;  %v18727_v1 = vld [vmem:[#allocation85_spill] sm:$0xff] }
 0x5f3   : > { %v15571_v12 = vmul.f32 0.5, %v18703_v6  ;;  %v5132_v21 = vmul.f32 0.5, %v18722_v13  ;;  %v5900_v25 = vsel %vm5836_vm6, %v5804_v37, %v5868_v59  ;;  %v5267_v43 = vadd.f32 1.0, %v5235_v15 }
 0x5f4   : > { %v5965_v17 = vmul.f32 %v5933_v32, %v5133_v51  ;;  %v5583_v56 = vadd.f32 0.2548296, %v5551_v40  ;;  %v5932_v30 = vadd.f32 1.0, %v5900_v25  ;;  %v5614_v8 = vmul.f32 %v15312_v16, %v5582_v9  ;;  %v18729_v25 = vld [vmem:[#allocation137_spill] sm:$0xff] }
 0x5f5   : > { %vm5839_vm7 = vcmp.ge.f32.partialorder %v15467_v14, 0.0  ;;  %v5134_v0 = vmul.f32 0.5, %v18723_v24  ;;  %v5649_v44 = vsub.f32 0.0, %v15538_v22  ;;  %v5360_v33 = vmul.f32 1.0614054, %v15318_v7 }
 0x5f6   : > { %v8227_v31 = vpop.eup %8226  ;;  %v6029_v6 = vrot.slane %v5965_v17, 4  ;;  %v5615_v47 = vmul.f32 %v15513_v54, %v5583_v56  ;;  %v5964_v39 = vmul.f32 %v5932_v30, %v5132_v21  ;;  %v5774_v11 = vmul.f32 %v15400_v53, %v5614_v8 }
 0x5f7   : > { %vm5838_vm8 = vcmp.ge.f32.partialorder %v18724_v26, 0.0  ;;  %8232 = vrcp.f32 %v5267_v43  ;;  %v5392_v61 = vadd.f32 -1.4531521, %v5360_v33  ;;  %v5362_v16 = vmul.f32 1.0614054, %v15322_v23 }
 0x5f8   : > { %v6093_v52 = vmul.f32 %v6029_v6, %v18725_v60  ;;  %v5775_v2 = vmul.f32 %v8227_v31, %v5615_v47  ;;  %v6028_v10 = vrot.slane %v5964_v39, 4  ;;  %v5806_v41 = vsub.f32 1.0, %v5774_v11  ;;  %v18730_v47 = vld [vmem:[#allocation70_spill] sm:$0xff] }
 0x5f9   : > { %v15584_v37 = vpop.eup %8228  ;;  %v15587_v46 = vmul.f32 0.5, %v18714_v19  ;;  %v5681_v54 = vmul.f32 %v5649_v44, %v15538_v22  ;;  %v5424_v53 = vmul.f32 %v15318_v7, %v5392_v61  ;;  %v5394_v5 = vadd.f32 -1.4531521, %v5362_v16  ;;  %v18728_v19 = vld [vmem:[#allocation198_spill] sm:$0xff] }
 0x5fa   : > { %v6125_v15 = vmul.f32 %v6093_v52, %v18726_v49  ;;  %v5807_v51 = vsub.f32 1.0, %v5775_v2  ;;  %v6092_v59 = vmul.f32 %v6028_v10, %v18727_v1  ;;  %v5870_v32 = vsub.f32 0.0, %v5806_v41 }
 0x5fb   : > { %v15593_v40 = vpop.eup %8230  ;;  %v5651_v29 = vsub.f32 0.0, %v15555_v55  ;;  %v5456_v9 = vadd.f32 1.4214138, %v5424_v53  ;;  %v5426_v13 = vmul.f32 %v15322_v23, %v5394_v5  ;;  %v15598_v21 = vmul.f32 0.70710677, %v18728_v19 }
 0x5fc   : > { %7896 = vmatprep.subr.msk.mxu0 %vm334_vm0, %v6125_v15  ;;  %v5871_v22 = vsub.f32 0.0, %v5807_v51  ;;  %v6124_v43 = vmul.f32 %v6092_v59, %v18729_v25  ;;  %v5902_v17 = vsel %vm5838_vm8, %v5806_v41, %v5870_v32  ;;  %v5361_v56 = vmul.f32 1.0614054, %v15593_v40  ;;  %v18731_v32 = vld [vmem:[#allocation48_spill] sm:$0xff] }
 0x5fd   : > { %v5934_v30 = vadd.f32 1.0, %v5902_v17  ;;  %v5488_v8 = vmul.f32 %v15318_v7, %v5456_v9  ;;  %v5458_v24 = vadd.f32 1.4214138, %v5426_v13  ;;  %v5205_v44 = vand.u32 2147483647, %v15598_v21 }
 0x5fe   : > { %v5903_v33 = vsel %vm5839_vm7, %v5807_v51, %v5871_v22  ;;  %7897 = vmatpush1.msk.msra.mxu0 %vm334_vm0, %v6124_v43  ;;  %v5393_v31 = vadd.f32 -1.4531521, %v5361_v56  ;;  %v5726_v6 = vmul.f32 1.442695, %v5681_v54  ;;  %v15611_v39 = vmul.f32 0.70710677, %v18730_v47 }
 0x5ff   : > { %v5935_v11 = vadd.f32 1.0, %v5903_v33  ;;  %v5966_v26 = vmul.f32 %v5934_v30, %v5134_v0  ;;  %7898 = vmatmul.mubr.msk.f32.vlgmr.msra.gmra.mrb[20].mxu0 %vm330_vm1, %v15456_v38  ;;  %v5520_v61 = vadd.f32 -0.28449672, %v5488_v8  ;;  %v5490_v16 = vmul.f32 %v15322_v23, %v5458_v24  ;;  %v18733_v22 = vld [vmem:[#allocation120_spill] sm:$0xff] }
 0x600   : > { %v5425_v60 = vmul.f32 %v15593_v40, %v5393_v31  ;;  %v5683_v14 = vmul.f32 %v5651_v29, %v15555_v55  ;;  %v5237_v52 = vmul.f32 0.3275911, %v5205_v44  ;;  %v5207_v2 = vand.u32 2147483647, %v15611_v39  ;;  %6738 = vmatprep.mubr.f32.mxu0 %v18705_v34  ;;  %v18732_v29 = vld [vmem:[#allocation49_spill] sm:$0xff]  ;;  %v18734_v31 = vld [vmem:[#allocation174_spill] sm:$0xff] }
 0x601   : > { %v15620_v10 = vpop.eup %8232  ;;  %v5967_v41 = vmul.f32 %v5935_v11, %v15571_v12  ;;  %v6030_v0 = vrot.slane %v5966_v26, 4  ;;  %v5552_v54 = vmul.f32 %v15318_v7, %v5520_v61  ;;  %v5522_v53 = vadd.f32 -0.28449672, %v5490_v16  ;;  %v18735_v16 = vld [vmem:[#allocation180_spill] sm:$0xff] }
 0x602   : > { %v5457_v5 = vadd.f32 1.4214138, %v5425_v60  ;;  %8234 = vpow2.f32 %v5726_v6  ;;  %v5363_v49 = vmul.f32 1.0614054, %v15620_v10  ;;  %v5269_v15 = vadd.f32 1.0, %v5237_v52 }
 0x603   : > { %v6031_v51 = vrot.slane %v5967_v41, 4  ;;  %v5584_v55 = vadd.f32 0.2548296, %v5552_v54  ;;  %v5554_v1 = vmul.f32 %v15322_v23, %v5522_v53  ;;  %v5653_v59 = vsub.f32 0.0, %v5205_v44 }
 0x604   : > { %vm5840_vm9 = vcmp.ge.f32.partialorder %v18731_v32, 0.0  ;;  %v6094_v9 = vmul.f32 %v6030_v0, %v18732_v29  ;;  %v5489_v12 = vmul.f32 %v15593_v40, %v5457_v5  ;;  %v5395_v13 = vadd.f32 -1.4531521, %v5363_v49 }
 0x605   : > { %8236 = vrcp.f32 %v5269_v15  ;;  %v6095_v25 = vmul.f32 %v6031_v51, %v18733_v22  ;;  %v5730_v43 = vmul.f32 1.442695, %v5683_v14  ;;  %v5616_v17 = vmul.f32 %v15318_v7, %v5584_v55  ;;  %v18737_v15 = vld [vmem:[#allocation176_spill] sm:$0xff] }
 0x606   : > { %v5586_v56 = vadd.f32 0.2548296, %v5554_v1  ;;  %v5521_v30 = vadd.f32 -0.28449672, %v5489_v12  ;;  %v15632_v8 = vmul.f32 0.5, %v18718_v3  ;;  %v5427_v24 = vmul.f32 %v15620_v10, %v5395_v13 }
 0x607   : > { %v5239_v33 = vmul.f32 0.3275911, %v5207_v2  ;;  %v6127_v6 = vmul.f32 %v6095_v25, %v18734_v31  ;;  %v5776_v11 = vmul.f32 %v15413_v42, %v5616_v17  ;;  %v5685_v61 = vmul.f32 %v5653_v59, %v5205_v44  ;;  %v18736_v44 = vld [vmem:[#allocation40_spill] sm:$0xff] }
 0x608   : > { %v5618_v26 = vmul.f32 %v15322_v23, %v5586_v56  ;;  %v6126_v60 = vmul.f32 %v6094_v9, %v18735_v16  ;;  %v5553_v14 = vmul.f32 %v15593_v40, %v5521_v30  ;;  %v5459_v7 = vadd.f32 1.4214138, %v5427_v24  ;;  %v18738_v56 = vld [vmem:[#allocation72_spill] sm:$0xff] }
 0x609   : > { %v5271_v52 = vadd.f32 1.0, %v5239_v33  ;;  %7899 = vmatprep.subr.msk.mxu1 %vm334_vm0, %v6127_v6  ;;  %8238 = vpow2.f32 %v5730_v43  ;;  %v5808_v3 = vsub.f32 1.0, %v5776_v11  ;;  %v5655_v0 = vsub.f32 0.0, %v5207_v2 }
 0x60a   : > { %v5778_v41 = vmul.f32 %v15417_v28, %v5618_v26  ;;  %7900 = vmatpush1.msk.msra.mxu1 %vm334_vm0, %v6126_v60  ;;  %v5585_v54 = vadd.f32 0.2548296, %v5553_v14  ;;  %v5491_v42 = vmul.f32 %v15620_v10, %v5459_v7  ;;  %v5364_v23 = vmul.f32 1.0614054, %v15327_v48 }
 0x60b   : > { %8240 = vrcp.f32 %v5271_v52  ;;  %vm5841_vm10 = vcmp.ge.f32.partialorder %v15527_v36, 0.0  ;;  %7901 = vmatmul.mubr.msk.f32.vlgmr.msra.gmra.mrb[20].mxu1 %vm330_vm1, %v15456_v38  ;;  %v5136_v53 = vmul.f32 0.5, %v18736_v44  ;;  %v5872_v5 = vsub.f32 0.0, %v5808_v3 }
 0x60c   : > { %v5810_v49 = vsub.f32 1.0, %v5778_v41  ;;  %vm5842_vm11 = vcmp.ge.f32.partialorder %v18737_v15, 0.0  ;;  %v8235_v28 = vpop.eup %8234  ;;  %v5617_v51 = vmul.f32 %v15593_v40, %v5585_v54  ;;  %v5523_v55 = vadd.f32 -0.28449672, %v5491_v42  ;;  %6809 = vmatprep.mubr.f32.mxu1 %v18705_v34 }
 0x60d   : > { %v5734_v1 = vmul.f32 1.442695, %v5685_v61  ;;  %v5396_v59 = vadd.f32 -1.4531521, %v5364_v23  ;;  %v5904_v29 = vsel %vm5840_vm9, %v5808_v3, %v5872_v5  ;;  %v5687_v12 = vmul.f32 %v5655_v0, %v5207_v2  ;;  %v18739_v0 = vld [vmem:[#allocation80_spill] sm:$0xff] }
 0x60e   : > { %v5874_v9 = vsub.f32 0.0, %v5810_v49  ;;  %v5366_v13 = vmul.f32 1.0614054, %v15331_v58  ;;  %v5777_v25 = vmul.f32 %v8235_v28, %v5617_v51  ;;  %v5555_v43 = vmul.f32 %v15620_v10, %v5523_v55 }
 0x60f   : > { %v15655_v22 = vpop.eup %8236  ;;  %v5936_v17 = vadd.f32 1.0, %v5904_v29  ;;  %v5428_v40 = vmul.f32 %v15327_v48, %v5396_v59  ;;  %v5138_v30 = vmul.f32 0.5, %v18738_v56  ;;  %v15664_v11 = vmul.f32 0.5, %v18728_v19 }
 0x610   : > { %v5906_v24 = vsel %vm5842_vm11, %v5810_v49, %v5874_v9  ;;  %v5365_v32 = vmul.f32 1.0614054, %v15655_v22  ;;  %v5398_v33 = vadd.f32 -1.4531521, %v5366_v13  ;;  %v5809_v31 = vsub.f32 1.0, %v5777_v25  ;;  %v18740_v49 = vld [vmem:[#allocation124_spill] sm:$0xff] }
 0x611   : > { %v5587_v2 = vadd.f32 0.2548296, %v5555_v43  ;;  %v5968_v6 = vmul.f32 %v5936_v17, %v5136_v53  ;;  %vm5843_vm12 = vcmp.ge.f32.partialorder %v15544_v50, 0.0  ;;  %8242 = vpow2.f32 %v5734_v1  ;;  %v18741_v43 = vld [vmem:[#allocation20_spill] sm:$0xff] }
 0x612   : > { %v5397_v26 = vadd.f32 -1.4531521, %v5365_v32  ;;  %v5460_v61 = vadd.f32 1.4214138, %v5428_v40  ;;  %v5430_v16 = vmul.f32 %v15331_v58, %v5398_v33  ;;  %v5873_v60 = vsub.f32 0.0, %v5809_v31 }
 0x613   : > { %v5619_v14 = vmul.f32 %v15620_v10, %v5587_v2  ;;  %v5938_v7 = vadd.f32 1.0, %v5906_v24  ;;  %v5738_v52 = vmul.f32 1.442695, %v5687_v12  ;;  %v8239_v3 = vpop.eup %8238  ;;  %v15671_v54 = vmul.f32 0.5, %v18739_v0 }
 0x614   : > { %v5429_v41 = vmul.f32 %v15655_v22, %v5397_v26  ;;  %v5492_v19 = vmul.f32 %v15327_v48, %v5460_v61  ;;  %v5462_v42 = vadd.f32 1.4214138, %v5430_v16  ;;  %v5905_v44 = vsel %vm5841_vm10, %v5809_v31, %v5873_v60  ;;  %v18742_v61 = vld [vmem:[#allocation171_spill] sm:$0xff] }
 0x615   : > { %v15674_v23 = vpop.eup %8240  ;;  %v5779_v53 = vmul.f32 %v8239_v3, %v5619_v14  ;;  %v6032_v5 = vrot.slane %v5968_v6, 4  ;;  %v15679_v10 = vmul.f32 0.70710677, %v18740_v49  ;;  %v5937_v15 = vadd.f32 1.0, %v5905_v44 }
 0x616   : > { %v5461_v28 = vadd.f32 1.4214138, %v5429_v41  ;;  %v5367_v51 = vmul.f32 1.0614054, %v15674_v23  ;;  %v5494_v55 = vmul.f32 %v15331_v58, %v5462_v42  ;;  %v5970_v59 = vmul.f32 %v5938_v7, %v5138_v30  ;;  %v18744_v42 = vld [vmem:[#allocation97_spill] sm:$0xff] }
 0x617   : > { %v5811_v1 = vsub.f32 1.0, %v5779_v53  ;;  %8244 = vpow2.f32 %v5738_v52  ;;  %v5524_v29 = vadd.f32 -0.28449672, %v5492_v19  ;;  %v5969_v9 = vmul.f32 %v5937_v15, %v15587_v46  ;;  %v18743_v52 = vld [vmem:[#allocation86_spill] sm:$0xff] }
 0x618   : > { %v5493_v36 = vmul.f32 %v15655_v22, %v5461_v28  ;;  %v5399_v12 = vadd.f32 -1.4531521, %v5367_v51  ;;  %v5526_v13 = vadd.f32 -0.28449672, %v5494_v55  ;;  %v6096_v17 = vmul.f32 %v6032_v5, %v18741_v43  ;;  %v18745_v15 = vld [vmem:[#allocation162_spill] sm:$0xff] }
 0x619   : > { %v5875_v25 = vsub.f32 0.0, %v5811_v1  ;;  %v5556_v40 = vmul.f32 %v15327_v48, %v5524_v29  ;;  %v5209_v56 = vand.u32 2147483647, %v15679_v10  ;;  %v6033_v24 = vrot.slane %v5969_v9, 4  ;;  %v18746_v29 = vld [vmem:[#allocation213_spill] sm:$0xff] }
 0x61a   : > { %v5525_v32 = vadd.f32 -0.28449672, %v5493_v36  ;;  %v5431_v33 = vmul.f32 %v15674_v23, %v5399_v12  ;;  %v5558_v30 = vmul.f32 %v15331_v58, %v5526_v13  ;;  %v6034_v31 = vrot.slane %v5970_v59, 4  ;;  %v18747_v13 = vld [vmem:[#allocation28_spill] sm:$0xff] }
 0x61b   : > { %v5907_v46 = vsel %vm5843_vm12, %v5811_v1, %v5875_v25  ;;  %v5588_v2 = vadd.f32 0.2548296, %v5556_v40  ;;  %v5241_v6 = vmul.f32 0.3275911, %v5209_v56  ;;  %v8243_v26 = vpop.eup %8242  ;;  %v6097_v16 = vmul.f32 %v6033_v24, %v18742_v61 }
 0x61c   : > { %v5939_v60 = vadd.f32 1.0, %v5907_v46  ;;  %v5557_v14 = vmul.f32 %v15655_v22, %v5525_v32  ;;  %v5463_v7 = vadd.f32 1.4214138, %v5431_v33  ;;  %v6128_v3 = vmul.f32 %v6096_v17, %v18743_v52  ;;  %v18751_v17 = vld [vmem:[#allocation178_spill] sm:$0xff]  ;;  %v18753_v33 = vld [vmem:[#allocation77_spill] sm:$0xff] }
 0x61d   : > { %v5620_v41 = vmul.f32 %v15327_v48, %v5588_v2  ;;  %v5590_v0 = vadd.f32 0.2548296, %v5558_v30  ;;  %v5273_v19 = vadd.f32 1.0, %v5241_v6  ;;  %v6129_v44 = vmul.f32 %v6097_v16, %v18744_v42  ;;  %v18752_v32 = vld [vmem:[#allocation118_spill] sm:$0xff]  ;;  %v18754_v2 = vld [vmem:[#allocation169_spill] sm:$0xff]  ;;  %v18755_v42 = vld [vmem:[#allocation215_spill] sm:$0xff] }
 0x61e   : > { %v5971_v50 = vmul.f32 %v5939_v60, %v15632_v8  ;;  %v5589_v53 = vadd.f32 0.2548296, %v5557_v14  ;;  %v5495_v5 = vmul.f32 %v15674_v23, %v5463_v7  ;;  %v6098_v28 = vmul.f32 %v6034_v31, %v18745_v15 }
 0x61f   : > { %v5780_v51 = vmul.f32 %v15429_v35, %v5620_v41  ;;  %v5622_v55 = vmul.f32 %v15331_v58, %v5590_v0  ;;  %8246 = vrcp.f32 %v5273_v19  ;;  %7902 = vmatprep.subr.msk.mxu0 %vm334_vm0, %v6129_v44  ;;  %vm5844_vm13 = vcmp.ge.f32.partialorder %v18746_v29, 0.0  ;;  %v18748_v35 = vld [vmem:[#allocation69_spill] sm:$0xff]  ;;  %v18750_v58 = vld [vmem:[#allocation191_spill] sm:$0xff] }
 0x620   : > { %v6035_v1 = vrot.slane %v5971_v50, 4  ;;  %v5621_v48 = vmul.f32 %v15655_v22, %v5589_v53  ;;  %v5527_v59 = vadd.f32 -0.28449672, %v5495_v5  ;;  %7903 = vmatpush1.msk.msra.mxu0 %vm334_vm0, %v6128_v3  ;;  %v5657_v12 = vsub.f32 0.0, %v5209_v56 }
 0x621   : > { %v8245_v9 = vpop.eup %8244  ;;  %v5812_v8 = vsub.f32 1.0, %v5780_v51  ;;  %v5782_v36 = vmul.f32 %v15435_v4, %v5622_v55  ;;  %v18749_v25 = vsub.f32 %v18747_v13, %v18748_v35  ;;  %7904 = vmatmul.mubr.msk.f32.vlgmr.msra.gmra.mrb[22].mxu0 %vm330_vm1, %v15456_v38  ;;  %vm5846_vm14 = vcmp.ge.f32.partialorder %v18752_v32, 0.0 }
 0x622   : > { %v6099_v40 = vmul.f32 %v6035_v1, %v18751_v17  ;;  %v5781_v24 = vmul.f32 %v8243_v26, %v5621_v48  ;;  %v5559_v22 = vmul.f32 %v15674_v23, %v5527_v59  ;;  %v6130_v30 = vmul.f32 %v6098_v28, %v18753_v33  ;;  %6880 = vmatprep.mubr.f32.mxu0 %v18705_v34  ;;  %v18756_v33 = vld [vmem:[#allocation30_spill] sm:$0xff] }
 0x623   : > { %v15711_v43 = vmul.f32 %v18750_v58, %v18749_v25  ;;  %v5876_v4 = vsub.f32 0.0, %v5812_v8  ;;  %v5814_v46 = vsub.f32 1.0, %v5782_v36  ;;  %v5368_v16 = vmul.f32 1.0614054, %v15339_v63 }
 0x624   : > { %v6131_v6 = vmul.f32 %v6099_v40, %v18754_v2  ;;  %v5813_v61 = vsub.f32 1.0, %v5781_v24  ;;  %v5591_v26 = vadd.f32 0.2548296, %v5559_v22  ;;  %v5689_v7 = vmul.f32 %v5657_v12, %v5209_v56 }
 0x625   : > { %v15720_v31 = vmul.f32 0.70710677, %v15711_v43  ;;  %v5908_v60 = vsel %vm5844_vm13, %v5812_v8, %v5876_v4  ;;  %v5878_v14 = vsub.f32 0.0, %v5814_v46  ;;  %v5400_v19 = vadd.f32 -1.4531521, %v5368_v16  ;;  %v18758_v16 = vld [vmem:[#allocation195_spill] sm:$0xff] }
 0x626   : > { %7905 = vmatprep.subr.msk.mxu1 %vm334_vm0, %v6131_v6  ;;  %v5877_v3 = vsub.f32 0.0, %v5813_v61  ;;  %v5623_v41 = vmul.f32 %v15674_v23, %v5591_v26  ;;  %v5940_v0 = vadd.f32 1.0, %v5908_v60  ;;  %vm5845_vm15 = vcmp.ge.f32.partialorder %v15598_v21, 0.0 }
 0x627   : > { %v5211_v52 = vand.u32 2147483647, %v15720_v31  ;;  %7906 = vmatpush1.msk.msra.mxu1 %vm334_vm0, %v6130_v30  ;;  %v5142_v44 = vmul.f32 0.5, %v18755_v42  ;;  %v5910_v50 = vsel %vm5846_vm14, %v5814_v46, %v5878_v14  ;;  %v5742_v55 = vmul.f32 1.442695, %v5689_v7  ;;  %v18760_v7 = vld [vmem:[#allocation113_spill] sm:$0xff] }
 0x628   : > { %v5909_v56 = vsel %vm5845_vm15, %v5813_v61, %v5877_v3  ;;  %v5783_v5 = vmul.f32 %v8245_v9, %v5623_v41  ;;  %7907 = vmatmul.mubr.msk.f32.vlgmr.msra.gmra.mrb[22].mxu1 %vm330_vm1, %v15456_v38  ;;  %v5972_v15 = vmul.f32 %v5940_v0, %v15671_v54  ;;  %v5942_v23 = vadd.f32 1.0, %v5910_v50  ;;  %v18763_v50 = vld [vmem:[#allocation165_spill] sm:$0xff] }
 0x629   : > { %v5243_v53 = vmul.f32 0.3275911, %v5211_v52  ;;  %v15738_v28 = vpop.eup %8246  ;;  %v5941_v51 = vadd.f32 1.0, %v5909_v56  ;;  %6951 = vmatprep.mubr.f32.mxu1 %v18705_v34  ;;  %v5432_v21 = vmul.f32 %v15339_v63, %v5400_v19  ;;  %v5659_v9 = vsub.f32 0.0, %v5211_v52 }
 0x62a   : > { %v5815_v48 = vsub.f32 1.0, %v5783_v5  ;;  %v6036_v59 = vrot.slane %v5972_v15, 4  ;;  %v5369_v29 = vmul.f32 1.0614054, %v15738_v28  ;;  %v5143_v36 = vmul.f32 0.5, %v18730_v47  ;;  %v18757_v47 = vld [vmem:[#allocation81_spill] sm:$0xff] }
 0x62b   : > { %v5275_v1 = vadd.f32 1.0, %v5243_v53  ;;  %v5973_v8 = vmul.f32 %v5941_v51, %v15664_v11  ;;  %v5464_v54 = vadd.f32 1.4214138, %v5432_v21  ;;  %vm5847_vm2 = vcmp.ge.f32.partialorder %v15611_v39, 0.0 }
 0x62c   : > { %v5879_v12 = vsub.f32 0.0, %v5815_v48  ;;  %v5974_v25 = vmul.f32 %v5942_v23, %v5142_v44  ;;  %v5401_v17 = vadd.f32 -1.4531521, %v5369_v29  ;;  %v5370_v22 = vmul.f32 1.0614054, %v15350_v18 }
 0x62d   : > { %8248 = vrcp.f32 %v5275_v1  ;;  %v6037_v40 = vrot.slane %v5973_v8, 4  ;;  %v5496_v24 = vmul.f32 %v15339_v63, %v5464_v54  ;;  %v6100_v30 = vmul.f32 %v6036_v59, %v18756_v33  ;;  %v18765_v1 = vld [vmem:[#allocation154_spill] sm:$0xff] }
 0x62e   : > { %8250 = vpow2.f32 %v5742_v55  ;;  %v5911_v32 = vsel %vm5847_vm2, %v5815_v48, %v5879_v12  ;;  %v5433_v11 = vmul.f32 %v15738_v28, %v5401_v17  ;;  %v5691_v4 = vmul.f32 %v5659_v9, %v5211_v52  ;;  %v18762_v52 = vld [vmem:[#allocation122_spill] sm:$0xff]  ;;  %v18766_v9 = vld [vmem:[#allocation140_spill] sm:$0xff] }
 0x62f   : > { %v6101_v46 = vmul.f32 %v6037_v40, %v18757_v47  ;;  %v5943_v2 = vadd.f32 1.0, %v5911_v32  ;;  %v5528_v6 = vadd.f32 -0.28449672, %v5496_v24  ;;  %v5402_v39 = vadd.f32 -1.4531521, %v5370_v22  ;;  %v18764_v55 = vld [vmem:[#allocation202_spill] sm:$0xff] }
 0x630   : > { %v6038_v61 = vrot.slane %v5974_v25, 4  ;;  %v5465_v26 = vadd.f32 1.4214138, %v5433_v11  ;;  %v18759_v60 = vsub.f32 %v18758_v16, %v18748_v35  ;;  %v18761_v3 = vsub.f32 %v18760_v7, %v18748_v35  ;;  %v18767_v22 = vld [vmem:[#allocation116_spill] sm:$0xff] }
 0x631   : > { %v6133_v0 = vmul.f32 %v6101_v46, %v18762_v52  ;;  %v5975_v19 = vmul.f32 %v5943_v2, %v5143_v36  ;;  %v5560_v42 = vmul.f32 %v15339_v63, %v5528_v6  ;;  %v5434_v44 = vmul.f32 %v15350_v18, %v5402_v39  ;;  %v18768_v11 = vld [vmem:[#allocation68_spill] sm:$0xff] }
 0x632   : > { %v15755_v14 = vmul.f32 %v18750_v58, %v18759_v60  ;;  %v15761_v41 = vmul.f32 %v18750_v58, %v18761_v3  ;;  %8252 = vpow2.f32 %v15335_v62  ;;  %v6132_v53 = vmul.f32 %v6100_v30, %v18763_v50 }
 0x633   : > { %v5497_v56 = vmul.f32 %v15738_v28, %v5465_v26  ;;  %8254 = vpow2.f32 %v15337_v20  ;;  %7908 = vmatprep.subr.msk.mxu0 %vm334_vm0, %v6133_v0  ;;  %v6039_v15 = vrot.slane %v5975_v19, 4  ;;  %v5592_v23 = vadd.f32 0.2548296, %v5560_v42  ;;  %v18769_v42 = vld [vmem:[#allocation39_spill] sm:$0xff] }
 0x634   : > { %v15770_v5 = vmul.f32 0.70710677, %v15755_v14  ;;  %v5466_v51 = vadd.f32 1.4214138, %v5434_v44  ;;  %vm5848_vm3 = vcmp.ge.f32.partialorder %v18764_v55, 0.0  ;;  %7909 = vmatpush1.msk.msra.mxu0 %vm334_vm0, %v6132_v53  ;;  %v6102_v62 = vmul.f32 %v6038_v61, %v18765_v1  ;;  %v18770_v53 = vld [vmem:[#allocation31_spill] sm:$0xff] }
 0x635   : > { %v5529_v21 = vadd.f32 -0.28449672, %v5497_v56  ;;  %v5746_v48 = vmul.f32 1.442695, %v5691_v4  ;;  %v6103_v8 = vmul.f32 %v6039_v15, %v18766_v9  ;;  %7910 = vmatmul.mubr.msk.f32.vlgmr.msra.gmra.mrb[24].mxu0 %vm330_vm1, %v15456_v38  ;;  %v5624_v20 = vmul.f32 %v15339_v63, %v5592_v23 }
 0x636   : > { %v5213_v59 = vand.u32 2147483647, %v15770_v5  ;;  %v5498_v36 = vmul.f32 %v15350_v18, %v5466_v51  ;;  %v15786_v54 = vmul.f32 0.70710677, %v15761_v41  ;;  %7022 = vmatprep.mubr.f32.mxu0 %v18705_v34  ;;  %v6134_v4 = vmul.f32 %v6102_v62, %v18768_v11  ;;  %v18773_v11 = vld [vmem:[#allocation54_spill] sm:$0xff] }
 0x637   : > { %v15778_v29 = vpop.eup %8248  ;;  %v5561_v12 = vmul.f32 %v15738_v28, %v5529_v21  ;;  %v6135_v32 = vmul.f32 %v6103_v8, %v18767_v22  ;;  %v5784_v33 = vmul.f32 %v15584_v37, %v5624_v20  ;;  %8256 = vpow2.f32 %v15343_v57 }
 0x638   : > { %v5371_v25 = vmul.f32 1.0614054, %v15778_v29  ;;  %v5245_v17 = vmul.f32 0.3275911, %v5213_v59  ;;  %v5661_v40 = vsub.f32 0.0, %v5213_v59  ;;  %v8251_v24 = vpop.eup %8250  ;;  %v5145_v37 = vmul.f32 0.5, %v18740_v49 }
 0x639   : > { %v5530_v30 = vadd.f32 -0.28449672, %v5498_v36  ;;  %v5215_v63 = vand.u32 2147483647, %v15786_v54  ;;  %v5593_v47 = vadd.f32 0.2548296, %v5561_v12  ;;  %7911 = vmatprep.subr.msk.mxu1 %vm334_vm0, %v6135_v32 }
 0x63a   : > { %v5403_v46 = vadd.f32 -1.4531521, %v5371_v25  ;;  %v5277_v2 = vadd.f32 1.0, %v5245_v17  ;;  %v5816_v6 = vsub.f32 1.0, %v5784_v33  ;;  %7912 = vmatpush1.msk.msra.mxu1 %vm334_vm0, %v6134_v4  ;;  %v5693_v52 = vmul.f32 %v5661_v40, %v5213_v59  ;;  %v18771_v25 = vld [vmem:[#allocation156_spill] sm:$0xff] }
 0x63b   : > { %v5562_v39 = vmul.f32 %v15350_v18, %v5530_v30  ;;  %v5247_v61 = vmul.f32 0.3275911, %v5215_v63  ;;  %v5625_v26 = vmul.f32 %v15738_v28, %v5593_v47  ;;  %7913 = vmatmul.mubr.msk.f32.vlgmr.msra.gmra.mrb[24].mxu1 %vm330_vm1, %v15456_v38  ;;  %vm5850_vm4 = vcmp.ge.f32.partialorder %v18769_v42, 0.0 }
 0x63c   : > { %v5435_v60 = vmul.f32 %v15778_v29, %v5403_v46  ;;  %8258 = vrcp.f32 %v5277_v2  ;;  %v5880_v3 = vsub.f32 0.0, %v5816_v6  ;;  %v8253_v19 = vpop.eup %8252  ;;  %v5144_v49 = vmul.f32 0.5, %v18770_v53  ;;  %7093 = vmatprep.mubr.f32.mxu1 %v18705_v34 }
 0x63d   : > { %v5594_v57 = vadd.f32 0.2548296, %v5562_v39  ;;  %v5279_v0 = vadd.f32 1.0, %v5247_v61  ;;  %v5785_v44 = vmul.f32 %v8251_v24, %v5625_v26  ;;  %8260 = vpow2.f32 %v5746_v48  ;;  %v15807_v28 = vpop.eup %8254 }
 0x63e   : > { %v5467_v50 = vadd.f32 1.4214138, %v5435_v60  ;;  %v5912_v56 = vsel %vm5848_vm3, %v5816_v6, %v5880_v3  ;;  %v5663_v15 = vsub.f32 0.0, %v5215_v63  ;;  %v5372_v62 = vmul.f32 1.0614054, %v15353_v27 }
 0x63f   : > { %v5626_v38 = vmul.f32 %v15350_v18, %v5594_v57  ;;  %8262 = vrcp.f32 %v5279_v0  ;;  %v5817_v23 = vsub.f32 1.0, %v5785_v44  ;;  %v5944_v1 = vadd.f32 1.0, %v5912_v56  ;;  %v18774_v0 = vld [vmem:[#allocation27_spill] sm:$0xff] }
 0x640   : > { %v5499_v51 = vmul.f32 %v15778_v29, %v5467_v50  ;;  %vm5849_vm5 = vcmp.ge.f32.partialorder %v15679_v10, 0.0  ;;  %v5750_v48 = vmul.f32 1.442695, %v5693_v52  ;;  %v5374_v59 = vmul.f32 1.0614054, %v15360_v45 }
 0x641   : > { %v5786_v21 = vmul.f32 %v8253_v19, %v5626_v38  ;;  %v5881_v9 = vsub.f32 0.0, %v5817_v23  ;;  %v5976_v55 = vmul.f32 %v5944_v1, %v5144_v49  ;;  %v5404_v20 = vadd.f32 -1.4531521, %v5372_v62  ;;  %v15824_v33 = vpop.eup %8256 }
 0x642   : > { %v5531_v8 = vadd.f32 -0.28449672, %v5499_v51  ;;  %v5695_v18 = vmul.f32 %v5663_v15, %v5215_v63  ;;  %v5406_v12 = vadd.f32 -1.4531521, %v5374_v59  ;;  %v18772_v17 = vsub.f32 %v18771_v25, %v18748_v35 }
 0x643   : > { %v5818_v36 = vsub.f32 1.0, %v5786_v21  ;;  %v5913_v24 = vsel %vm5849_vm5, %v5817_v23, %v5881_v9  ;;  %v6040_v22 = vrot.slane %v5976_v55, 4  ;;  %v5436_v32 = vmul.f32 %v15353_v27, %v5404_v20  ;;  %v18776_v9 = vld [vmem:[#allocation84_spill] sm:$0xff] }
 0x644   : > { %v15820_v40 = vmul.f32 %v18750_v58, %v18772_v17  ;;  %v5563_v10 = vmul.f32 %v15778_v29, %v5531_v8  ;;  %v5945_v30 = vadd.f32 1.0, %v5913_v24  ;;  %v5146_v4 = vmul.f32 0.5, %v18773_v11 }
 0x645   : > { %v5882_v47 = vsub.f32 0.0, %v5818_v36  ;;  %v5438_v63 = vmul.f32 %v15360_v45, %v5406_v12  ;;  %8264 = vpow2.f32 %v5750_v48  ;;  %v5468_v6 = vadd.f32 1.4214138, %v5436_v32 }
 0x646   : > { %v15828_v46 = vpop.eup %8258  ;;  %v5595_v2 = vadd.f32 0.2548296, %v5563_v10  ;;  %v15831_v39 = vmul.f32 0.70710677, %v15820_v40  ;;  %v5977_v61 = vmul.f32 %v5945_v30, %v5145_v37  ;;  %v6104_v19 = vmul.f32 %v6040_v22, %v18774_v0  ;;  %v18778_v0 = vld [vmem:[#allocation92_spill] sm:$0xff] }
 0x647   : > { %v5914_v26 = vsel %vm5850_vm4, %v5818_v36, %v5882_v47  ;;  %v5373_v60 = vmul.f32 1.0614054, %v15828_v46  ;;  %v5470_v3 = vadd.f32 1.4214138, %v5438_v63  ;;  %v8261_v57 = vpop.eup %8260  ;;  %v5754_v44 = vmul.f32 1.442695, %v5695_v18 }
 0x648   : > { %v5627_v52 = vmul.f32 %v15778_v29, %v5595_v2  ;;  %v5500_v50 = vmul.f32 %v15353_v27, %v5468_v6  ;;  %v6041_v49 = vrot.slane %v5977_v61, 4  ;;  %v15843_v42 = vand.u32 2147483647, %v15831_v39  ;;  %v18775_v29 = vld [vmem:[#allocation114_spill] sm:$0xff] }
 0x649   : > { %v15839_v53 = vpop.eup %8262  ;;  %v5405_v56 = vadd.f32 -1.4531521, %v5373_v60  ;;  %v5502_v37 = vmul.f32 %v15360_v45, %v5470_v3  ;;  %v5946_v15 = vadd.f32 1.0, %v5914_v26  ;;  %v6136_v8 = vmul.f32 %v6104_v19, %v18776_v9  ;;  %v18777_v36 = vld [vmem:[#allocation26_spill] sm:$0xff] }
 0x64a   : > { %v5787_v38 = vmul.f32 %v8261_v57, %v5627_v52  ;;  %v5375_v23 = vmul.f32 1.0614054, %v15839_v53  ;;  %v5532_v51 = vadd.f32 -0.28449672, %v5500_v50  ;;  %v6105_v1 = vmul.f32 %v6041_v49, %v18775_v29  ;;  %v18780_v49 = vld [vmem:[#allocation163_spill] sm:$0xff]  ;;  %v18782_v29 = vld [vmem:[#allocation214_spill] sm:$0xff] }
 0x64b   : > { %v5437_v62 = vmul.f32 %v15828_v46, %v5405_v56  ;;  %v5534_v21 = vadd.f32 -0.28449672, %v5502_v37  ;;  %v5249_v48 = vmul.f32 0.3275911, %v15843_v42  ;;  %v5978_v22 = vmul.f32 %v5946_v15, %v5146_v4  ;;  %v18783_v9 = vld [vmem:[#allocation98_spill] sm:$0xff] }
 0x64c   : > { %v5819_v59 = vsub.f32 1.0, %v5787_v38  ;;  %v5407_v55 = vadd.f32 -1.4531521, %v5375_v23  ;;  %v5564_v20 = vmul.f32 %v15353_v27, %v5532_v51  ;;  %v6137_v18 = vmul.f32 %v6105_v1, %v18777_v36 }
 0x64d   : > { %v5469_v12 = vadd.f32 1.4214138, %v5437_v62  ;;  %v5566_v17 = vmul.f32 %v15360_v45, %v5534_v21  ;;  %v5281_v24 = vadd.f32 1.0, %v5249_v48  ;;  %vm5851_vm6 = vcmp.ge.f32.partialorder %v15720_v31, 0.0  ;;  %v15863_v31 = vld [vmem:[%s16384_s5] sm:$0xf] }
 0x64e   : > { %v5883_v10 = vsub.f32 0.0, %v5819_v59  ;;  %v5439_v32 = vmul.f32 %v15839_v53, %v5407_v55  ;;  %v5596_v30 = vadd.f32 0.2548296, %v5564_v20  ;;  %7914 = vmatprep.subr.msk.mxu0 %vm334_vm0, %v6137_v18  ;;  %v5147_v2 = vmul.f32 0.5, %v15711_v43 }
 0x64f   : > { %v5501_v11 = vmul.f32 %v15828_v46, %v5469_v12  ;;  %v5598_v47 = vadd.f32 0.2548296, %v5566_v17  ;;  %8266 = vrcp.f32 %v5281_v24  ;;  %v8265_v63 = vpop.eup %8264  ;;  %7915 = vmatpush1.msk.msra.mxu0 %vm334_vm0, %v6136_v8  ;;  %v6042_v43 = vrot.slane %v5978_v22, 4  ;;  %v18784_v17 = vld [vmem:[#allocation184_spill] sm:$0xff] }
 0x650   : > { %v5915_v6 = vsel %vm5851_vm6, %v5819_v59, %v5883_v10  ;;  %v5471_v61 = vadd.f32 1.4214138, %v5439_v32  ;;  %v5628_v4 = vmul.f32 %v15353_v27, %v5596_v30  ;;  %8268 = vpow2.f32 %v5754_v44  ;;  %7916 = vmatmul.mubr.msk.f32.vlgmr.msra.gmra.mrb[26].mxu0 %vm330_vm1, %v15863_v31  ;;  %v18785_v30 = vld [vmem:[#allocation199_spill] sm:$0xff] }
 0x651   : > { %v5947_v26 = vadd.f32 1.0, %v5915_v6  ;;  %v5533_v60 = vadd.f32 -0.28449672, %v5501_v11  ;;  %v5630_v3 = vmul.f32 %v15360_v45, %v5598_v47  ;;  %v18779_v27 = vsub.f32 %v18778_v0, %v18748_v35  ;;  %7164 = vmatprep.mubr.f32.mxu0 %v18705_v34  ;;  %v18786_v6 = vld [vmem:[#allocation51_spill] sm:$0xff] }
 0x652   : > { %v5503_v57 = vmul.f32 %v15839_v53, %v5471_v61  ;;  %v5788_v52 = vmul.f32 %v15807_v28, %v5628_v4  ;;  %v5148_v56 = vmul.f32 0.5, %v18780_v49  ;;  %v5665_v15 = vsub.f32 0.0, %v15843_v42 }
 0x653   : > { %v15874_v19 = vmul.f32 %v18750_v58, %v18779_v27  ;;  %v5979_v44 = vmul.f32 %v5947_v26, %v5147_v2  ;;  %v5565_v50 = vmul.f32 %v15828_v46, %v5533_v60  ;;  %v5790_v45 = vmul.f32 %v15824_v33, %v5630_v3  ;;  %v18781_v58 = vld [vmem:[#allocation111_spill] sm:$0xff]  ;;  %v18787_v26 = vld [vmem:[#allocation52_spill] sm:$0xff] }
 0x654   : > { %v5535_v37 = vadd.f32 -0.28449672, %v5503_v57  ;;  %v5820_v38 = vsub.f32 1.0, %v5788_v52  ;;  %vm5852_vm7 = vcmp.ge.f32.partialorder %v18781_v58, 0.0  ;;  %v6106_v1 = vmul.f32 %v6042_v43, %v18782_v29 }
 0x655   : > { %v15882_v28 = vmul.f32 0.70710677, %v15874_v19  ;;  %v6043_v35 = vrot.slane %v5979_v44, 4  ;;  %v5597_v23 = vadd.f32 0.2548296, %v5565_v50  ;;  %v5822_v51 = vsub.f32 1.0, %v5790_v45 }
 0x656   : > { %v5567_v62 = vmul.f32 %v15839_v53, %v5535_v37  ;;  %v5884_v21 = vsub.f32 0.0, %v5820_v38  ;;  %vm5854_vm8 = vcmp.ge.f32.partialorder %v18783_v9, 0.0  ;;  %v5697_v36 = vmul.f32 %v5665_v15, %v15843_v42  ;;  %v18789_v50 = vld [vmem:[#allocation42_spill] sm:$0xff] }
 0x657   : > { %v15888_v48 = vand.u32 2147483647, %v15882_v28  ;;  %v6107_v33 = vmul.f32 %v6043_v35, %v18747_v13  ;;  %v5629_v59 = vmul.f32 %v15828_v46, %v5597_v23  ;;  %v5886_v8 = vsub.f32 0.0, %v5822_v51 }
 0x658   : > { %v5599_v55 = vadd.f32 0.2548296, %v5567_v62  ;;  %v5916_v20 = vsel %vm5852_vm7, %v5820_v38, %v5884_v21  ;;  %v6138_v13 = vmul.f32 %v6106_v1, %v18785_v30  ;;  %v5760_v61 = vmul.f32 1.442695, %v18786_v6 }
 0x659   : > { %v5251_v18 = vmul.f32 0.3275911, %v15888_v48  ;;  %v15895_v12 = vpop.eup %8266  ;;  %v6139_v24 = vmul.f32 %v6107_v33, %v18784_v17  ;;  %v5789_v10 = vmul.f32 %v8265_v63, %v5629_v59  ;;  %v5948_v22 = vadd.f32 1.0, %v5916_v20 }
 0x65a   : > { %v5918_v32 = vsel %vm5854_vm8, %v5822_v51, %v5886_v8  ;;  %v5631_v46 = vmul.f32 %v15839_v53, %v5599_v55  ;;  %v5377_v11 = vmul.f32 1.0614054, %v15895_v12  ;;  %v8269_v2 = vpop.eup %8268  ;;  %v5376_v60 = vmul.f32 1.0614054, %v18787_v26  ;;  %v18788_v53 = vld [vmem:[#allocation216_spill] sm:$0xff] }
 0x65b   : > { %v5283_v47 = vadd.f32 1.0, %v5251_v18  ;;  %7917 = vmatprep.subr.msk.mxu1 %vm334_vm0, %v6139_v24  ;;  %v5821_v42 = vsub.f32 1.0, %v5789_v10  ;;  %v5950_v4 = vadd.f32 1.0, %v5918_v32  ;;  %v5980_v3 = vmul.f32 %v5948_v22, %v5148_v56 }
 0x65c   : > { %7918 = vmatpush1.msk.msra.mxu1 %vm334_vm0, %v6138_v13  ;;  %v5791_v63 = vmul.f32 %v8269_v2, %v5631_v46  ;;  %v5409_v43 = vadd.f32 -1.4531521, %v5377_v11  ;;  %v5150_v52 = vmul.f32 0.5, %v18788_v53  ;;  %v5758_v27 = vmul.f32 1.442695, %v5697_v36  ;;  %v18791_v36 = vld [vmem:[#allocation105_spill] sm:$0xff] }
 0x65d   : > { %8270 = vrcp.f32 %v5283_v47  ;;  %v5885_v57 = vsub.f32 0.0, %v5821_v42  ;;  %7919 = vmatmul.mubr.msk.f32.vlgmr.msra.gmra.mrb[26].mxu1 %vm330_vm1, %v15863_v31  ;;  %v5408_v44 = vadd.f32 -1.4531521, %v5376_v60  ;;  %vm5853_vm9 = vcmp.ge.f32.partialorder %v15770_v5, 0.0  ;;  %v18790_v5 = vld [vmem:[#allocation93_spill] sm:$0xff]  ;;  %v18793_v60 = vld [vmem:[#allocation138_spill] sm:$0xff] }
 0x65e   : > { %8272 = vpow2.f32 %v18789_v50  ;;  %v5823_v49 = vsub.f32 1.0, %v5791_v63  ;;  %v5441_v45 = vmul.f32 %v15895_v12, %v5409_v43  ;;  %7235 = vmatprep.mubr.f32.mxu1 %v18705_v34  ;;  %v5149_v56 = vmul.f32 0.5, %v15755_v14  ;;  %v18795_v50 = vld [vmem:[#allocation175_spill] sm:$0xff] }
 0x65f   : > { %v5917_v37 = vsel %vm5853_vm9, %v5821_v42, %v5885_v57  ;;  %v5982_v38 = vmul.f32 %v5950_v4, %v5150_v52  ;;  %v5440_v15 = vmul.f32 %v18787_v26, %v5408_v44  ;;  %v6044_v58 = vrot.slane %v5980_v3, 4  ;;  %v18792_v42 = vld [vmem:[#allocation161_spill] sm:$0xff]  ;;  %v18794_v3 = vld [vmem:[#allocation112_spill] sm:$0xff] }
 0x660   : > { %v5949_v35 = vadd.f32 1.0, %v5917_v37  ;;  %v5887_v23 = vsub.f32 0.0, %v5823_v49  ;;  %v5473_v51 = vadd.f32 1.4214138, %v5441_v45  ;;  %vm5855_vm10 = vcmp.ge.f32.partialorder %v15786_v54, 0.0 }
 0x661   : > { %8274 = vpow2.f32 %v5758_v27  ;;  %v5472_v29 = vadd.f32 1.4214138, %v5440_v15  ;;  %v5378_v1 = vmul.f32 1.0614054, %v18790_v5  ;;  %v5667_v14 = vsub.f32 0.0, %v15888_v48 }
 0x662   : > { %v5981_v62 = vmul.f32 %v5949_v35, %v5149_v56  ;;  %v5919_v21 = vsel %vm5855_vm10, %v5823_v49, %v5887_v23  ;;  %v5505_v33 = vmul.f32 %v15895_v12, %v5473_v51  ;;  %v5151_v59 = vmul.f32 0.5, %v15761_v41 }
 0x663   : > { %v5951_v9 = vadd.f32 1.0, %v5919_v21  ;;  %v5504_v8 = vmul.f32 %v18787_v26, %v5472_v29  ;;  %v5410_v55 = vadd.f32 -1.4531521, %v5378_v1  ;;  %v6108_v18 = vmul.f32 %v6044_v58, %v18791_v36 }
 0x664   : > { %v6045_v20 = vrot.slane %v5981_v62, 4  ;;  %v6046_v54 = vrot.slane %v5982_v38, 4  ;;  %v5537_v17 = vadd.f32 -0.28449672, %v5505_v33  ;;  %8276 = vpow2.f32 %v5760_v61 }
 0x665   : > { %v5983_v24 = vmul.f32 %v5951_v9, %v5151_v59  ;;  %v5536_v10 = vadd.f32 -0.28449672, %v5504_v8  ;;  %v5442_v22 = vmul.f32 %v18790_v5, %v5410_v55  ;;  %v5699_v13 = vmul.f32 %v5667_v14, %v15888_v48  ;;  %v18797_v59 = vld [vmem:[#allocation44_spill] sm:$0xff] }
 0x666   : > { %v6109_v30 = vmul.f32 %v6045_v20, %v18758_v16  ;;  %v5569_v41 = vmul.f32 %v15895_v12, %v5537_v17  ;;  %v6140_v63 = vmul.f32 %v6108_v18, %v18793_v60  ;;  %v6110_v43 = vmul.f32 %v6046_v54, %v18794_v3  ;;  %v18798_v54 = vld [vmem:[#allocation88_spill] sm:$0xff]  ;;  %v18801_v60 = vld [vmem:[#allocation123_spill] sm:$0xff] }
 0x667   : > { %v15922_v32 = vpop.eup %8270  ;;  %v6047_v46 = vrot.slane %v5983_v24, 4  ;;  %v5568_v47 = vmul.f32 %v18787_v26, %v5536_v10  ;;  %v5474_v2 = vadd.f32 1.4214138, %v5442_v22  ;;  %v5762_v27 = vmul.f32 1.442695, %v5699_v13 }
 0x668   : > { %v5379_v11 = vmul.f32 1.0614054, %v15922_v32  ;;  %v8273_v6 = vpop.eup %8272  ;;  %v6141_v4 = vmul.f32 %v6109_v30, %v18792_v42  ;;  %v5601_v61 = vadd.f32 0.2548296, %v5569_v41  ;;  %vm5857_vm11 = vcmp.ge.f32.partialorder %v15831_v39, 0.0 }
 0x669   : > { %v6111_v16 = vmul.f32 %v6047_v46, %v18760_v7  ;;  %v5600_v53 = vadd.f32 0.2548296, %v5568_v47  ;;  %v5506_v48 = vmul.f32 %v18790_v5, %v5474_v2  ;;  %v18796_v7 = vld [vmem:[#allocation153_spill] sm:$0xff]  ;;  %8278 = vpow2.f32 %v5762_v27  ;;  %v18799_v46 = vld [vmem:[#allocation94_spill] sm:$0xff] }
 0x66a   : > { %v5411_v57 = vadd.f32 -1.4531521, %v5379_v11  ;;  %7920 = vmatprep.subr.msk.mxu0 %vm334_vm0, %v6141_v4  ;;  %v5633_v52 = vmul.f32 %v15895_v12, %v5601_v61  ;;  %v6142_v38 = vmul.f32 %v6110_v43, %v18796_v7  ;;  %vm5856_vm12 = vcmp.ge.f32.partialorder %v18797_v59, 0.0  ;;  %v18802_v43 = vld [vmem:[#allocation37_spill] sm:$0xff] }
 0x66b   : > { %v8275_v44 = vpop.eup %8274  ;;  %v6143_v49 = vmul.f32 %v6111_v16, %v18795_v50  ;;  %7921 = vmatpush1.msk.msra.mxu0 %vm334_vm0, %v6140_v63  ;;  %v5632_v56 = vmul.f32 %v18787_v26, %v5600_v53  ;;  %v5538_v37 = vadd.f32 -0.28449672, %v5506_v48  ;;  %v5153_v9 = vmul.f32 0.5, %v15820_v40  ;;  %v18803_v16 = vld [vmem:[#allocation103_spill] sm:$0xff] }
 0x66c   : > { %v5443_v45 = vmul.f32 %v15922_v32, %v5411_v57  ;;  %v5793_v15 = vmul.f32 %v8275_v44, %v5633_v52  ;;  %7922 = vmatmul.mubr.msk.f32.vlgmr.msra.gmra.mrb[28].mxu0 %vm330_vm1, %v15863_v31  ;;  %v5152_v17 = vmul.f32 0.5, %v18798_v54  ;;  %vm5858_vm13 = vcmp.ge.f32.partialorder %v18799_v46, 0.0 }
 0x66d   : > { %7923 = vmatprep.subr.msk.mxu1 %vm334_vm0, %v6143_v49  ;;  %v5792_v35 = vmul.f32 %v8273_v6, %v5632_v56  ;;  %v5570_v23 = vmul.f32 %v18790_v5, %v5538_v37  ;;  %7306 = vmatprep.mubr.f32.mxu0 %v18705_v34  ;;  %v18800_v6 = vld [vmem:[#allocation63_spill] sm:$0xff]  ;;  %v5154_v61 = vmul.f32 0.5, %v18802_v43  ;;  %vm5859_vm14 = vcmp.ge.f32.partialorder %v15882_v28, 0.0  ;;  %v18804_v49 = vld [vmem:[#allocation13_spill] sm:$0xff]  ;;  %v18805_v37 = vld [vmem:[#allocation32_spill] sm:$0xff] }
 0x66e   : > { %v5475_v12 = vadd.f32 1.4214138, %v5443_v45  ;;  %7924 = vmatpush1.msk.msra.mxu1 %vm334_vm0, %v6142_v38  ;;  %v5825_v58 = vsub.f32 1.0, %v5793_v15  ;;  %v8277_v1 = vpop.eup %8276  ;;  %v5155_v48 = vmul.f32 0.5, %v15874_v19  ;;  %v18806_v38 = vld [vmem:[#allocation76_spill] sm:$0xff] }
 0x66f   : > { %7925 = vmatmul.mubr.msk.f32.vlgmr.msra.gmra.mrb[28].mxu1 %vm330_vm1, %v15863_v31  ;;  %v5824_v51 = vsub.f32 1.0, %v5792_v35  ;;  %v5602_v29 = vadd.f32 0.2548296, %v5570_v23 }
 0x670   : > { %v5507_v26 = vmul.f32 %v15922_v32, %v5475_v12  ;;  %v5889_v62 = vsub.f32 0.0, %v5825_v58  ;;  %7377 = vmatprep.mubr.f32.mxu1 %v18705_v34 }
 0x671   : > { %v5888_v33 = vsub.f32 0.0, %v5824_v51  ;;  %v5634_v14 = vmul.f32 %v18790_v5, %v5602_v29 }
 0x672   : > { %v5539_v21 = vadd.f32 -0.28449672, %v5507_v26  ;;  %v5921_v8 = vsel %vm5857_vm11, %v5825_v58, %v5889_v62 }
 0x673   : > { %v5953_v55 = vadd.f32 1.0, %v5921_v8  ;;  %v5920_v36 = vsel %vm5856_vm12, %v5824_v51, %v5888_v33  ;;  %v5794_v18 = vmul.f32 %v8277_v1, %v5634_v14  ;;  %v8279_v13 = vpop.eup %8278 }
 0x674   : > { %v5571_v20 = vmul.f32 %v15922_v32, %v5539_v21  ;;  %v5952_v24 = vadd.f32 1.0, %v5920_v36 }
 0x675   : > { %v5985_v34 = vmul.f32 %v5953_v55, %v5153_v9  ;;  %v5826_v39 = vsub.f32 1.0, %v5794_v18 }
 0x676   : > { %v5603_v10 = vadd.f32 0.2548296, %v5571_v20  ;;  %v5984_v22 = vmul.f32 %v5952_v24, %v5152_v17 }
 0x677   : > { %v6049_v30 = vrot.slane %v5985_v34, 4  ;;  %v5890_v41 = vsub.f32 0.0, %v5826_v39 }
 0x678   : > { %v5635_v5 = vmul.f32 %v15922_v32, %v5603_v10  ;;  %v6048_v40 = vrot.slane %v5984_v22, 4 }
 0x679   : > { %v6113_v11 = vmul.f32 %v6049_v30, %v18771_v25  ;;  %v5922_v2 = vsel %vm5858_vm13, %v5826_v39, %v5890_v41 }
 0x67a   : > { %v5795_v47 = vmul.f32 %v8279_v13, %v5635_v5  ;;  %v6112_v42 = vmul.f32 %v6048_v40, %v18800_v6  ;;  %v5954_v4 = vadd.f32 1.0, %v5922_v2 }
 0x67b   : > { %v6145_v63 = vmul.f32 %v6113_v11, %v18801_v60 }
 0x67c   : > { %v5827_v3 = vsub.f32 1.0, %v5795_v47  ;;  %v6144_v57 = vmul.f32 %v6112_v42, %v18803_v16  ;;  %v5986_v53 = vmul.f32 %v5954_v4, %v5154_v61 }
 0x67d   : > { %7926 = vmatprep.subr.msk.mxu0 %vm334_vm0, %v6145_v63 }
 0x67e   : > { %v5891_v32 = vsub.f32 0.0, %v5827_v3  ;;  %7927 = vmatpush1.msk.msra.mxu0 %vm334_vm0, %v6144_v57  ;;  %v6050_v27 = vrot.slane %v5986_v53, 4 }
 0x67f   : > { %7928 = vmatmul.mubr.msk.f32.vlgmr.msra.gmra.mrb[30].mxu0 %vm330_vm1, %v15863_v31 }
 0x680   : > { %v5923_v25 = vsel %vm5859_vm14, %v5827_v3, %v5891_v32  ;;  %v6114_v45 = vmul.f32 %v6050_v27, %v18804_v49 }
 0x681   : > { %v5955_v52 = vadd.f32 1.0, %v5923_v25 }
 0x682   : > { %v6146_v28 = vmul.f32 %v6114_v45, %v18806_v38 }
 0x683   : > { %v5987_v44 = vmul.f32 %v5955_v52, %v5155_v48 }
 0x685   : > { %v6051_v50 = vrot.slane %v5987_v44, 4 }
 0x687   : > { %v6115_v56 = vmul.f32 %v6051_v50, %v18778_v0 }
 0x689   : > { %v6147_v7 = vmul.f32 %v6115_v56, %v18805_v37 }
 0x68b   : > { %7929 = vmatprep.subr.msk.mxu1 %vm334_vm0, %v6147_v7 }
 0x68c   : > { %7930 = vmatpush1.msk.msra.mxu1 %vm334_vm0, %v6146_v28 }
 0x68d   : > { %7931 = vmatmul.mubr.msk.f32.vlgmr.msra.gmra.mrb[30].mxu1 %vm330_vm1, %v15863_v31 }
 0x6a6   : > { %v15978_v19 = vpop.f32.mrb[16].mxu0 }
 0x6a7   : > { %v7384_v15 = vsel %vm334_vm0, %v15978_v19, 0.0  ;;  %v7451_v12 = vmul.f32 %v15978_v19, %v15978_v19  ;;  %v15984_v0 = vpop.f32.mrb[17].mxu0 }
 0x6a8   : > { %v7385_v35 = vsel %vm334_vm0, %v15984_v0, 0.0  ;;  %v7452_v23 = vmul.f32 %v15984_v0, %v15984_v0 }
 0x6a9   : > { %v7483_v58 = vsel %vm334_vm0, %v7451_v12, 0.0  ;;  %v7386_v26 = vadd.f32 %v7385_v35, %v7384_v15 }
 0x6aa   : > { %v7484_v31 = vsel %vm334_vm0, %v7452_v23, 0.0 }
 0x6ab   : > { %v7485_v51 = vadd.f32 %v7484_v31, %v7483_v58 }
 0x6be   : > { %v15992_v29 = vpop.f32.mrb[16].mxu1 }
 0x6bf   : > { %v7387_v1 = vsel %vm334_vm0, %v15992_v29, 0.0  ;;  %v7453_v62 = vmul.f32 %v15992_v29, %v15992_v29  ;;  %v15998_v21 = vpop.f32.mrb[17].mxu1 }
 0x6c0   : > { %v7388_v33 = vadd.f32 %v7387_v1, %v7386_v26  ;;  %v7454_v14 = vmul.f32 %v15998_v21, %v15998_v21  ;;  %v7389_v9 = vsel %vm334_vm0, %v15998_v21, 0.0 }
 0x6c1   : > { %v7486_v59 = vsel %vm334_vm0, %v7453_v62, 0.0  ;;  %v16005_v8 = vpop.f32.mrb[18].mxu0 }
 0x6c2   : > { %v7487_v55 = vadd.f32 %v7486_v59, %v7485_v51  ;;  %v7390_v20 = vadd.f32 %v7389_v9, %v7388_v33  ;;  %v7391_v36 = vsel %vm334_vm0, %v16005_v8, 0.0  ;;  %v16009_v18 = vpop.f32.mrb[19].mxu0  ;;  %v7488_v54 = vsel %vm334_vm0, %v7454_v14, 0.0 }
 0x6c3   : > { %v7455_v17 = vmul.f32 %v16005_v8, %v16005_v8  ;;  %v7456_v24 = vmul.f32 %v16009_v18, %v16009_v18  ;;  %v7393_v30 = vsel %vm334_vm0, %v16009_v18, 0.0 }
 0x6c4   : > { %v7489_v34 = vadd.f32 %v7488_v54, %v7487_v55  ;;  %v7392_v10 = vadd.f32 %v7391_v36, %v7390_v20  ;;  %v16016_v39 = vpop.f32.mrb[18].mxu1 }
 0x6c5   : > { %v7490_v22 = vsel %vm334_vm0, %v7455_v17, 0.0  ;;  %v7395_v5 = vsel %vm334_vm0, %v16016_v39, 0.0  ;;  %v7457_v41 = vmul.f32 %v16016_v39, %v16016_v39  ;;  %v16025_v13 = vpop.f32.mrb[19].mxu1  ;;  %v7492_v11 = vsel %vm334_vm0, %v7456_v24, 0.0 }
 0x6c6   : > { %v7491_v46 = vadd.f32 %v7490_v22, %v7489_v34  ;;  %v7394_v40 = vadd.f32 %v7393_v30, %v7392_v10  ;;  %v7458_v2 = vmul.f32 %v16025_v13, %v16025_v13  ;;  %v7397_v4 = vsel %vm334_vm0, %v16025_v13, 0.0 }
 0x6c7   : > { %v7494_v47 = vsel %vm334_vm0, %v7457_v41, 0.0 }
 0x6c8   : > { %v7493_v6 = vadd.f32 %v7492_v11, %v7491_v46  ;;  %v7396_v42 = vadd.f32 %v7395_v5, %v7394_v40  ;;  %v7496_v3 = vsel %vm334_vm0, %v7458_v2, 0.0 }
 0x6ca   : > { %v7495_v60 = vadd.f32 %v7494_v47, %v7493_v6  ;;  %v7398_v63 = vadd.f32 %v7397_v4, %v7396_v42 }
 0x6cc   : > { %v7497_v43 = vadd.f32 %v7496_v3, %v7495_v60 }
 0x6d2   : > { %v16034_v61 = vpop.f32.mrb[20].mxu0 }
 0x6d3   : > { %v7399_v16 = vsel %vm334_vm0, %v16034_v61, 0.0  ;;  %v7459_v57 = vmul.f32 %v16034_v61, %v16034_v61  ;;  %v16040_v32 = vpop.f32.mrb[21].mxu0 }
 0x6d4   : > { %v7400_v53 = vadd.f32 %v7399_v16, %v7398_v63  ;;  %v7460_v25 = vmul.f32 %v16040_v32, %v16040_v32  ;;  %v7401_v52 = vsel %vm334_vm0, %v16040_v32, 0.0 }
 0x6d5   : > { %v7498_v48 = vsel %vm334_vm0, %v7459_v57, 0.0 }
 0x6d6   : > { %v7499_v27 = vadd.f32 %v7498_v48, %v7497_v43  ;;  %v7402_v44 = vadd.f32 %v7401_v52, %v7400_v53  ;;  %v7500_v50 = vsel %vm334_vm0, %v7460_v25, 0.0 }
 0x6d8   : > { %v7501_v49 = vadd.f32 %v7500_v50, %v7499_v27 }
 0x6de   : > { %v16048_v45 = vpop.f32.mrb[20].mxu1 }
 0x6df   : > { %v7403_v56 = vsel %vm334_vm0, %v16048_v45, 0.0  ;;  %v7461_v37 = vmul.f32 %v16048_v45, %v16048_v45  ;;  %v16054_v7 = vpop.f32.mrb[21].mxu1 }
 0x6e0   : > { %v7404_v38 = vadd.f32 %v7403_v56, %v7402_v44  ;;  %v7462_v28 = vmul.f32 %v16054_v7, %v16054_v7  ;;  %v7405_v12 = vsel %vm334_vm0, %v16054_v7, 0.0 }
 0x6e1   : > { %v7502_v15 = vsel %vm334_vm0, %v7461_v37, 0.0 }
 0x6e2   : > { %v7503_v35 = vadd.f32 %v7502_v15, %v7501_v49  ;;  %v7406_v23 = vadd.f32 %v7405_v12, %v7404_v38  ;;  %v7504_v58 = vsel %vm334_vm0, %v7462_v28, 0.0 }
 0x6e4   : > { %v7505_v26 = vadd.f32 %v7504_v58, %v7503_v35 }
 0x6f4   : > { %v16062_v31 = vpop.f32.mrb[22].mxu0 }
 0x6f5   : > { %v7407_v51 = vsel %vm334_vm0, %v16062_v31, 0.0  ;;  %v7463_v1 = vmul.f32 %v16062_v31, %v16062_v31  ;;  %v16068_v62 = vpop.f32.mrb[23].mxu0 }
 0x6f6   : > { %v7408_v33 = vadd.f32 %v7407_v51, %v7406_v23  ;;  %v7464_v14 = vmul.f32 %v16068_v62, %v16068_v62  ;;  %v7409_v9 = vsel %vm334_vm0, %v16068_v62, 0.0 }
 0x6f7   : > { %v7506_v59 = vsel %vm334_vm0, %v7463_v1, 0.0 }
 0x6f8   : > { %v7507_v55 = vadd.f32 %v7506_v59, %v7505_v26  ;;  %v7410_v20 = vadd.f32 %v7409_v9, %v7408_v33  ;;  %v7508_v36 = vsel %vm334_vm0, %v7464_v14, 0.0 }
 0x6fa   : > { %v7509_v54 = vadd.f32 %v7508_v36, %v7507_v55 }
 0x6fb   : > { %v16076_v17 = vpop.f32.mrb[22].mxu1 }
 0x6fc   : > { %v7411_v24 = vsel %vm334_vm0, %v16076_v17, 0.0  ;;  %v7465_v34 = vmul.f32 %v16076_v17, %v16076_v17  ;;  %v16082_v10 = vpop.f32.mrb[23].mxu1 }
 0x6fd   : > { %v7412_v22 = vadd.f32 %v7411_v24, %v7410_v20  ;;  %v7466_v30 = vmul.f32 %v16082_v10, %v16082_v10  ;;  %v7413_v41 = vsel %vm334_vm0, %v16082_v10, 0.0 }
 0x6fe   : > { %v7510_v5 = vsel %vm334_vm0, %v7465_v34, 0.0 }
 0x6ff   : > { %v7511_v46 = vadd.f32 %v7510_v5, %v7509_v54  ;;  %v7414_v40 = vadd.f32 %v7413_v41, %v7412_v22  ;;  %v7512_v11 = vsel %vm334_vm0, %v7466_v30, 0.0 }
 0x701   : > { %v7513_v47 = vadd.f32 %v7512_v11, %v7511_v46 }
 0x708   : > { %v16090_v2 = vpop.f32.mrb[24].mxu0 }
 0x709   : > { %v7415_v6 = vsel %vm334_vm0, %v16090_v2, 0.0  ;;  %v7467_v42 = vmul.f32 %v16090_v2, %v16090_v2  ;;  %v16096_v4 = vpop.f32.mrb[25].mxu0 }
 0x70a   : > { %v7416_v60 = vadd.f32 %v7415_v6, %v7414_v40  ;;  %v7468_v63 = vmul.f32 %v16096_v4, %v16096_v4  ;;  %v7417_v43 = vsel %vm334_vm0, %v16096_v4, 0.0 }
 0x70b   : > { %v7514_v3 = vsel %vm334_vm0, %v7467_v42, 0.0 }
 0x70c   : > { %v7515_v16 = vadd.f32 %v7514_v3, %v7513_v47  ;;  %v7418_v57 = vadd.f32 %v7417_v43, %v7416_v60  ;;  %v7516_v53 = vsel %vm334_vm0, %v7468_v63, 0.0 }
 0x70e   : > { %v7517_v25 = vadd.f32 %v7516_v53, %v7515_v16  ;;  %v16104_v48 = vpop.f32.mrb[24].mxu1 }
 0x70f   : > { %v7419_v52 = vsel %vm334_vm0, %v16104_v48, 0.0  ;;  %v7469_v27 = vmul.f32 %v16104_v48, %v16104_v48  ;;  %v16110_v44 = vpop.f32.mrb[25].mxu1 }
 0x710   : > { %v7420_v50 = vadd.f32 %v7419_v52, %v7418_v57  ;;  %v7470_v49 = vmul.f32 %v16110_v44, %v16110_v44  ;;  %v7421_v37 = vsel %vm334_vm0, %v16110_v44, 0.0 }
 0x711   : > { %v7518_v56 = vsel %vm334_vm0, %v7469_v27, 0.0 }
 0x712   : > { %v7519_v38 = vadd.f32 %v7518_v56, %v7517_v25  ;;  %v7422_v28 = vadd.f32 %v7421_v37, %v7420_v50  ;;  %v7520_v15 = vsel %vm334_vm0, %v7470_v49, 0.0 }
 0x714   : > { %v7521_v12 = vadd.f32 %v7520_v15, %v7519_v38 }
 0x723   : > { %v16118_v35 = vpop.f32.mrb[26].mxu0 }
 0x724   : > { %v7423_v23 = vsel %vm334_vm0, %v16118_v35, 0.0  ;;  %v7471_v58 = vmul.f32 %v16118_v35, %v16118_v35  ;;  %v16124_v26 = vpop.f32.mrb[27].mxu0 }
 0x725   : > { %v7424_v51 = vadd.f32 %v7423_v23, %v7422_v28  ;;  %v7472_v1 = vmul.f32 %v16124_v26, %v16124_v26  ;;  %v7425_v14 = vsel %vm334_vm0, %v16124_v26, 0.0 }
 0x726   : > { %v7522_v33 = vsel %vm334_vm0, %v7471_v58, 0.0 }
 0x727   : > { %v7523_v59 = vadd.f32 %v7522_v33, %v7521_v12  ;;  %v7426_v9 = vadd.f32 %v7425_v14, %v7424_v51  ;;  %v7524_v55 = vsel %vm334_vm0, %v7472_v1, 0.0 }
 0x729   : > { %v7525_v20 = vadd.f32 %v7524_v55, %v7523_v59 }
 0x730   : > { %v16132_v36 = vpop.f32.mrb[26].mxu1 }
 0x731   : > { %v7427_v54 = vsel %vm334_vm0, %v16132_v36, 0.0  ;;  %v7473_v24 = vmul.f32 %v16132_v36, %v16132_v36  ;;  %v16138_v34 = vpop.f32.mrb[27].mxu1 }
 0x732   : > { %v7428_v22 = vadd.f32 %v7427_v54, %v7426_v9  ;;  %v7474_v30 = vmul.f32 %v16138_v34, %v16138_v34  ;;  %v7429_v41 = vsel %vm334_vm0, %v16138_v34, 0.0 }
 0x733   : > { %v7526_v5 = vsel %vm334_vm0, %v7473_v24, 0.0 }
 0x734   : > { %v7527_v46 = vadd.f32 %v7526_v5, %v7525_v20  ;;  %v7430_v40 = vadd.f32 %v7429_v41, %v7428_v22  ;;  %v7528_v11 = vsel %vm334_vm0, %v7474_v30, 0.0 }
 0x736   : > { %v7529_v47 = vadd.f32 %v7528_v11, %v7527_v46 }
 0x73f   : > { %v16146_v6 = vpop.f32.mrb[28].mxu0 }
 0x740   : > { %v7431_v42 = vsel %vm334_vm0, %v16146_v6, 0.0  ;;  %v7475_v60 = vmul.f32 %v16146_v6, %v16146_v6  ;;  %v16152_v63 = vpop.f32.mrb[29].mxu0 }
 0x741   : > { %v7432_v3 = vadd.f32 %v7431_v42, %v7430_v40  ;;  %v7476_v43 = vmul.f32 %v16152_v63, %v16152_v63  ;;  %v7433_v57 = vsel %vm334_vm0, %v16152_v63, 0.0 }
 0x742   : > { %v7530_v16 = vsel %vm334_vm0, %v7475_v60, 0.0  ;;  %v16159_v53 = vpop.f32.mrb[28].mxu1 }
 0x743   : > { %v7531_v25 = vadd.f32 %v7530_v16, %v7529_v47  ;;  %v7434_v52 = vadd.f32 %v7433_v57, %v7432_v3  ;;  %v7435_v27 = vsel %vm334_vm0, %v16159_v53, 0.0  ;;  %v16163_v50 = vpop.f32.mrb[29].mxu1  ;;  %v7532_v49 = vsel %vm334_vm0, %v7476_v43, 0.0 }
 0x744   : > { %v7477_v56 = vmul.f32 %v16159_v53, %v16159_v53  ;;  %v7478_v37 = vmul.f32 %v16163_v50, %v16163_v50  ;;  %v7437_v12 = vsel %vm334_vm0, %v16163_v50, 0.0 }
 0x745   : > { %v7533_v38 = vadd.f32 %v7532_v49, %v7531_v25  ;;  %v7436_v28 = vadd.f32 %v7435_v27, %v7434_v52 }
 0x746   : > { %v7534_v15 = vsel %vm334_vm0, %v7477_v56, 0.0  ;;  %v7536_v51 = vsel %vm334_vm0, %v7478_v37, 0.0 }
 0x747   : > { %v7535_v23 = vadd.f32 %v7534_v15, %v7533_v38  ;;  %v7438_v58 = vadd.f32 %v7437_v12, %v7436_v28 }
 0x749   : > { %v7537_v1 = vadd.f32 %v7536_v51, %v7535_v23 }
 0x752   : > { %v16174_v33 = vpop.f32.mrb[30].mxu0 }
 0x753   : > { %v7439_v14 = vsel %vm334_vm0, %v16174_v33, 0.0  ;;  %v7479_v59 = vmul.f32 %v16174_v33, %v16174_v33  ;;  %v16180_v9 = vpop.f32.mrb[31].mxu0 }
 0x754   : > { %v7440_v55 = vadd.f32 %v7439_v14, %v7438_v58  ;;  %v7480_v20 = vmul.f32 %v16180_v9, %v16180_v9  ;;  %v7441_v24 = vsel %vm334_vm0, %v16180_v9, 0.0 }
 0x755   : > { %v7538_v54 = vsel %vm334_vm0, %v7479_v59, 0.0 }
 0x756   : > { %v7539_v22 = vadd.f32 %v7538_v54, %v7537_v1  ;;  %v7442_v30 = vadd.f32 %v7441_v24, %v7440_v55  ;;  %v7540_v5 = vsel %vm334_vm0, %v7480_v20, 0.0 }
 0x758   : > { %v7541_v41 = vadd.f32 %v7540_v5, %v7539_v22 }
 0x760   : > { %v16188_v46 = vpop.f32.mrb[30].mxu1 }
 0x761   : > { %v7443_v40 = vsel %vm334_vm0, %v16188_v46, 0.0  ;;  %v7481_v11 = vmul.f32 %v16188_v46, %v16188_v46  ;;  %v16194_v47 = vpop.f32.mrb[31].mxu1 }
 0x762   : > { %v7444_v42 = vadd.f32 %v7443_v40, %v7442_v30  ;;  %v7482_v60 = vmul.f32 %v16194_v47, %v16194_v47  ;;  %v7445_v43 = vsel %vm334_vm0, %v16194_v47, 0.0 }
 0x763   : > { %v7542_v3 = vsel %vm334_vm0, %v7481_v11, 0.0 }
 0x764   : > { %v7446_v16 = vadd.f32 %v7445_v43, %v7444_v42  ;;  %v7543_v57 = vadd.f32 %v7542_v3, %v7541_v41  ;;  %v7544_v25 = vsel %vm334_vm0, %v7482_v60, 0.0 }
 0x766   : > { %7447 = vadd.xlane.f32.xlu0 %v7446_v16  ;;  %v7545_v52 = vadd.f32 %v7544_v25, %v7543_v57 }
 0x768   : > { %7546 = vadd.xlane.f32.xlu1 %v7545_v52 }
 0x7f3   : > { %v7448_v27 = vpop.xlane.xlu0 %7447 }
 0x7f4   : > { %v16202_v49 = vmul.f32 0.00024414063, %v7448_v27 }
 0x7f5   : > { %v7547_v56 = vpop.xlane.xlu1 %7546 }
 0x7f6   : > { %v7548_v37 = vmul.f32 0.00024414063, %v7547_v56  ;;  %v7549_v38 = vmul.f32 %v16202_v49, %v16202_v49  ;;  %v7552_v23 = vsub.f32 %v15978_v19, %v16202_v49  ;;  %v7553_v58 = vsub.f32 %v15984_v0, %v16202_v49 }
 0x7f7   : > { %v7554_v51 = vsub.f32 %v15992_v29, %v16202_v49  ;;  %v7555_v1 = vsub.f32 %v15998_v21, %v16202_v49  ;;  %v7556_v14 = vsub.f32 %v16005_v8, %v16202_v49  ;;  %v7557_v59 = vsub.f32 %v16009_v18, %v16202_v49 }
 0x7f8   : > { %v7550_v28 = vsub.f32 %v7548_v37, %v7549_v38  ;;  %v7558_v55 = vsub.f32 %v16016_v39, %v16202_v49  ;;  %v7559_v19 = vsub.f32 %v16025_v13, %v16202_v49  ;;  %v7560_v0 = vsub.f32 %v16034_v61, %v16202_v49 }
 0x7f9   : > { %v7561_v29 = vsub.f32 %v16040_v32, %v16202_v49  ;;  %v7562_v21 = vsub.f32 %v16048_v45, %v16202_v49  ;;  %v7563_v8 = vsub.f32 %v16054_v7, %v16202_v49  ;;  %v7564_v18 = vsub.f32 %v16062_v31, %v16202_v49 }
 0x7fa   : > { %v7551_v15 = vmax.f32 %v7550_v28, 0.0  ;;  %v7565_v39 = vsub.f32 %v16068_v62, %v16202_v49  ;;  %v7566_v13 = vsub.f32 %v16076_v17, %v16202_v49  ;;  %v7567_v61 = vsub.f32 %v16082_v10, %v16202_v49  ;;  %v7618_v28 = vld [vmem:[%s8636_s15] sm:$0xff] }
 0x7fb   : > { %v7568_v32 = vsub.f32 %v16090_v2, %v16202_v49  ;;  %v7569_v45 = vsub.f32 %v16096_v4, %v16202_v49  ;;  %v7570_v7 = vsub.f32 %v16104_v48, %v16202_v49  ;;  %v7571_v31 = vsub.f32 %v16110_v44, %v16202_v49 }
 0x7fc   : > { %v7584_v12 = vadd.f32 1e-05, %v7551_v15  ;;  %v7572_v62 = vsub.f32 %v16118_v35, %v16202_v49  ;;  %v7573_v17 = vsub.f32 %v16124_v26, %v16202_v49  ;;  %v7574_v10 = vsub.f32 %v16132_v36, %v16202_v49 }
 0x7fd   : > { %v7575_v2 = vsub.f32 %v16138_v34, %v16202_v49  ;;  %v7576_v4 = vsub.f32 %v16146_v6, %v16202_v49  ;;  %v7577_v48 = vsub.f32 %v16152_v63, %v16202_v49  ;;  %v7578_v44 = vsub.f32 %v16159_v53, %v16202_v49 }
 0x7fe   : > { %8280 = vrsqrt.f32 %v7584_v12  ;;  %v7579_v35 = vsub.f32 %v16163_v50, %v16202_v49  ;;  %v7580_v26 = vsub.f32 %v16174_v33, %v16202_v49  ;;  %v7581_v36 = vsub.f32 %v16180_v9, %v16202_v49 }
 0x7ff   : > { %v7582_v34 = vsub.f32 %v16188_v46, %v16202_v49  ;;  %v7583_v6 = vsub.f32 %v16194_v47, %v16202_v49 }
 0x808   : > { %v8281_v20 = vpop.eup %8280 }
 0x809   : > { %v16270_v63 = vmul.f32 %v8281_v20, %v7552_v23  ;;  %v16272_v54 = vmul.f32 %v8281_v20, %v7553_v58  ;;  %v16274_v53 = vmul.f32 %v8281_v20, %v7554_v51  ;;  %v16276_v50 = vmul.f32 %v8281_v20, %v7555_v1  ;;  %v7619_v51 = vld [vmem:[%s8636_s15 + $0x8] sm:$0xff]  ;;  %v7620_v1 = vld [vmem:[%s8636_s15 + $0x10] sm:$0xff] }
 0x80a   : > { %v16278_v24 = vmul.f32 %v8281_v20, %v7556_v14  ;;  %v7591_v33 = vmul.f32 %v8281_v20, %v7557_v59  ;;  %v7592_v22 = vmul.f32 %v8281_v20, %v7558_v55  ;;  %v7593_v30 = vmul.f32 %v8281_v20, %v7559_v19  ;;  %v7621_v14 = vld [vmem:[%s8636_s15 + $0x18] sm:$0xff] }
 0x80b   : > { %v16280_v9 = vmul.f32 %v8281_v20, %v7560_v0  ;;  %v16282_v5 = vmul.f32 %v8281_v20, %v7561_v29  ;;  %v16284_v41 = vmul.f32 %v8281_v20, %v7562_v21  ;;  %v7597_v46 = vmul.f32 %v8281_v20, %v7563_v8  ;;  %v7622_v29 = vld [vmem:[%s8636_s15 + $0x20] sm:$0xff]  ;;  %v7623_v21 = vld [vmem:[%s8636_s15 + $0x28] sm:$0xff]  ;;  %v7624_v8 = vld [vmem:[%s8636_s15 + $0x30] sm:$0xff] }
 0x80c   : > { %v7598_v40 = vmul.f32 %v8281_v20, %v7564_v18  ;;  %v7599_v11 = vmul.f32 %v8281_v20, %v7565_v39  ;;  %v7600_v47 = vmul.f32 %v8281_v20, %v7566_v13  ;;  %v7601_v42 = vmul.f32 %v8281_v20, %v7567_v61 }
 0x80d   : > { %v7602_v60 = vmul.f32 %v8281_v20, %v7568_v32  ;;  %v7603_v3 = vmul.f32 %v8281_v20, %v7569_v45  ;;  %v7604_v43 = vmul.f32 %v8281_v20, %v7570_v7  ;;  %v7605_v16 = vmul.f32 %v8281_v20, %v7571_v31  ;;  %v7625_v32 = vld [vmem:[%s8636_s15 + $0x38] sm:$0xff]  ;;  %v7626_v45 = vld [vmem:[%s8636_s15 + $0x40] sm:$0xff]  ;;  %v7627_v7 = vld [vmem:[%s8636_s15 + $0x48] sm:$0xff] }
 0x80e   : > { %v7606_v57 = vmul.f32 %v8281_v20, %v7572_v62  ;;  %v7607_v25 = vmul.f32 %v8281_v20, %v7573_v17  ;;  %v7608_v52 = vmul.f32 %v8281_v20, %v7574_v10  ;;  %v7609_v27 = vmul.f32 %v8281_v20, %v7575_v2  ;;  %v7628_v2 = vld [vmem:[%s8636_s15 + $0x50] sm:$0xff] }
 0x80f   : > { %v7610_v49 = vmul.f32 %v8281_v20, %v7576_v4  ;;  %v7611_v56 = vmul.f32 %v8281_v20, %v7577_v48  ;;  %v7612_v37 = vmul.f32 %v8281_v20, %v7578_v44  ;;  %v7613_v38 = vmul.f32 %v8281_v20, %v7579_v35  ;;  %v7629_v4 = vld [vmem:[%s8636_s15 + $0x58] sm:$0xff]  ;;  %v7630_v48 = vld [vmem:[%s8636_s15 + $0x60] sm:$0xff] }
 0x810   : > { %v7614_v15 = vmul.f32 %v8281_v20, %v7580_v26  ;;  %v7615_v12 = vmul.f32 %v8281_v20, %v7581_v36  ;;  %v7616_v23 = vmul.f32 %v8281_v20, %v7582_v34  ;;  %v7617_v58 = vmul.f32 %v8281_v20, %v7583_v6  ;;  %v7631_v36 = vld [vmem:[%s8636_s15 + $0x68] sm:$0xff]  ;;  %v7632_v34 = vld [vmem:[%s8636_s15 + $0x70] sm:$0xff]  ;;  %v7633_v6 = vld [vmem:[%s8636_s15 + $0x78] sm:$0xff]  ;;  %s16327_s15 = scalar_lea.hbm %s16385_s6, %s7938_s16 }
 0x811   : > { %v7666_v59 = vcombine.low %v16270_v63, %v16272_v54  ;;  %v7667_v55 = vcombine.low %v16274_v53, %v16276_v50  ;;  %v7668_v19 = vcombine.low %v16278_v24, %v7591_v33  ;;  %v7669_v0 = vcombine.low %v7592_v22, %v7593_v30 }
 0x812   : > { %v7670_v18 = vcombine.low %v16280_v9, %v16282_v5  ;;  %v7671_v39 = vcombine.low %v16284_v41, %v7597_v46  ;;  %v7672_v13 = vcombine.low %v7598_v40, %v7599_v11  ;;  %v7673_v61 = vcombine.low %v7600_v47, %v7601_v42 }
 0x813   : > { %v7674_v31 = vcombine.low %v7602_v60, %v7603_v3  ;;  %v7675_v62 = vcombine.low %v7604_v43, %v7605_v16  ;;  %v7676_v17 = vcombine.low %v7606_v57, %v7607_v25  ;;  %v7677_v10 = vcombine.low %v7608_v52, %v7609_v27 }
 0x814   : > { %v7678_v44 = vcombine.low %v7610_v49, %v7611_v56  ;;  %v7679_v35 = vcombine.low %v7612_v37, %v7613_v38  ;;  %v7680_v20 = vcombine.low %v7614_v15, %v7615_v12  ;;  %v7681_v26 = vcombine.low %v7616_v23, %v7617_v58 }
 0x815   : > { %v7698_v63 = vadd.f32 %v7666_v59, %v7618_v28  ;;  %v7699_v54 = vadd.f32 %v7667_v55, %v7619_v51  ;;  %v7700_v53 = vadd.f32 %v7668_v19, %v7620_v1  ;;  %v7701_v50 = vadd.f32 %v7669_v0, %v7621_v14 }
 0x816   : > { %v7702_v24 = vadd.f32 %v7670_v18, %v7622_v29  ;;  %v7703_v33 = vadd.f32 %v7671_v39, %v7623_v21  ;;  %v7704_v22 = vadd.f32 %v7672_v13, %v7624_v8  ;;  %v7705_v30 = vadd.f32 %v7673_v61, %v7625_v32 }
 0x817   : > { %v7706_v9 = vadd.f32 %v7674_v31, %v7626_v45  ;;  %v7707_v5 = vadd.f32 %v7675_v62, %v7627_v7  ;;  %v7708_v41 = vadd.f32 %v7676_v17, %v7628_v2  ;;  %v7709_v46 = vadd.f32 %v7677_v10, %v7629_v4  ;;  %7714 = vst [vmem:[%s16313_s13] sm:$0xff] %v7698_v63 }
 0x818   : > { %7715 = vst [vmem:[%s16313_s13 + $0x8] sm:$0xff] %v7699_v54  ;;  %7716 = vst [vmem:[%s16313_s13 + $0x10] sm:$0xff] %v7700_v53  ;;  %v7710_v40 = vadd.f32 %v7678_v44, %v7630_v48  ;;  %v7711_v11 = vadd.f32 %v7679_v35, %v7631_v36  ;;  %v7712_v47 = vadd.f32 %v7680_v20, %v7632_v34 }
 0x819   : > { %7717 = vst [vmem:[%s16313_s13 + $0x18] sm:$0xff] %v7701_v50  ;;  %v7713_v42 = vadd.f32 %v7681_v26, %v7633_v6  ;;  %7718 = vst [vmem:[%s16313_s13 + $0x20] sm:$0xff] %v7702_v24 }
 0x81a   : > { %7719 = vst [vmem:[%s16313_s13 + $0x28] sm:$0xff] %v7703_v33  ;;  %7720 = vst [vmem:[%s16313_s13 + $0x30] sm:$0xff] %v7704_v22 }
 0x81b   : > { %7721 = vst [vmem:[%s16313_s13 + $0x38] sm:$0xff] %v7705_v30  ;;  %7722 = vst [vmem:[%s16313_s13 + $0x40] sm:$0xff] %v7706_v9 }
 0x81c   : > { %7723 = vst [vmem:[%s16313_s13 + $0x48] sm:$0xff] %v7707_v5  ;;  %7724 = vst [vmem:[%s16313_s13 + $0x50] sm:$0xff] %v7708_v41 }
 0x81d   : > { %7725 = vst [vmem:[%s16313_s13 + $0x58] sm:$0xff] %v7709_v46  ;;  %7726 = vst [vmem:[%s16313_s13 + $0x60] sm:$0xff] %v7710_v40 }
 0x81e   : > { %7727 = vst [vmem:[%s16313_s13 + $0x68] sm:$0xff] %v7711_v11  ;;  %7728 = vst [vmem:[%s16313_s13 + $0x70] sm:$0xff] %v7712_v47 }
 0x81f   : > { %7729 = vst [vmem:[%s16313_s13 + $0x78] sm:$0xff] %v7713_v42 }
 0x820   : > { %8356 = shalt.err (!%p8353_p10)
}
 0x821   : > { %s8357_s20 = scalar_lea.hbm %s16327_s15, 2048  ;;  %s8361_s18 = scalar_lea.hbm %s16385_s6, 4096 }
 0x822   : > { %p8358_p1 = scmp.ne.s32.totalorder %s16327_s15, %s8357_s20  ;;  %p8362_p3 = scmp.lt.u32.totalorder %s16327_s15, %s16385_s6 }
 0x823   : > { %p8363_p11 = scmp.lt.u32.totalorder %s8361_s18, %s8357_s20  ;;  %p8365_p6 = scmp.lt.u32.totalorder %s8357_s20, %s16327_s15 }
 0x824   : > { %p8359_p2 = pnand %p8358_p1, %p8581_p8 }
 0x825   : > { %p8364_p4 = por %p8363_p11, %p8362_p3 }
 0x826   : > { %p8360_p7 = pneg %p8359_p2 }
 0x827   : > { %p8366_p9 = por %p8365_p6, %p8364_p4 }
 0x829   : > { %p8367_p12 = pnand %p8366_p9, %p8360_p7 }
 0x82b   : > { %8370 = shalt.err (!%p8367_p12)
}
 0x82c   : > { %7945 = dma.vmem_to_hbm [thread:$0]  (%p8581_p8), %s16329_s17, 2048, %s16327_s15, %s7731_s11  }
 0x82d PF: > { %s7757_s13 = sand.u32 1, %s8401_s21   ;;  %p18807_p13 = scmp.ne.s32.totalorder %s17085_s28, 0 }
 0x82e   : > { %p18808_p0 = scmp.ge.s32.totalorder %s8413_s24, 2  ;;  %s7758_s25 = scalar_lea.sflag [#allocation6], %s7757_s13 }
 0x830   : > { %p7956_p5 = pnand %p18808_p0, %p18807_p13 }
 0x832   : > { %8396 = dma.done.wait (!%p7956_p5), %s7758_s25, 2048  }
 0x833   : > { %8398 = vsyncadd (!%p7956_p5), %s7758_s25, 4294965248  ;;  %p20_p10 = scmp.ge.s32.totalorder %s8537_s8, 4   ;;  %s18809_s21 = smov %s8405_s22 }
 0x834   : > { %s18810_s22 = smov %s8409_s23  ;;  %s18811_s23 = smov %s8573_s10 }
 0x835   : > { %s18812_s24 = smov %s8537_s8  ;;  %22 = sbr.rel (!%p20_p10) target bundleno = 6 (0x6), region = 93 }
 0x83c   :  { %7763 = vsyncpa [#allocation5], 1 }
 0x83d   :  { %7765 = vsyncpa [#allocation5 + $0x1], 1 }
 0x83e   :  { %7766 = vsyncpa [#allocation8], 1 }
 0x83f   :  { %7767 = vsyncpa [#allocation6], 1 }
 0x840   :  { %7769 = vsyncpa [#allocation6 + $0x1], 1 }

</bundles_post_ra>
